<compile_context>
chip_gen: v6e
topology: v6e:2x2x1
jax: 0.10.0
libtpu: 0.0.40
codegen_flags: <defaults>
</compile_context>

<pallas_src>
import math
import jax
import jax.numpy as jnp
from jax.experimental import pallas as pl
from jax.experimental.pallas import tpu as pltpu

_NEG_SLOPE = 0.01  # nn.LeakyReLU() default


def _ss_feat_kernel(x_cf_ref, x_cl_ref, w1_ref, b1_ref, w2_ref, b2_ref,
                    w3t_ref, b3_ref, o_ref, pad_ref, col_ref):
    """Fused 3x(conv3x3+LeakyReLU) + channel concat; one batch element per grid step.

    x_cf_ref : (1, C, H*W)   input, channels-first flattened (for the concat copy)
    x_cl_ref : (1, H, W, C)  same input, channels-last (seeds the conv buffer)
    w1_ref   : (9F, F) bf16  layer-1 weights, Cin zero-padded C->F
    b1_ref   : (1, F)  f32
    w2_ref   : (9F, F) bf16
    b2_ref   : (1, F)  f32
    w3t_ref  : (OF, 9F) bf16 layer-3 weights, transposed
    b3_ref   : (OF, 1) f32
    o_ref    : (1, C+OF, H*W)
    pad_ref  : (H+2, W+2, F) f32 scratch — zero-padded channels-last activation
    col_ref  : (H*W, 9F)     f32 scratch — im2col patches
    """
    H = pad_ref.shape[0] - 2
    W = pad_ref.shape[1] - 2
    F = pad_ref.shape[2]
    HW = H * W
    C = x_cf_ref.shape[1]
    OF = w3t_ref.shape[0]

    # -- concat, part 1: pass the input channels straight through (exact f32).
    o_ref[0, 0:C, :] = x_cf_ref[0]

    # -- in-kernel "same" zero padding: memset once; the border (and the unused
    #    layer-1 channels C..F-1) stay zero, the interior is overwritten below.
    pad_ref[...] = jnp.zeros_like(pad_ref)
    pad_ref[1:H + 1, 1:W + 1, 0:C] = x_cl_ref[0]

    def build_patches():
        # im2col: column block t = (dy*3+dx) holds the (H, W, F) window shifted
        # by (dy, dx) -> one (HW, 9F) operand for a single K=9F MXU dot.
        for t in range(9):
            dy, dx = t // 3, t % 3
            tap = pad_ref[dy:dy + H, dx:dx + W, :]            # (H, W, F)
            col_ref[:, t * F:(t + 1) * F] = tap.reshape(HW, F)
        return col_ref[...].astype(jnp.bfloat16)              # (HW, 9F)

    def lrelu(v):
        return jnp.where(v > 0, v, _NEG_SLOPE * v)

    # -- layer 1 -----------------------------------------------------------
    p = build_patches()
    a = jnp.dot(p, w1_ref[...], preferred_element_type=jnp.float32)
    a = lrelu(a + b1_ref[...])                                 # (HW, F) f32
    pad_ref[1:H + 1, 1:W + 1, :] = a.reshape(H, W, F)

    # -- layer 2 -----------------------------------------------------------
    p = build_patches()
    a = jnp.dot(p, w2_ref[...], preferred_element_type=jnp.float32)
    a = lrelu(a + b2_ref[...])
    pad_ref[1:H + 1, 1:W + 1, :] = a.reshape(H, W, F)

    # -- layer 3: A @ B^T so the result lands as (OF, HW) -> lane-dense store.
    p = build_patches()
    a3 = jax.lax.dot_general(w3t_ref[...], p, (((1,), (1,)), ((), ())),
                             preferred_element_type=jnp.float32)   # (OF, HW)
    a3 = lrelu(a3 + b3_ref[...])
    o_ref[0, C:C + OF, :] = a3


def prepare_params(params, num_filters):
    """Flatten / zero-pad / transpose the conv weights for the fused kernel (done once)."""
    (w1, b1), (w2, b2), (w3, b3) = params
    C = w1.shape[2]
    F = num_filters
    OF = w3.shape[3]
    w1p = jnp.pad(w1, ((0, 0), (0, 0), (0, F - C), (0, 0)))     # Cin: C -> F (zeros)
    w1f = w1p.reshape(9 * F, F).astype(jnp.bfloat16)
    w2f = w2.reshape(9 * F, F).astype(jnp.bfloat16)
    w3t = w3.reshape(9 * F, OF).T.astype(jnp.bfloat16)          # (OF, 9F)
    return (w1f, b1.reshape(1, F).astype(jnp.float32),
            w2f, b2.reshape(1, F).astype(jnp.float32),
            w3t, b3.reshape(OF, 1).astype(jnp.float32))


def ss_feat_extract(x_nchw, prepped):
    """Forward pass of SSFeatExtract. Input/output NCHW, like the PyTorch module."""
    B, C, H, W = x_nchw.shape
    w1f, b1, w2f, b2, w3t, b3 = prepped
    F = w1f.shape[1]
    OF = w3t.shape[0]
    HW = H * W

    x_cf = x_nchw.reshape(B, C, HW)                  # free reshape (NCHW, HW flat)
    x_cl = jnp.transpose(x_nchw, (0, 2, 3, 1))       # tiny (B*H*W*C*4 bytes) helper copy

    out = pl.pallas_call(
        _ss_feat_kernel,
        out_shape=jax.ShapeDtypeStruct((B, C + OF, HW), jnp.float32),
        grid_spec=pltpu.PrefetchScalarGridSpec(
            num_scalar_prefetch=0,
            grid=(B,),
            in_specs=[
                pl.BlockSpec((1, C, HW), lambda i: (i, 0, 0)),
                pl.BlockSpec((1, H, W, C), lambda i: (i, 0, 0, 0)),
                pl.BlockSpec((9 * F, F), lambda i: (0, 0)),
                pl.BlockSpec((1, F), lambda i: (0, 0)),
                pl.BlockSpec((9 * F, F), lambda i: (0, 0)),
                pl.BlockSpec((1, F), lambda i: (0, 0)),
                pl.BlockSpec((OF, 9 * F), lambda i: (0, 0)),
                pl.BlockSpec((OF, 1), lambda i: (0, 0)),
            ],
            out_specs=pl.BlockSpec((1, C + OF, HW), lambda i: (i, 0, 0)),
            scratch_shapes=[
                pltpu.VMEM((H + 2, W + 2, F), jnp.float32),   # padded activation
                pltpu.VMEM((HW, 9 * F), jnp.float32),         # im2col patches
            ],
        ),
        # ~1 MiB total VMEM at these shapes — no explicit vmem_limit needed.
        compiler_params=pltpu.CompilerParams(
            dimension_semantics=("parallel",)),               # both TCs on v7x
    )(x_cf, x_cl, w1f, b1, w2f, b2, w3t, b3)

    return out.reshape(B, C + OF, H, W)


def init_params(key, C, num_filters=32, out_features=8):
    """Deterministic synthetic parameters (Kaiming-like fan-in scaling), HWIO layout."""
    ks = jax.random.split(key, 6)

    def conv_w(k, cin, cout):
        std = 1.0 / math.sqrt(9 * cin)
        return jax.random.normal(k, (3, 3, cin, cout), jnp.float32) * std

    def conv_b(k, cin, cout):
        bound = 1.0 / math.sqrt(9 * cin)
        return jax.random.uniform(k, (cout,), jnp.float32, -bound, bound)

    return [
        (conv_w(ks[0], C, num_filters), conv_b(ks[1], C, num_filters)),
        (conv_w(ks[2], num_filters, num_filters), conv_b(ks[3], num_filters, num_filters)),
        (conv_w(ks[4], num_filters, out_features), conv_b(ks[5], num_filters, out_features)),
    ]


def ss_feat_extract_ref(x_nchw, params):
    """Pure-JAX/XLA reference (f32 end-to-end) for correctness checking."""
    x = jnp.transpose(x_nchw, (0, 2, 3, 1))
    out = x
    for (w, b) in params:
        out = jax.lax.conv_general_dilated(
            out, w, window_strides=(1, 1), padding="SAME",
            dimension_numbers=("NHWC", "HWIO", "NHWC")) + b
        out = jnp.where(out > 0, out, _NEG_SLOPE * out)
    y = jnp.concatenate([x, out], axis=-1)
    return jnp.transpose(y, (0, 3, 1, 2))


if __name__ == "__main__":
    key = jax.random.PRNGKey(0)
    k_x, k_p = jax.random.split(key)

    B, C, H, W = 2, 4, 16, 16            # input_shape = (H, W, C) = (16, 16, 4)
    num_filters, out_features = 32, 8

    x = jax.random.normal(k_x, (B, C, H, W), jnp.float32)        # NCHW like PyTorch
    params = init_params(k_p, C, num_filters, out_features)
    prepped = prepare_params(params, num_filters)

    fwd = jax.jit(ss_feat_extract)
    y = jax.block_until_ready(fwd(x, prepped))

    assert y.shape == (B, C + out_features, H, W), y.shape
    assert bool(jnp.all(jnp.isfinite(y)))
    # Concatenated input channels must pass through bit-exactly.
    assert bool(jnp.array_equal(y[:, :C], x))
    # Conv features vs. f32 XLA reference (loose tol for bf16 MXU operands).
    y_ref = ss_feat_extract_ref(x, params)
    err = float(jnp.max(jnp.abs(y - y_ref)))
    assert err < 0.3, f"max abs err vs reference = {err}"
    print("KERNEL_OK")
</pallas_src>

<mosaic_0001>
module attributes {stable_mosaic.version = 11 : i64} {
  func.func @_ss_feat_kernel(%arg0: i32, %arg1: memref<1x4x256xf32, #tpu.memory_space<vmem>>, %arg2: memref<1x16x16x4xf32, #tpu.memory_space<vmem>>, %arg3: memref<288x32xbf16, #tpu.memory_space<vmem>>, %arg4: memref<1x32xf32, #tpu.memory_space<vmem>>, %arg5: memref<288x32xbf16, #tpu.memory_space<vmem>>, %arg6: memref<1x32xf32, #tpu.memory_space<vmem>>, %arg7: memref<8x288xbf16, #tpu.memory_space<vmem>>, %arg8: memref<8x1xf32, #tpu.memory_space<vmem>>, %arg9: memref<1x12x256xf32, #tpu.memory_space<vmem>>, %arg10: memref<18x18x32xf32, #tpu.memory_space<vmem>>, %arg11: memref<256x288xf32, #tpu.memory_space<vmem>>) attributes {dimension_semantics = [#tpu.dimension_semantics<parallel>], iteration_bounds = array<i64: 2>, scalar_prefetch = 0 : i64, scratch_operands = 2 : i64, tpu.core_type = #tpu.core_type<tc>, window_params = [{transform_indices = @transform_0, window_bounds = array<i64: 1, 4, 256>}, {transform_indices = @transform_1, window_bounds = array<i64: 1, 16, 16, 4>}, {pipeline_mode = #tpu.pipeline_mode<synchronous>, transform_indices = @transform_2, window_bounds = array<i64: 288, 32>}, {pipeline_mode = #tpu.pipeline_mode<synchronous>, transform_indices = @transform_3, window_bounds = array<i64: 1, 32>}, {pipeline_mode = #tpu.pipeline_mode<synchronous>, transform_indices = @transform_4, window_bounds = array<i64: 288, 32>}, {pipeline_mode = #tpu.pipeline_mode<synchronous>, transform_indices = @transform_5, window_bounds = array<i64: 1, 32>}, {pipeline_mode = #tpu.pipeline_mode<synchronous>, transform_indices = @transform_6, window_bounds = array<i64: 8, 288>}, {pipeline_mode = #tpu.pipeline_mode<synchronous>, transform_indices = @transform_7, window_bounds = array<i64: 8, 1>}, {transform_indices = @transform_8, window_bounds = array<i64: 1, 12, 256>}]} {
    %c0 = arith.constant 0 : index
    %c0_0 = arith.constant 0 : index
    %c0_1 = arith.constant 0 : index
    %0 = vector.load %arg1[%c0, %c0_0, %c0_1] : memref<1x4x256xf32, #tpu.memory_space<vmem>>, vector<1x4x256xf32>
    %1 = vector.shape_cast %0 : vector<1x4x256xf32> to vector<4x256xf32>
    %c0_2 = arith.constant 0 : index
    %c0_3 = arith.constant 0 : index
    %c0_4 = arith.constant 0 : index
    %2 = vector.load %arg9[%c0_2, %c0_3, %c0_4] : memref<1x12x256xf32, #tpu.memory_space<vmem>>, vector<1x4x256xf32>
    %3 = vector.shape_cast %2 : vector<1x4x256xf32> to vector<4x256xf32>
    %4 = vector.shape_cast %1 : vector<4x256xf32> to vector<1x4x256xf32>
    tpu.vector_store %arg9[%c0_2, %c0_3, %c0_4], %4 {strides = array<i32>} : memref<1x12x256xf32, #tpu.memory_space<vmem>>, vector<1x4x256xf32>,
    %cst = arith.constant 0.000000e+00 : f32
    %5 = vector.broadcast %cst : f32 to vector<18x18x32xf32>
    %c0_5 = arith.constant 0 : index
    %c0_6 = arith.constant 0 : index
    %c0_7 = arith.constant 0 : index
    %6 = vector.load %arg10[%c0_5, %c0_6, %c0_7] : memref<18x18x32xf32, #tpu.memory_space<vmem>>, vector<18x18x32xf32>
    tpu.vector_store %arg10[%c0_5, %c0_6, %c0_7], %5 {strides = array<i32>} : memref<18x18x32xf32, #tpu.memory_space<vmem>>, vector<18x18x32xf32>,
    %c0_8 = arith.constant 0 : index
    %c0_9 = arith.constant 0 : index
    %c0_10 = arith.constant 0 : index
    %c0_11 = arith.constant 0 : index
    %7 = vector.load %arg2[%c0_8, %c0_9, %c0_10, %c0_11] : memref<1x16x16x4xf32, #tpu.memory_space<vmem>>, vector<1x16x16x4xf32>
    %8 = vector.shape_cast %7 : vector<1x16x16x4xf32> to vector<16x16x4xf32>
    %c1 = arith.constant 1 : index
    %c1_12 = arith.constant 1 : index
    %c0_13 = arith.constant 0 : index
    %9 = vector.load %arg10[%c1, %c1_12, %c0_13] : memref<18x18x32xf32, #tpu.memory_space<vmem>>, vector<16x16x4xf32>
    tpu.vector_store %arg10[%c1, %c1_12, %c0_13], %8 {strides = array<i32>} : memref<18x18x32xf32, #tpu.memory_space<vmem>>, vector<16x16x4xf32>,
    %c0_14 = arith.constant 0 : index
    %c0_15 = arith.constant 0 : index
    %c0_16 = arith.constant 0 : index
    %10 = vector.load %arg10[%c0_14, %c0_15, %c0_16] : memref<18x18x32xf32, #tpu.memory_space<vmem>>, vector<16x16x32xf32>
    %11 = vector.shape_cast %10 : vector<16x16x32xf32> to vector<256x32xf32>
    %c0_17 = arith.constant 0 : index
    %c0_18 = arith.constant 0 : index
    %12 = vector.load %arg11[%c0_17, %c0_18] : memref<256x288xf32, #tpu.memory_space<vmem>>, vector<256x32xf32>
    tpu.vector_store %arg11[%c0_17, %c0_18], %11 {strides = array<i32>} : memref<256x288xf32, #tpu.memory_space<vmem>>, vector<256x32xf32>,
    %c0_19 = arith.constant 0 : index
    %c1_20 = arith.constant 1 : index
    %c0_21 = arith.constant 0 : index
    %13 = vector.load %arg10[%c0_19, %c1_20, %c0_21] : memref<18x18x32xf32, #tpu.memory_space<vmem>>, vector<16x16x32xf32>
    %14 = vector.shape_cast %13 : vector<16x16x32xf32> to vector<256x32xf32>
    %c0_22 = arith.constant 0 : index
    %c32 = arith.constant 32 : index
    %15 = vector.load %arg11[%c0_22, %c32] : memref<256x288xf32, #tpu.memory_space<vmem>>, vector<256x32xf32>
    tpu.vector_store %arg11[%c0_22, %c32], %14 {strides = array<i32>} : memref<256x288xf32, #tpu.memory_space<vmem>>, vector<256x32xf32>,
    %c0_23 = arith.constant 0 : index
    %c2 = arith.constant 2 : index
    %c0_24 = arith.constant 0 : index
    %16 = vector.load %arg10[%c0_23, %c2, %c0_24] : memref<18x18x32xf32, #tpu.memory_space<vmem>>, vector<16x16x32xf32>
    %17 = vector.shape_cast %16 : vector<16x16x32xf32> to vector<256x32xf32>
    %c0_25 = arith.constant 0 : index
    %c64 = arith.constant 64 : index
    %18 = vector.load %arg11[%c0_25, %c64] : memref<256x288xf32, #tpu.memory_space<vmem>>, vector<256x32xf32>
    tpu.vector_store %arg11[%c0_25, %c64], %17 {strides = array<i32>} : memref<256x288xf32, #tpu.memory_space<vmem>>, vector<256x32xf32>,
    %c1_26 = arith.constant 1 : index
    %c0_27 = arith.constant 0 : index
    %c0_28 = arith.constant 0 : index
    %19 = vector.load %arg10[%c1_26, %c0_27, %c0_28] : memref<18x18x32xf32, #tpu.memory_space<vmem>>, vector<16x16x32xf32>
    %20 = vector.shape_cast %19 : vector<16x16x32xf32> to vector<256x32xf32>
    %c0_29 = arith.constant 0 : index
    %c96 = arith.constant 96 : index
    %21 = vector.load %arg11[%c0_29, %c96] : memref<256x288xf32, #tpu.memory_space<vmem>>, vector<256x32xf32>
    tpu.vector_store %arg11[%c0_29, %c96], %20 {strides = array<i32>} : memref<256x288xf32, #tpu.memory_space<vmem>>, vector<256x32xf32>,
    %c1_30 = arith.constant 1 : index
    %c1_31 = arith.constant 1 : index
    %c0_32 = arith.constant 0 : index
    %22 = vector.load %arg10[%c1_30, %c1_31, %c0_32] : memref<18x18x32xf32, #tpu.memory_space<vmem>>, vector<16x16x32xf32>
    %23 = vector.shape_cast %22 : vector<16x16x32xf32> to vector<256x32xf32>
    %c0_33 = arith.constant 0 : index
    %c128 = arith.constant 128 : index
    %24 = vector.load %arg11[%c0_33, %c128] : memref<256x288xf32, #tpu.memory_space<vmem>>, vector<256x32xf32>
    tpu.vector_store %arg11[%c0_33, %c128], %23 {strides = array<i32>} : memref<256x288xf32, #tpu.memory_space<vmem>>, vector<256x32xf32>,
    %c1_34 = arith.constant 1 : index
    %c2_35 = arith.constant 2 : index
    %c0_36 = arith.constant 0 : index
    %25 = vector.load %arg10[%c1_34, %c2_35, %c0_36] : memref<18x18x32xf32, #tpu.memory_space<vmem>>, vector<16x16x32xf32>
    %26 = vector.shape_cast %25 : vector<16x16x32xf32> to vector<256x32xf32>
    %c0_37 = arith.constant 0 : index
    %c160 = arith.constant 160 : index
    %27 = vector.load %arg11[%c0_37, %c160] : memref<256x288xf32, #tpu.memory_space<vmem>>, vector<256x32xf32>
    tpu.vector_store %arg11[%c0_37, %c160], %26 {strides = array<i32>} : memref<256x288xf32, #tpu.memory_space<vmem>>, vector<256x32xf32>,
    %c2_38 = arith.constant 2 : index
    %c0_39 = arith.constant 0 : index
    %c0_40 = arith.constant 0 : index
    %28 = vector.load %arg10[%c2_38, %c0_39, %c0_40] : memref<18x18x32xf32, #tpu.memory_space<vmem>>, vector<16x16x32xf32>
    %29 = vector.shape_cast %28 : vector<16x16x32xf32> to vector<256x32xf32>
    %c0_41 = arith.constant 0 : index
    %c192 = arith.constant 192 : index
    %30 = vector.load %arg11[%c0_41, %c192] : memref<256x288xf32, #tpu.memory_space<vmem>>, vector<256x32xf32>
    tpu.vector_store %arg11[%c0_41, %c192], %29 {strides = array<i32>} : memref<256x288xf32, #tpu.memory_space<vmem>>, vector<256x32xf32>,
    %c2_42 = arith.constant 2 : index
    %c1_43 = arith.constant 1 : index
    %c0_44 = arith.constant 0 : index
    %31 = vector.load %arg10[%c2_42, %c1_43, %c0_44] : memref<18x18x32xf32, #tpu.memory_space<vmem>>, vector<16x16x32xf32>
    %32 = vector.shape_cast %31 : vector<16x16x32xf32> to vector<256x32xf32>
    %c0_45 = arith.constant 0 : index
    %c224 = arith.constant 224 : index
    %33 = vector.load %arg11[%c0_45, %c224] : memref<256x288xf32, #tpu.memory_space<vmem>>, vector<256x32xf32>
    tpu.vector_store %arg11[%c0_45, %c224], %32 {strides = array<i32>} : memref<256x288xf32, #tpu.memory_space<vmem>>, vector<256x32xf32>,
    %c2_46 = arith.constant 2 : index
    %c2_47 = arith.constant 2 : index
    %c0_48 = arith.constant 0 : index
    %34 = vector.load %arg10[%c2_46, %c2_47, %c0_48] : memref<18x18x32xf32, #tpu.memory_space<vmem>>, vector<16x16x32xf32>
    %35 = vector.shape_cast %34 : vector<16x16x32xf32> to vector<256x32xf32>
    %c0_49 = arith.constant 0 : index
    %c256 = arith.constant 256 : index
    %36 = vector.load %arg11[%c0_49, %c256] : memref<256x288xf32, #tpu.memory_space<vmem>>, vector<256x32xf32>
    tpu.vector_store %arg11[%c0_49, %c256], %35 {strides = array<i32>} : memref<256x288xf32, #tpu.memory_space<vmem>>, vector<256x32xf32>,
    %c0_50 = arith.constant 0 : index
    %c0_51 = arith.constant 0 : index
    %37 = vector.load %arg11[%c0_50, %c0_51] : memref<256x288xf32, #tpu.memory_space<vmem>>, vector<256x288xf32>
    %38 = arith.truncf %37 : vector<256x288xf32> to vector<256x288xbf16>
    %c0_52 = arith.constant 0 : index
    %c0_53 = arith.constant 0 : index
    %39 = vector.load %arg3[%c0_52, %c0_53] : memref<288x32xbf16, #tpu.memory_space<vmem>>, vector<288x32xbf16>
    %cst_54 = arith.constant dense<0.000000e+00> : vector<256x32xf32>
    %40 = tpu.matmul %38, %39, %cst_54 {dimension_numbers = #tpu.dot_dimension_numbers<[1], [0], [0], [1], [0, 0, 1, 1], [], []>} : vector<256x288xbf16>, vector<288x32xbf16>, vector<256x32xf32> -> vector<256x32xf32>
    %c0_55 = arith.constant 0 : index
    %c0_56 = arith.constant 0 : index
    %41 = vector.load %arg4[%c0_55, %c0_56] : memref<1x32xf32, #tpu.memory_space<vmem>>, vector<1x32xf32>
    %42 = vector.broadcast %41 : vector<1x32xf32> to vector<256x32xf32>
    %43 = arith.addf %40, %42 : vector<256x32xf32>
    %cst_57 = arith.constant 0.000000e+00 : f32
    %44 = vector.broadcast %cst_57 : f32 to vector<256x32xf32>
    %45 = arith.cmpf ogt, %43, %44 : vector<256x32xf32>
    %cst_58 = arith.constant 0.00999999977 : f32
    %46 = vector.broadcast %cst_58 : f32 to vector<256x32xf32>
    %47 = arith.mulf %46, %43 : vector<256x32xf32>
    %48 = arith.select %45, %43, %47 : vector<256x32xi1>, vector<256x32xf32>
    %49 = vector.shape_cast %48 : vector<256x32xf32> to vector<16x16x32xf32>
    %c1_59 = arith.constant 1 : index
    %c1_60 = arith.constant 1 : index
    %c0_61 = arith.constant 0 : index
    %50 = vector.load %arg10[%c1_59, %c1_60, %c0_61] : memref<18x18x32xf32, #tpu.memory_space<vmem>>, vector<16x16x32xf32>
    tpu.vector_store %arg10[%c1_59, %c1_60, %c0_61], %49 {strides = array<i32>} : memref<18x18x32xf32, #tpu.memory_space<vmem>>, vector<16x16x32xf32>,
    %c0_62 = arith.constant 0 : index
    %c0_63 = arith.constant 0 : index
    %c0_64 = arith.constant 0 : index
    %51 = vector.load %arg10[%c0_62, %c0_63, %c0_64] : memref<18x18x32xf32, #tpu.memory_space<vmem>>, vector<16x16x32xf32>
    %52 = vector.shape_cast %51 : vector<16x16x32xf32> to vector<256x32xf32>
    %c0_65 = arith.constant 0 : index
    %c0_66 = arith.constant 0 : index
    %53 = vector.load %arg11[%c0_65, %c0_66] : memref<256x288xf32, #tpu.memory_space<vmem>>, vector<256x32xf32>
    tpu.vector_store %arg11[%c0_65, %c0_66], %52 {strides = array<i32>} : memref<256x288xf32, #tpu.memory_space<vmem>>, vector<256x32xf32>,
    %c0_67 = arith.constant 0 : index
    %c1_68 = arith.constant 1 : index
    %c0_69 = arith.constant 0 : index
    %54 = vector.load %arg10[%c0_67, %c1_68, %c0_69] : memref<18x18x32xf32, #tpu.memory_space<vmem>>, vector<16x16x32xf32>
    %55 = vector.shape_cast %54 : vector<16x16x32xf32> to vector<256x32xf32>
    %c0_70 = arith.constant 0 : index
    %c32_71 = arith.constant 32 : index
    %56 = vector.load %arg11[%c0_70, %c32_71] : memref<256x288xf32, #tpu.memory_space<vmem>>, vector<256x32xf32>
    tpu.vector_store %arg11[%c0_70, %c32_71], %55 {strides = array<i32>} : memref<256x288xf32, #tpu.memory_space<vmem>>, vector<256x32xf32>,
    %c0_72 = arith.constant 0 : index
    %c2_73 = arith.constant 2 : index
    %c0_74 = arith.constant 0 : index
    %57 = vector.load %arg10[%c0_72, %c2_73, %c0_74] : memref<18x18x32xf32, #tpu.memory_space<vmem>>, vector<16x16x32xf32>
    %58 = vector.shape_cast %57 : vector<16x16x32xf32> to vector<256x32xf32>
    %c0_75 = arith.constant 0 : index
    %c64_76 = arith.constant 64 : index
    %59 = vector.load %arg11[%c0_75, %c64_76] : memref<256x288xf32, #tpu.memory_space<vmem>>, vector<256x32xf32>
    tpu.vector_store %arg11[%c0_75, %c64_76], %58 {strides = array<i32>} : memref<256x288xf32, #tpu.memory_space<vmem>>, vector<256x32xf32>,
    %c1_77 = arith.constant 1 : index
    %c0_78 = arith.constant 0 : index
    %c0_79 = arith.constant 0 : index
    %60 = vector.load %arg10[%c1_77, %c0_78, %c0_79] : memref<18x18x32xf32, #tpu.memory_space<vmem>>, vector<16x16x32xf32>
    %61 = vector.shape_cast %60 : vector<16x16x32xf32> to vector<256x32xf32>
    %c0_80 = arith.constant 0 : index
    %c96_81 = arith.constant 96 : index
    %62 = vector.load %arg11[%c0_80, %c96_81] : memref<256x288xf32, #tpu.memory_space<vmem>>, vector<256x32xf32>
    tpu.vector_store %arg11[%c0_80, %c96_81], %61 {strides = array<i32>} : memref<256x288xf32, #tpu.memory_space<vmem>>, vector<256x32xf32>,
    %c1_82 = arith.constant 1 : index
    %c1_83 = arith.constant 1 : index
    %c0_84 = arith.constant 0 : index
    %63 = vector.load %arg10[%c1_82, %c1_83, %c0_84] : memref<18x18x32xf32, #tpu.memory_space<vmem>>, vector<16x16x32xf32>
    %64 = vector.shape_cast %63 : vector<16x16x32xf32> to vector<256x32xf32>
    %c0_85 = arith.constant 0 : index
    %c128_86 = arith.constant 128 : index
    %65 = vector.load %arg11[%c0_85, %c128_86] : memref<256x288xf32, #tpu.memory_space<vmem>>, vector<256x32xf32>
    tpu.vector_store %arg11[%c0_85, %c128_86], %64 {strides = array<i32>} : memref<256x288xf32, #tpu.memory_space<vmem>>, vector<256x32xf32>,
    %c1_87 = arith.constant 1 : index
    %c2_88 = arith.constant 2 : index
    %c0_89 = arith.constant 0 : index
    %66 = vector.load %arg10[%c1_87, %c2_88, %c0_89] : memref<18x18x32xf32, #tpu.memory_space<vmem>>, vector<16x16x32xf32>
    %67 = vector.shape_cast %66 : vector<16x16x32xf32> to vector<256x32xf32>
    %c0_90 = arith.constant 0 : index
    %c160_91 = arith.constant 160 : index
    %68 = vector.load %arg11[%c0_90, %c160_91] : memref<256x288xf32, #tpu.memory_space<vmem>>, vector<256x32xf32>
    tpu.vector_store %arg11[%c0_90, %c160_91], %67 {strides = array<i32>} : memref<256x288xf32, #tpu.memory_space<vmem>>, vector<256x32xf32>,
    %c2_92 = arith.constant 2 : index
    %c0_93 = arith.constant 0 : index
    %c0_94 = arith.constant 0 : index
    %69 = vector.load %arg10[%c2_92, %c0_93, %c0_94] : memref<18x18x32xf32, #tpu.memory_space<vmem>>, vector<16x16x32xf32>
    %70 = vector.shape_cast %69 : vector<16x16x32xf32> to vector<256x32xf32>
    %c0_95 = arith.constant 0 : index
    %c192_96 = arith.constant 192 : index
    %71 = vector.load %arg11[%c0_95, %c192_96] : memref<256x288xf32, #tpu.memory_space<vmem>>, vector<256x32xf32>
    tpu.vector_store %arg11[%c0_95, %c192_96], %70 {strides = array<i32>} : memref<256x288xf32, #tpu.memory_space<vmem>>, vector<256x32xf32>,
    %c2_97 = arith.constant 2 : index
    %c1_98 = arith.constant 1 : index
    %c0_99 = arith.constant 0 : index
    %72 = vector.load %arg10[%c2_97, %c1_98, %c0_99] : memref<18x18x32xf32, #tpu.memory_space<vmem>>, vector<16x16x32xf32>
    %73 = vector.shape_cast %72 : vector<16x16x32xf32> to vector<256x32xf32>
    %c0_100 = arith.constant 0 : index
    %c224_101 = arith.constant 224 : index
    %74 = vector.load %arg11[%c0_100, %c224_101] : memref<256x288xf32, #tpu.memory_space<vmem>>, vector<256x32xf32>
    tpu.vector_store %arg11[%c0_100, %c224_101], %73 {strides = array<i32>} : memref<256x288xf32, #tpu.memory_space<vmem>>, vector<256x32xf32>,
    %c2_102 = arith.constant 2 : index
    %c2_103 = arith.constant 2 : index
    %c0_104 = arith.constant 0 : index
    %75 = vector.load %arg10[%c2_102, %c2_103, %c0_104] : memref<18x18x32xf32, #tpu.memory_space<vmem>>, vector<16x16x32xf32>
    %76 = vector.shape_cast %75 : vector<16x16x32xf32> to vector<256x32xf32>
    %c0_105 = arith.constant 0 : index
    %c256_106 = arith.constant 256 : index
    %77 = vector.load %arg11[%c0_105, %c256_106] : memref<256x288xf32, #tpu.memory_space<vmem>>, vector<256x32xf32>
    tpu.vector_store %arg11[%c0_105, %c256_106], %76 {strides = array<i32>} : memref<256x288xf32, #tpu.memory_space<vmem>>, vector<256x32xf32>,
    %c0_107 = arith.constant 0 : index
    %c0_108 = arith.constant 0 : index
    %78 = vector.load %arg11[%c0_107, %c0_108] : memref<256x288xf32, #tpu.memory_space<vmem>>, vector<256x288xf32>
    %79 = arith.truncf %78 : vector<256x288xf32> to vector<256x288xbf16>
    %c0_109 = arith.constant 0 : index
    %c0_110 = arith.constant 0 : index
    %80 = vector.load %arg5[%c0_109, %c0_110] : memref<288x32xbf16, #tpu.memory_space<vmem>>, vector<288x32xbf16>
    %cst_111 = arith.constant dense<0.000000e+00> : vector<256x32xf32>
    %81 = tpu.matmul %79, %80, %cst_111 {dimension_numbers = #tpu.dot_dimension_numbers<[1], [0], [0], [1], [0, 0, 1, 1], [], []>} : vector<256x288xbf16>, vector<288x32xbf16>, vector<256x32xf32> -> vector<256x32xf32>
    %c0_112 = arith.constant 0 : index
    %c0_113 = arith.constant 0 : index
    %82 = vector.load %arg6[%c0_112, %c0_113] : memref<1x32xf32, #tpu.memory_space<vmem>>, vector<1x32xf32>
    %83 = vector.broadcast %82 : vector<1x32xf32> to vector<256x32xf32>
    %84 = arith.addf %81, %83 : vector<256x32xf32>
    %cst_114 = arith.constant 0.000000e+00 : f32
    %85 = vector.broadcast %cst_114 : f32 to vector<256x32xf32>
    %86 = arith.cmpf ogt, %84, %85 : vector<256x32xf32>
    %cst_115 = arith.constant 0.00999999977 : f32
    %87 = vector.broadcast %cst_115 : f32 to vector<256x32xf32>
    %88 = arith.mulf %87, %84 : vector<256x32xf32>
    %89 = arith.select %86, %84, %88 : vector<256x32xi1>, vector<256x32xf32>
    %90 = vector.shape_cast %89 : vector<256x32xf32> to vector<16x16x32xf32>
    %c1_116 = arith.constant 1 : index
    %c1_117 = arith.constant 1 : index
    %c0_118 = arith.constant 0 : index
    %91 = vector.load %arg10[%c1_116, %c1_117, %c0_118] : memref<18x18x32xf32, #tpu.memory_space<vmem>>, vector<16x16x32xf32>
    tpu.vector_store %arg10[%c1_116, %c1_117, %c0_118], %90 {strides = array<i32>} : memref<18x18x32xf32, #tpu.memory_space<vmem>>, vector<16x16x32xf32>,
    %c0_119 = arith.constant 0 : index
    %c0_120 = arith.constant 0 : index
    %c0_121 = arith.constant 0 : index
    %92 = vector.load %arg10[%c0_119, %c0_120, %c0_121] : memref<18x18x32xf32, #tpu.memory_space<vmem>>, vector<16x16x32xf32>
    %93 = vector.shape_cast %92 : vector<16x16x32xf32> to vector<256x32xf32>
    %c0_122 = arith.constant 0 : index
    %c0_123 = arith.constant 0 : index
    %94 = vector.load %arg11[%c0_122, %c0_123] : memref<256x288xf32, #tpu.memory_space<vmem>>, vector<256x32xf32>
    tpu.vector_store %arg11[%c0_122, %c0_123], %93 {strides = array<i32>} : memref<256x288xf32, #tpu.memory_space<vmem>>, vector<256x32xf32>,
    %c0_124 = arith.constant 0 : index
    %c1_125 = arith.constant 1 : index
    %c0_126 = arith.constant 0 : index
    %95 = vector.load %arg10[%c0_124, %c1_125, %c0_126] : memref<18x18x32xf32, #tpu.memory_space<vmem>>, vector<16x16x32xf32>
    %96 = vector.shape_cast %95 : vector<16x16x32xf32> to vector<256x32xf32>
    %c0_127 = arith.constant 0 : index
    %c32_128 = arith.constant 32 : index
    %97 = vector.load %arg11[%c0_127, %c32_128] : memref<256x288xf32, #tpu.memory_space<vmem>>, vector<256x32xf32>
    tpu.vector_store %arg11[%c0_127, %c32_128], %96 {strides = array<i32>} : memref<256x288xf32, #tpu.memory_space<vmem>>, vector<256x32xf32>,
    %c0_129 = arith.constant 0 : index
    %c2_130 = arith.constant 2 : index
    %c0_131 = arith.constant 0 : index
    %98 = vector.load %arg10[%c0_129, %c2_130, %c0_131] : memref<18x18x32xf32, #tpu.memory_space<vmem>>, vector<16x16x32xf32>
    %99 = vector.shape_cast %98 : vector<16x16x32xf32> to vector<256x32xf32>
    %c0_132 = arith.constant 0 : index
    %c64_133 = arith.constant 64 : index
    %100 = vector.load %arg11[%c0_132, %c64_133] : memref<256x288xf32, #tpu.memory_space<vmem>>, vector<256x32xf32>
    tpu.vector_store %arg11[%c0_132, %c64_133], %99 {strides = array<i32>} : memref<256x288xf32, #tpu.memory_space<vmem>>, vector<256x32xf32>,
    %c1_134 = arith.constant 1 : index
    %c0_135 = arith.constant 0 : index
    %c0_136 = arith.constant 0 : index
    %101 = vector.load %arg10[%c1_134, %c0_135, %c0_136] : memref<18x18x32xf32, #tpu.memory_space<vmem>>, vector<16x16x32xf32>
    %102 = vector.shape_cast %101 : vector<16x16x32xf32> to vector<256x32xf32>
    %c0_137 = arith.constant 0 : index
    %c96_138 = arith.constant 96 : index
    %103 = vector.load %arg11[%c0_137, %c96_138] : memref<256x288xf32, #tpu.memory_space<vmem>>, vector<256x32xf32>
    tpu.vector_store %arg11[%c0_137, %c96_138], %102 {strides = array<i32>} : memref<256x288xf32, #tpu.memory_space<vmem>>, vector<256x32xf32>,
    %c1_139 = arith.constant 1 : index
    %c1_140 = arith.constant 1 : index
    %c0_141 = arith.constant 0 : index
    %104 = vector.load %arg10[%c1_139, %c1_140, %c0_141] : memref<18x18x32xf32, #tpu.memory_space<vmem>>, vector<16x16x32xf32>
    %105 = vector.shape_cast %104 : vector<16x16x32xf32> to vector<256x32xf32>
    %c0_142 = arith.constant 0 : index
    %c128_143 = arith.constant 128 : index
    %106 = vector.load %arg11[%c0_142, %c128_143] : memref<256x288xf32, #tpu.memory_space<vmem>>, vector<256x32xf32>
    tpu.vector_store %arg11[%c0_142, %c128_143], %105 {strides = array<i32>} : memref<256x288xf32, #tpu.memory_space<vmem>>, vector<256x32xf32>,
    %c1_144 = arith.constant 1 : index
    %c2_145 = arith.constant 2 : index
    %c0_146 = arith.constant 0 : index
    %107 = vector.load %arg10[%c1_144, %c2_145, %c0_146] : memref<18x18x32xf32, #tpu.memory_space<vmem>>, vector<16x16x32xf32>
    %108 = vector.shape_cast %107 : vector<16x16x32xf32> to vector<256x32xf32>
    %c0_147 = arith.constant 0 : index
    %c160_148 = arith.constant 160 : index
    %109 = vector.load %arg11[%c0_147, %c160_148] : memref<256x288xf32, #tpu.memory_space<vmem>>, vector<256x32xf32>
    tpu.vector_store %arg11[%c0_147, %c160_148], %108 {strides = array<i32>} : memref<256x288xf32, #tpu.memory_space<vmem>>, vector<256x32xf32>,
    %c2_149 = arith.constant 2 : index
    %c0_150 = arith.constant 0 : index
    %c0_151 = arith.constant 0 : index
    %110 = vector.load %arg10[%c2_149, %c0_150, %c0_151] : memref<18x18x32xf32, #tpu.memory_space<vmem>>, vector<16x16x32xf32>
    %111 = vector.shape_cast %110 : vector<16x16x32xf32> to vector<256x32xf32>
    %c0_152 = arith.constant 0 : index
    %c192_153 = arith.constant 192 : index
    %112 = vector.load %arg11[%c0_152, %c192_153] : memref<256x288xf32, #tpu.memory_space<vmem>>, vector<256x32xf32>
    tpu.vector_store %arg11[%c0_152, %c192_153], %111 {strides = array<i32>} : memref<256x288xf32, #tpu.memory_space<vmem>>, vector<256x32xf32>,
    %c2_154 = arith.constant 2 : index
    %c1_155 = arith.constant 1 : index
    %c0_156 = arith.constant 0 : index
    %113 = vector.load %arg10[%c2_154, %c1_155, %c0_156] : memref<18x18x32xf32, #tpu.memory_space<vmem>>, vector<16x16x32xf32>
    %114 = vector.shape_cast %113 : vector<16x16x32xf32> to vector<256x32xf32>
    %c0_157 = arith.constant 0 : index
    %c224_158 = arith.constant 224 : index
    %115 = vector.load %arg11[%c0_157, %c224_158] : memref<256x288xf32, #tpu.memory_space<vmem>>, vector<256x32xf32>
    tpu.vector_store %arg11[%c0_157, %c224_158], %114 {strides = array<i32>} : memref<256x288xf32, #tpu.memory_space<vmem>>, vector<256x32xf32>,
    %c2_159 = arith.constant 2 : index
    %c2_160 = arith.constant 2 : index
    %c0_161 = arith.constant 0 : index
    %116 = vector.load %arg10[%c2_159, %c2_160, %c0_161] : memref<18x18x32xf32, #tpu.memory_space<vmem>>, vector<16x16x32xf32>
    %117 = vector.shape_cast %116 : vector<16x16x32xf32> to vector<256x32xf32>
    %c0_162 = arith.constant 0 : index
    %c256_163 = arith.constant 256 : index
    %118 = vector.load %arg11[%c0_162, %c256_163] : memref<256x288xf32, #tpu.memory_space<vmem>>, vector<256x32xf32>
    tpu.vector_store %arg11[%c0_162, %c256_163], %117 {strides = array<i32>} : memref<256x288xf32, #tpu.memory_space<vmem>>, vector<256x32xf32>,
    %c0_164 = arith.constant 0 : index
    %c0_165 = arith.constant 0 : index
    %119 = vector.load %arg11[%c0_164, %c0_165] : memref<256x288xf32, #tpu.memory_space<vmem>>, vector<256x288xf32>
    %120 = arith.truncf %119 : vector<256x288xf32> to vector<256x288xbf16>
    %c0_166 = arith.constant 0 : index
    %c0_167 = arith.constant 0 : index
    %121 = vector.load %arg7[%c0_166, %c0_167] : memref<8x288xbf16, #tpu.memory_space<vmem>>, vector<8x288xbf16>
    %cst_168 = arith.constant dense<0.000000e+00> : vector<8x256xf32>
    %122 = tpu.matmul %121, %120, %cst_168 {dimension_numbers = #tpu.dot_dimension_numbers<[1], [1], [0], [0], [0, 0, 1, 0], [], []>} : vector<8x288xbf16>, vector<256x288xbf16>, vector<8x256xf32> -> vector<8x256xf32>
    %c0_169 = arith.constant 0 : index
    %c0_170 = arith.constant 0 : index
    %123 = vector.load %arg8[%c0_169, %c0_170] : memref<8x1xf32, #tpu.memory_space<vmem>>, vector<8x1xf32>
    %124 = vector.broadcast %123 : vector<8x1xf32> to vector<8x256xf32>
    %125 = arith.addf %122, %124 : vector<8x256xf32>
    %cst_171 = arith.constant 0.000000e+00 : f32
    %126 = vector.broadcast %cst_171 : f32 to vector<8x256xf32>
    %127 = arith.cmpf ogt, %125, %126 : vector<8x256xf32>
    %cst_172 = arith.constant 0.00999999977 : f32
    %128 = vector.broadcast %cst_172 : f32 to vector<8x256xf32>
    %129 = arith.mulf %128, %125 : vector<8x256xf32>
    %130 = arith.select %127, %125, %129 : vector<8x256xi1>, vector<8x256xf32>
    %c0_173 = arith.constant 0 : index
    %c4 = arith.constant 4 : index
    %c0_174 = arith.constant 0 : index
    %131 = vector.load %arg9[%c0_173, %c4, %c0_174] : memref<1x12x256xf32, #tpu.memory_space<vmem>>, vector<1x8x256xf32>
    %132 = vector.shape_cast %131 : vector<1x8x256xf32> to vector<8x256xf32>
    %133 = vector.shape_cast %130 : vector<8x256xf32> to vector<1x8x256xf32>
    tpu.vector_store %arg9[%c0_173, %c4, %c0_174], %133 {strides = array<i32>} : memref<1x12x256xf32, #tpu.memory_space<vmem>>, vector<1x8x256xf32>,
    return
  }
  func.func @transform_0(%arg0: i32) -> (i32, i32, i32) {
    %c0_i32 = arith.constant 0 : i32
    %c0_i32_0 = arith.constant 0 : i32
    %c0_i32_1 = arith.constant 0 : i32
    return %arg0, %c0_i32, %c0_i32_0 : i32, i32, i32
  }
  func.func @transform_1(%arg0: i32) -> (i32, i32, i32, i32) {
    %c0_i32 = arith.constant 0 : i32
    %c0_i32_0 = arith.constant 0 : i32
    %c0_i32_1 = arith.constant 0 : i32
    %c0_i32_2 = arith.constant 0 : i32
    return %arg0, %c0_i32, %c0_i32_0, %c0_i32_1 : i32, i32, i32, i32
  }
  func.func @transform_2(%arg0: i32) -> (i32, i32) {
    %c0_i32 = arith.constant 0 : i32
    %c0_i32_0 = arith.constant 0 : i32
    %c0_i32_1 = arith.constant 0 : i32
    return %c0_i32, %c0_i32_0 : i32, i32
  }
  func.func @transform_3(%arg0: i32) -> (i32, i32) {
    %c0_i32 = arith.constant 0 : i32
    %c0_i32_0 = arith.constant 0 : i32
    %c0_i32_1 = arith.constant 0 : i32
    return %c0_i32, %c0_i32_0 : i32, i32
  }
  func.func @transform_4(%arg0: i32) -> (i32, i32) {
    %c0_i32 = arith.constant 0 : i32
    %c0_i32_0 = arith.constant 0 : i32
    %c0_i32_1 = arith.constant 0 : i32
    return %c0_i32, %c0_i32_0 : i32, i32
  }
  func.func @transform_5(%arg0: i32) -> (i32, i32) {
    %c0_i32 = arith.constant 0 : i32
    %c0_i32_0 = arith.constant 0 : i32
    %c0_i32_1 = arith.constant 0 : i32
    return %c0_i32, %c0_i32_0 : i32, i32
  }
  func.func @transform_6(%arg0: i32) -> (i32, i32) {
    %c0_i32 = arith.constant 0 : i32
    %c0_i32_0 = arith.constant 0 : i32
    %c0_i32_1 = arith.constant 0 : i32
    return %c0_i32, %c0_i32_0 : i32, i32
  }
  func.func @transform_7(%arg0: i32) -> (i32, i32) {
    %c0_i32 = arith.constant 0 : i32
    %c0_i32_0 = arith.constant 0 : i32
    %c0_i32_1 = arith.constant 0 : i32
    return %c0_i32, %c0_i32_0 : i32, i32
  }
  func.func @transform_8(%arg0: i32) -> (i32, i32, i32) {
    %c0_i32 = arith.constant 0 : i32
    %c0_i32_0 = arith.constant 0 : i32
    %c0_i32_1 = arith.constant 0 : i32
    return %arg0, %c0_i32, %c0_i32_0 : i32, i32, i32
  }
}

</mosaic_0001>

<bundles_post_ra>
// kernel: ss_feat_extract.1
= control target key start
LH: loop header
LB: loop body
LE: loop exit
PB: predicated region body
PF: predicated region fallthrough
CT: control target
= control target key end

     0   :  { %s7017_s27 = smov 0   ;;  %s10251_s0 = inlined_call_operand.vmem [shape: f32[2,4,256], index: 0, kind: input, shape index: {}]   ;;  %s10252_s1 = inlined_call_operand.vmem [shape: f32[2,16,16,4], index: 1, kind: input, shape index: {}]   ;;  %s10253_s2 = inlined_call_operand.vmem [shape: bf16[288,32], index: 2, kind: input, shape index: {}]   ;;  %s10254_s3 = inlined_call_operand.vmem [shape: f32[1,32], index: 3, kind: input, shape index: {}]   ;;  %s10255_s4 = inlined_call_operand.vmem [shape: bf16[288,32], index: 4, kind: input, shape index: {}]   ;;  %s10256_s5 = inlined_call_operand.vmem [shape: f32[1,32], index: 5, kind: input, shape index: {}]   ;;  %s10257_s6 = inlined_call_operand.vmem [shape: bf16[8,288], index: 6, kind: input, shape index: {}]   ;;  %s10258_s7 = inlined_call_operand.vmem [shape: f32[8,1], index: 7, kind: input, shape index: {}]   ;;  %s10259_s8 = inlined_call_operand.vmem [shape: f32[2,12,256], index: 8, kind: output, shape index: {}]  }
   0x1 LB: > { %s6455_s28 = sadd.s32 4294967295, %s6965_s27   ;;  %p6459_p0 = scmp.ge.s32.totalorder %s6965_s27, 1  ;;  %s6965_s27 = sphi %s7017_s27, %s18_s27  }
   0x2   : > { %p272_p1 = scmp.lt.s32.totalorder %s6965_s27, 3 }
   0x4   : > { %p273_p2 = pnand %p6459_p0, %p272_p1 }
   0x6   : > { %276 = sbr.rel (%p273_p2) target bundleno = 1802 (0x70a), region = 52 }
   0xb   : > { %vm333_vm0 = vcmask 261120   ;;  %vm336_vm1 = vcmask 254976   ;;  %p7027_p3 = scmp.lt.s32.totalorder %s6455_s28, 1  ;;  %v6967_v0 = vmov 0.0   ;;  %vm422_vm2 = vcmask 31744   ;;  %s6968_s12 = smov 32  }
   0xc   : > { %334 = vst.msk [vmem:[#allocation2] sm:$0xff] %vm333_vm0, %v6967_v0  ;;  %335 = vst.msk [vmem:[#allocation2 + $0x8] sm:$0xff] %vm333_vm0, %v6967_v0  ;;  %s6969_s13 = smov 64   ;;  %vm679_vm3 = vcmask 523520   ;;  %s6970_s14 = smov 96   ;;  %vm872_vm4 = vcmask 785920  }
   0xd   : > { %338 = vst.msk [vmem:[#allocation2 + $0x18] sm:$0xff] %vm333_vm0, %v6967_v0  ;;  %339 = vst.msk [vmem:[#allocation2 + $0x20] sm:$0xff] %vm333_vm0, %v6967_v0  ;;  %s10301_s28 = smov (!%p7027_p3, %s6455_s28), 1  ;;  %vm1065_vm5 = vcmask 1048320  }
   0xe   : > { %341 = vst.msk [vmem:[#allocation2 + $0x30] sm:$0xff] %vm333_vm0, %v6967_v0  ;;  %342 = vst.msk [vmem:[#allocation2 + $0x38] sm:$0xff] %vm333_vm0, %v6967_v0  ;;  %s6543_s30 = sshll.u32 %s10301_s28, 8  ;;  %s6544_s10 = sshll.u32 %s10301_s28, 5 }
   0xf   : > { %344 = vst.msk [vmem:[#allocation2 + $0x48] sm:$0xff] %vm333_vm0, %v6967_v0  ;;  %345 = vst.msk [vmem:[#allocation2 + $0x50] sm:$0xff] %vm333_vm0, %v6967_v0  ;;  %s7095_s11 = scalar_lea.vmem %s10252_s1, %s6543_s30  ;;  %s10217_s19 = scalar_lea.vmem %s10259_s8, %s6544_s10 }
  0x10   : > { %347 = vst.msk [vmem:[#allocation2 + $0x60] sm:$0xff] %vm333_vm0, %v6967_v0  ;;  %348 = vst.msk [vmem:[#allocation2 + $0x68] sm:$0xff] %vm333_vm0, %v6967_v0  ;;  %v389_v1 = vld [vmem:[%s7095_s11] sm:$0xff]  ;;  %v391_v2 = vld [vmem:[%s7095_s11 + $0x10] sm:$0xff] }
  0x11   : > { %350 = vst.msk [vmem:[#allocation2 + $0x78] sm:$0xff] %vm333_vm0, %v6967_v0  ;;  %351 = vst.msk [vmem:[#allocation2 + $0x80] sm:$0xff] %vm333_vm0, %v6967_v0  ;;  %v390_v3 = vld [vmem:[%s7095_s11 + $0x8] sm:$0xff]  ;;  %v393_v4 = vld [vmem:[%s7095_s11 + $0x20] sm:$0xff] }
  0x12   : > { %353 = vst.msk [vmem:[#allocation2 + $0x90] sm:$0xff] %vm333_vm0, %v6967_v0  ;;  %354 = vst.msk [vmem:[#allocation2 + $0x98] sm:$0xff] %vm333_vm0, %v6967_v0  ;;  %v392_v5 = vld [vmem:[%s7095_s11 + $0x18] sm:$0xff]  ;;  %v395_v6 = vld [vmem:[%s7095_s11 + $0x30] sm:$0xff] }
  0x13   : > { %356 = vst.msk [vmem:[#allocation2 + $0xa8] sm:$0xff] %vm333_vm0, %v6967_v0  ;;  %357 = vst.msk [vmem:[#allocation2 + $0xb0] sm:$0xff] %vm333_vm0, %v6967_v0  ;;  %v519_v7 = vld [vmem:[#allocation2 + $0x1] sm:$0xff]  ;;  %v396_v11 = vld [vmem:[%s7095_s11 + $0x38] sm:$0xff] }
  0x14   : > { %359 = vst.msk [vmem:[#allocation2 + $0xc0] sm:$0xff] %vm333_vm0, %v6967_v0  ;;  %360 = vst.msk [vmem:[#allocation2 + $0xc8] sm:$0xff] %vm333_vm0, %v6967_v0  ;;  %v394_v9 = vld [vmem:[%s7095_s11 + $0x28] sm:$0xff]  ;;  %583 = vrot.lane.b32.xlu0 %v519_v7, %s6968_s12  ;;  %v397_v10 = vld [vmem:[%s7095_s11 + $0x40] sm:$0xff] }
  0x15   : > { %362 = vst.msk [vmem:[#allocation2 + $0xd8] sm:$0xff] %vm333_vm0, %v6967_v0  ;;  %363 = vst.msk [vmem:[#allocation2 + $0xe0] sm:$0xff] %vm333_vm0, %v6967_v0  ;;  %v399_v12 = vld [vmem:[%s7095_s11 + $0x50] sm:$0xff]  ;;  %v398_v13 = vld [vmem:[%s7095_s11 + $0x48] sm:$0xff] }
  0x16   : > { %365 = vst.msk [vmem:[#allocation2 + $0xf0] sm:$0xff] %vm333_vm0, %v6967_v0  ;;  %366 = vst.msk [vmem:[#allocation2 + $0xf8] sm:$0xff] %vm333_vm0, %v6967_v0  ;;  %v401_v14 = vld [vmem:[%s7095_s11 + $0x60] sm:$0xff]  ;;  %v400_v15 = vld [vmem:[%s7095_s11 + $0x58] sm:$0xff] }
  0x17   : > { %368 = vst.msk [vmem:[#allocation2 + $0x108] sm:$0xff] %vm333_vm0, %v6967_v0  ;;  %369 = vst.msk [vmem:[#allocation2 + $0x110] sm:$0xff] %vm333_vm0, %v6967_v0  ;;  %v403_v16 = vld [vmem:[%s7095_s11 + $0x70] sm:$0xff]  ;;  %v402_v17 = vld [vmem:[%s7095_s11 + $0x68] sm:$0xff] }
  0x18   : > { %371 = vst.msk [vmem:[#allocation2 + $0x120] sm:$0xff] %vm333_vm0, %v6967_v0  ;;  %372 = vst.msk [vmem:[#allocation2 + $0x128] sm:$0xff] %vm333_vm0, %v6967_v0  ;;  %v405_v18 = vld [vmem:[%s7095_s11 + $0x80] sm:$0xff]  ;;  %v404_v19 = vld [vmem:[%s7095_s11 + $0x78] sm:$0xff] }
  0x19   : > { %374 = vst.msk [vmem:[#allocation2 + $0x138] sm:$0xff] %vm333_vm0, %v6967_v0  ;;  %375 = vst.msk [vmem:[#allocation2 + $0x140] sm:$0xff] %vm333_vm0, %v6967_v0  ;;  %v407_v20 = vld [vmem:[%s7095_s11 + $0x90] sm:$0xff]  ;;  %v406_v21 = vld [vmem:[%s7095_s11 + $0x88] sm:$0xff] }
  0x1a   : > { %377 = vst.msk [vmem:[#allocation2 + $0x150] sm:$0xff] %vm333_vm0, %v6967_v0  ;;  %378 = vst.msk [vmem:[#allocation2 + $0x158] sm:$0xff] %vm333_vm0, %v6967_v0  ;;  %v409_v22 = vld [vmem:[%s7095_s11 + $0xa0] sm:$0xff]  ;;  %v408_v23 = vld [vmem:[%s7095_s11 + $0x98] sm:$0xff] }
  0x1b   : > { %380 = vst.msk [vmem:[#allocation2 + $0x168] sm:$0xff] %vm333_vm0, %v6967_v0  ;;  %381 = vst.msk [vmem:[#allocation2 + $0x170] sm:$0xff] %vm333_vm0, %v6967_v0  ;;  %v411_v24 = vld [vmem:[%s7095_s11 + $0xb0] sm:$0xff]  ;;  %v410_v28 = vld [vmem:[%s7095_s11 + $0xa8] sm:$0xff] }
  0x1c   : > { %383 = vst.msk [vmem:[#allocation2 + $0x180] sm:$0xff] %vm333_vm0, %v6967_v0  ;;  %384 = vst.msk [vmem:[#allocation2 + $0x188] sm:$0xff] %vm333_vm0, %v6967_v0  ;;  %v413_v29 = vld [vmem:[%s7095_s11 + $0xc0] sm:$0xff]  ;;  %v412_v33 = vld [vmem:[%s7095_s11 + $0xb8] sm:$0xff] }
  0x1d   : > { %386 = vst.msk [vmem:[#allocation2 + $0x198] sm:$0xff] %vm333_vm0, %v6967_v0  ;;  %387 = vst.msk [vmem:[#allocation2 + $0x1a0] sm:$0xff] %vm333_vm0, %v6967_v0  ;;  %v415_v34 = vld [vmem:[%s7095_s11 + $0xd0] sm:$0xff]  ;;  %v414_v35 = vld [vmem:[%s7095_s11 + $0xc8] sm:$0xff] }
  0x1e   : > { %337 = vst.msk [vmem:[#allocation2 + $0x10] sm:$0x3] %vm336_vm1, %v6967_v0  ;;  %340 = vst.msk [vmem:[#allocation2 + $0x28] sm:$0x3] %vm336_vm1, %v6967_v0  ;;  %v417_v36 = vld [vmem:[%s7095_s11 + $0xe0] sm:$0xff]  ;;  %v416_v37 = vld [vmem:[%s7095_s11 + $0xd8] sm:$0xff] }
  0x1f   : > { %343 = vst.msk [vmem:[#allocation2 + $0x40] sm:$0x3] %vm336_vm1, %v6967_v0  ;;  %346 = vst.msk [vmem:[#allocation2 + $0x58] sm:$0x3] %vm336_vm1, %v6967_v0  ;;  %v418_v39 = vld [vmem:[%s7095_s11 + $0xe8] sm:$0xff]  ;;  %v455_v50 = vld [vmem:[#allocation2] sm:$0xff] }
  0x20   : > { %349 = vst.msk [vmem:[#allocation2 + $0x70] sm:$0x3] %vm336_vm1, %v6967_v0  ;;  %352 = vst.msk [vmem:[#allocation2 + $0x88] sm:$0x3] %vm336_vm1, %v6967_v0  ;;  %v456_v53 = vld [vmem:[#allocation2 + $0x8] sm:$0xff] }
  0x21   : > { %355 = vst.msk [vmem:[#allocation2 + $0xa0] sm:$0x3] %vm336_vm1, %v6967_v0  ;;  %358 = vst.msk [vmem:[#allocation2 + $0xb8] sm:$0x3] %vm336_vm1, %v6967_v0 }
  0x22   : > { %361 = vst.msk [vmem:[#allocation2 + $0xd0] sm:$0x3] %vm336_vm1, %v6967_v0  ;;  %364 = vst.msk [vmem:[#allocation2 + $0xe8] sm:$0x3] %vm336_vm1, %v6967_v0 }
  0x23   : > { %367 = vst.msk [vmem:[#allocation2 + $0x100] sm:$0x3] %vm336_vm1, %v6967_v0  ;;  %370 = vst.msk [vmem:[#allocation2 + $0x118] sm:$0x3] %vm336_vm1, %v6967_v0 }
  0x24   : > { %373 = vst.msk [vmem:[#allocation2 + $0x130] sm:$0x3] %vm336_vm1, %v6967_v0  ;;  %376 = vst.msk [vmem:[#allocation2 + $0x148] sm:$0x3] %vm336_vm1, %v6967_v0 }
  0x25   : > { %379 = vst.msk [vmem:[#allocation2 + $0x160] sm:$0x3] %vm336_vm1, %v6967_v0  ;;  %382 = vst.msk [vmem:[#allocation2 + $0x178] sm:$0x3] %vm336_vm1, %v6967_v0  ;;  %v520_v8 = vld [vmem:[#allocation2 + $0x9] sm:$0xff] }
  0x26   : > { %385 = vst.msk [vmem:[#allocation2 + $0x190] sm:$0x3] %vm336_vm1, %v6967_v0  ;;  %388 = vst.msk [vmem:[#allocation2 + $0x1a8] sm:$0x3] %vm336_vm1, %v6967_v0  ;;  %585 = vrot.lane.b32.xlu0 %v520_v8, %s6968_s12 }
  0x27   : > { %423 = vst.msk [vmem:[#allocation2 + $0x19] sm:$0xff] %vm422_vm2, %v389_v1  ;;  %425 = vst.msk [vmem:[#allocation2 + $0x31] sm:$0xff] %vm422_vm2, %v391_v2 }
  0x28   : > { %424 = vst.msk [vmem:[#allocation2 + $0x21] sm:$0xff] %vm422_vm2, %v390_v3  ;;  %427 = vst.msk [vmem:[#allocation2 + $0x49] sm:$0xff] %vm422_vm2, %v393_v4 }
  0x29   : > { %426 = vst.msk [vmem:[#allocation2 + $0x39] sm:$0xff] %vm422_vm2, %v392_v5  ;;  %429 = vst.msk [vmem:[#allocation2 + $0x61] sm:$0xff] %vm422_vm2, %v395_v6 }
  0x2a   : > { %428 = vst.msk [vmem:[#allocation2 + $0x51] sm:$0xff] %vm422_vm2, %v394_v9  ;;  %431 = vst.msk [vmem:[#allocation2 + $0x79] sm:$0xff] %vm422_vm2, %v397_v10 }
  0x2b   : > { %430 = vst.msk [vmem:[#allocation2 + $0x69] sm:$0xff] %vm422_vm2, %v396_v11  ;;  %433 = vst.msk [vmem:[#allocation2 + $0x91] sm:$0xff] %vm422_vm2, %v399_v12 }
  0x2c   : > { %432 = vst.msk [vmem:[#allocation2 + $0x81] sm:$0xff] %vm422_vm2, %v398_v13  ;;  %435 = vst.msk [vmem:[#allocation2 + $0xa9] sm:$0xff] %vm422_vm2, %v401_v14 }
  0x2d   : > { %434 = vst.msk [vmem:[#allocation2 + $0x99] sm:$0xff] %vm422_vm2, %v400_v15  ;;  %437 = vst.msk [vmem:[#allocation2 + $0xc1] sm:$0xff] %vm422_vm2, %v403_v16 }
  0x2e   : > { %436 = vst.msk [vmem:[#allocation2 + $0xb1] sm:$0xff] %vm422_vm2, %v402_v17  ;;  %439 = vst.msk [vmem:[#allocation2 + $0xd9] sm:$0xff] %vm422_vm2, %v405_v18  ;;  %v521_v25 = vld [vmem:[#allocation2 + $0x19] sm:$0xff]  ;;  %v7140_v26 = vld [vmem:[#allocation2 + $0x31] sm:$0xff] }
  0x2f   : > { %438 = vst.msk [vmem:[#allocation2 + $0xc9] sm:$0xff] %vm422_vm2, %v404_v19  ;;  %441 = vst.msk [vmem:[#allocation2 + $0xf1] sm:$0xff] %vm422_vm2, %v407_v20  ;;  %v522_v27 = vld [vmem:[#allocation2 + $0x21] sm:$0xff]  ;;  %587 = vrot.lane.b32.xlu1 %v521_v25, %s6968_s12  ;;  %591 = vrot.lane.b32.xlu0 %v7140_v26, %s6968_s12  ;;  %v7154_v30 = vld [vmem:[#allocation2 + $0x49] sm:$0xff] }
  0x30   : > { %440 = vst.msk [vmem:[#allocation2 + $0xe1] sm:$0xff] %vm422_vm2, %v406_v21  ;;  %443 = vst.msk [vmem:[#allocation2 + $0x109] sm:$0xff] %vm422_vm2, %v409_v22  ;;  %v7157_v31 = vld [vmem:[#allocation2 + $0x39] sm:$0xff]  ;;  %v7161_v32 = vld [vmem:[#allocation2 + $0x61] sm:$0xff] }
  0x31   : > { %442 = vst.msk [vmem:[#allocation2 + $0xf9] sm:$0xff] %vm422_vm2, %v408_v23  ;;  %445 = vst.msk [vmem:[#allocation2 + $0x121] sm:$0xff] %vm422_vm2, %v411_v24  ;;  %v7173_v38 = vld [vmem:[#allocation2 + $0x51] sm:$0xff]  ;;  %v7183_v41 = vld [vmem:[#allocation2 + $0x79] sm:$0xff] }
  0x32   : > { %1131 = vst.msk [vmem:[#allocation3 + $0x20] sm:$0xff] %vm333_vm0, %v522_v27  ;;  %1130 = vst.msk [vmem:[#allocation3 + $0x8] sm:$0xff] %vm333_vm0, %v521_v25  ;;  %v7181_v40 = vld [vmem:[#allocation2 + $0x32] sm:$0xff]  ;;  %v7185_v42 = vld [vmem:[#allocation2 + $0x4a] sm:$0xff] }
  0x33   : > { %444 = vst.msk [vmem:[#allocation2 + $0x111] sm:$0xff] %vm422_vm2, %v410_v28  ;;  %447 = vst.msk [vmem:[#allocation2 + $0x139] sm:$0xff] %vm422_vm2, %v413_v29  ;;  %589 = vrot.lane.b32.xlu1 %v522_v27, %s6968_s12  ;;  %595 = vrot.lane.b32.xlu0 %v7154_v30, %s6968_s12  ;;  %v7187_v43 = vld [vmem:[#allocation2 + $0x3a] sm:$0xff]  ;;  %v7193_v44 = vld [vmem:[#allocation2 + $0x52] sm:$0xff] }
  0x34   : > { %446 = vst.msk [vmem:[#allocation2 + $0x129] sm:$0xff] %vm422_vm2, %v412_v33  ;;  %449 = vst.msk [vmem:[#allocation2 + $0x151] sm:$0xff] %vm422_vm2, %v415_v34  ;;  %v7199_v45 = vld [vmem:[#allocation2 + $0x69] sm:$0xff]  ;;  %v7205_v46 = vld [vmem:[#allocation2 + $0x91] sm:$0xff] }
  0x35   : > { %448 = vst.msk [vmem:[#allocation2 + $0x141] sm:$0xff] %vm422_vm2, %v414_v35  ;;  %451 = vst.msk [vmem:[#allocation2 + $0x169] sm:$0xff] %vm422_vm2, %v417_v36  ;;  %v7209_v47 = vld [vmem:[#allocation2 + $0x81] sm:$0xff]  ;;  %v7213_v48 = vld [vmem:[#allocation2 + $0xa9] sm:$0xff] }
  0x36   : > { %450 = vst.msk [vmem:[#allocation2 + $0x159] sm:$0xff] %vm422_vm2, %v416_v37  ;;  %452 = vst.msk [vmem:[#allocation2 + $0x171] sm:$0xff] %vm422_vm2, %v418_v39  ;;  %v7215_v49 = vld [vmem:[#allocation2 + $0x99] sm:$0xff]  ;;  %v7222_v52 = vld [vmem:[#allocation2 + $0x30] sm:$0xff] }
  0x37   : > { %593 = vrot.lane.b32.xlu1 %v7157_v31, %s6968_s12  ;;  %599 = vrot.lane.b32.xlu0 %v7161_v32, %s6968_s12  ;;  %1771 = vst.msk [vmem:[#allocation3 + $0x10] sm:$0xff] %vm333_vm0, %v7181_v40  ;;  %1772 = vst.msk [vmem:[#allocation3 + $0x28] sm:$0xff] %vm333_vm0, %v7187_v43  ;;  %v7217_v51 = vld [vmem:[#allocation2 + $0x38] sm:$0xff]  ;;  %v7228_v55 = vld [vmem:[#allocation2 + $0xc1] sm:$0xff] }
  0x38   : > { %1773 = vst.msk [vmem:[#allocation3 + $0x40] sm:$0xff] %vm333_vm0, %v7185_v42  ;;  %1774 = vst.msk [vmem:[#allocation3 + $0x58] sm:$0xff] %vm333_vm0, %v7193_v44  ;;  %v7224_v54 = vld [vmem:[#allocation2 + $0x18] sm:$0xff]  ;;  %v7235_v56 = vld [vmem:[#allocation2 + $0x20] sm:$0xff] }
  0x39   : > { %487 = vst.msk [vmem:[#allocation3] sm:$0xff] %vm333_vm0, %v455_v50  ;;  %492 = vst.msk [vmem:[#allocation3 + $0x78] sm:$0xff] %vm333_vm0, %v7217_v51  ;;  %v7237_v57 = vld [vmem:[#allocation2 + $0x48] sm:$0xff]  ;;  %v7239_v58 = vld [vmem:[#allocation2 + $0x60] sm:$0xff] }
  0x3a   : > { %488 = vst.msk [vmem:[#allocation3 + $0x18] sm:$0xff] %vm333_vm0, %v456_v53  ;;  %489 = vst.msk [vmem:[#allocation3 + $0x30] sm:$0xff] %vm333_vm0, %v7224_v54  ;;  %v7249_v59 = vld [vmem:[#allocation2 + $0x50] sm:$0xff]  ;;  %v7251_v60 = vld [vmem:[#allocation2 + $0x78] sm:$0xff] }
  0x3b   : > { %597 = vrot.lane.b32.xlu1 %v7173_v38, %s6968_s12  ;;  %603 = vrot.lane.b32.xlu0 %v7183_v41, %s6968_s12  ;;  %491 = vst.msk [vmem:[#allocation3 + $0x60] sm:$0xff] %vm333_vm0, %v7222_v52  ;;  %490 = vst.msk [vmem:[#allocation3 + $0x48] sm:$0xff] %vm333_vm0, %v7235_v56  ;;  %v7253_v61 = vld [vmem:[#allocation2 + $0x68] sm:$0xff]  ;;  %v7255_v62 = vld [vmem:[#allocation2 + $0xb1] sm:$0xff] }
  0x3c   : > { %493 = vst.msk [vmem:[#allocation3 + $0x90] sm:$0xff] %vm333_vm0, %v7237_v57  ;;  %495 = vst.msk [vmem:[#allocation3 + $0xc0] sm:$0xff] %vm333_vm0, %v7239_v58  ;;  %v7263_v63 = vld [vmem:[#allocation2 + $0x90] sm:$0xff]  ;;  %v7265_v0 = vld [vmem:[#allocation2 + $0x80] sm:$0xff] }
  0x3d   : > { %494 = vst.msk [vmem:[#allocation3 + $0xa8] sm:$0xff] %vm333_vm0, %v7249_v59  ;;  %497 = vst.msk [vmem:[#allocation3 + $0xf0] sm:$0xff] %vm333_vm0, %v7251_v60  ;;  %v7267_v1 = vld [vmem:[#allocation2 + $0xa8] sm:$0xff]  ;;  %v7277_v2 = vld [vmem:[#allocation2 + $0x98] sm:$0xff] }
  0x3e   : > { %496 = vst.msk [vmem:[#allocation3 + $0xd8] sm:$0xff] %vm333_vm0, %v7253_v61  ;;  %499 = vst.msk [vmem:[#allocation3 + $0x120] sm:$0xff] %vm333_vm0, %v7263_v63  ;;  %v7279_v3 = vld [vmem:[#allocation2 + $0xc0] sm:$0xff]  ;;  %v7281_v4 = vld [vmem:[#allocation2 + $0xb0] sm:$0xff] }
  0x3f   : > { %601 = vrot.lane.b32.xlu1 %v7199_v45, %s6968_s12  ;;  %607 = vrot.lane.b32.xlu0 %v7205_v46, %s6968_s12  ;;  %498 = vst.msk [vmem:[#allocation3 + $0x108] sm:$0xff] %vm333_vm0, %v7265_v0  ;;  %501 = vst.msk [vmem:[#allocation3 + $0x150] sm:$0xff] %vm333_vm0, %v7267_v1  ;;  %v7283_v5 = vld [vmem:[#allocation2 + $0xd9] sm:$0xff]  ;;  %v7293_v7 = vld [vmem:[#allocation2 + $0xc8] sm:$0xff] }
  0x40   : > { %500 = vst.msk [vmem:[#allocation3 + $0x138] sm:$0xff] %vm333_vm0, %v7277_v2  ;;  %503 = vst.msk [vmem:[#allocation3 + $0x180] sm:$0xff] %vm333_vm0, %v7279_v3  ;;  %v7291_v6 = vld [vmem:[#allocation2 + $0xd8] sm:$0xff]  ;;  %v7295_v8 = vld [vmem:[#allocation2 + $0xf0] sm:$0xff] }
  0x41   : > { %502 = vst.msk [vmem:[#allocation3 + $0x168] sm:$0xff] %vm333_vm0, %v7281_v4  ;;  %505 = vst.msk [vmem:[#allocation3 + $0x1b0] sm:$0xff] %vm333_vm0, %v7291_v6  ;;  %v7305_v9 = vld [vmem:[#allocation2 + $0xe0] sm:$0xff]  ;;  %v7307_v10 = vld [vmem:[#allocation2 + $0x108] sm:$0xff] }
  0x42   : > { %504 = vst.msk [vmem:[#allocation3 + $0x198] sm:$0xff] %vm333_vm0, %v7293_v7  ;;  %507 = vst.msk [vmem:[#allocation3 + $0x1e0] sm:$0xff] %vm333_vm0, %v7295_v8  ;;  %v7309_v11 = vld [vmem:[#allocation2 + $0xf8] sm:$0xff]  ;;  %v7311_v12 = vld [vmem:[#allocation2 + $0xc9] sm:$0xff] }
  0x43   : > { %605 = vrot.lane.b32.xlu1 %v7209_v47, %s6968_s12  ;;  %611 = vrot.lane.b32.xlu0 %v7213_v48, %s6968_s12  ;;  %10278 = vst [vmem:[#allocation4_spill] sm:$0xff] %v7307_v10  ;;  %506 = vst.msk [vmem:[#allocation3 + $0x1c8] sm:$0xff] %vm333_vm0, %v7305_v9  ;;  %v7321_v13 = vld [vmem:[#allocation2 + $0x120] sm:$0xff]  ;;  %v539_v14 = vld [vmem:[#allocation2 + $0xf1] sm:$0xff] }
  0x44   : > { %509 = vst.msk [vmem:[#allocation3 + $0x210] sm:$0xff] %vm333_vm0, %v7307_v10  ;;  %508 = vst.msk [vmem:[#allocation3 + $0x1f8] sm:$0xff] %vm333_vm0, %v7309_v11  ;;  %v7325_v15 = vld [vmem:[#allocation2 + $0x110] sm:$0xff]  ;;  %v7331_v16 = vld [vmem:[#allocation2 + $0xe1] sm:$0xff] }
  0x45   : > { %10279 = vst [vmem:[#allocation5_spill] sm:$0xff] %v7321_v13  ;;  %511 = vst.msk [vmem:[#allocation3 + $0x240] sm:$0xff] %vm333_vm0, %v7321_v13  ;;  %v7335_v17 = vld [vmem:[#allocation2 + $0x138] sm:$0xff]  ;;  %v541_v18 = vld [vmem:[#allocation2 + $0x109] sm:$0xff] }
  0x46   : > { %510 = vst.msk [vmem:[#allocation3 + $0x228] sm:$0xff] %vm333_vm0, %v7325_v15  ;;  %10280 = vst [vmem:[#allocation6_spill] sm:$0xff] %v7335_v17  ;;  %v7339_v19 = vld [vmem:[#allocation2 + $0x128] sm:$0xff]  ;;  %v540_v20 = vld [vmem:[#allocation2 + $0xf9] sm:$0xff] }
  0x47   : > { %609 = vrot.lane.b32.xlu1 %v7215_v49, %s6968_s12  ;;  %615 = vrot.lane.b32.xlu0 %v7228_v55, %s6968_s12  ;;  %513 = vst.msk [vmem:[#allocation3 + $0x270] sm:$0xff] %vm333_vm0, %v7335_v17  ;;  %10281 = vst [vmem:[#allocation7_spill] sm:$0xff] %v7339_v19  ;;  %v7346_v21 = vld [vmem:[#allocation2 + $0x150] sm:$0xff]  ;;  %v543_v22 = vld [vmem:[#allocation2 + $0x121] sm:$0xff] }
  0x48   : > { %512 = vst.msk [vmem:[#allocation3 + $0x258] sm:$0xff] %vm333_vm0, %v7339_v19  ;;  %10282 = vst [vmem:[#allocation8_spill] sm:$0xff] %v7346_v21  ;;  %v7350_v23 = vld [vmem:[#allocation2 + $0x140] sm:$0xff]  ;;  %v542_v24 = vld [vmem:[#allocation2 + $0x111] sm:$0xff] }
  0x49   : > { %515 = vst.msk [vmem:[#allocation3 + $0x2a0] sm:$0xff] %vm333_vm0, %v7346_v21  ;;  %10283 = vst [vmem:[#allocation9_spill] sm:$0xff] %v7350_v23  ;;  %v7356_v25 = vld [vmem:[#allocation2 + $0x168] sm:$0xff]  ;;  %v545_v27 = vld [vmem:[#allocation2 + $0x139] sm:$0xff] }
  0x4a   : > { %514 = vst.msk [vmem:[#allocation3 + $0x288] sm:$0xff] %vm333_vm0, %v7350_v23  ;;  %10284 = vst [vmem:[#allocation10_spill] sm:$0xff] %v7356_v25  ;;  %v7360_v28 = vld [vmem:[#allocation2 + $0x158] sm:$0xff]  ;;  %v544_v29 = vld [vmem:[#allocation2 + $0x129] sm:$0xff] }
  0x4b   : > { %613 = vrot.lane.b32.xlu1 %v7255_v62, %s6968_s12  ;;  %619 = vrot.lane.b32.xlu0 %v7283_v5, %s6968_s12  ;;  %517 = vst.msk [vmem:[#allocation3 + $0x2d0] sm:$0xff] %vm333_vm0, %v7356_v25  ;;  %10285 = vst [vmem:[#allocation11_spill] sm:$0xff] %v7360_v28  ;;  %v547_v33 = vld [vmem:[#allocation2 + $0x151] sm:$0xff]  ;;  %v546_v35 = vld [vmem:[#allocation2 + $0x141] sm:$0xff] }
  0x4c   : > { %516 = vst.msk [vmem:[#allocation3 + $0x2b8] sm:$0xff] %vm333_vm0, %v7360_v28  ;;  %v7366_v34 = vld [vmem:[#allocation2 + $0x170] sm:$0xff]  ;;  %v548_v37 = vld [vmem:[#allocation2 + $0x159] sm:$0xff]  ;;  %v712_v39 = vld [vmem:[#allocation2 + $0x2] sm:$0xff] }
  0x4d   : > { %10286 = vst [vmem:[#allocation12_spill] sm:$0xff] %v7366_v34  ;;  %518 = vst.msk [vmem:[#allocation3 + $0x2e8] sm:$0xff] %vm333_vm0, %v7366_v34  ;;  %v549_v36 = vld [vmem:[#allocation2 + $0x169] sm:$0xff]  ;;  %v550_v50 = vld [vmem:[#allocation2 + $0x171] sm:$0xff] }
  0x4e   : > { %v7377_v53 = vld [vmem:[#allocation2 + $0x1a] sm:$0xff]  ;;  %v7434_v34 = vld [vmem:[#allocation2 + $0xb2] sm:$0xff]  ;;  %v6922_v25 = vld [vmem:[%s10253_s2 + $0x28] sm:$0xff]  }
  0x4f   : > { %617 = vrot.lane.b32.xlu1 %v7311_v12, %s6968_s12  ;;  %623 = vrot.lane.b32.xlu0 %v539_v14, %s6968_s12  ;;  %v713_v14 = vld [vmem:[#allocation2 + $0xa] sm:$0xff]  ;;  %v6924_v21 = vld [vmem:[%s10253_s2 + $0x20] sm:$0xff]   ;;  %v6926_v23 = vld [vmem:[%s10253_s2 + $0x18] sm:$0xff]  }
  0x50   : > { %v7448_v28 = vld [vmem:[#allocation2 + $0xca] sm:$0xff]  ;;  %v7462_v17 = vld [vmem:[#allocation2 + $0xe2] sm:$0xff]  ;;  %v7476_v13 = vld [vmem:[#allocation2 + $0xfa] sm:$0xff] }
  0x51   : > { %v6930_v19 = vld [vmem:[%s10253_s2 + $0x8] sm:$0xff]  }
  0x53   : > { %621 = vrot.lane.b32.xlu1 %v7331_v16, %s6968_s12  ;;  %627 = vrot.lane.b32.xlu0 %v541_v18, %s6968_s12  ;;  %v715_v18 = vld [vmem:[#allocation2 + $0x22] sm:$0xff] }
  0x57   : > { %625 = vrot.lane.b32.xlu1 %v540_v20, %s6968_s12  ;;  %631 = vrot.lane.b32.xlu0 %v543_v22, %s6968_s12  ;;  %v7388_v20 = vld [vmem:[#allocation2 + $0x62] sm:$0xff]  ;;  %v7394_v22 = vld [vmem:[#allocation2 + $0x7a] sm:$0xff] }
  0x5b   : > { %629 = vrot.lane.b32.xlu1 %v542_v24, %s6968_s12  ;;  %635 = vrot.lane.b32.xlu0 %v545_v27, %s6968_s12  ;;  %v7398_v24 = vld [vmem:[#allocation2 + $0x6a] sm:$0xff]  ;;  %v7402_v27 = vld [vmem:[#allocation2 + $0x92] sm:$0xff] }
  0x5f   : > { %633 = vrot.lane.b32.xlu1 %v544_v29, %s6968_s12  ;;  %639 = vrot.lane.b32.xlu0 %v547_v33, %s6968_s12  ;;  %v7406_v29 = vld [vmem:[#allocation2 + $0x82] sm:$0xff]  ;;  %v7410_v33 = vld [vmem:[#allocation2 + $0xaa] sm:$0xff] }
  0x63   : > { %637 = vrot.lane.b32.xlu1 %v546_v35, %s6968_s12  ;;  %643 = vrot.lane.b32.xlu0 %v549_v36, %s6968_s12  ;;  %v6917_v35 = vld [vmem:[%s10253_s2 + $0x78] sm:$0xff]  }
  0x64   : > { %v6918_v36 = vld [vmem:[%s10253_s2 + $0x38] sm:$0xff]   ;;  %6545 = vmatprep.subr.bf16.mxu0 %v6917_v35 }
  0x65   : > { %6546 = vmatpush3.bf16.msra.mxu0 %v6918_v36  ;;  %v7438_v35 = vld [vmem:[#allocation2 + $0xda] sm:$0xff]  ;;  %v6921_v36 = vld [vmem:[%s10253_s2 + $0x68] sm:$0xff]  }
  0x67   : > { %641 = vrot.lane.b32.xlu1 %v548_v37, %s6968_s12  ;;  %776 = vrot.lane.b32.xlu0 %v712_v39, %s6969_s13  ;;  %v7420_v37 = vld [vmem:[#allocation2 + $0x9a] sm:$0xff]  ;;  %v7424_v39 = vld [vmem:[#allocation2 + $0xc2] sm:$0xff] }
  0x6b   : > { %645 = vrot.lane.b32.xlu1 %v550_v50, %s6968_s12  ;;  %780 = vrot.lane.b32.xlu0 %v7377_v53, %s6969_s13  ;;  %v6919_v50 = vld [vmem:[%s10253_s2 + $0x70] sm:$0xff]  }
  0x6c   : > { %6547 = vmatprep.subr.bf16.mxu0 %v6919_v50  ;;  %v7452_v50 = vld [vmem:[#allocation2 + $0xf2] sm:$0xff] }
  0x6f   : > { %778 = vrot.lane.b32.xlu1 %v713_v14, %s6969_s13  ;;  %784 = vrot.lane.b32.xlu0 %v7181_v40, %s6969_s13  ;;  %v6920_v14 = vld [vmem:[%s10253_s2 + $0x30] sm:$0xff]  }
  0x70   : > { %6548 = vmatpush3.bf16.msra.mxu0 %v6920_v14  ;;  %v6923_v14 = vld [vmem:[%s10253_s2 + $0x60] sm:$0xff]  }
  0x71   : > { %6549 = vmatprep.subr.bf16.mxu0 %v6921_v36  ;;  %v6925_v36 = vld [vmem:[%s10253_s2 + $0x58] sm:$0xff]  }
  0x73   : > { %782 = vrot.lane.b32.xlu1 %v715_v18, %s6969_s13  ;;  %788 = vrot.lane.b32.xlu0 %v7185_v42, %s6969_s13 }
  0x74   : > { %6550 = vmatpush3.bf16.msra.mxu0 %v6922_v25  ;;  %v7466_v25 = vld [vmem:[#allocation2 + $0x10a] sm:$0xff] }
  0x75   : > { %6551 = vmatprep.subr.bf16.mxu0 %v6923_v14  ;;  %10287 = vst [vmem:[#allocation13_spill] sm:$0xff] %v7466_v25  ;;  %v6928_v14 = vld [vmem:[%s10253_s2 + $0x10] sm:$0xff]  }
  0x77   : > { %786 = vrot.lane.b32.xlu1 %v7187_v43, %s6969_s13  ;;  %792 = vrot.lane.b32.xlu0 %v7388_v20, %s6969_s13 }
  0x78   : > { %6552 = vmatpush3.bf16.msra.mxu0 %v6924_v21  ;;  %v6927_v21 = vld [vmem:[%s10253_s2 + $0x50] sm:$0xff]  }
  0x79   : > { %6553 = vmatprep.subr.bf16.mxu0 %v6925_v36 }
  0x7b   : > { %790 = vrot.lane.b32.xlu1 %v7193_v44, %s6969_s13  ;;  %796 = vrot.lane.b32.xlu0 %v7394_v22, %s6969_s13 }
  0x7c   : > { %6554 = vmatpush3.bf16.msra.mxu0 %v6926_v23  ;;  %v6929_v23 = vld [vmem:[%s10253_s2 + $0x48] sm:$0xff]  }
  0x7d   : > { %6555 = vmatprep.subr.bf16.mxu0 %v6927_v21  ;;  %v6932_v21 = vld [vmem:[%s10253_s2 + $0x88] sm:$0xff]  }
  0x7e   : > { %6823 = vmatprep.subr.bf16.mxu1 %v6932_v21 }
  0x7f   : > { %794 = vrot.lane.b32.xlu1 %v7398_v24, %s6969_s13  ;;  %800 = vrot.lane.b32.xlu0 %v7402_v27, %s6969_s13 }
  0x80   : > { %6556 = vmatpush3.bf16.msra.mxu0 %v6928_v14  ;;  %6824 = vmatpush3.bf16.msra.mxu1 %v6932_v21 }
  0x81   : > { %6557 = vmatprep.subr.bf16.mxu0 %v6929_v23  ;;  %v7517_v23 = vld [vmem:[#allocation2 + $0xf1] sm:$0xff] }
  0x82   : > { %1148 = vst.msk [vmem:[#allocation3 + $0x1b8] sm:$0xff] %vm333_vm0, %v7517_v23 }
  0x83   : > { %798 = vrot.lane.b32.xlu1 %v7406_v29, %s6969_s13  ;;  %804 = vrot.lane.b32.xlu0 %v7410_v33, %s6969_s13 }
  0x84   : > { %6558 = vmatpush3.bf16.msra.mxu0 %v6930_v19 }
  0x86   : > { %v584_v36 = vpop.permute.xlu0 %583 }
  0x87   : > { %802 = vrot.lane.b32.xlu1 %v7420_v37, %s6969_s13  ;;  %808 = vrot.lane.b32.xlu0 %v7424_v39, %s6969_s13  ;;  %680 = vst.msk [vmem:[#allocation3] sm:$0xff] %vm679_vm3, %v584_v36  ;;  %v6934_v36 = vld [vmem:[%s10253_s2 + $0x80] sm:$0xff]  }
  0x88   : > { %6825 = vmatprep.subr.bf16.mxu1 %v6934_v36 }
  0x89   : > { %6826 = vmatpush3.bf16.msra.mxu1 %v6934_v36  ;;  %v1103_v36 = vld [vmem:[#allocation2 + $0x51] sm:$0xff] }
  0x8a   : > { %1135 = vst.msk [vmem:[#allocation3 + $0x80] sm:$0xff] %vm333_vm0, %v1103_v36  ;;  %v7586_v36 = vld [vmem:[#allocation2 + $0x112] sm:$0xff] }
  0x8b   : > { %806 = vrot.lane.b32.xlu1 %v7434_v34, %s6969_s13  ;;  %812 = vrot.lane.b32.xlu0 %v7438_v35, %s6969_s13  ;;  %1790 = vst.msk [vmem:[#allocation3 + $0x1d8] sm:$0xff] %vm333_vm0, %v7586_v36 }
  0x8f   : > { %810 = vrot.lane.b32.xlu1 %v7448_v28, %s6969_s13  ;;  %816 = vrot.lane.b32.xlu0 %v7452_v50, %s6969_s13 }
  0x93   : > { %814 = vrot.lane.b32.xlu1 %v7462_v17, %s6969_s13  ;;  %820 = vrot.lane.b32.xlu0 %v7466_v25, %s6969_s13  ;;  %v1101_v25 = vld [vmem:[#allocation2 + $0x39] sm:$0xff] }
  0x94   : > { %1133 = vst.msk [vmem:[#allocation3 + $0x50] sm:$0xff] %vm333_vm0, %v1101_v25  ;;  %v6933_v25 = vld [vmem:[%s10253_s2] sm:$0xff]  }
  0x97   : > { %818 = vrot.lane.b32.xlu1 %v7476_v13, %s6969_s13  ;;  %1228 = vrot.lane.b32.xlu0 %v715_v18, %s6968_s12  ;;  %v1100_v18 = vld [vmem:[#allocation2 + $0x31] sm:$0xff] }
  0x98   : > { %1132 = vst.msk [vmem:[#allocation3 + $0x38] sm:$0xff] %vm333_vm0, %v1100_v18  ;;  %v586_v14 = vpop.permute.xlu0 %585 }
  0x99   : > { %681 = vst.msk [vmem:[#allocation3 + $0x18] sm:$0xff] %vm679_vm3, %v586_v14 }
  0x9b   : > { %1226 = vrot.lane.b32.xlu1 %v7377_v53, %s6968_s12  ;;  %1421 = vrot.lane.b32.xlu0 %v7217_v51, %s6969_s13  ;;  %v6931_v53 = vld [vmem:[%s10253_s2 + $0x40] sm:$0xff]  }
  0x9c   : > { %6559 = vmatprep.subr.bf16.mxu0 %v6931_v53  ;;  %v1808_v53 = vld [vmem:[#allocation3 + $0x28] sm:$0xff] }
  0x9d   : > { %6560 = vmatpush3.bf16.msra.mxu0 %v6933_v25  ;;  %v1811_v25 = vld [vmem:[#allocation3 + $0x40] sm:$0xff] }
  0x9f   : > { %1419 = vrot.lane.b32.xlu1 %v7222_v52, %s6969_s13  ;;  %1613 = vrot.lane.b32.xlu0 %v7157_v31, %s6970_s14  ;;  %v1805_v31 = vld [vmem:[#allocation3 + $0x10] sm:$0xff] }
  0xa0   : > { %v1901_v21 = vpack.c.bf16 %v1808_v53, %v1805_v31  ;;  %v1102_v31 = vld [vmem:[#allocation2 + $0x49] sm:$0xff] }
  0xa1   : > { %v588_v19 = vpop.permute.xlu1 %587  ;;  %v592_v18 = vpop.permute.xlu0 %591  ;;  %1134 = vst.msk [vmem:[#allocation3 + $0x68] sm:$0xff] %vm333_vm0, %v1102_v31 }
  0xa2   : > { %682 = vst.msk [vmem:[#allocation3 + $0x30] sm:$0xff] %vm679_vm3, %v588_v19  ;;  %684 = vst.msk [vmem:[#allocation3 + $0x60] sm:$0xff] %vm679_vm3, %v592_v18  ;;  %v1814_v19 = vld [vmem:[#allocation3 + $0x58] sm:$0xff]  ;;  %6827 = vmatprep.mubr.msk.bf16.mxu1 %vm333_vm0, %v1901_v21 }
  0xa3   : > { %1611 = vrot.lane.b32.xlu1 %v7140_v26, %s6970_s14  ;;  %971 = vrot.lane.b32.xlu0 %v7235_v56, %s6970_s14  ;;  %v7530_v26 = vld [vmem:[#allocation2 + $0xf9] sm:$0xff]  ;;  %v1904_v10 = vpack.c.bf16 %v1814_v19, %v1811_v25  ;;  %v1105_v19 = vld [vmem:[#allocation2 + $0x69] sm:$0xff] }
  0xa4   : > { %1149 = vst.msk [vmem:[#allocation3 + $0x1d0] sm:$0xff] %vm333_vm0, %v7530_v26  ;;  %1137 = vst.msk [vmem:[#allocation3 + $0xb0] sm:$0xff] %vm333_vm0, %v1105_v19  ;;  %v7608_v19 = vld [vmem:[#allocation2 + $0x129] sm:$0xff] }
  0xa5   : > { %v590_v14 = vpop.permute.xlu1 %589  ;;  %v596_v18 = vpop.permute.xlu0 %595  ;;  %6828 = vmatmul.mubr.msk.bf16.vlgmr.msra.gmra.mxu1 %vm333_vm0, %v1904_v10  ;;  %v7556_v10 = vld [vmem:[#allocation2 + $0x109] sm:$0xff]  ;;  %1153 = vst.msk [vmem:[#allocation3 + $0x230] sm:$0xff] %vm333_vm0, %v7608_v19 }
  0xa6   : > { %683 = vst.msk [vmem:[#allocation3 + $0x48] sm:$0xff] %vm679_vm3, %v590_v14  ;;  %686 = vst.msk [vmem:[#allocation3 + $0x90] sm:$0xff] %vm679_vm3, %v596_v18  ;;  %v1743_v18 = vld [vmem:[#allocation2 + $0x62] sm:$0xff] }
  0xa7   : > { %969 = vrot.lane.b32.xlu1 %v7224_v54, %s6970_s14  ;;  %1232 = vrot.lane.b32.xlu0 %v7187_v43, %s6968_s12  ;;  %1150 = vst.msk [vmem:[#allocation3 + $0x1e8] sm:$0xff] %vm333_vm0, %v7556_v10  ;;  %1775 = vst.msk [vmem:[#allocation3 + $0x70] sm:$0xff] %vm333_vm0, %v1743_v18  ;;  %v1106_v18 = vld [vmem:[#allocation2 + $0x79] sm:$0xff] }
  0xa8   : > { %1138 = vst.msk [vmem:[#allocation3 + $0xc8] sm:$0xff] %vm333_vm0, %v1106_v18  ;;  %v1112_v18 = vld [vmem:[#allocation2 + $0xc1] sm:$0xff] }
  0xa9   : > { %v594_v56 = vpop.permute.xlu1 %593  ;;  %v600_v54 = vpop.permute.xlu0 %599  ;;  %1144 = vst.msk [vmem:[#allocation3 + $0x158] sm:$0xff] %vm333_vm0, %v1112_v18 }
  0xaa   : > { %685 = vst.msk [vmem:[#allocation3 + $0x78] sm:$0xff] %vm679_vm3, %v594_v56  ;;  %688 = vst.msk [vmem:[#allocation3 + $0xc0] sm:$0xff] %vm679_vm3, %v600_v54  ;;  %v1744_v56 = vld [vmem:[#allocation2 + $0x6a] sm:$0xff] }
  0xab   : > { %1230 = vrot.lane.b32.xlu1 %v7181_v40, %s6968_s12  ;;  %1425 = vrot.lane.b32.xlu0 %v7249_v59, %s6969_s13  ;;  %1776 = vst.msk [vmem:[#allocation3 + $0x88] sm:$0xff] %vm333_vm0, %v1744_v56 }
  0xad   : > { %v598_v53 = vpop.permute.xlu1 %597  ;;  %v604_v43 = vpop.permute.xlu0 %603 }
  0xae   : > { %687 = vst.msk [vmem:[#allocation3 + $0xa8] sm:$0xff] %vm679_vm3, %v598_v53  ;;  %690 = vst.msk [vmem:[#allocation3 + $0xf0] sm:$0xff] %vm679_vm3, %v604_v43  ;;  %v7598_v43 = vld [vmem:[#allocation2 + $0x121] sm:$0xff] }
  0xaf   : > { %1423 = vrot.lane.b32.xlu1 %v7237_v57, %s6969_s13  ;;  %1617 = vrot.lane.b32.xlu0 %v7173_v38, %s6970_s14  ;;  %v7566_v38 = vld [vmem:[#allocation2 + $0x111] sm:$0xff]  ;;  %1152 = vst.msk [vmem:[#allocation3 + $0x218] sm:$0xff] %vm333_vm0, %v7598_v43 }
  0xb0   : > { %1151 = vst.msk [vmem:[#allocation3 + $0x200] sm:$0xff] %vm333_vm0, %v7566_v38 }
  0xb1   : > { %v602_v40 = vpop.permute.xlu1 %601  ;;  %v608_v14 = vpop.permute.xlu0 %607 }
  0xb2   : > { %689 = vst.msk [vmem:[#allocation3 + $0xd8] sm:$0xff] %vm679_vm3, %v602_v40  ;;  %692 = vst.msk [vmem:[#allocation3 + $0x120] sm:$0xff] %vm679_vm3, %v608_v14  ;;  %v1817_v14 = vld [vmem:[#allocation3 + $0x70] sm:$0xff] }
  0xb3   : > { %1615 = vrot.lane.b32.xlu1 %v7154_v30, %s6970_s14  ;;  %975 = vrot.lane.b32.xlu0 %v7217_v51, %s6970_s14 }
  0xb5   : > { %v606_v21 = vpop.permute.xlu1 %605  ;;  %v612_v25 = vpop.permute.xlu0 %611 }
  0xb6   : > { %691 = vst.msk [vmem:[#allocation3 + $0x108] sm:$0xff] %vm679_vm3, %v606_v21  ;;  %694 = vst.msk [vmem:[#allocation3 + $0x150] sm:$0xff] %vm679_vm3, %v612_v25  ;;  %v1820_v21 = vld [vmem:[#allocation3 + $0x88] sm:$0xff] }
  0xb7   : > { %973 = vrot.lane.b32.xlu1 %v7222_v52, %s6970_s14  ;;  %1236 = vrot.lane.b32.xlu0 %v7193_v44, %s6968_s12  ;;  %v1104_v52 = vld [vmem:[#allocation2 + $0x61] sm:$0xff] }
  0xb8   : > { %1136 = vst.msk [vmem:[#allocation3 + $0x98] sm:$0xff] %vm333_vm0, %v1104_v52  ;;  %v1746_v44 = vld [vmem:[#allocation2 + $0x82] sm:$0xff] }
  0xb9   : > { %v610_v30 = vpop.permute.xlu1 %609  ;;  %v616_v51 = vpop.permute.xlu0 %615  ;;  %1778 = vst.msk [vmem:[#allocation3 + $0xb8] sm:$0xff] %vm333_vm0, %v1746_v44 }
  0xba   : > { %693 = vst.msk [vmem:[#allocation3 + $0x138] sm:$0xff] %vm679_vm3, %v610_v30  ;;  %696 = vst.msk [vmem:[#allocation3 + $0x180] sm:$0xff] %vm679_vm3, %v616_v51 }
  0xbb   : > { %1234 = vrot.lane.b32.xlu1 %v7185_v42, %s6968_s12  ;;  %1429 = vrot.lane.b32.xlu0 %v7253_v61, %s6969_s13  ;;  %v1745_v42 = vld [vmem:[#allocation2 + $0x7a] sm:$0xff] }
  0xbc   : > { %1777 = vst.msk [vmem:[#allocation3 + $0xa0] sm:$0xff] %vm333_vm0, %v1745_v42 }
  0xbd   : > { %v614_v54 = vpop.permute.xlu1 %613  ;;  %v620_v31 = vpop.permute.xlu0 %619 }
  0xbe   : > { %695 = vst.msk [vmem:[#allocation3 + $0x168] sm:$0xff] %vm679_vm3, %v614_v54  ;;  %698 = vst.msk [vmem:[#allocation3 + $0x1b0] sm:$0xff] %vm679_vm3, %v620_v31  ;;  %v1107_v54 = vld [vmem:[#allocation2 + $0x81] sm:$0xff]  ;;  %v7640_v31 = vld [vmem:[#allocation2 + $0x139] sm:$0xff] }
  0xbf   : > { %1427 = vrot.lane.b32.xlu1 %v7239_v58, %s6969_s13  ;;  %1621 = vrot.lane.b32.xlu0 %v7199_v45, %s6970_s14  ;;  %v1907_v45 = vpack.c.bf16 %v1820_v21, %v1817_v14  ;;  %1139 = vst.msk [vmem:[#allocation3 + $0xe0] sm:$0xff] %vm333_vm0, %v1107_v54  ;;  %1154 = vst.msk [vmem:[#allocation3 + $0x248] sm:$0xff] %vm333_vm0, %v7640_v31  ;;  %v1109_v14 = vld [vmem:[#allocation2 + $0x99] sm:$0xff]  ;;  %v419_v54 = vld [vmem:[%s7095_s11 + $0xf0] sm:$0xff] }
  0xc0   : > { %v1826_v51 = vld [vmem:[#allocation3 + $0xb8] sm:$0xff]  ;;  %1141 = vst.msk [vmem:[#allocation3 + $0x110] sm:$0xff] %vm333_vm0, %v1109_v14  ;;  %v1114_v14 = vld [vmem:[#allocation2 + $0xd9] sm:$0xff] }
  0xc1   : > { %v618_v53 = vpop.permute.xlu1 %617  ;;  %v624_v40 = vpop.permute.xlu0 %623  ;;  %6831 = vmatprep.mubr.msk.bf16.mxu1 %vm333_vm0, %v1907_v45  ;;  %453 = vst.msk [vmem:[#allocation2 + $0x181] sm:$0xff] %vm422_vm2, %v419_v54  ;;  %v1752_v54 = vld [vmem:[#allocation2 + $0xca] sm:$0xff] }
  0xc2   : > { %697 = vst.msk [vmem:[#allocation3 + $0x198] sm:$0xff] %vm679_vm3, %v618_v53  ;;  %700 = vst.msk [vmem:[#allocation3 + $0x1e0] sm:$0xff] %vm679_vm3, %v624_v40  ;;  %v7642_v53 = vld [vmem:[#allocation2 + $0x141] sm:$0xff] }
  0xc3   : > { %1619 = vrot.lane.b32.xlu1 %v7161_v32, %s6970_s14  ;;  %979 = vrot.lane.b32.xlu0 %v7249_v59, %s6970_s14  ;;  %v1823_v30 = vld [vmem:[#allocation3 + $0xa0] sm:$0xff]  ;;  %1155 = vst.msk [vmem:[#allocation3 + $0x260] sm:$0xff] %vm333_vm0, %v7642_v53  ;;  %1146 = vst.msk [vmem:[#allocation3 + $0x188] sm:$0xff] %vm333_vm0, %v1114_v14 }
  0xc4   : > { %v1910_v32 = vpack.c.bf16 %v1826_v51, %v1823_v30  ;;  %v7682_v30 = vld [vmem:[#allocation2 + $0x159] sm:$0xff]  ;;  %v1110_v51 = vld [vmem:[#allocation2 + $0xa9] sm:$0xff]  ;;  %1784 = vst.msk [vmem:[#allocation3 + $0x148] sm:$0xff] %vm333_vm0, %v1752_v54 }
  0xc5   : > { %v622_v25 = vpop.permute.xlu1 %621  ;;  %v628_v52 = vpop.permute.xlu0 %627  ;;  %1157 = vst.msk [vmem:[#allocation3 + $0x290] sm:$0xff] %vm333_vm0, %v7682_v30  ;;  %1142 = vst.msk [vmem:[#allocation3 + $0x128] sm:$0xff] %vm333_vm0, %v1110_v51  ;;  %v7899_v54 = vld [vmem:[#allocation2 + $0x142] sm:$0xff] }
  0xc6   : > { %699 = vst.msk [vmem:[#allocation3 + $0x1c8] sm:$0xff] %vm679_vm3, %v622_v25  ;;  %702 = vst.msk [vmem:[#allocation3 + $0x210] sm:$0xff] %vm679_vm3, %v628_v52  ;;  %6832 = vmatmul.mubr.msk.bf16.gmra.mxu1 %vm333_vm0, %v1910_v32 }
  0xc7   : > { %977 = vrot.lane.b32.xlu1 %v7237_v57, %s6970_s14  ;;  %1240 = vrot.lane.b32.xlu0 %v7398_v24, %s6968_s12 }
  0xc9   : > { %v626_v59 = vpop.permute.xlu1 %625  ;;  %v632_v57 = vpop.permute.xlu0 %631 }
  0xca   : > { %701 = vst.msk [vmem:[#allocation3 + $0x1f8] sm:$0xff] %vm679_vm3, %v626_v59  ;;  %704 = vst.msk [vmem:[#allocation3 + $0x240] sm:$0xff] %vm679_vm3, %v632_v57 }
  0xcb   : > { %1238 = vrot.lane.b32.xlu1 %v7388_v20, %s6968_s12  ;;  %1433 = vrot.lane.b32.xlu0 %v7265_v0, %s6969_s13 }
  0xcd   : > { %v630_v56 = vpop.permute.xlu1 %629  ;;  %v636_v24 = vpop.permute.xlu0 %635 }
  0xce   : > { %703 = vst.msk [vmem:[#allocation3 + $0x228] sm:$0xff] %vm679_vm3, %v630_v56  ;;  %706 = vst.msk [vmem:[#allocation3 + $0x270] sm:$0xff] %vm679_vm3, %v636_v24  ;;  %v1113_v56 = vld [vmem:[#allocation2 + $0xc9] sm:$0xff] }
  0xcf   : > { %1431 = vrot.lane.b32.xlu1 %v7251_v60, %s6969_s13  ;;  %1625 = vrot.lane.b32.xlu0 %v7209_v47, %s6970_s14  ;;  %1145 = vst.msk [vmem:[#allocation3 + $0x170] sm:$0xff] %vm333_vm0, %v1113_v56 }
  0xd1   : > { %v634_v20 = vpop.permute.xlu1 %633  ;;  %v640_v42 = vpop.permute.xlu0 %639 }
  0xd2   : > { %705 = vst.msk [vmem:[#allocation3 + $0x258] sm:$0xff] %vm679_vm3, %v634_v20  ;;  %708 = vst.msk [vmem:[#allocation3 + $0x2a0] sm:$0xff] %vm679_vm3, %v640_v42  ;;  %v420_v20 = vld [vmem:[%s7095_s11 + $0xf8] sm:$0xff] }
  0xd3   : > { %1623 = vrot.lane.b32.xlu1 %v7183_v41, %s6970_s14  ;;  %983 = vrot.lane.b32.xlu0 %v7253_v61, %s6970_s14  ;;  %v1108_v61 = vld [vmem:[#allocation2 + $0x91] sm:$0xff]  ;;  %454 = vst.msk [vmem:[#allocation2 + $0x189] sm:$0xff] %vm422_vm2, %v420_v20 }
  0xd4   : > { %1140 = vst.msk [vmem:[#allocation3 + $0xf8] sm:$0xff] %vm333_vm0, %v1108_v61 }
  0xd5   : > { %v638_v44 = vpop.permute.xlu1 %637  ;;  %v644_v47 = vpop.permute.xlu0 %643 }
  0xd6   : > { %707 = vst.msk [vmem:[#allocation3 + $0x288] sm:$0xff] %vm679_vm3, %v638_v44  ;;  %710 = vst.msk [vmem:[#allocation3 + $0x2d0] sm:$0xff] %vm679_vm3, %v644_v47  ;;  %v1747_v44 = vld [vmem:[#allocation2 + $0x92] sm:$0xff]  ;;  %v1748_v47 = vld [vmem:[#allocation2 + $0x9a] sm:$0xff] }
  0xd7   : > { %981 = vrot.lane.b32.xlu1 %v7239_v58, %s6970_s14  ;;  %1244 = vrot.lane.b32.xlu0 %v7406_v29, %s6968_s12  ;;  %1779 = vst.msk [vmem:[#allocation3 + $0xd0] sm:$0xff] %vm333_vm0, %v1747_v44  ;;  %1780 = vst.msk [vmem:[#allocation3 + $0xe8] sm:$0xff] %vm333_vm0, %v1748_v47  ;;  %v1754_v44 = vld [vmem:[#allocation2 + $0xe2] sm:$0xff] }
  0xd8   : > { %1786 = vst.msk [vmem:[#allocation3 + $0x178] sm:$0xff] %vm333_vm0, %v1754_v44  ;;  %v1756_v44 = vld [vmem:[#allocation2 + $0xfa] sm:$0xff] }
  0xd9   : > { %v642_v41 = vpop.permute.xlu1 %641  ;;  %v777_v58 = vpop.permute.xlu0 %776  ;;  %1788 = vst.msk [vmem:[#allocation3 + $0x1a8] sm:$0xff] %vm333_vm0, %v1756_v44 }
  0xda   : > { %709 = vst.msk [vmem:[#allocation3 + $0x2b8] sm:$0xff] %vm679_vm3, %v642_v41  ;;  %v1749_v41 = vld [vmem:[#allocation2 + $0xaa] sm:$0xff] }
  0xdb   : > { %1242 = vrot.lane.b32.xlu1 %v7394_v22, %s6968_s12  ;;  %873 = vst.msk [vmem:[#allocation3] sm:$0xff] %vm872_vm4, %v777_v58  ;;  %1437 = vrot.lane.b32.xlu0 %v7277_v2, %s6969_s13  ;;  %v7774_v51 = vld [vmem:[#allocation2 + $0x189] sm:$0xff] }
  0xdc   : > { %1781 = vst.msk [vmem:[#allocation3 + $0x100] sm:$0xff] %vm333_vm0, %v1749_v41  ;;  %1161 = vst.msk [vmem:[#allocation3 + $0x2f0] sm:$0xff] %vm333_vm0, %v7774_v51 }
  0xdd   : > { %v646_v40 = vpop.permute.xlu1 %645  ;;  %v781_v29 = vpop.permute.xlu0 %780 }
  0xde   : > { %711 = vst.msk [vmem:[#allocation3 + $0x2e8] sm:$0xff] %vm679_vm3, %v646_v40  ;;  %v1829_v40 = vld [vmem:[#allocation3 + $0xd0] sm:$0xff] }
  0xdf   : > { %1435 = vrot.lane.b32.xlu1 %v7263_v63, %s6969_s13  ;;  %875 = vst.msk [vmem:[#allocation3 + $0x30] sm:$0xff] %vm872_vm4, %v781_v29  ;;  %1629 = vrot.lane.b32.xlu0 %v7215_v49, %s6970_s14  ;;  %v1832_v29 = vld [vmem:[#allocation3 + $0xe8] sm:$0xff]  ;;  %v1850_v14 = vld [vmem:[#allocation3 + $0x178] sm:$0xff] }
  0xe1   : > { %v779_v22 = vpop.permute.xlu1 %778  ;;  %v785_v21 = vpop.permute.xlu0 %784 }
  0xe2   : > { %874 = vst.msk [vmem:[#allocation3 + $0x18] sm:$0xff] %vm872_vm4, %v779_v22  ;;  %877 = vst.msk [vmem:[#allocation3 + $0x60] sm:$0xff] %vm872_vm4, %v785_v21  ;;  %v1913_v22 = vpack.c.bf16 %v1832_v29, %v1829_v40 }
  0xe3   : > { %1627 = vrot.lane.b32.xlu1 %v7205_v46, %s6970_s14  ;;  %987 = vrot.lane.b32.xlu0 %v7265_v0, %s6970_s14  ;;  %v7680_v46 = vld [vmem:[#allocation2 + $0x151] sm:$0xff] }
  0xe4   : > { %1156 = vst.msk [vmem:[#allocation3 + $0x278] sm:$0xff] %vm333_vm0, %v7680_v46  ;;  %6835 = vmatprep.mubr.msk.bf16.mxu1 %vm333_vm0, %v1913_v22 }
  0xe5   : > { %v783_v25 = vpop.permute.xlu1 %782  ;;  %v789_v45 = vpop.permute.xlu0 %788 }
  0xe6   : > { %876 = vst.msk [vmem:[#allocation3 + $0x48] sm:$0xff] %vm872_vm4, %v783_v25  ;;  %879 = vst.msk [vmem:[#allocation3 + $0x90] sm:$0xff] %vm872_vm4, %v789_v45  ;;  %v1115_v45 = vld [vmem:[#allocation2 + $0xe1] sm:$0xff] }
  0xe7   : > { %985 = vrot.lane.b32.xlu1 %v7251_v60, %s6970_s14  ;;  %1248 = vrot.lane.b32.xlu0 %v7420_v37, %s6968_s12  ;;  %v1111_v37 = vld [vmem:[#allocation2 + $0xb1] sm:$0xff]  ;;  %1147 = vst.msk [vmem:[#allocation3 + $0x1a0] sm:$0xff] %vm333_vm0, %v1115_v45 }
  0xe8   : > { %1143 = vst.msk [vmem:[#allocation3 + $0x140] sm:$0xff] %vm333_vm0, %v1111_v37  ;;  %v10291_v45 = vld [vmem:[#allocation5_spill] sm:$0xff] }
  0xe9   : > { %v787_v49 = vpop.permute.xlu1 %786  ;;  %v793_v0 = vpop.permute.xlu0 %792 }
  0xea   : > { %878 = vst.msk [vmem:[#allocation3 + $0x78] sm:$0xff] %vm872_vm4, %v787_v49  ;;  %881 = vst.msk [vmem:[#allocation3 + $0xc0] sm:$0xff] %vm872_vm4, %v793_v0  ;;  %v7772_v0 = vld [vmem:[#allocation2 + $0x181] sm:$0xff] }
  0xeb   : > { %1246 = vrot.lane.b32.xlu1 %v7402_v27, %s6968_s12  ;;  %1441 = vrot.lane.b32.xlu0 %v7281_v4, %s6969_s13  ;;  %1160 = vst.msk [vmem:[#allocation3 + $0x2d8] sm:$0xff] %vm333_vm0, %v7772_v0 }
  0xed   : > { %v791_v60 = vpop.permute.xlu1 %790  ;;  %v797_v27 = vpop.permute.xlu0 %796 }
  0xee   : > { %880 = vst.msk [vmem:[#allocation3 + $0xa8] sm:$0xff] %vm872_vm4, %v791_v60  ;;  %883 = vst.msk [vmem:[#allocation3 + $0xf0] sm:$0xff] %vm872_vm4, %v797_v27 }
  0xef   : > { %1439 = vrot.lane.b32.xlu1 %v7267_v1, %s6969_s13  ;;  %1633 = vrot.lane.b32.xlu0 %v7255_v62, %s6970_s14 }
  0xf1   : > { %v795_v32 = vpop.permute.xlu1 %794  ;;  %v801_v52 = vpop.permute.xlu0 %800 }
  0xf2   : > { %882 = vst.msk [vmem:[#allocation3 + $0xd8] sm:$0xff] %vm872_vm4, %v795_v32  ;;  %885 = vst.msk [vmem:[#allocation3 + $0x120] sm:$0xff] %vm872_vm4, %v801_v52 }
  0xf3   : > { %1631 = vrot.lane.b32.xlu1 %v7213_v48, %s6970_s14  ;;  %991 = vrot.lane.b32.xlu0 %v7277_v2, %s6970_s14  ;;  %v7721_v2 = vld [vmem:[#allocation2 + $0x169] sm:$0xff] }
  0xf4   : > { %1158 = vst.msk [vmem:[#allocation3 + $0x2a8] sm:$0xff] %vm333_vm0, %v7721_v2 }
  0xf5   : > { %v799_v59 = vpop.permute.xlu1 %798  ;;  %v805_v57 = vpop.permute.xlu0 %804 }
  0xf6   : > { %884 = vst.msk [vmem:[#allocation3 + $0x108] sm:$0xff] %vm872_vm4, %v799_v59  ;;  %887 = vst.msk [vmem:[#allocation3 + $0x150] sm:$0xff] %vm872_vm4, %v805_v57 }
  0xf7   : > { %989 = vrot.lane.b32.xlu1 %v7263_v63, %s6970_s14  ;;  %1252 = vrot.lane.b32.xlu0 %v7434_v34, %s6968_s12  ;;  %v7723_v34 = vld [vmem:[#allocation2 + $0x171] sm:$0xff] }
  0xf8   : > { %1159 = vst.msk [vmem:[#allocation3 + $0x2c0] sm:$0xff] %vm333_vm0, %v7723_v34 }
  0xf9   : > { %v803_v62 = vpop.permute.xlu1 %802  ;;  %v809_v48 = vpop.permute.xlu0 %808 }
  0xfa   : > { %886 = vst.msk [vmem:[#allocation3 + $0x138] sm:$0xff] %vm872_vm4, %v803_v62  ;;  %889 = vst.msk [vmem:[#allocation3 + $0x180] sm:$0xff] %vm872_vm4, %v809_v48 }
  0xfb   : > { %1250 = vrot.lane.b32.xlu1 %v7410_v33, %s6968_s12  ;;  %1445 = vrot.lane.b32.xlu0 %v7293_v7, %s6969_s13 }
  0xfd   : > { %v807_v63 = vpop.permute.xlu1 %806  ;;  %v813_v33 = vpop.permute.xlu0 %812 }
  0xfe   : > { %888 = vst.msk [vmem:[#allocation3 + $0x168] sm:$0xff] %vm872_vm4, %v807_v63  ;;  %891 = vst.msk [vmem:[#allocation3 + $0x1b0] sm:$0xff] %vm872_vm4, %v813_v33 }
  0xff   : > { %1443 = vrot.lane.b32.xlu1 %v7279_v3, %s6969_s13  ;;  %1637 = vrot.lane.b32.xlu0 %v7311_v12, %s6970_s14  ;;  %v1750_v12 = vld [vmem:[#allocation2 + $0xb2] sm:$0xff] }
 0x100   : > { %1782 = vst.msk [vmem:[#allocation3 + $0x118] sm:$0xff] %vm333_vm0, %v1750_v12 }
 0x101   : > { %v811_v24 = vpop.permute.xlu1 %810  ;;  %v817_v42 = vpop.permute.xlu0 %816 }
 0x102   : > { %890 = vst.msk [vmem:[#allocation3 + $0x198] sm:$0xff] %vm872_vm4, %v811_v24  ;;  %893 = vst.msk [vmem:[#allocation3 + $0x1e0] sm:$0xff] %vm872_vm4, %v817_v42  ;;  %v1751_v24 = vld [vmem:[#allocation2 + $0xc2] sm:$0xff] }
 0x103   : > { %1635 = vrot.lane.b32.xlu1 %v7228_v55, %s6970_s14  ;;  %995 = vrot.lane.b32.xlu0 %v7281_v4, %s6970_s14  ;;  %1783 = vst.msk [vmem:[#allocation3 + $0x130] sm:$0xff] %vm333_vm0, %v1751_v24 }
 0x105   : > { %v815_v58 = vpop.permute.xlu1 %814  ;;  %v821_v55 = vpop.permute.xlu0 %820 }
 0x106   : > { %892 = vst.msk [vmem:[#allocation3 + $0x1c8] sm:$0xff] %vm872_vm4, %v815_v58  ;;  %895 = vst.msk [vmem:[#allocation3 + $0x210] sm:$0xff] %vm872_vm4, %v821_v55 }
 0x107   : > { %993 = vrot.lane.b32.xlu1 %v7267_v1, %s6970_s14  ;;  %1256 = vrot.lane.b32.xlu0 %v7448_v28, %s6968_s12  ;;  %v1835_v1 = vld [vmem:[#allocation3 + $0x100] sm:$0xff]  ;;  %v1838_v21 = vld [vmem:[#allocation3 + $0x118] sm:$0xff] }
 0x108   : > { %v1916_v28 = vpack.c.bf16 %v1838_v21, %v1835_v1 }
 0x109   : > { %v819_v61 = vpop.permute.xlu1 %818  ;;  %v1229_v4 = vpop.permute.xlu0 %1228 }
 0x10a   : > { %894 = vst.msk [vmem:[#allocation3 + $0x1f8] sm:$0xff] %vm872_vm4, %v819_v61  ;;  %6836 = vmatmul.mubr.msk.bf16.gmra.mxu1 %vm333_vm0, %v1916_v28  ;;  %v1841_v61 = vld [vmem:[#allocation3 + $0x130] sm:$0xff]  ;;  %v10290_v28 = vld [vmem:[#allocation7_spill] sm:$0xff] }
 0x10b   : > { %1254 = vrot.lane.b32.xlu1 %v7424_v39, %s6968_s12  ;;  %1323 = vst.msk [vmem:[#allocation3 + $0x20] sm:$0xff] %vm679_vm3, %v1229_v4  ;;  %1449 = vrot.lane.b32.xlu0 %v7305_v9, %s6969_s13  ;;  %v1844_v4 = vld [vmem:[#allocation3 + $0x148] sm:$0xff] }
 0x10c   : > { %v1919_v40 = vpack.c.bf16 %v1844_v4, %v1841_v61  ;;  %v10295_v4 = vld [vmem:[#allocation11_spill] sm:$0xff] }
 0x10d   : > { %v1227_v25 = vpop.permute.xlu1 %1226  ;;  %v1422_v39 = vpop.permute.xlu0 %1421 }
 0x10e   : > { %1322 = vst.msk [vmem:[#allocation3 + $0x8] sm:$0xff] %vm679_vm3, %v1227_v25  ;;  %6839 = vmatprep.mubr.msk.bf16.mxu1 %vm333_vm0, %v1919_v40 }
 0x10f   : > { %1447 = vrot.lane.b32.xlu1 %v7291_v6, %s6969_s13  ;;  %1516 = vst.msk [vmem:[#allocation3 + $0x20] sm:$0xff] %vm872_vm4, %v1422_v39  ;;  %1641 = vrot.lane.b32.xlu0 %v7331_v16, %s6970_s14 }
 0x111   : > { %v1420_v49 = vpop.permute.xlu1 %1419  ;;  %v1614_v60 = vpop.permute.xlu0 %1613 }
 0x112   : > { %1515 = vst.msk [vmem:[#allocation3 + $0x8] sm:$0xff] %vm872_vm4, %v1420_v49 }
 0x113   : > { %1639 = vrot.lane.b32.xlu1 %v7283_v5, %s6970_s14  ;;  %1708 = vst.msk [vmem:[#allocation3 + $0x20] sm:$0xff] %vm1065_vm5, %v1614_v60  ;;  %999 = vrot.lane.b32.xlu0 %v7293_v7, %s6970_s14 }
 0x115   : > { %v1612_v27 = vpop.permute.xlu1 %1611  ;;  %v972_v16 = vpop.permute.xlu0 %971 }
 0x116   : > { %1707 = vst.msk [vmem:[#allocation3 + $0x8] sm:$0xff] %vm1065_vm5, %v1612_v27  ;;  %1067 = vst.msk [vmem:[#allocation3 + $0x18] sm:$0xff] %vm1065_vm5, %v972_v16 }
 0x117   : > { %997 = vrot.lane.b32.xlu1 %v7279_v3, %s6970_s14  ;;  %1260 = vrot.lane.b32.xlu0 %v7462_v17, %s6968_s12 }
 0x119   : > { %v970_v5 = vpop.permute.xlu1 %969  ;;  %v1233_v37 = vpop.permute.xlu0 %1232 }
 0x11a   : > { %1066 = vst.msk [vmem:[#allocation3] sm:$0xff] %vm1065_vm5, %v970_v5  ;;  %v1807_v32 = vld [vmem:[#allocation3 + $0x20] sm:$0xff] }
 0x11b   : > { %1258 = vrot.lane.b32.xlu1 %v7438_v35, %s6968_s12  ;;  %1325 = vst.msk [vmem:[#allocation3 + $0x50] sm:$0xff] %vm679_vm3, %v1233_v37  ;;  %1453 = vrot.lane.b32.xlu0 %v7309_v11, %s6969_s13 }
 0x11d   : > { %v1231_v7 = vpop.permute.xlu1 %1230  ;;  %v1804_v52 = vld [vmem:[#allocation3 + $0x8] sm:$0xff]  ;;  %v1426_v17 = vpop.permute.xlu0 %1425  ;;  %v1806_v59 = vld [vmem:[#allocation3 + $0x18] sm:$0xff] }
 0x11e   : > { %1324 = vst.msk [vmem:[#allocation3 + $0x38] sm:$0xff] %vm679_vm3, %v1231_v7  ;;  %v1900_v3 = vpack.c.bf16 %v1807_v32, %v1804_v52  ;;  %v7864_v7 = vld [vmem:[#allocation2 + $0x12a] sm:$0xff]  ;;  %v1184_v52 = vld [vmem:[#allocation2 + $0x122] sm:$0xff] }
 0x11f   : > { %1451 = vrot.lane.b32.xlu1 %v7295_v8, %s6969_s13  ;;  %1518 = vst.msk [vmem:[#allocation3 + $0x50] sm:$0xff] %vm872_vm4, %v1426_v17  ;;  %1645 = vrot.lane.b32.xlu0 %v7530_v26, %s6970_s14 }
 0x120   : > { %2178 = vmatprep.mubr.bf16.mxu0 %v1900_v3 }
 0x121   : > { %v1424_v35 = vpop.permute.xlu1 %1423  ;;  %v1803_v57 = vld [vmem:[#allocation3] sm:$0xff]  ;;  %v1618_v48 = vpop.permute.xlu0 %1617 }
 0x122   : > { %1517 = vst.msk [vmem:[#allocation3 + $0x38] sm:$0xff] %vm872_vm4, %v1424_v35  ;;  %v1899_v62 = vpack.c.bf16 %v1806_v59, %v1803_v57  ;;  %v10292_v35 = vld [vmem:[#allocation9_spill] sm:$0xff] }
 0x123   : > { %1643 = vrot.lane.b32.xlu1 %v7517_v23, %s6970_s14  ;;  %1710 = vst.msk [vmem:[#allocation3 + $0x50] sm:$0xff] %vm1065_vm5, %v1618_v48  ;;  %1003 = vrot.lane.b32.xlu0 %v7305_v9, %s6970_s14 }
 0x124   : > { %2179 = vmatmul.mubr.bf16.vlgmr.msra.gmra.mxu0 %v1899_v62  ;;  %v10293_v62 = vld [vmem:[#allocation6_spill] sm:$0xff] }
 0x125   : > { %v1616_v18 = vpop.permute.xlu1 %1615  ;;  %v976_v26 = vpop.permute.xlu0 %975 }
 0x126   : > { %1709 = vst.msk [vmem:[#allocation3 + $0x38] sm:$0xff] %vm1065_vm5, %v1616_v18  ;;  %1069 = vst.msk [vmem:[#allocation3 + $0x48] sm:$0xff] %vm1065_vm5, %v976_v26 }
 0x127   : > { %1001 = vrot.lane.b32.xlu1 %v7291_v6, %s6970_s14  ;;  %1264 = vrot.lane.b32.xlu0 %v7476_v13, %s6968_s12  ;;  %v10288_v13 = vld [vmem:[#allocation4_spill] sm:$0xff] }
 0x129   : > { %v974_v63 = vpop.permute.xlu1 %973  ;;  %v1237_v23 = vpop.permute.xlu0 %1236 }
 0x12a   : > { %1068 = vst.msk [vmem:[#allocation3 + $0x30] sm:$0xff] %vm1065_vm5, %v974_v63  ;;  %v1813_v33 = vld [vmem:[#allocation3 + $0x50] sm:$0xff] }
 0x12b   : > { %1262 = vrot.lane.b32.xlu1 %v7452_v50, %s6968_s12  ;;  %1327 = vst.msk [vmem:[#allocation3 + $0x80] sm:$0xff] %vm679_vm3, %v1237_v23  ;;  %1457 = vrot.lane.b32.xlu0 %v7325_v15, %s6969_s13  ;;  %v1753_v50 = vld [vmem:[#allocation2 + $0xda] sm:$0xff] }
 0x12c   : > { %1785 = vst.msk [vmem:[#allocation3 + $0x160] sm:$0xff] %vm333_vm0, %v1753_v50  ;;  %v1755_v50 = vld [vmem:[#allocation2 + $0xf2] sm:$0xff] }
 0x12d   : > { %v1235_v9 = vpop.permute.xlu1 %1234  ;;  %v1810_v56 = vld [vmem:[#allocation3 + $0x38] sm:$0xff]  ;;  %v1430_v20 = vpop.permute.xlu0 %1429  ;;  %v1812_v42 = vld [vmem:[#allocation3 + $0x48] sm:$0xff]  ;;  %1787 = vst.msk [vmem:[#allocation3 + $0x190] sm:$0xff] %vm333_vm0, %v1755_v50 }
 0x12e   : > { %1326 = vst.msk [vmem:[#allocation3 + $0x68] sm:$0xff] %vm679_vm3, %v1235_v9  ;;  %v1903_v6 = vpack.c.bf16 %v1813_v33, %v1810_v56  ;;  %v7889_v56 = vld [vmem:[#allocation2 + $0x13a] sm:$0xff] }
 0x12f   : > { %1455 = vrot.lane.b32.xlu1 %v10288_v13, %s6969_s13  ;;  %1520 = vst.msk [vmem:[#allocation3 + $0x80] sm:$0xff] %vm872_vm4, %v1430_v20  ;;  %1649 = vrot.lane.b32.xlu0 %v7566_v38, %s6970_s14 }
 0x130   : > { %2186 = vmatprep.mubr.bf16.mxu0 %v1903_v6 }
 0x131   : > { %v1428_v47 = vpop.permute.xlu1 %1427  ;;  %v1809_v41 = vld [vmem:[#allocation3 + $0x30] sm:$0xff]  ;;  %v1622_v58 = vpop.permute.xlu0 %1621 }
 0x132   : > { %1519 = vst.msk [vmem:[#allocation3 + $0x68] sm:$0xff] %vm872_vm4, %v1428_v47  ;;  %v1902_v12 = vpack.c.bf16 %v1812_v42, %v1809_v41 }
 0x133   : > { %1647 = vrot.lane.b32.xlu1 %v7556_v10, %s6970_s14  ;;  %1712 = vst.msk [vmem:[#allocation3 + $0x80] sm:$0xff] %vm1065_vm5, %v1622_v58  ;;  %1007 = vrot.lane.b32.xlu0 %v7309_v11, %s6970_s14  ;;  %v1847_v29 = vld [vmem:[#allocation3 + $0x160] sm:$0xff]  ;;  %v10289_v11 = vld [vmem:[#allocation13_spill] sm:$0xff] }
 0x134   : > { %2187 = vmatmul.mubr.bf16.gmra.mxu0 %v1902_v12  ;;  %v1922_v10 = vpack.c.bf16 %v1850_v14, %v1847_v29  ;;  %v1757_v12 = vld [vmem:[#allocation2 + $0x10a] sm:$0xff]  ;;  %v1853_v29 = vld [vmem:[#allocation3 + $0x190] sm:$0xff]  ;;  %v1856_v14 = vld [vmem:[#allocation3 + $0x1a8] sm:$0xff] }
 0x135   : > { %v1620_v55 = vpop.permute.xlu1 %1619  ;;  %v980_v38 = vpop.permute.xlu0 %979  ;;  %1789 = vst.msk [vmem:[#allocation3 + $0x1c0] sm:$0xff] %vm333_vm0, %v1757_v12 }
 0x136   : > { %1711 = vst.msk [vmem:[#allocation3 + $0x68] sm:$0xff] %vm1065_vm5, %v1620_v55  ;;  %1071 = vst.msk [vmem:[#allocation3 + $0x78] sm:$0xff] %vm1065_vm5, %v980_v38  ;;  %6840 = vmatmul.mubr.msk.bf16.gmra.mxu1 %vm333_vm0, %v1922_v10 }
 0x137   : > { %1005 = vrot.lane.b32.xlu1 %v7295_v8, %s6970_s14  ;;  %1268 = vrot.lane.b32.xlu0 %v7586_v36, %s6968_s12 }
 0x139   : > { %v978_v22 = vpop.permute.xlu1 %977  ;;  %v1241_v8 = vpop.permute.xlu0 %1240 }
 0x13a   : > { %1070 = vst.msk [vmem:[#allocation3 + $0x60] sm:$0xff] %vm1065_vm5, %v978_v22  ;;  %v1819_v1 = vld [vmem:[#allocation3 + $0x80] sm:$0xff]  ;;  %v1925_v22 = vpack.c.bf16 %v1856_v14, %v1853_v29 }
 0x13b   : > { %1266 = vrot.lane.b32.xlu1 %v10289_v11, %s6968_s12  ;;  %1329 = vst.msk [vmem:[#allocation3 + $0xb0] sm:$0xff] %vm679_vm3, %v1241_v8  ;;  %1461 = vrot.lane.b32.xlu0 %v10290_v28, %s6969_s13  ;;  %v1862_v8 = vld [vmem:[#allocation3 + $0x1d8] sm:$0xff] }
 0x13c   : > { %v1859_v11 = vld [vmem:[#allocation3 + $0x1c0] sm:$0xff]  ;;  %6843 = vmatprep.mubr.msk.bf16.mxu1 %vm333_vm0, %v1925_v22 }
 0x13d   : > { %v1239_v21 = vpop.permute.xlu1 %1238  ;;  %v1816_v25 = vld [vmem:[#allocation3 + $0x68] sm:$0xff]  ;;  %v1434_v49 = vpop.permute.xlu0 %1433  ;;  %v1818_v60 = vld [vmem:[#allocation3 + $0x78] sm:$0xff] }
 0x13e   : > { %1328 = vst.msk [vmem:[#allocation3 + $0x98] sm:$0xff] %vm679_vm3, %v1239_v21  ;;  %v1906_v39 = vpack.c.bf16 %v1819_v1, %v1816_v25  ;;  %v1928_v1 = vpack.c.bf16 %v1862_v8, %v1859_v11  ;;  %v1760_v22 = vld [vmem:[#allocation2 + $0x12a] sm:$0xff]  ;;  %v1386_v11 = vld [vmem:[#allocation2 + $0x1a0] sm:$0xff] }
 0x13f   : > { %1459 = vrot.lane.b32.xlu1 %v10291_v45, %s6969_s13  ;;  %1522 = vst.msk [vmem:[#allocation3 + $0xb0] sm:$0xff] %vm872_vm4, %v1434_v49  ;;  %1653 = vrot.lane.b32.xlu0 %v7608_v19, %s6970_s14  ;;  %v1761_v8 = vld [vmem:[#allocation2 + $0x13a] sm:$0xff] }
 0x140   : > { %2194 = vmatprep.mubr.bf16.mxu0 %v1906_v39  ;;  %6844 = vmatmul.mubr.msk.bf16.gmra.mxu1 %vm333_vm0, %v1928_v1  ;;  %1792 = vst.msk [vmem:[#allocation3 + $0x208] sm:$0xff] %vm333_vm0, %v1760_v22  ;;  %v1762_v1 = vld [vmem:[#allocation2 + $0x142] sm:$0xff]  ;;  %1793 = vst.msk [vmem:[#allocation3 + $0x220] sm:$0xff] %vm333_vm0, %v1761_v8 }
 0x141   : > { %v1432_v27 = vpop.permute.xlu1 %1431  ;;  %v1815_v16 = vld [vmem:[#allocation3 + $0x60] sm:$0xff]  ;;  %v1626_v37 = vpop.permute.xlu0 %1625  ;;  %1794 = vst.msk [vmem:[#allocation3 + $0x238] sm:$0xff] %vm333_vm0, %v1762_v1 }
 0x142   : > { %1521 = vst.msk [vmem:[#allocation3 + $0x98] sm:$0xff] %vm872_vm4, %v1432_v27  ;;  %v1905_v5 = vpack.c.bf16 %v1818_v60, %v1815_v16  ;;  %v7937_v16 = vld [vmem:[#allocation2 + $0x15a] sm:$0xff] }
 0x143   : > { %1651 = vrot.lane.b32.xlu1 %v7598_v43, %s6970_s14  ;;  %1714 = vst.msk [vmem:[#allocation3 + $0xb0] sm:$0xff] %vm1065_vm5, %v1626_v37  ;;  %1011 = vrot.lane.b32.xlu0 %v7325_v15, %s6970_s14 }
 0x144   : > { %2195 = vmatmul.mubr.bf16.gmra.mxu0 %v1905_v5  ;;  %v10296_v5 = vld [vmem:[#allocation10_spill] sm:$0xff] }
 0x145   : > { %v1624_v32 = vpop.permute.xlu1 %1623  ;;  %v984_v19 = vpop.permute.xlu0 %983 }
 0x146   : > { %1713 = vst.msk [vmem:[#allocation3 + $0x98] sm:$0xff] %vm1065_vm5, %v1624_v32  ;;  %1073 = vst.msk [vmem:[#allocation3 + $0xa8] sm:$0xff] %vm1065_vm5, %v984_v19 }
 0x147   : > { %1009 = vrot.lane.b32.xlu1 %v10288_v13, %s6970_s14  ;;  %1272 = vrot.lane.b32.xlu0 %v7864_v7, %s6968_s12 }
 0x149   : > { %v982_v43 = vpop.permute.xlu1 %981  ;;  %v1245_v3 = vpop.permute.xlu0 %1244 }
 0x14a   : > { %1072 = vst.msk [vmem:[#allocation3 + $0x90] sm:$0xff] %vm1065_vm5, %v982_v43  ;;  %v1825_v15 = vld [vmem:[#allocation3 + $0xb0] sm:$0xff] }
 0x14b   : > { %1270 = vrot.lane.b32.xlu1 %v1184_v52, %s6968_s12  ;;  %1331 = vst.msk [vmem:[#allocation3 + $0xe0] sm:$0xff] %vm679_vm3, %v1245_v3  ;;  %1465 = vrot.lane.b32.xlu0 %v10292_v35, %s6969_s13  ;;  %v931_v3 = vld [vmem:[#allocation2 + $0x150] sm:$0xff] }
 0x14d   : > { %v1243_v17 = vpop.permute.xlu1 %1242  ;;  %v1822_v59 = vld [vmem:[#allocation3 + $0x98] sm:$0xff]  ;;  %v1824_v48 = vld [vmem:[#allocation3 + $0xa8] sm:$0xff]  ;;  %v1438_v18 = vpop.permute.xlu0 %1437 }
 0x14e   : > { %1330 = vst.msk [vmem:[#allocation3 + $0xc8] sm:$0xff] %vm679_vm3, %v1243_v17  ;;  %v1909_v57 = vpack.c.bf16 %v1825_v15, %v1822_v59 }
 0x14f   : > { %1463 = vrot.lane.b32.xlu1 %v10293_v62, %s6969_s13  ;;  %1524 = vst.msk [vmem:[#allocation3 + $0xe0] sm:$0xff] %vm872_vm4, %v1438_v18  ;;  %1655 = vrot.lane.b32.xlu0 %v7640_v31, %s6970_s14 }
 0x150   : > { %2202 = vmatprep.mubr.bf16.mxu0 %v1909_v57 }
 0x151   : > { %v1436_v26 = vpop.permute.xlu1 %1435  ;;  %v1821_v63 = vld [vmem:[#allocation3 + $0x90] sm:$0xff]  ;;  %v1630_v33 = vpop.permute.xlu0 %1629 }
 0x152   : > { %1523 = vst.msk [vmem:[#allocation3 + $0xc8] sm:$0xff] %vm872_vm4, %v1436_v26  ;;  %v1908_v23 = vpack.c.bf16 %v1824_v48, %v1821_v63 }
 0x153   : > { %822 = vrot.lane.b32.xlu1 %v7586_v36, %s6969_s13  ;;  %1716 = vst.msk [vmem:[#allocation3 + $0xe0] sm:$0xff] %vm1065_vm5, %v1630_v33  ;;  %1013 = vrot.lane.b32.xlu0 %v10291_v45, %s6970_s14 }
 0x154   : > { %2203 = vmatmul.mubr.bf16.gmra.mxu0 %v1908_v23  ;;  %v7968_v23 = vld [vmem:[#allocation2 + $0x180] sm:$0xff] }
 0x155   : > { %v1628_v9 = vpop.permute.xlu1 %1627  ;;  %v988_v31 = vpop.permute.xlu0 %987 }
 0x156   : > { %1715 = vst.msk [vmem:[#allocation3 + $0xc8] sm:$0xff] %vm1065_vm5, %v1628_v9  ;;  %1075 = vst.msk [vmem:[#allocation3 + $0xd8] sm:$0xff] %vm1065_vm5, %v988_v31 }
 0x157   : > { %1657 = vrot.lane.b32.xlu1 %v7642_v53, %s6970_s14  ;;  %1274 = vrot.lane.b32.xlu0 %v7889_v56, %s6968_s12  ;;  %v10294_v53 = vld [vmem:[#allocation8_spill] sm:$0xff] }
 0x159   : > { %v986_v6 = vpop.permute.xlu1 %985  ;;  %v1249_v36 = vpop.permute.xlu0 %1248 }
 0x15a   : > { %1074 = vst.msk [vmem:[#allocation3 + $0xc0] sm:$0xff] %vm1065_vm5, %v986_v6  ;;  %v1831_v24 = vld [vmem:[#allocation3 + $0xe0] sm:$0xff]  ;;  %v7980_v6 = vld [vmem:[#allocation2 + $0x188] sm:$0xff] }
 0x15b   : > { %1015 = vrot.lane.b32.xlu1 %v10290_v28, %s6970_s14  ;;  %1333 = vst.msk [vmem:[#allocation3 + $0x110] sm:$0xff] %vm679_vm3, %v1249_v36  ;;  %1467 = vrot.lane.b32.xlu0 %v10294_v53, %s6969_s13 }
 0x15d   : > { %v1247_v13 = vpop.permute.xlu1 %1246  ;;  %v1828_v20 = vld [vmem:[#allocation3 + $0xc8] sm:$0xff]  ;;  %v1442_v47 = vpop.permute.xlu0 %1441  ;;  %v1830_v41 = vld [vmem:[#allocation3 + $0xd8] sm:$0xff] }
 0x15e   : > { %1332 = vst.msk [vmem:[#allocation3 + $0xf8] sm:$0xff] %vm679_vm3, %v1247_v13  ;;  %v1912_v42 = vpack.c.bf16 %v1831_v24, %v1828_v20  ;;  %v933_v20 = vld [vmem:[#allocation2 + $0x168] sm:$0xff] }
 0x15f   : > { %1276 = vrot.lane.b32.xlu1 %v7899_v54, %s6968_s12  ;;  %1526 = vst.msk [vmem:[#allocation3 + $0x110] sm:$0xff] %vm872_vm4, %v1442_v47  ;;  %824 = vrot.lane.b32.xlu0 %v1184_v52, %s6969_s13  ;;  %v10297_v52 = vld [vmem:[#allocation12_spill] sm:$0xff] }
 0x160   : > { %2210 = vmatprep.mubr.bf16.mxu0 %v1912_v42 }
 0x161   : > { %v1440_v58 = vpop.permute.xlu1 %1439  ;;  %v1827_v55 = vld [vmem:[#allocation3 + $0xc0] sm:$0xff]  ;;  %v1634_v38 = vpop.permute.xlu0 %1633 }
 0x162   : > { %1525 = vst.msk [vmem:[#allocation3 + $0xf8] sm:$0xff] %vm872_vm4, %v1440_v58  ;;  %v1911_v61 = vpack.c.bf16 %v1830_v41, %v1827_v55  ;;  %v934_v55 = vld [vmem:[#allocation2 + $0x170] sm:$0xff] }
 0x163   : > { %1469 = vrot.lane.b32.xlu1 %v10295_v4, %s6969_s13  ;;  %1718 = vst.msk [vmem:[#allocation3 + $0x110] sm:$0xff] %vm1065_vm5, %v1634_v38  ;;  %1659 = vrot.lane.b32.xlu0 %v7680_v46, %s6970_s14  ;;  %v7926_v46 = vld [vmem:[#allocation2 + $0x152] sm:$0xff] }
 0x164   : > { %2211 = vmatmul.mubr.bf16.gmra.mxu0 %v1911_v61 }
 0x165   : > { %v1632_v40 = vpop.permute.xlu1 %1631  ;;  %v992_v10 = vpop.permute.xlu0 %991 }
 0x166   : > { %1717 = vst.msk [vmem:[#allocation3 + $0xf8] sm:$0xff] %vm1065_vm5, %v1632_v40  ;;  %1077 = vst.msk [vmem:[#allocation3 + $0x108] sm:$0xff] %vm1065_vm5, %v992_v10  ;;  %v1193_v40 = vld [vmem:[#allocation2 + $0x18a] sm:$0xff]  ;;  %v1759_v10 = vld [vmem:[#allocation2 + $0x122] sm:$0xff] }
 0x167   : > { %826 = vrot.lane.b32.xlu1 %v7864_v7, %s6969_s13  ;;  %1017 = vrot.lane.b32.xlu0 %v10293_v62, %s6970_s14  ;;  %v7960_v62 = vld [vmem:[#allocation2 + $0x16a] sm:$0xff]  ;;  %1791 = vst.msk [vmem:[#allocation3 + $0x1f0] sm:$0xff] %vm333_vm0, %v1759_v10 }
 0x169   : > { %v990_v21 = vpop.permute.xlu1 %989  ;;  %v1253_v25 = vpop.permute.xlu0 %1252 }
 0x16a   : > { %1076 = vst.msk [vmem:[#allocation3 + $0xf0] sm:$0xff] %vm1065_vm5, %v990_v21  ;;  %v1837_v28 = vld [vmem:[#allocation3 + $0x110] sm:$0xff] }
 0x16b   : > { %1661 = vrot.lane.b32.xlu1 %v7682_v30, %s6970_s14  ;;  %1335 = vst.msk [vmem:[#allocation3 + $0x140] sm:$0xff] %vm679_vm3, %v1253_v25  ;;  %1278 = vrot.lane.b32.xlu0 %v7926_v46, %s6968_s12  ;;  %v1577_v25 = vld [vmem:[#allocation2 + $0x199] sm:$0xff] }
 0x16d   : > { %v1251_v39 = vpop.permute.xlu1 %1250  ;;  %v1834_v45 = vld [vmem:[#allocation3 + $0xf8] sm:$0xff]  ;;  %v1446_v60 = vpop.permute.xlu0 %1445  ;;  %v1836_v27 = vld [vmem:[#allocation3 + $0x108] sm:$0xff] }
 0x16e   : > { %1334 = vst.msk [vmem:[#allocation3 + $0x128] sm:$0xff] %vm679_vm3, %v1251_v39  ;;  %v1915_v49 = vpack.c.bf16 %v1837_v28, %v1834_v45 }
 0x16f   : > { %1019 = vrot.lane.b32.xlu1 %v10292_v35, %s6970_s14  ;;  %1528 = vst.msk [vmem:[#allocation3 + $0x140] sm:$0xff] %vm872_vm4, %v1446_v60  ;;  %1471 = vrot.lane.b32.xlu0 %v10296_v5, %s6969_s13  ;;  %v1868_v5 = vld [vmem:[#allocation3 + $0x208] sm:$0xff] }
 0x170   : > { %2218 = vmatprep.mubr.bf16.mxu0 %v1915_v49 }
 0x171   : > { %v1444_v30 = vpop.permute.xlu1 %1443  ;;  %v1833_v37 = vld [vmem:[#allocation3 + $0xf0] sm:$0xff]  ;;  %v1638_v7 = vpop.permute.xlu0 %1637 }
 0x172   : > { %1527 = vst.msk [vmem:[#allocation3 + $0x128] sm:$0xff] %vm872_vm4, %v1444_v30  ;;  %v1914_v32 = vpack.c.bf16 %v1836_v27, %v1833_v37  ;;  %v1865_v30 = vld [vmem:[#allocation3 + $0x1f0] sm:$0xff] }
 0x173   : > { %1280 = vrot.lane.b32.xlu1 %v7937_v16, %s6968_s12  ;;  %1720 = vst.msk [vmem:[#allocation3 + $0x140] sm:$0xff] %vm1065_vm5, %v1638_v7  ;;  %828 = vrot.lane.b32.xlu0 %v7889_v56, %s6969_s13  ;;  %v1578_v37 = vld [vmem:[#allocation2 + $0x1a1] sm:$0xff]  ;;  %v1871_v7 = vld [vmem:[#allocation3 + $0x220] sm:$0xff] }
 0x174   : > { %2219 = vmatmul.mubr.bf16.gmra.mxu0 %v1914_v32  ;;  %v1931_v32 = vpack.c.bf16 %v1868_v5, %v1865_v30 }
 0x175   : > { %v1636_v19 = vpop.permute.xlu1 %1635  ;;  %v996_v43 = vpop.permute.xlu0 %995 }
 0x176   : > { %1719 = vst.msk [vmem:[#allocation3 + $0x128] sm:$0xff] %vm1065_vm5, %v1636_v19  ;;  %1079 = vst.msk [vmem:[#allocation3 + $0x138] sm:$0xff] %vm1065_vm5, %v996_v43  ;;  %v1874_v19 = vld [vmem:[#allocation3 + $0x238] sm:$0xff]  ;;  %6847 = vmatprep.mubr.msk.bf16.mxu1 %vm333_vm0, %v1931_v32 }
 0x177   : > { %1473 = vrot.lane.b32.xlu1 %v10297_v52, %s6969_s13  ;;  %1663 = vrot.lane.b32.xlu0 %v7721_v2, %s6970_s14  ;;  %v1934_v43 = vpack.c.bf16 %v1874_v19, %v1871_v7  ;;  %v8073_v19 = vpop.f32.mrf.mxu1 }
 0x179   : > { %v994_v15 = vpop.permute.xlu1 %993  ;;  %v1257_v17 = vpop.permute.xlu0 %1256  ;;  %6848 = vmatmul.mubr.msk.bf16.gmra.mxu1 %vm333_vm0, %v1934_v43 }
 0x17a   : > { %1078 = vst.msk [vmem:[#allocation3 + $0x120] sm:$0xff] %vm1065_vm5, %v994_v15  ;;  %v1843_v59 = vld [vmem:[#allocation3 + $0x140] sm:$0xff]  ;;  %v2660_v15 = vld [vmem:[#allocation2 + $0x1] sm:$0xff] }
 0x17b   : > { %830 = vrot.lane.b32.xlu1 %v7899_v54, %s6969_s13  ;;  %1337 = vst.msk [vmem:[#allocation3 + $0x170] sm:$0xff] %vm679_vm3, %v1257_v17  ;;  %1021 = vrot.lane.b32.xlu0 %v931_v3, %s6970_s14  ;;  %v6935_v3 = vld [vmem:[%s10255_s4 + $0x88] sm:$0xff]  }
 0x17c   : > { %6859 = vmatprep.subr.bf16.mxu0 %v6935_v3 }
 0x17d   : > { %v1255_v35 = vpop.permute.xlu1 %1254  ;;  %v1840_v57 = vld [vmem:[#allocation3 + $0x128] sm:$0xff]  ;;  %v1450_v2 = vpop.permute.xlu0 %1449  ;;  %v1842_v18 = vld [vmem:[#allocation3 + $0x138] sm:$0xff]  ;;  %6860 = vmatpush3.bf16.msra.mxu0 %v6935_v3 }
 0x17e   : > { %1336 = vst.msk [vmem:[#allocation3 + $0x158] sm:$0xff] %vm679_vm3, %v1255_v35  ;;  %v1918_v48 = vpack.c.bf16 %v1843_v59, %v1840_v57  ;;  %v6936_v35 = vld [vmem:[%s10255_s4 + $0x80] sm:$0xff]  }
 0x17f   : > { %1665 = vrot.lane.b32.xlu1 %v7723_v34, %s6970_s14  ;;  %1530 = vst.msk [vmem:[#allocation3 + $0x170] sm:$0xff] %vm872_vm4, %v1450_v2  ;;  %1282 = vrot.lane.b32.xlu0 %v7960_v62, %s6968_s12  ;;  %v7972_v34 = vld [vmem:[#allocation2 + $0x172] sm:$0xff] }
 0x180   : > { %2226 = vmatprep.mubr.bf16.mxu0 %v1918_v48  ;;  %6861 = vmatprep.subr.bf16.mxu0 %v6936_v35  ;;  %v2661_v48 = vld [vmem:[#allocation2 + $0x9] sm:$0xff] }
 0x181   : > { %v1448_v26 = vpop.permute.xlu1 %1447  ;;  %v1839_v63 = vld [vmem:[#allocation3 + $0x120] sm:$0xff]  ;;  %v1642_v9 = vpop.permute.xlu0 %1641  ;;  %6862 = vmatpush3.bf16.msra.mxu0 %v6936_v35 }
 0x182   : > { %1529 = vst.msk [vmem:[#allocation3 + $0x158] sm:$0xff] %vm872_vm4, %v1448_v26  ;;  %v1917_v33 = vpack.c.bf16 %v1842_v18, %v1839_v63 }
 0x183   : > { %1023 = vrot.lane.b32.xlu1 %v10295_v4, %s6970_s14  ;;  %1722 = vst.msk [vmem:[#allocation3 + $0x170] sm:$0xff] %vm1065_vm5, %v1642_v9  ;;  %1475 = vrot.lane.b32.xlu0 %v7968_v23, %s6969_s13  ;;  %v1385_v4 = vld [vmem:[#allocation2 + $0x198] sm:$0xff] }
 0x184   : > { %2227 = vmatmul.mubr.bf16.gmra.mxu0 %v1917_v33 }
 0x185   : > { %v1640_v56 = vpop.permute.xlu1 %1639  ;;  %v1000_v31 = vpop.permute.xlu0 %999 }
 0x186   : > { %1721 = vst.msk [vmem:[#allocation3 + $0x158] sm:$0xff] %vm1065_vm5, %v1640_v56  ;;  %1081 = vst.msk [vmem:[#allocation3 + $0x168] sm:$0xff] %vm1065_vm5, %v1000_v31 }
 0x187   : > { %1284 = vrot.lane.b32.xlu1 %v7972_v34, %s6968_s12  ;;  %832 = vrot.lane.b32.xlu0 %v7926_v46, %s6969_s13 }
 0x189   : > { %v998_v36 = vpop.permute.xlu1 %997  ;;  %v1261_v24 = vpop.permute.xlu0 %1260 }
 0x18a   : > { %1080 = vst.msk [vmem:[#allocation3 + $0x150] sm:$0xff] %vm1065_vm5, %v998_v36  ;;  %v1849_v54 = vld [vmem:[#allocation3 + $0x170] sm:$0xff] }
 0x18b   : > { %1477 = vrot.lane.b32.xlu1 %v7980_v6, %s6969_s13  ;;  %1339 = vst.msk [vmem:[#allocation3 + $0x1a0] sm:$0xff] %vm679_vm3, %v1261_v24  ;;  %1667 = vrot.lane.b32.xlu0 %v7772_v0, %s6970_s14  ;;  %v1192_v0 = vld [vmem:[#allocation2 + $0x182] sm:$0xff] }
 0x18d   : > { %v1259_v13 = vpop.permute.xlu1 %1258  ;;  %v1846_v53 = vld [vmem:[#allocation3 + $0x158] sm:$0xff]  ;;  %v1454_v50 = vpop.permute.xlu0 %1453  ;;  %v1848_v44 = vld [vmem:[#allocation3 + $0x168] sm:$0xff] }
 0x18e   : > { %1338 = vst.msk [vmem:[#allocation3 + $0x188] sm:$0xff] %vm679_vm3, %v1259_v13  ;;  %v1921_v42 = vpack.c.bf16 %v1849_v54, %v1846_v53 }
 0x18f   : > { %834 = vrot.lane.b32.xlu1 %v7937_v16, %s6969_s13  ;;  %1532 = vst.msk [vmem:[#allocation3 + $0x1a0] sm:$0xff] %vm872_vm4, %v1454_v50  ;;  %1025 = vrot.lane.b32.xlu0 %v933_v20, %s6970_s14 }
 0x190   : > { %2234 = vmatprep.mubr.bf16.mxu0 %v1921_v42 }
 0x191   : > { %v1452_v47 = vpop.permute.xlu1 %1451  ;;  %v1845_v41 = vld [vmem:[#allocation3 + $0x150] sm:$0xff]  ;;  %v1646_v58 = vpop.permute.xlu0 %1645 }
 0x192   : > { %1531 = vst.msk [vmem:[#allocation3 + $0x188] sm:$0xff] %vm872_vm4, %v1452_v47  ;;  %v1920_v12 = vpack.c.bf16 %v1848_v44, %v1845_v41 }
 0x193   : > { %1669 = vrot.lane.b32.xlu1 %v7774_v51, %s6970_s14  ;;  %1724 = vst.msk [vmem:[#allocation3 + $0x1a0] sm:$0xff] %vm1065_vm5, %v1646_v58  ;;  %1286 = vrot.lane.b32.xlu0 %v1192_v0, %s6968_s12  ;;  %v1764_v58 = vld [vmem:[#allocation2 + $0x15a] sm:$0xff] }
 0x194   : > { %2235 = vmatmul.mubr.bf16.gmra.mxu0 %v1920_v12  ;;  %v1763_v12 = vld [vmem:[#allocation2 + $0x152] sm:$0xff]  ;;  %1796 = vst.msk [vmem:[#allocation3 + $0x268] sm:$0xff] %vm333_vm0, %v1764_v58 }
 0x195   : > { %v1644_v61 = vpop.permute.xlu1 %1643  ;;  %v1004_v38 = vpop.permute.xlu0 %1003  ;;  %1795 = vst.msk [vmem:[#allocation3 + $0x250] sm:$0xff] %vm333_vm0, %v1763_v12 }
 0x196   : > { %1723 = vst.msk [vmem:[#allocation3 + $0x188] sm:$0xff] %vm1065_vm5, %v1644_v61  ;;  %1083 = vst.msk [vmem:[#allocation3 + $0x198] sm:$0xff] %vm1065_vm5, %v1004_v38  ;;  %v1765_v61 = vld [vmem:[#allocation2 + $0x16a] sm:$0xff] }
 0x197   : > { %1027 = vrot.lane.b32.xlu1 %v934_v55, %s6970_s14  ;;  %1479 = vrot.lane.b32.xlu0 %v1385_v4, %s6969_s13  ;;  %v1766_v4 = vld [vmem:[#allocation2 + $0x172] sm:$0xff]  ;;  %1797 = vst.msk [vmem:[#allocation3 + $0x280] sm:$0xff] %vm333_vm0, %v1765_v61 }
 0x198   : > { %1798 = vst.msk [vmem:[#allocation3 + $0x298] sm:$0xff] %vm333_vm0, %v1766_v4 }
 0x199   : > { %v1002_v29 = vpop.permute.xlu1 %1001  ;;  %v1265_v51 = vpop.permute.xlu0 %1264 }
 0x19a   : > { %1082 = vst.msk [vmem:[#allocation3 + $0x180] sm:$0xff] %vm1065_vm5, %v1002_v29  ;;  %v1855_v14 = vld [vmem:[#allocation3 + $0x1a0] sm:$0xff] }
 0x19b   : > { %1288 = vrot.lane.b32.xlu1 %v1193_v40, %s6968_s12  ;;  %1341 = vst.msk [vmem:[#allocation3 + $0x1d0] sm:$0xff] %vm679_vm3, %v1265_v51  ;;  %836 = vrot.lane.b32.xlu0 %v7960_v62, %s6969_s13 }
 0x19c   : > { %v1877_v51 = vld [vmem:[#allocation3 + $0x250] sm:$0xff] }
 0x19d   : > { %v1263_v21 = vpop.permute.xlu1 %1262  ;;  %v1852_v46 = vld [vmem:[#allocation3 + $0x188] sm:$0xff]  ;;  %v1458_v39 = vpop.permute.xlu0 %1457  ;;  %v1854_v45 = vld [vmem:[#allocation3 + $0x198] sm:$0xff] }
 0x19e   : > { %1340 = vst.msk [vmem:[#allocation3 + $0x1b8] sm:$0xff] %vm679_vm3, %v1263_v21  ;;  %v1924_v28 = vpack.c.bf16 %v1855_v14, %v1852_v46  ;;  %v1880_v14 = vld [vmem:[#allocation3 + $0x268] sm:$0xff] }
 0x19f   : > { %1481 = vrot.lane.b32.xlu1 %v1386_v11, %s6969_s13  ;;  %1534 = vst.msk [vmem:[#allocation3 + $0x1d0] sm:$0xff] %vm872_vm4, %v1458_v39  ;;  %1671 = vrot.lane.b32.xlu0 %v1577_v25, %s6970_s14  ;;  %v1937_v22 = vpack.c.bf16 %v1880_v14, %v1877_v51  ;;  %v1883_v11 = vld [vmem:[#allocation3 + $0x280] sm:$0xff]  ;;  %v1886_v8 = vld [vmem:[#allocation3 + $0x298] sm:$0xff] }
 0x1a0   : > { %2242 = vmatprep.mubr.bf16.mxu0 %v1924_v28  ;;  %v1940_v1 = vpack.c.bf16 %v1886_v8, %v1883_v11 }
 0x1a1   : > { %v1456_v49 = vpop.permute.xlu1 %1455  ;;  %v1851_v60 = vld [vmem:[#allocation3 + $0x180] sm:$0xff]  ;;  %v1650_v16 = vpop.permute.xlu0 %1649  ;;  %6851 = vmatprep.mubr.msk.bf16.mxu1 %vm333_vm0, %v1937_v22 }
 0x1a2   : > { %1533 = vst.msk [vmem:[#allocation3 + $0x1b8] sm:$0xff] %vm872_vm4, %v1456_v49  ;;  %v1923_v27 = vpack.c.bf16 %v1854_v45, %v1851_v60  ;;  %6852 = vmatmul.mubr.msk.bf16.gmra.mxu1 %vm333_vm0, %v1940_v1 }
 0x1a3   : > { %838 = vrot.lane.b32.xlu1 %v7972_v34, %s6969_s13  ;;  %1726 = vst.msk [vmem:[#allocation3 + $0x1d0] sm:$0xff] %vm1065_vm5, %v1650_v16  ;;  %1029 = vrot.lane.b32.xlu0 %v7968_v23, %s6970_s14 }
 0x1a4   : > { %2243 = vmatmul.mubr.bf16.gmra.mxu0 %v1923_v27 }
 0x1a5   : > { %v1648_v52 = vpop.permute.xlu1 %1647  ;;  %v1008_v17 = vpop.permute.xlu0 %1007 }
 0x1a6   : > { %1725 = vst.msk [vmem:[#allocation3 + $0x1b8] sm:$0xff] %vm1065_vm5, %v1648_v52  ;;  %1085 = vst.msk [vmem:[#allocation3 + $0x1c8] sm:$0xff] %vm1065_vm5, %v1008_v17  ;;  %v2341_v17 = vpop.f32.mrf.mxu1 }
 0x1a7   : > { %1673 = vrot.lane.b32.xlu1 %v1578_v37, %s6970_s14  ;;  %2724 = vrot.lane.b32.xlu0 %v2660_v15, %s6968_s12 }
 0x1a9   : > { %v1006_v59 = vpop.permute.xlu1 %1005  ;;  %v1269_v57 = vpop.permute.xlu0 %1268 }
 0x1aa   : > { %1084 = vst.msk [vmem:[#allocation3 + $0x1b0] sm:$0xff] %vm1065_vm5, %v1006_v59  ;;  %v1861_v62 = vld [vmem:[#allocation3 + $0x1d0] sm:$0xff] }
 0x1ab   : > { %1031 = vrot.lane.b32.xlu1 %v7980_v6, %s6970_s14  ;;  %1343 = vst.msk [vmem:[#allocation3 + $0x200] sm:$0xff] %vm679_vm3, %v1269_v57  ;;  %v2596_v57 = vld [vmem:[#allocation2] sm:$0xff] }
 0x1ac   : > { %2628 = vst.msk [vmem:[#allocation3] sm:$0xff] %vm333_vm0, %v2596_v57 }
 0x1ad   : > { %v1267_v2 = vpop.permute.xlu1 %1266  ;;  %v1858_v18 = vld [vmem:[#allocation3 + $0x1b8] sm:$0xff]  ;;  %v1462_v63 = vpop.permute.xlu0 %1461  ;;  %v1860_v23 = vld [vmem:[#allocation3 + $0x1c8] sm:$0xff] }
 0x1ae   : > { %1342 = vst.msk [vmem:[#allocation3 + $0x1e8] sm:$0xff] %vm679_vm3, %v1267_v2  ;;  %v1927_v26 = vpack.c.bf16 %v1861_v62, %v1858_v18 }
 0x1af   : > { %2726 = vrot.lane.b32.xlu1 %v2661_v48, %s6968_s12  ;;  %1536 = vst.msk [vmem:[#allocation3 + $0x200] sm:$0xff] %vm872_vm4, %v1462_v63  ;;  %v8081_v48 = vld [vmem:[%s10254_s3] ss:$0 sm:$0xff] }
 0x1b0   : > { %2250 = vmatprep.mubr.bf16.mxu0 %v1927_v26 }
 0x1b1   : > { %v1460_v33 = vpop.permute.xlu1 %1459  ;;  %v1857_v9 = vld [vmem:[#allocation3 + $0x1b0] sm:$0xff]  ;;  %v1654_v56 = vpop.permute.xlu0 %1653 }
 0x1b2   : > { %1535 = vst.msk [vmem:[#allocation3 + $0x1e8] sm:$0xff] %vm872_vm4, %v1460_v33  ;;  %v1926_v34 = vpack.c.bf16 %v1860_v23, %v1857_v9  ;;  %v8084_v33 = vpop.f32.mrf.mxu1 }
 0x1b3   : > { %1728 = vst.msk [vmem:[#allocation3 + $0x200] sm:$0xff] %vm1065_vm5, %v1654_v56 }
 0x1b4   : > { %2251 = vmatmul.mubr.bf16.gmra.mxu0 %v1926_v34 }
 0x1b5   : > { %v1652_v31 = vpop.permute.xlu1 %1651  ;;  %v1012_v6 = vpop.permute.xlu0 %1011 }
 0x1b6   : > { %1727 = vst.msk [vmem:[#allocation3 + $0x1e8] sm:$0xff] %vm1065_vm5, %v1652_v31  ;;  %1087 = vst.msk [vmem:[#allocation3 + $0x1f8] sm:$0xff] %vm1065_vm5, %v1012_v6  ;;  %v2597_v31 = vld [vmem:[#allocation2 + $0x8] sm:$0xff] }
 0x1b7   : > { %2629 = vst.msk [vmem:[#allocation3 + $0x18] sm:$0xff] %vm333_vm0, %v2597_v31 }
 0x1b9   : > { %v1010_v36 = vpop.permute.xlu1 %1009  ;;  %v1273_v24 = vpop.permute.xlu0 %1272 }
 0x1ba   : > { %1086 = vst.msk [vmem:[#allocation3 + $0x1e0] sm:$0xff] %vm1065_vm5, %v1010_v36  ;;  %v1867_v54 = vld [vmem:[#allocation3 + $0x200] sm:$0xff] }
 0x1bb   : > { %1345 = vst.msk [vmem:[#allocation3 + $0x230] sm:$0xff] %vm679_vm3, %v1273_v24 }
 0x1bd   : > { %v1271_v13 = vpop.permute.xlu1 %1270  ;;  %v1864_v53 = vld [vmem:[#allocation3 + $0x1e8] sm:$0xff]  ;;  %v1466_v42 = vpop.permute.xlu0 %1465  ;;  %v1866_v50 = vld [vmem:[#allocation3 + $0x1f8] sm:$0xff] }
 0x1be   : > { %1344 = vst.msk [vmem:[#allocation3 + $0x218] sm:$0xff] %vm679_vm3, %v1271_v13  ;;  %v1930_v20 = vpack.c.bf16 %v1867_v54, %v1864_v53  ;;  %v2344_v53 = vpop.f32.mrf.mxu1 }
 0x1bf   : > { %1538 = vst.msk [vmem:[#allocation3 + $0x230] sm:$0xff] %vm872_vm4, %v1466_v42  ;;  %v1768_v42 = vld [vmem:[#allocation2 + $0x18a] sm:$0xff] }
 0x1c0   : > { %2258 = vmatprep.mubr.bf16.mxu0 %v1930_v20  ;;  %v1767_v20 = vld [vmem:[#allocation2 + $0x182] sm:$0xff]  ;;  %1800 = vst.msk [vmem:[#allocation3 + $0x2c8] sm:$0xff] %vm333_vm0, %v1768_v42 }
 0x1c1   : > { %v1464_v44 = vpop.permute.xlu1 %1463  ;;  %v1863_v47 = vld [vmem:[#allocation3 + $0x1e0] sm:$0xff]  ;;  %v1656_v0 = vpop.permute.xlu0 %1655  ;;  %1799 = vst.msk [vmem:[#allocation3 + $0x2b0] sm:$0xff] %vm333_vm0, %v1767_v20 }
 0x1c2   : > { %1537 = vst.msk [vmem:[#allocation3 + $0x218] sm:$0xff] %vm872_vm4, %v1464_v44  ;;  %v1929_v41 = vpack.c.bf16 %v1866_v50, %v1863_v47 }
 0x1c3   : > { %1729 = vst.msk [vmem:[#allocation3 + $0x218] sm:$0xff] %vm1065_vm5, %v1656_v0  ;;  %v1770_v0 = vld [vmem:[#allocation2 + $0x1a2] sm:$0xff] }
 0x1c4   : > { %2259 = vmatmul.mubr.bf16.gmra.mxu0 %v1929_v41  ;;  %v1769_v41 = vld [vmem:[#allocation2 + $0x19a] sm:$0xff]  ;;  %1802 = vst.msk [vmem:[#allocation3 + $0x2f8] sm:$0xff] %vm333_vm0, %v1770_v0 }
 0x1c5   : > { %v823_v55 = vpop.permute.xlu1 %822  ;;  %v1014_v38 = vpop.permute.xlu0 %1013  ;;  %1801 = vst.msk [vmem:[#allocation3 + $0x2e0] sm:$0xff] %vm333_vm0, %v1769_v41 }
 0x1c6   : > { %896 = vst.msk [vmem:[#allocation3 + $0x228] sm:$0xff] %vm872_vm4, %v823_v55 }
 0x1c7   : > { %1088 = vst.msk [vmem:[#allocation3 + $0x210] sm:$0xff] %vm1065_vm5, %v1014_v38  ;;  %v1892_v14 = vld [vmem:[#allocation3 + $0x2c8] sm:$0xff] }
 0x1c8   : > { %v1889_v51 = vld [vmem:[#allocation3 + $0x2b0] sm:$0xff] }
 0x1c9   : > { %v1658_v40 = vpop.permute.xlu1 %1657  ;;  %v1275_v29 = vpop.permute.xlu0 %1274  ;;  %v1943_v22 = vpack.c.bf16 %v1892_v14, %v1889_v51 }
 0x1ca   : > { %1730 = vst.msk [vmem:[#allocation3 + $0x230] sm:$0xff] %vm1065_vm5, %v1658_v40  ;;  %v1870_v46 = vld [vmem:[#allocation3 + $0x218] sm:$0xff] }
 0x1cb   : > { %1346 = vst.msk [vmem:[#allocation3 + $0x248] sm:$0xff] %vm679_vm3, %v1275_v29  ;;  %v1898_v8 = vld [vmem:[#allocation3 + $0x2f8] sm:$0xff]  ;;  %6855 = vmatprep.mubr.msk.bf16.mxu1 %vm333_vm0, %v1943_v22 }
 0x1cc   : > { %v1895_v11 = vld [vmem:[#allocation3 + $0x2e0] sm:$0xff]  ;;  %3939 = vst.msk [vmem:[#allocation3 + $0x2f8] sm:$0xff] %vm333_vm0, %v1770_v0 }
 0x1cd   : > { %v1016_v10 = vpop.permute.xlu1 %1015  ;;  %v1468_v21 = vpop.permute.xlu0 %1467  ;;  %3938 = vst.msk [vmem:[#allocation3 + $0x2e0] sm:$0xff] %vm333_vm0, %v1769_v41 }
 0x1ce   : > { %1089 = vst.msk [vmem:[#allocation3 + $0x228] sm:$0xff] %vm1065_vm5, %v1016_v10  ;;  %v1869_v49 = vld [vmem:[#allocation3 + $0x210] sm:$0xff] }
 0x1cf   : > { %1539 = vst.msk [vmem:[#allocation3 + $0x248] sm:$0xff] %vm872_vm4, %v1468_v21  ;;  %v1946_v21 = vpack.c.bf16 %v1898_v8, %v1895_v11 }
 0x1d1   : > { %v1277_v25 = vpop.permute.xlu1 %1276  ;;  %v1873_v28 = vld [vmem:[#allocation3 + $0x230] sm:$0xff]  ;;  %v825_v45 = vpop.permute.xlu0 %824  ;;  %6856 = vmatmul.mubr.msk.bf16.gmra.mxu1 %vm333_vm0, %v1946_v21 }
 0x1d2   : > { %1347 = vst.msk [vmem:[#allocation3 + $0x260] sm:$0xff] %vm679_vm3, %v1277_v25  ;;  %v1933_v39 = vpack.c.bf16 %v1873_v28, %v1870_v46 }
 0x1d3   : > { %897 = vst.msk [vmem:[#allocation3 + $0x240] sm:$0xff] %vm872_vm4, %v825_v45 }
 0x1d4   : > { %2266 = vmatprep.mubr.bf16.mxu0 %v1933_v39 }
 0x1d5   : > { %v1470_v60 = vpop.permute.xlu1 %1469  ;;  %v1872_v27 = vld [vmem:[#allocation3 + $0x228] sm:$0xff]  ;;  %v1660_v30 = vpop.permute.xlu0 %1659 }
 0x1d6   : > { %1540 = vst.msk [vmem:[#allocation3 + $0x260] sm:$0xff] %vm872_vm4, %v1470_v60  ;;  %v1932_v16 = vpack.c.bf16 %v1872_v27, %v1869_v49 }
 0x1d7   : > { %1731 = vst.msk [vmem:[#allocation3 + $0x248] sm:$0xff] %vm1065_vm5, %v1660_v30 }
 0x1d8   : > { %2267 = vmatmul.mubr.bf16.gmra.mxu0 %v1932_v16 }
 0x1d9   : > { %v827_v5 = vpop.permute.xlu1 %826  ;;  %v1018_v37 = vpop.permute.xlu0 %1017 }
 0x1da   : > { %898 = vst.msk [vmem:[#allocation3 + $0x258] sm:$0xff] %vm872_vm4, %v827_v5 }
 0x1db   : > { %1090 = vst.msk [vmem:[#allocation3 + $0x240] sm:$0xff] %vm1065_vm5, %v1018_v37 }
 0x1dd   : > { %v1662_v32 = vpop.permute.xlu1 %1661  ;;  %v1279_v7 = vpop.permute.xlu0 %1278 }
 0x1de   : > { %1732 = vst.msk [vmem:[#allocation3 + $0x260] sm:$0xff] %vm1065_vm5, %v1662_v32  ;;  %v1876_v15 = vld [vmem:[#allocation3 + $0x248] sm:$0xff] }
 0x1df   : > { %1348 = vst.msk [vmem:[#allocation3 + $0x278] sm:$0xff] %vm679_vm3, %v1279_v7 }
 0x1e1   : > { %v1020_v52 = vpop.permute.xlu1 %1019  ;;  %v1472_v43 = vpop.permute.xlu0 %1471 }
 0x1e2   : > { %1091 = vst.msk [vmem:[#allocation3 + $0x258] sm:$0xff] %vm1065_vm5, %v1020_v52  ;;  %v1875_v63 = vld [vmem:[#allocation3 + $0x240] sm:$0xff] }
 0x1e3   : > { %1541 = vst.msk [vmem:[#allocation3 + $0x278] sm:$0xff] %vm872_vm4, %v1472_v43 }
 0x1e4   : > { %v6561_v3 = vpop.f32.mrf.mxu0 }
 0x1e5   : > { %v1281_v59 = vpop.permute.xlu1 %1280  ;;  %v1879_v35 = vld [vmem:[#allocation3 + $0x260] sm:$0xff]  ;;  %v829_v26 = vpop.permute.xlu0 %828 }
 0x1e6   : > { %1349 = vst.msk [vmem:[#allocation3 + $0x290] sm:$0xff] %vm679_vm3, %v1281_v59  ;;  %v6562_v62 = vpop.f32.mrf.mxu0  ;;  %v1936_v2 = vpack.c.bf16 %v1879_v35, %v1876_v15 }
 0x1e7   : > { %v6563_v18 = vadd.f32 %v6562_v62, %v6561_v3  ;;  %899 = vst.msk [vmem:[#allocation3 + $0x270] sm:$0xff] %vm872_vm4, %v829_v26 }
 0x1e8   : > { %v6564_v23 = vpop.f32.mrf.mxu0  ;;  %2274 = vmatprep.mubr.bf16.mxu0 %v1936_v2 }
 0x1e9   : > { %v1474_v9 = vpop.permute.xlu1 %1473  ;;  %v2181_v34 = vadd.f32 %v6563_v18, %v8081_v48  ;;  %v1878_v56 = vld [vmem:[#allocation3 + $0x258] sm:$0xff]  ;;  %v1664_v13 = vpop.permute.xlu0 %1663 }
 0x1ea   : > { %1542 = vst.msk [vmem:[#allocation3 + $0x290] sm:$0xff] %vm872_vm4, %v1474_v9  ;;  %v6565_v6 = vpop.f32.mrf.mxu0  ;;  %v1935_v36 = vpack.c.bf16 %v1878_v56, %v1875_v63  ;;  %v8129_v63 = vpop.f32.mrf.mxu1 }
 0x1eb   : > { %v6566_v24 = vadd.f32 %v6565_v6, %v6564_v23  ;;  %v2342_v54 = vadd.f32 %v2341_v17, %v2181_v34  ;;  %1733 = vst.msk [vmem:[#allocation3 + $0x278] sm:$0xff] %vm1065_vm5, %v1664_v13 }
 0x1ec   : > { %2275 = vmatmul.mubr.bf16.gmra.mxu0 %v1935_v36 }
 0x1ed   : > { %vm2468_vm6 = vcmp.gt.f32.partialorder %v2342_v54, 0.0  ;;  %v2500_v50 = vmul.f32 0.01, %v2342_v54  ;;  %v831_v44 = vpop.permute.xlu1 %830  ;;  %v2184_v47 = vadd.f32 %v6566_v24, %v8081_v48  ;;  %v1022_v55 = vpop.permute.xlu0 %1021 }
 0x1ee   : > { %900 = vst.msk [vmem:[#allocation3 + $0x288] sm:$0xff] %vm872_vm4, %v831_v44 }
 0x1ef   : > { %v2532_v12 = vsel %vm2468_vm6, %v2342_v54, %v2500_v50  ;;  %v2345_v58 = vadd.f32 %v2344_v53, %v2184_v47  ;;  %1092 = vst.msk [vmem:[#allocation3 + $0x270] sm:$0xff] %vm1065_vm5, %v1022_v55 }
 0x1f0   : > { %2564 = vst.msk [vmem:[#allocation2 + $0x19] sm:$0xff] %vm333_vm0, %v2532_v12 }
 0x1f1   : > { %vm2469_vm7 = vcmp.gt.f32.partialorder %v2345_v58, 0.0  ;;  %v2501_v61 = vmul.f32 0.01, %v2345_v58  ;;  %v1666_v4 = vpop.permute.xlu1 %1665  ;;  %v1283_v40 = vpop.permute.xlu0 %1282 }
 0x1f2   : > { %1734 = vst.msk [vmem:[#allocation3 + $0x290] sm:$0xff] %vm1065_vm5, %v1666_v4  ;;  %v1882_v39 = vld [vmem:[#allocation3 + $0x278] sm:$0xff] }
 0x1f3   : > { %v2533_v38 = vsel %vm2469_vm7, %v2345_v58, %v2501_v61  ;;  %1350 = vst.msk [vmem:[#allocation3 + $0x2a8] sm:$0xff] %vm679_vm3, %v1283_v40 }
 0x1f4   : > { %2565 = vst.msk [vmem:[#allocation2 + $0x21] sm:$0xff] %vm333_vm0, %v2533_v38  ;;  %v6567_v29 = vpop.f32.mrf.mxu0 }
 0x1f5   : > { %v1024_v10 = vpop.permute.xlu1 %1023  ;;  %v1476_v28 = vpop.permute.xlu0 %1475 }
 0x1f6   : > { %1093 = vst.msk [vmem:[#allocation3 + $0x288] sm:$0xff] %vm1065_vm5, %v1024_v10  ;;  %v6568_v1 = vpop.f32.mrf.mxu0  ;;  %v1881_v15 = vld [vmem:[#allocation3 + $0x270] sm:$0xff] }
 0x1f7   : > { %v6569_v46 = vadd.f32 %v6568_v1, %v6567_v29  ;;  %v2662_v25 = vld [vmem:[#allocation2 + $0x19] sm:$0xff]  ;;  %1543 = vst.msk [vmem:[#allocation3 + $0x2a8] sm:$0xff] %vm872_vm4, %v1476_v28 }
 0x1f8   : > { %v8105_v45 = vld [vmem:[#allocation2 + $0x18] sm:$0xff]  ;;  %2728 = vrot.lane.b32.xlu0 %v2662_v25, %s6968_s12  ;;  %v6570_v49 = vpop.f32.mrf.mxu0 }
 0x1f9   : > { %2630 = vst.msk [vmem:[#allocation3 + $0x30] sm:$0xff] %vm333_vm0, %v8105_v45  ;;  %v3236_v60 = vld [vmem:[#allocation2 + $0x19] sm:$0xff]  ;;  %v2189_v27 = vadd.f32 %v6569_v46, %v8081_v48  ;;  %v1285_v16 = vpop.permute.xlu1 %1284  ;;  %v833_v43 = vpop.permute.xlu0 %832 }
 0x1fa   : > { %v1885_v30 = vld [vmem:[#allocation3 + $0x290] sm:$0xff]  ;;  %3268 = vst.msk [vmem:[#allocation3 + $0x8] sm:$0xff] %vm333_vm0, %v3236_v60  ;;  %v6571_v5 = vpop.f32.mrf.mxu0 }
 0x1fb   : > { %1351 = vst.msk [vmem:[#allocation3 + $0x2c0] sm:$0xff] %vm679_vm3, %v1285_v16  ;;  %v1939_v37 = vpack.c.bf16 %v1885_v30, %v1882_v39  ;;  %v2350_v32 = vadd.f32 %v8073_v19, %v2189_v27  ;;  %v6572_v7 = vadd.f32 %v6571_v5, %v6570_v49  ;;  %v2663_v52 = vld [vmem:[#allocation2 + $0x21] sm:$0xff] }
 0x1fc   : > { %2730 = vrot.lane.b32.xlu1 %v2663_v52, %s6968_s12  ;;  %901 = vst.msk [vmem:[#allocation3 + $0x2a0] sm:$0xff] %vm872_vm4, %v833_v43  ;;  %v8119_v3 = vld [vmem:[#allocation2 + $0x20] sm:$0xff] }
 0x1fd   : > { %2282 = vmatprep.mubr.bf16.mxu0 %v1939_v37  ;;  %v3237_v17 = vld [vmem:[#allocation2 + $0x21] sm:$0xff]  ;;  %vm2470_vm8 = vcmp.gt.f32.partialorder %v2350_v32, 0.0  ;;  %v2502_v59 = vmul.f32 0.01, %v2350_v32  ;;  %v2192_v35 = vadd.f32 %v6572_v7, %v8081_v48  ;;  %v1478_v57 = vpop.permute.xlu1 %1477  ;;  %v1884_v62 = vld [vmem:[#allocation3 + $0x288] sm:$0xff]  ;;  %2631 = vst.msk [vmem:[#allocation3 + $0x48] sm:$0xff] %vm333_vm0, %v8119_v3  ;;  %v1668_v26 = vpop.permute.xlu0 %1667 }
 0x1fe   : > { %3269 = vst.msk [vmem:[#allocation3 + $0x20] sm:$0xff] %vm333_vm0, %v3237_v17  ;;  %v1938_v19 = vpack.c.bf16 %v1884_v62, %v1881_v15 }
 0x1ff   : > { %1544 = vst.msk [vmem:[#allocation3 + $0x2c0] sm:$0xff] %vm872_vm4, %v1478_v57  ;;  %v2534_v2 = vsel %vm2470_vm8, %v2350_v32, %v2502_v59  ;;  %v2353_v18 = vadd.f32 %v8084_v33, %v2192_v35  ;;  %v2357_v33 = vpop.f32.mrf.mxu1 }
 0x200   : > { %2566 = vst.msk [vmem:[#allocation2 + $0x31] sm:$0xff] %vm333_vm0, %v2534_v2  ;;  %2283 = vmatmul.mubr.bf16.gmra.mxu0 %v1938_v19 }
 0x201   : > { %1735 = vst.msk [vmem:[#allocation3 + $0x2a8] sm:$0xff] %vm1065_vm5, %v1668_v26  ;;  %vm2471_vm9 = vcmp.gt.f32.partialorder %v2353_v18, 0.0  ;;  %v2503_v23 = vmul.f32 0.01, %v2353_v18  ;;  %v835_v9 = vpop.permute.xlu1 %834  ;;  %v1026_v56 = vpop.permute.xlu0 %1025 }
 0x202   : > { %902 = vst.msk [vmem:[#allocation3 + $0x2b8] sm:$0xff] %vm872_vm4, %v835_v9  ;;  %v8141_v42 = vpop.f32.mrf.mxu1 }
 0x203   : > { %v2535_v34 = vsel %vm2471_vm9, %v2353_v18, %v2503_v23  ;;  %1094 = vst.msk [vmem:[#allocation3 + $0x2a0] sm:$0xff] %vm1065_vm5, %v1026_v56 }
 0x204   : > { %2567 = vst.msk [vmem:[#allocation2 + $0x39] sm:$0xff] %vm333_vm0, %v2535_v34  ;;  %v6573_v31 = vpop.f32.mrf.mxu0  ;;  %v2360_v38 = vpop.f32.mrf.mxu1 }
 0x205   : > { %v1670_v6 = vpop.permute.xlu1 %1669  ;;  %v1287_v13 = vpop.permute.xlu0 %1286 }
 0x206   : > { %1736 = vst.msk [vmem:[#allocation3 + $0x2c0] sm:$0xff] %vm1065_vm5, %v1670_v6  ;;  %v6574_v36 = vpop.f32.mrf.mxu0 }
 0x207   : > { %v6575_v24 = vadd.f32 %v6574_v36, %v6573_v31  ;;  %v8135_v54 = vld [vmem:[#allocation2 + $0x31] sm:$0xff]  ;;  %1352 = vst.msk [vmem:[#allocation3 + $0x2d8] sm:$0xff] %vm679_vm3, %v1287_v13 }
 0x208   : > { %v8137_v53 = vld [vmem:[#allocation2 + $0x30] sm:$0xff]  ;;  %v6576_v20 = vpop.f32.mrf.mxu0  ;;  %2732 = vrot.lane.b32.xlu0 %v8135_v54, %s6968_s12  ;;  %v1888_v61 = vld [vmem:[#allocation3 + $0x2a8] sm:$0xff] }
 0x209   : > { %2632 = vst.msk [vmem:[#allocation3 + $0x60] sm:$0xff] %vm333_vm0, %v8137_v53  ;;  %v3238_v50 = vld [vmem:[#allocation2 + $0x31] sm:$0xff]  ;;  %v1028_v44 = vpop.permute.xlu1 %1027  ;;  %v2197_v47 = vadd.f32 %v6575_v24, %v8081_v48  ;;  %v1480_v55 = vpop.permute.xlu0 %1479 }
 0x20a   : > { %3270 = vst.msk [vmem:[#allocation3 + $0x38] sm:$0xff] %vm333_vm0, %v3238_v50  ;;  %v6577_v41 = vpop.f32.mrf.mxu0  ;;  %v1887_v25 = vld [vmem:[#allocation3 + $0x2a0] sm:$0xff] }
 0x20b   : > { %1095 = vst.msk [vmem:[#allocation3 + $0x2b8] sm:$0xff] %vm1065_vm5, %v1028_v44  ;;  %v6578_v0 = vadd.f32 %v6577_v41, %v6576_v20  ;;  %v2358_v12 = vadd.f32 %v2357_v33, %v2197_v47  ;;  %v8149_v58 = vld [vmem:[#allocation2 + $0x39] sm:$0xff]  ;;  %v8216_v20 = vpop.f32.mrf.mxu1  ;;  %v6939_v50 = vld [vmem:[%s10255_s4 + $0x70] sm:$0xff]  }
 0x20c   : > { %v8151_v4 = vld [vmem:[#allocation2 + $0x32] sm:$0xff]  ;;  %2734 = vrot.lane.b32.xlu1 %v8149_v58, %s6968_s12  ;;  %1545 = vst.msk [vmem:[#allocation3 + $0x2d8] sm:$0xff] %vm872_vm4, %v1480_v55  ;;  %v8156_v40 = vld [vmem:[#allocation2 + $0x3a] sm:$0xff] }
 0x20d   : > { %3908 = vst.msk [vmem:[#allocation3 + $0x10] sm:$0xff] %vm333_vm0, %v8151_v4  ;;  %v8160_v29 = vld [vmem:[#allocation2 + $0x38] sm:$0xff]  ;;  %vm2472_vm10 = vcmp.gt.f32.partialorder %v2358_v12, 0.0  ;;  %v2504_v14 = vmul.f32 0.01, %v2358_v12  ;;  %v1289_v10 = vpop.permute.xlu1 %1288  ;;  %v2200_v22 = vadd.f32 %v6578_v0, %v8081_v48  ;;  %v1891_v11 = vld [vmem:[#allocation3 + $0x2c0] sm:$0xff]  ;;  %v837_v46 = vpop.permute.xlu0 %836 }
 0x20e   : > { %v3239_v51 = vld [vmem:[#allocation2 + $0x39] sm:$0xff]  ;;  %3909 = vst.msk [vmem:[#allocation3 + $0x28] sm:$0xff] %vm333_vm0, %v8156_v40  ;;  %2633 = vst.msk [vmem:[#allocation3 + $0x78] sm:$0xff] %vm333_vm0, %v8160_v29  ;;  %v1942_v8 = vpack.c.bf16 %v1891_v11, %v1888_v61  ;;  %v6940_v0 = vld [vmem:[%s10255_s4 + $0x30] sm:$0xff]  }
 0x20f   : > { %3271 = vst.msk [vmem:[#allocation3 + $0x50] sm:$0xff] %vm333_vm0, %v3239_v51  ;;  %v2536_v1 = vsel %vm2472_vm10, %v2358_v12, %v2504_v14  ;;  %v2361_v21 = vadd.f32 %v2360_v38, %v2200_v22  ;;  %v6938_v33 = vld [vmem:[%s10255_s4 + $0x38] sm:$0xff]   ;;  %v2373_v14 = vpop.f32.mrf.mxu1  ;;  %v6942_v11 = vld [vmem:[%s10255_s4 + $0x28] sm:$0xff]  }
 0x210   : > { %1353 = vst.msk [vmem:[#allocation3 + $0x2f0] sm:$0xff] %vm679_vm3, %v1289_v10  ;;  %2290 = vmatprep.mubr.bf16.mxu0 %v1942_v8  ;;  %v6941_v10 = vld [vmem:[%s10255_s4 + $0x68] sm:$0xff]  }
 0x211   : > { %2568 = vst.msk [vmem:[#allocation2 + $0x49] sm:$0xff] %vm333_vm0, %v2536_v1  ;;  %vm2473_vm11 = vcmp.gt.f32.partialorder %v2361_v21, 0.0  ;;  %v2505_v28 = vmul.f32 0.01, %v2361_v21  ;;  %v1482_v39 = vpop.permute.xlu1 %1481  ;;  %v1672_v16 = vpop.permute.xlu0 %1671 }
 0x212   : > { %903 = vst.msk [vmem:[#allocation3 + $0x2d0] sm:$0xff] %vm872_vm4, %v837_v46  ;;  %v1890_v49 = vld [vmem:[#allocation3 + $0x2b8] sm:$0xff]  ;;  %1546 = vst.msk [vmem:[#allocation3 + $0x2f0] sm:$0xff] %vm872_vm4, %v1482_v39 }
 0x213   : > { %v1941_v60 = vpack.c.bf16 %v1890_v49, %v1887_v25  ;;  %v2537_v27 = vsel %vm2473_vm11, %v2361_v21, %v2505_v28  ;;  %1737 = vst.msk [vmem:[#allocation3 + $0x2d8] sm:$0xff] %vm1065_vm5, %v1672_v16 }
 0x214   : > { %2569 = vst.msk [vmem:[#allocation2 + $0x51] sm:$0xff] %vm333_vm0, %v2537_v27  ;;  %v6579_v30 = vpop.f32.mrf.mxu0  ;;  %v3942_v61 = vld [vmem:[#allocation3 + $0x10] sm:$0xff] }
 0x215   : > { %2291 = vmatmul.mubr.bf16.gmra.mxu0 %v1941_v60  ;;  %v839_v5 = vpop.permute.xlu1 %838  ;;  %v1030_v52 = vpop.permute.xlu0 %1029  ;;  %v3945_v38 = vld [vmem:[#allocation3 + $0x28] sm:$0xff]  ;;  %v6943_v27 = vld [vmem:[%s10255_s4 + $0x60] sm:$0xff]  }
 0x216   : > { %904 = vst.msk [vmem:[#allocation3 + $0x2e8] sm:$0xff] %vm872_vm4, %v839_v5  ;;  %v6580_v37 = vpop.f32.mrf.mxu0  ;;  %v4038_v46 = vpack.c.bf16 %v3945_v38, %v3942_v61  ;;  %v8238_v60 = vpop.f32.mrf.mxu1  ;;  %v8251_v5 = vld [vmem:[#allocation2 + $0x1a] sm:$0xff]  ;;  %v6949_v61 = vld [vmem:[%s10255_s4 + $0x48] sm:$0xff]  }
 0x217   : > { %v6581_v32 = vadd.f32 %v6580_v37, %v6579_v30  ;;  %1096 = vst.msk [vmem:[#allocation3 + $0x2d0] sm:$0xff] %vm1065_vm5, %v1030_v52  ;;  %v6944_v30 = vld [vmem:[%s10255_s4 + $0x20] sm:$0xff]   ;;  %v2853_v38 = vld [vmem:[#allocation2 + $0xa] sm:$0xff] }
 0x218   : > { %v8175_v7 = vld [vmem:[#allocation2 + $0x49] sm:$0xff]  ;;  %v6582_v17 = vpop.f32.mrf.mxu0 }
 0x219   : > { %v8177_v43 = vld [vmem:[#allocation2 + $0x48] sm:$0xff]  ;;  %2736 = vrot.lane.b32.xlu0 %v8175_v7, %s6968_s12  ;;  %v2205_v59 = vadd.f32 %v6581_v32, %v8081_v48  ;;  %v1674_v35 = vpop.permute.xlu1 %1673  ;;  %v2725_v26 = vpop.permute.xlu0 %2724 }
 0x21a   : > { %v3240_v15 = vld [vmem:[#allocation2 + $0x49] sm:$0xff]  ;;  %2634 = vst.msk [vmem:[#allocation3 + $0x90] sm:$0xff] %vm333_vm0, %v8177_v43  ;;  %v6583_v57 = vpop.f32.mrf.mxu0 }
 0x21b   : > { %3272 = vst.msk [vmem:[#allocation3 + $0x68] sm:$0xff] %vm333_vm0, %v3240_v15  ;;  %v2366_v62 = vadd.f32 %v8129_v63, %v2205_v59  ;;  %v6584_v19 = vadd.f32 %v6583_v57, %v6582_v17  ;;  %v8188_v2 = vld [vmem:[#allocation2 + $0x51] sm:$0xff]  ;;  %v1894_v13 = vld [vmem:[#allocation3 + $0x2d8] sm:$0xff] }
 0x21c   : > { %1738 = vst.msk [vmem:[#allocation3 + $0x2f0] sm:$0xff] %vm1065_vm5, %v1674_v35  ;;  %v8190_v18 = vld [vmem:[#allocation2 + $0x4a] sm:$0xff]  ;;  %2738 = vrot.lane.b32.xlu1 %v8188_v2, %s6968_s12  ;;  %v8194_v23 = vld [vmem:[#allocation2 + $0x52] sm:$0xff] }
 0x21d   : > { %3910 = vst.msk [vmem:[#allocation3 + $0x40] sm:$0xff] %vm333_vm0, %v8190_v18  ;;  %v8198_v9 = vld [vmem:[#allocation2 + $0x50] sm:$0xff]  ;;  %v6937_v63 = vld [vmem:[%s10255_s4 + $0x78] sm:$0xff]   ;;  %vm2474_vm12 = vcmp.gt.f32.partialorder %v2366_v62, 0.0  ;;  %v2506_v34 = vmul.f32 0.01, %v2366_v62  ;;  %v2208_v56 = vadd.f32 %v6584_v19, %v8081_v48  ;;  %v1032_v31 = vpop.permute.xlu1 %1031 }
 0x21e   : > { %2820 = vst.msk [vmem:[#allocation3] sm:$0xff] %vm679_vm3, %v2725_v26  ;;  %v3241_v6 = vld [vmem:[#allocation2 + $0x51] sm:$0xff]  ;;  %6675 = vmatprep.subr.bf16.mxu1 %v6937_v63  ;;  %v1893_v55 = vld [vmem:[#allocation3 + $0x2d0] sm:$0xff] }
 0x21f   : > { %3911 = vst.msk [vmem:[#allocation3 + $0x58] sm:$0xff] %vm333_vm0, %v8194_v23  ;;  %2635 = vst.msk [vmem:[#allocation3 + $0xa8] sm:$0xff] %vm333_vm0, %v8198_v9  ;;  %v2538_v36 = vsel %vm2474_vm12, %v2366_v62, %v2506_v34  ;;  %v2369_v24 = vadd.f32 %v8141_v42, %v2208_v56  ;;  %6676 = vmatpush3.bf16.msra.mxu1 %v6938_v33  ;;  %v2376_v62 = vpop.f32.mrf.mxu1  ;;  %v6945_v26 = vld [vmem:[%s10255_s4 + $0x58] sm:$0xff]  }
 0x220   : > { %1097 = vst.msk [vmem:[#allocation3 + $0x2e8] sm:$0xff] %vm1065_vm5, %v1032_v31  ;;  %6677 = vmatprep.subr.bf16.mxu1 %v6939_v50  ;;  %v6946_v31 = vld [vmem:[%s10255_s4 + $0x18] sm:$0xff]  }
 0x221   : > { %3273 = vst.msk [vmem:[#allocation3 + $0x80] sm:$0xff] %vm333_vm0, %v3241_v6  ;;  %2570 = vst.msk [vmem:[#allocation2 + $0x61] sm:$0xff] %vm333_vm0, %v2538_v36  ;;  %vm2475_vm13 = vcmp.gt.f32.partialorder %v2369_v24, 0.0  ;;  %v2507_v44 = vmul.f32 0.01, %v2369_v24  ;;  %v2727_v41 = vpop.permute.xlu1 %2726  ;;  %v8279_v6 = vld [vmem:[#allocation2 + $0x22] sm:$0xff] }
 0x222   : > { %2821 = vst.msk [vmem:[#allocation3 + $0x18] sm:$0xff] %vm679_vm3, %v2727_v41 }
 0x223   : > { %v1897_v47 = vld [vmem:[#allocation3 + $0x2f0] sm:$0xff]  ;;  %v2539_v42 = vsel %vm2475_vm13, %v2369_v24, %v2507_v44  ;;  %6678 = vmatpush3.bf16.msra.mxu1 %v6940_v0  ;;  %v6948_v44 = vld [vmem:[%s10255_s4 + $0x10] sm:$0xff]  }
 0x224   : > { %v1945_v12 = vpack.c.bf16 %v1897_v47, %v1894_v13  ;;  %2571 = vst.msk [vmem:[#allocation2 + $0x69] sm:$0xff] %vm333_vm0, %v2539_v42  ;;  %v6585_v51 = vpop.f32.mrf.mxu0  ;;  %6679 = vmatprep.subr.bf16.mxu1 %v6941_v10  ;;  %v3948_v37 = vld [vmem:[#allocation3 + $0x40] sm:$0xff]  ;;  %v2852_v47 = vld [vmem:[#allocation2 + $0x2] sm:$0xff] }
 0x225   : > { %v6947_v13 = vld [vmem:[%s10255_s4 + $0x50] sm:$0xff]  }
 0x226   : > { %2298 = vmatprep.mubr.bf16.mxu0 %v1945_v12  ;;  %v6586_v1 = vpop.f32.mrf.mxu0  ;;  %v3951_v32 = vld [vmem:[#allocation3 + $0x58] sm:$0xff] }
 0x227   : > { %v1896_v22 = vld [vmem:[#allocation3 + $0x2e8] sm:$0xff]  ;;  %v6587_v25 = vadd.f32 %v6586_v1, %v6585_v51  ;;  %6680 = vmatpush3.bf16.msra.mxu1 %v6942_v11  ;;  %v4041_v33 = vpack.c.bf16 %v3951_v32, %v3948_v37  ;;  %v6950_v51 = vld [vmem:[%s10255_s4 + $0x8] sm:$0xff]  }
 0x228   : > { %v1944_v8 = vpack.c.bf16 %v1896_v22, %v1893_v55  ;;  %v8232_v21 = vld [vmem:[#allocation2 + $0x61] sm:$0xff]  ;;  %v6588_v49 = vpop.f32.mrf.mxu0  ;;  %6681 = vmatprep.subr.bf16.mxu1 %v6943_v27 }
 0x229   : > { %v8234_v28 = vld [vmem:[#allocation2 + $0x60] sm:$0xff]  ;;  %2740 = vrot.lane.b32.xlu0 %v8232_v21, %s6968_s12  ;;  %v2213_v16 = vadd.f32 %v6587_v25, %v8081_v48 }
 0x22a   : > { %v3242_v39 = vld [vmem:[#allocation2 + $0x61] sm:$0xff]  ;;  %2299 = vmatmul.mubr.bf16.gmra.mxu0 %v1944_v8  ;;  %2636 = vst.msk [vmem:[#allocation3 + $0xc0] sm:$0xff] %vm333_vm0, %v8234_v28  ;;  %v6589_v52 = vpop.f32.mrf.mxu0 }
 0x22b   : > { %3274 = vst.msk [vmem:[#allocation3 + $0x98] sm:$0xff] %vm333_vm0, %v3242_v39  ;;  %6863 = vmatprep.mubr.msk.bf16.mxu0 %vm333_vm0, %v4038_v46  ;;  %v8253_v15 = vld [vmem:[#allocation2 + $0x69] sm:$0xff]  ;;  %v6590_v35 = vadd.f32 %v6589_v52, %v6588_v49  ;;  %v2374_v57 = vadd.f32 %v2373_v14, %v2213_v16  ;;  %6682 = vmatpush3.bf16.msra.mxu1 %v6944_v30  ;;  %v6951_v8 = vld [vmem:[%s10255_s4 + $0x40] sm:$0xff]  }
 0x22c   : > { %v8255_v17 = vld [vmem:[#allocation2 + $0x62] sm:$0xff]  ;;  %v8257_v59 = vld [vmem:[#allocation2 + $0x6a] sm:$0xff]  ;;  %2742 = vrot.lane.b32.xlu1 %v8253_v15, %s6968_s12  ;;  %6683 = vmatprep.subr.bf16.mxu1 %v6945_v26 }
 0x22d   : > { %3364 = vrot.lane.b32.xlu0 %v8251_v5, %s6968_s12  ;;  %3912 = vst.msk [vmem:[#allocation3 + $0x70] sm:$0xff] %vm333_vm0, %v8255_v17  ;;  %3913 = vst.msk [vmem:[#allocation3 + $0x88] sm:$0xff] %vm333_vm0, %v8257_v59  ;;  %v8267_v19 = vld [vmem:[#allocation2 + $0x68] sm:$0xff]  ;;  %vm2476_vm14 = vcmp.gt.f32.partialorder %v2374_v57, 0.0  ;;  %v2508_v34 = vmul.f32 0.01, %v2374_v57  ;;  %v2216_v56 = vadd.f32 %v6590_v35, %v8081_v48  ;;  %v8339_v35 = vpop.f32.mrf.mxu1 }
 0x22e   : > { %v3243_v63 = vld [vmem:[#allocation2 + $0x69] sm:$0xff]  ;;  %2637 = vst.msk [vmem:[#allocation3 + $0xd8] sm:$0xff] %vm333_vm0, %v8267_v19  ;;  %v6952_v25 = vld [vmem:[%s10255_s4] sm:$0xff]  }
 0x22f   : > { %3275 = vst.msk [vmem:[#allocation3 + $0xb0] sm:$0xff] %vm333_vm0, %v3243_v63  ;;  %v2540_v36 = vsel %vm2476_vm14, %v2374_v57, %v2508_v34  ;;  %v2377_v24 = vadd.f32 %v2376_v62, %v2216_v56  ;;  %6684 = vmatpush3.bf16.msra.mxu1 %v6946_v31 }
 0x230   : > { %3366 = vrot.lane.b32.xlu1 %v8279_v6, %s6968_s12  ;;  %2572 = vst.msk [vmem:[#allocation2 + $0x79] sm:$0xff] %vm333_vm0, %v2540_v36  ;;  %6685 = vmatprep.subr.bf16.mxu1 %v6947_v13 }
 0x231   : > { %3556 = vrot.lane.b32.xlu0 %v8137_v53, %s6969_s13  ;;  %vm2477_vm15 = vcmp.gt.f32.partialorder %v2377_v24, 0.0  ;;  %v2509_v50 = vmul.f32 0.01, %v2377_v24 }
 0x232   : > { %6864 = vmatmul.mubr.msk.bf16.vlgmr.msra.gmra.mxu0 %vm333_vm0, %v4041_v33 }
 0x233   : > { %v2541_v12 = vsel %vm2477_vm15, %v2377_v24, %v2509_v50  ;;  %6686 = vmatpush3.bf16.msra.mxu1 %v6948_v44 }
 0x234   : > { %v3954_v41 = vld [vmem:[#allocation3 + $0x70] sm:$0xff]  ;;  %v3957_v0 = vld [vmem:[#allocation3 + $0x88] sm:$0xff]  ;;  %3558 = vrot.lane.b32.xlu1 %v8160_v29, %s6969_s13  ;;  %v6591_v55 = vpop.f32.mrf.mxu0  ;;  %2573 = vst.msk [vmem:[#allocation2 + $0x81] sm:$0xff] %vm333_vm0, %v2541_v12  ;;  %6687 = vmatprep.subr.bf16.mxu1 %v6949_v61 }
 0x235   : > { %v4044_v42 = vpack.c.bf16 %v3957_v0, %v3954_v41  ;;  %2916 = vrot.lane.b32.xlu0 %v2852_v47, %s6969_s13 }
 0x236   : > { %v6592_v14 = vpop.f32.mrf.mxu0 }
 0x237   : > { %6867 = vmatprep.mubr.msk.bf16.mxu0 %vm333_vm0, %v4044_v42  ;;  %v6593_v10 = vadd.f32 %v6592_v14, %v6591_v55  ;;  %6688 = vmatpush3.bf16.msra.mxu1 %v6950_v51  ;;  %v3244_v22 = vld [vmem:[#allocation2 + $0x79] sm:$0xff] }
 0x238   : > { %2918 = vrot.lane.b32.xlu1 %v2853_v38, %s6969_s13  ;;  %v6594_v11 = vpop.f32.mrf.mxu0  ;;  %3276 = vst.msk [vmem:[#allocation3 + $0xc8] sm:$0xff] %vm333_vm0, %v3244_v22  ;;  %v2606_v1 = vld [vmem:[#allocation2 + $0x78] sm:$0xff]  ;;  %6689 = vmatprep.subr.bf16.mxu1 %v6951_v8 }
 0x239   : > { %3748 = vrot.lane.b32.xlu0 %v8135_v54, %s6970_s14  ;;  %v2221_v46 = vadd.f32 %v6593_v10, %v8081_v48  ;;  %2638 = vst.msk [vmem:[#allocation3 + $0xf0] sm:$0xff] %vm333_vm0, %v2606_v1 }
 0x23a   : > { %v6595_v39 = vpop.f32.mrf.mxu0 }
 0x23b   : > { %v2382_v49 = vadd.f32 %v8216_v20, %v2221_v46  ;;  %v6596_v27 = vadd.f32 %v6595_v39, %v6594_v11  ;;  %v8317_v16 = vld [vmem:[#allocation2 + $0x7a] sm:$0xff]  ;;  %v8319_v30 = vld [vmem:[#allocation2 + $0x82] sm:$0xff]  ;;  %6690 = vmatpush3.bf16.msra.mxu1 %v6952_v25 }
 0x23c   : > { %3750 = vrot.lane.b32.xlu1 %v8149_v58, %s6970_s14  ;;  %3914 = vst.msk [vmem:[#allocation3 + $0xa0] sm:$0xff] %vm333_vm0, %v8317_v16  ;;  %3915 = vst.msk [vmem:[#allocation3 + $0xb8] sm:$0xff] %vm333_vm0, %v8319_v30  ;;  %v8327_v54 = vld [vmem:[#allocation2 + $0x81] sm:$0xff] }
 0x23d   : > { %v2607_v37 = vld [vmem:[#allocation2 + $0x80] sm:$0xff]  ;;  %3108 = vrot.lane.b32.xlu0 %v8105_v45, %s6970_s14  ;;  %vm2478_vm1 = vcmp.gt.f32.partialorder %v2382_v49, 0.0  ;;  %v2510_v20 = vmul.f32 0.01, %v2382_v49  ;;  %v2224_v32 = vadd.f32 %v6596_v27, %v8081_v48  ;;  %3277 = vst.msk [vmem:[#allocation3 + $0xe0] sm:$0xff] %vm333_vm0, %v8327_v54 }
 0x23e   : > { %2639 = vst.msk [vmem:[#allocation3 + $0x108] sm:$0xff] %vm333_vm0, %v2607_v37 }
 0x23f   : > { %v2542_v58 = vsel %vm2478_vm1, %v2382_v49, %v2510_v20  ;;  %v2385_v52 = vadd.f32 %v8238_v60, %v2224_v32 }
 0x240   : > { %3110 = vrot.lane.b32.xlu1 %v8119_v3, %s6970_s14  ;;  %2574 = vst.msk [vmem:[#allocation2 + $0x91] sm:$0xff] %vm333_vm0, %v2542_v58  ;;  %v2389_v3 = vpop.f32.mrf.mxu1 }
 0x241   : > { %3368 = vrot.lane.b32.xlu0 %v8151_v4, %s6968_s12  ;;  %vm2479_vm2 = vcmp.gt.f32.partialorder %v2385_v52, 0.0  ;;  %v2511_v45 = vmul.f32 0.01, %v2385_v52 }
 0x242   : > { %v8353_v24 = vpop.f32.mrf.mxu1 }
 0x243   : > { %v2543_v57 = vsel %vm2479_vm2, %v2385_v52, %v2511_v45  ;;  %v3960_v62 = vld [vmem:[#allocation3 + $0xa0] sm:$0xff]  ;;  %v3963_v26 = vld [vmem:[#allocation3 + $0xb8] sm:$0xff] }
 0x244   : > { %3370 = vrot.lane.b32.xlu1 %v8156_v40, %s6968_s12  ;;  %2575 = vst.msk [vmem:[#allocation2 + $0x99] sm:$0xff] %vm333_vm0, %v2543_v57  ;;  %v4047_v60 = vpack.c.bf16 %v3963_v26, %v3960_v62  ;;  %v6597_v63 = vpop.f32.mrf.mxu0  ;;  %v2392_v12 = vpop.f32.mrf.mxu1 }
 0x245   : > { %3560 = vrot.lane.b32.xlu0 %v8177_v43, %s6969_s13 }
 0x246   : > { %6868 = vmatmul.mubr.msk.bf16.gmra.mxu0 %vm333_vm0, %v4047_v60  ;;  %v6598_v34 = vpop.f32.mrf.mxu0  ;;  %v8417_v57 = vpop.f32.mrf.mxu1 }
 0x247   : > { %v6599_v56 = vadd.f32 %v6598_v34, %v6597_v63  ;;  %v8349_v31 = vld [vmem:[#allocation2 + $0x91] sm:$0xff] }
 0x248   : > { %v2608_v33 = vld [vmem:[#allocation2 + $0x90] sm:$0xff]  ;;  %3562 = vrot.lane.b32.xlu1 %v8198_v9, %s6969_s13  ;;  %v6600_v36 = vpop.f32.mrf.mxu0  ;;  %3278 = vst.msk [vmem:[#allocation3 + $0xf8] sm:$0xff] %vm333_vm0, %v8349_v31 }
 0x249   : > { %2640 = vst.msk [vmem:[#allocation3 + $0x120] sm:$0xff] %vm333_vm0, %v2608_v33  ;;  %2920 = vrot.lane.b32.xlu0 %v8251_v5, %s6969_s13  ;;  %v2229_v13 = vadd.f32 %v6599_v56, %v8081_v48 }
 0x24a   : > { %v6601_v50 = vpop.f32.mrf.mxu0 }
 0x24b   : > { %v8361_v44 = vld [vmem:[#allocation2 + $0x92] sm:$0xff]  ;;  %v8363_v47 = vld [vmem:[#allocation2 + $0x9a] sm:$0xff]  ;;  %v6602_v41 = vadd.f32 %v6601_v50, %v6600_v36  ;;  %v2390_v0 = vadd.f32 %v2389_v3, %v2229_v13 }
 0x24c   : > { %2922 = vrot.lane.b32.xlu1 %v8279_v6, %s6969_s13  ;;  %3916 = vst.msk [vmem:[#allocation3 + $0xd0] sm:$0xff] %vm333_vm0, %v8361_v44  ;;  %3917 = vst.msk [vmem:[#allocation3 + $0xe8] sm:$0xff] %vm333_vm0, %v8363_v47  ;;  %v8371_v5 = vld [vmem:[#allocation2 + $0x99] sm:$0xff] }
 0x24d   : > { %v2609_v42 = vld [vmem:[#allocation2 + $0x98] sm:$0xff]  ;;  %3752 = vrot.lane.b32.xlu0 %v8175_v7, %s6970_s14  ;;  %vm2480_vm6 = vcmp.gt.f32.partialorder %v2390_v0, 0.0  ;;  %v2512_v55 = vmul.f32 0.01, %v2390_v0  ;;  %v2232_v61 = vadd.f32 %v6602_v41, %v8081_v48  ;;  %3279 = vst.msk [vmem:[#allocation3 + $0x110] sm:$0xff] %vm333_vm0, %v8371_v5 }
 0x24e   : > { %2641 = vst.msk [vmem:[#allocation3 + $0x138] sm:$0xff] %vm333_vm0, %v2609_v42 }
 0x24f   : > { %v2544_v6 = vsel %vm2480_vm6, %v2390_v0, %v2512_v55  ;;  %v2393_v38 = vadd.f32 %v2392_v12, %v2232_v61  ;;  %v8446_v12 = vld [vmem:[#allocation2 + $0x78] sm:$0xff] }
 0x250   : > { %3754 = vrot.lane.b32.xlu1 %v8188_v2, %s6970_s14  ;;  %2576 = vst.msk [vmem:[#allocation2 + $0xa9] sm:$0xff] %vm333_vm0, %v2544_v6 }
 0x251   : > { %3112 = vrot.lane.b32.xlu0 %v8137_v53, %s6970_s14  ;;  %vm2481_vm7 = vcmp.gt.f32.partialorder %v2393_v38, 0.0  ;;  %v2513_v7 = vmul.f32 0.01, %v2393_v38 }
 0x253   : > { %v3966_v51 = vld [vmem:[#allocation3 + $0xd0] sm:$0xff]  ;;  %v3969_v14 = vld [vmem:[#allocation3 + $0xe8] sm:$0xff]  ;;  %v2545_v10 = vsel %vm2481_vm7, %v2393_v38, %v2513_v7 }
 0x254   : > { %3114 = vrot.lane.b32.xlu1 %v8160_v29, %s6970_s14  ;;  %v4050_v22 = vpack.c.bf16 %v3969_v14, %v3966_v51  ;;  %v6603_v11 = vpop.f32.mrf.mxu0  ;;  %2577 = vst.msk [vmem:[#allocation2 + $0xb1] sm:$0xff] %vm333_vm0, %v2545_v10  ;;  %v8461_v51 = vld [vmem:[#allocation2 + $0x80] sm:$0xff] }
 0x255   : > { %3372 = vrot.lane.b32.xlu0 %v8190_v18, %s6968_s12 }
 0x256   : > { %6871 = vmatprep.mubr.msk.bf16.mxu0 %vm333_vm0, %v4050_v22  ;;  %v6604_v2 = vpop.f32.mrf.mxu0 }
 0x257   : > { %v6605_v8 = vadd.f32 %v6604_v2, %v6603_v11  ;;  %v3248_v53 = vld [vmem:[#allocation2 + $0xa9] sm:$0xff] }
 0x258   : > { %3374 = vrot.lane.b32.xlu1 %v8194_v23, %s6968_s12  ;;  %v6606_v1 = vpop.f32.mrf.mxu0  ;;  %3280 = vst.msk [vmem:[#allocation3 + $0x128] sm:$0xff] %vm333_vm0, %v3248_v53  ;;  %v2610_v46 = vld [vmem:[#allocation2 + $0xa8] sm:$0xff] }
 0x259   : > { %3564 = vrot.lane.b32.xlu0 %v8234_v28, %s6969_s13  ;;  %v2237_v29 = vadd.f32 %v6605_v8, %v8081_v48  ;;  %2642 = vst.msk [vmem:[#allocation3 + $0x150] sm:$0xff] %vm333_vm0, %v2610_v46  ;;  %v8470_v8 = vld [vmem:[#allocation2 + $0x79] sm:$0xff] }
 0x25a   : > { %v6607_v25 = vpop.f32.mrf.mxu0 }
 0x25b   : > { %v2398_v39 = vadd.f32 %v8339_v35, %v2237_v29  ;;  %v6608_v49 = vadd.f32 %v6607_v25, %v6606_v1  ;;  %v8398_v27 = vld [vmem:[#allocation2 + $0xaa] sm:$0xff]  ;;  %v8400_v37 = vld [vmem:[#allocation2 + $0xb2] sm:$0xff] }
 0x25c   : > { %3566 = vrot.lane.b32.xlu1 %v8267_v19, %s6969_s13  ;;  %3918 = vst.msk [vmem:[#allocation3 + $0x100] sm:$0xff] %vm333_vm0, %v8398_v27  ;;  %3919 = vst.msk [vmem:[#allocation3 + $0x118] sm:$0xff] %vm333_vm0, %v8400_v37  ;;  %v3249_v20 = vld [vmem:[#allocation2 + $0xb1] sm:$0xff] }
 0x25d   : > { %v2611_v32 = vld [vmem:[#allocation2 + $0xb0] sm:$0xff]  ;;  %2924 = vrot.lane.b32.xlu0 %v8151_v4, %s6969_s13  ;;  %vm2482_vm8 = vcmp.gt.f32.partialorder %v2398_v39, 0.0  ;;  %v2514_v58 = vmul.f32 0.01, %v2398_v39  ;;  %v2240_v52 = vadd.f32 %v6608_v49, %v8081_v48  ;;  %3281 = vst.msk [vmem:[#allocation3 + $0x140] sm:$0xff] %vm333_vm0, %v3249_v20 }
 0x25e   : > { %2643 = vst.msk [vmem:[#allocation3 + $0x168] sm:$0xff] %vm333_vm0, %v2611_v32 }
 0x25f   : > { %v2546_v35 = vsel %vm2482_vm8, %v2398_v39, %v2514_v58  ;;  %v2401_v45 = vadd.f32 %v8353_v24, %v2240_v52  ;;  %v8488_v39 = vld [vmem:[%s10254_s3] ss:$0 sm:$0xff] }
 0x260   : > { %2926 = vrot.lane.b32.xlu1 %v8156_v40, %s6969_s13  ;;  %2578 = vst.msk [vmem:[#allocation2 + $0xc1] sm:$0xff] %vm333_vm0, %v2546_v35  ;;  %v2405_v40 = vpop.f32.mrf.mxu1 }
 0x261   : > { %3756 = vrot.lane.b32.xlu0 %v8232_v21, %s6970_s14  ;;  %vm2483_vm9 = vcmp.gt.f32.partialorder %v2401_v45, 0.0  ;;  %v2515_v4 = vmul.f32 0.01, %v2401_v45 }
 0x263   : > { %v2547_v62 = vsel %vm2483_vm9, %v2401_v45, %v2515_v4  ;;  %v3972_v26 = vld [vmem:[#allocation3 + $0x100] sm:$0xff]  ;;  %v3975_v60 = vld [vmem:[#allocation3 + $0x118] sm:$0xff] }
 0x264   : > { %3758 = vrot.lane.b32.xlu1 %v8253_v15, %s6970_s14  ;;  %2579 = vst.msk [vmem:[#allocation2 + $0xc9] sm:$0xff] %vm333_vm0, %v2547_v62  ;;  %v4053_v63 = vpack.c.bf16 %v3975_v60, %v3972_v26  ;;  %v6609_v3 = vpop.f32.mrf.mxu0  ;;  %v8431_v15 = vpop.f32.mrf.mxu1 }
 0x265   : > { %3116 = vrot.lane.b32.xlu0 %v8177_v43, %s6970_s14 }
 0x266   : > { %6872 = vmatmul.mubr.msk.bf16.gmra.mxu0 %vm333_vm0, %v4053_v63  ;;  %v6610_v34 = vpop.f32.mrf.mxu0  ;;  %v2408_v42 = vpop.f32.mrf.mxu1  ;;  %v8515_v63 = vld [vmem:[#allocation2 + $0x90] sm:$0xff] }
 0x267   : > { %v6611_v21 = vadd.f32 %v6610_v34, %v6609_v3  ;;  %v8427_v56 = vld [vmem:[#allocation2 + $0xc1] sm:$0xff]  ;;  %v8522_v34 = vld [vmem:[#allocation2 + $0x98] sm:$0xff] }
 0x268   : > { %v2612_v33 = vld [vmem:[#allocation2 + $0xc0] sm:$0xff]  ;;  %3118 = vrot.lane.b32.xlu1 %v8198_v9, %s6970_s14  ;;  %v6612_v36 = vpop.f32.mrf.mxu0  ;;  %3282 = vst.msk [vmem:[#allocation3 + $0x158] sm:$0xff] %vm333_vm0, %v8427_v56  ;;  %v8518_v3 = vpop.f32.mrf.mxu1 }
 0x269   : > { %2644 = vst.msk [vmem:[#allocation3 + $0x180] sm:$0xff] %vm333_vm0, %v2612_v33  ;;  %3376 = vrot.lane.b32.xlu0 %v8255_v17, %s6968_s12  ;;  %v2245_v43 = vadd.f32 %v6611_v21, %v8081_v48 }
 0x26a   : > { %v2729_v24 = vpop.permute.xlu0 %2728  ;;  %v6613_v13 = vpop.f32.mrf.mxu0 }
 0x26b   : > { %2822 = vst.msk [vmem:[#allocation3 + $0x30] sm:$0xff] %vm679_vm3, %v2729_v24  ;;  %v8440_v50 = vld [vmem:[#allocation2 + $0xc2] sm:$0xff]  ;;  %v8442_v9 = vld [vmem:[#allocation2 + $0xca] sm:$0xff]  ;;  %v6614_v41 = vadd.f32 %v6613_v13, %v6612_v36  ;;  %v2406_v0 = vadd.f32 %v2405_v40, %v2245_v43  ;;  %v2421_v24 = vpop.f32.mrf.mxu1 }
 0x26c   : > { %3378 = vrot.lane.b32.xlu1 %v8257_v59, %s6968_s12  ;;  %3920 = vst.msk [vmem:[#allocation3 + $0x130] sm:$0xff] %vm333_vm0, %v8440_v50  ;;  %3921 = vst.msk [vmem:[#allocation3 + $0x148] sm:$0xff] %vm333_vm0, %v8442_v9  ;;  %v8452_v55 = vld [vmem:[#allocation2 + $0xc9] sm:$0xff] }
 0x26d   : > { %v2613_v61 = vld [vmem:[#allocation2 + $0xc8] sm:$0xff]  ;;  %3568 = vrot.lane.b32.xlu0 %v8446_v12, %s6969_s13  ;;  %vm2484_vm10 = vcmp.gt.f32.partialorder %v2406_v0, 0.0  ;;  %v2516_v6 = vmul.f32 0.01, %v2406_v0  ;;  %v2248_v38 = vadd.f32 %v6614_v41, %v8081_v48  ;;  %3283 = vst.msk [vmem:[#allocation3 + $0x170] sm:$0xff] %vm333_vm0, %v8452_v55 }
 0x26e   : > { %2645 = vst.msk [vmem:[#allocation3 + $0x198] sm:$0xff] %vm333_vm0, %v2613_v61  ;;  %v2731_v7 = vpop.permute.xlu1 %2730 }
 0x26f   : > { %2823 = vst.msk [vmem:[#allocation3 + $0x48] sm:$0xff] %vm679_vm3, %v2731_v7  ;;  %v2548_v14 = vsel %vm2484_vm10, %v2406_v0, %v2516_v6  ;;  %v2409_v10 = vadd.f32 %v2408_v42, %v2248_v38  ;;  %v8534_v6 = vpop.f32.mrf.mxu1 }
 0x270   : > { %3570 = vrot.lane.b32.xlu1 %v8461_v51, %s6969_s13  ;;  %2580 = vst.msk [vmem:[#allocation2 + $0xd9] sm:$0xff] %vm333_vm0, %v2548_v14 }
 0x271   : > { %2928 = vrot.lane.b32.xlu0 %v8190_v18, %s6969_s13  ;;  %vm2485_vm11 = vcmp.gt.f32.partialorder %v2409_v10, 0.0  ;;  %v2517_v48 = vmul.f32 0.01, %v2409_v10 }
 0x273   : > { %v3978_v22 = vld [vmem:[#allocation3 + $0x130] sm:$0xff]  ;;  %v3981_v11 = vld [vmem:[#allocation3 + $0x148] sm:$0xff]  ;;  %v2549_v2 = vsel %vm2485_vm11, %v2409_v10, %v2517_v48 }
 0x274   : > { %2930 = vrot.lane.b32.xlu1 %v8194_v23, %s6969_s13  ;;  %v4056_v53 = vpack.c.bf16 %v3981_v11, %v3978_v22  ;;  %v6615_v1 = vpop.f32.mrf.mxu0  ;;  %2581 = vst.msk [vmem:[#allocation2 + $0xe1] sm:$0xff] %vm333_vm0, %v2549_v2  ;;  %v2424_v11 = vpop.f32.mrf.mxu1 }
 0x275   : > { %3760 = vrot.lane.b32.xlu0 %v8470_v8, %s6970_s14 }
 0x276   : > { %6875 = vmatprep.mubr.msk.bf16.mxu0 %vm333_vm0, %v4056_v53  ;;  %v6616_v18 = vpop.f32.mrf.mxu0 }
 0x277   : > { %v6617_v46 = vadd.f32 %v6616_v18, %v6615_v1  ;;  %v8476_v29 = vld [vmem:[#allocation2 + $0xd9] sm:$0xff] }
 0x278   : > { %v2614_v25 = vld [vmem:[#allocation2 + $0xd8] sm:$0xff]  ;;  %3762 = vrot.lane.b32.xlu1 %v8327_v54, %s6970_s14  ;;  %v6618_v23 = vpop.f32.mrf.mxu0  ;;  %3284 = vst.msk [vmem:[#allocation3 + $0x188] sm:$0xff] %vm333_vm0, %v8476_v29 }
 0x279   : > { %2646 = vst.msk [vmem:[#allocation3 + $0x1b0] sm:$0xff] %vm333_vm0, %v2614_v25  ;;  %3120 = vrot.lane.b32.xlu0 %v8234_v28, %s6970_s14  ;;  %v2253_v49 = vadd.f32 %v8488_v39, %v6617_v46 }
 0x27a   : > { %v2733_v20 = vpop.permute.xlu0 %2732  ;;  %v6619_v32 = vpop.f32.mrf.mxu0 }
 0x27b   : > { %2824 = vst.msk [vmem:[#allocation3 + $0x60] sm:$0xff] %vm679_vm3, %v2733_v20  ;;  %v2414_v58 = vadd.f32 %v8417_v57, %v2253_v49  ;;  %v6620_v52 = vadd.f32 %v6619_v32, %v6618_v23  ;;  %v8493_v35 = vld [vmem:[#allocation2 + $0xda] sm:$0xff]  ;;  %v8495_v45 = vld [vmem:[#allocation2 + $0xe2] sm:$0xff] }
 0x27c   : > { %3122 = vrot.lane.b32.xlu1 %v8267_v19, %s6970_s14  ;;  %3922 = vst.msk [vmem:[#allocation3 + $0x160] sm:$0xff] %vm333_vm0, %v8493_v35  ;;  %3923 = vst.msk [vmem:[#allocation3 + $0x178] sm:$0xff] %vm333_vm0, %v8495_v45  ;;  %v8503_v28 = vld [vmem:[#allocation2 + $0xe1] sm:$0xff] }
 0x27d   : > { %v2615_v4 = vld [vmem:[#allocation2 + $0xe0] sm:$0xff]  ;;  %3380 = vrot.lane.b32.xlu0 %v8317_v16, %s6968_s12  ;;  %vm2486_vm12 = vcmp.gt.f32.partialorder %v2414_v58, 0.0  ;;  %v2518_v57 = vmul.f32 0.01, %v2414_v58  ;;  %v2256_v62 = vadd.f32 %v8488_v39, %v6620_v52  ;;  %3285 = vst.msk [vmem:[#allocation3 + $0x1a0] sm:$0xff] %vm333_vm0, %v8503_v28  ;;  %v8577_v52 = vld [vmem:[#allocation2 + $0xa8] sm:$0xff] }
 0x27e   : > { %2647 = vst.msk [vmem:[#allocation3 + $0x1c8] sm:$0xff] %vm333_vm0, %v2615_v4  ;;  %v2735_v19 = vpop.permute.xlu1 %2734 }
 0x27f   : > { %2825 = vst.msk [vmem:[#allocation3 + $0x78] sm:$0xff] %vm679_vm3, %v2735_v19  ;;  %v2550_v26 = vsel %vm2486_vm12, %v2414_v58, %v2518_v57  ;;  %v2417_v60 = vadd.f32 %v8431_v15, %v2256_v62  ;;  %v8585_v62 = vld [vmem:[#allocation2 + $0xb0] sm:$0xff] }
 0x280   : > { %3382 = vrot.lane.b32.xlu1 %v8319_v30, %s6968_s12  ;;  %2582 = vst.msk [vmem:[#allocation2 + $0xf1] sm:$0xff] %vm333_vm0, %v2550_v26 }
 0x281   : > { %3572 = vrot.lane.b32.xlu0 %v8515_v63, %s6969_s13  ;;  %vm2487_vm13 = vcmp.gt.f32.partialorder %v2417_v60, 0.0  ;;  %v2519_v40 = vmul.f32 0.01, %v2417_v60 }
 0x283   : > { %v2551_v21 = vsel %vm2487_vm13, %v2417_v60, %v2519_v40  ;;  %v3984_v33 = vld [vmem:[#allocation3 + $0x160] sm:$0xff]  ;;  %v3987_v36 = vld [vmem:[#allocation3 + $0x178] sm:$0xff] }
 0x284   : > { %3574 = vrot.lane.b32.xlu1 %v8522_v34, %s6969_s13  ;;  %2583 = vst.msk [vmem:[#allocation2 + $0xf9] sm:$0xff] %vm333_vm0, %v2551_v21  ;;  %v6621_v15 = vpop.f32.mrf.mxu0  ;;  %v4059_v43 = vpack.c.bf16 %v3987_v36, %v3984_v33 }
 0x285   : > { %2932 = vrot.lane.b32.xlu0 %v8255_v17, %s6969_s13 }
 0x286   : > { %v6622_v13 = vpop.f32.mrf.mxu0  ;;  %6876 = vmatmul.mubr.msk.bf16.gmra.mxu0 %vm333_vm0, %v4059_v43 }
 0x287   : > { %v6623_v41 = vadd.f32 %v6622_v13, %v6621_v15  ;;  %v8530_v0 = vld [vmem:[#allocation2 + $0xf1] sm:$0xff] }
 0x288   : > { %v2616_v42 = vld [vmem:[#allocation2 + $0xf0] sm:$0xff]  ;;  %2934 = vrot.lane.b32.xlu1 %v8257_v59, %s6969_s13  ;;  %v6624_v61 = vpop.f32.mrf.mxu0  ;;  %3286 = vst.msk [vmem:[#allocation3 + $0x1b8] sm:$0xff] %vm333_vm0, %v8530_v0 }
 0x289   : > { %2648 = vst.msk [vmem:[#allocation3 + $0x1e0] sm:$0xff] %vm333_vm0, %v2616_v42  ;;  %3764 = vrot.lane.b32.xlu0 %v8349_v31, %s6970_s14  ;;  %v2261_v17 = vadd.f32 %v8488_v39, %v6623_v41 }
 0x28a   : > { %v6625_v7 = vpop.f32.mrf.mxu0 }
 0x28b   : > { %v2737_v38 = vpop.permute.xlu0 %2736  ;;  %v6626_v14 = vadd.f32 %v6625_v7, %v6624_v61  ;;  %v8543_v10 = vld [vmem:[#allocation2 + $0xf2] sm:$0xff]  ;;  %v8545_v59 = vld [vmem:[#allocation2 + $0xfa] sm:$0xff]  ;;  %v2422_v48 = vadd.f32 %v2421_v24, %v2261_v17 }
 0x28c   : > { %2826 = vst.msk [vmem:[#allocation3 + $0x90] sm:$0xff] %vm679_vm3, %v2737_v38  ;;  %3766 = vrot.lane.b32.xlu1 %v8371_v5, %s6970_s14  ;;  %v8553_v22 = vld [vmem:[#allocation2 + $0xf9] sm:$0xff]  ;;  %v8616_v38 = vld [vmem:[#allocation2 + $0xb1] sm:$0xff] }
 0x28d   : > { %3924 = vst.msk [vmem:[#allocation3 + $0x190] sm:$0xff] %vm333_vm0, %v8543_v10  ;;  %3925 = vst.msk [vmem:[#allocation3 + $0x1a8] sm:$0xff] %vm333_vm0, %v8545_v59  ;;  %v2617_v2 = vld [vmem:[#allocation2 + $0xf8] sm:$0xff]  ;;  %3124 = vrot.lane.b32.xlu0 %v8446_v12, %s6970_s14  ;;  %vm2488_vm14 = vcmp.gt.f32.partialorder %v2422_v48, 0.0  ;;  %v2520_v53 = vmul.f32 0.01, %v2422_v48  ;;  %v2264_v1 = vadd.f32 %v8488_v39, %v6626_v14 }
 0x28e   : > { %3287 = vst.msk [vmem:[#allocation3 + $0x1d0] sm:$0xff] %vm333_vm0, %v8553_v22  ;;  %2649 = vst.msk [vmem:[#allocation3 + $0x1f8] sm:$0xff] %vm333_vm0, %v2617_v2  ;;  %v2739_v18 = vpop.permute.xlu1 %2738 }
 0x28f   : > { %2827 = vst.msk [vmem:[#allocation3 + $0xa8] sm:$0xff] %vm679_vm3, %v2739_v18  ;;  %v2552_v46 = vsel %vm2488_vm14, %v2422_v48, %v2520_v53  ;;  %v2425_v25 = vadd.f32 %v2424_v11, %v2264_v1 }
 0x290   : > { %3126 = vrot.lane.b32.xlu1 %v8461_v51, %s6970_s14  ;;  %2584 = vst.msk [vmem:[#allocation2 + $0x109] sm:$0xff] %vm333_vm0, %v2552_v46 }
 0x291   : > { %3384 = vrot.lane.b32.xlu0 %v8361_v44, %s6968_s12  ;;  %vm2489_vm15 = vcmp.gt.f32.partialorder %v2425_v25, 0.0  ;;  %v2521_v12 = vmul.f32 0.01, %v2425_v25 }
 0x293   : > { %v2553_v20 = vsel %vm2489_vm15, %v2425_v25, %v2521_v12 }
 0x294   : > { %v3990_v23 = vld [vmem:[#allocation3 + $0x190] sm:$0xff]  ;;  %v3993_v49 = vld [vmem:[#allocation3 + $0x1a8] sm:$0xff]  ;;  %3386 = vrot.lane.b32.xlu1 %v8363_v47, %s6968_s12  ;;  %2585 = vst.msk [vmem:[#allocation2 + $0x111] sm:$0xff] %vm333_vm0, %v2553_v20 }
 0x295   : > { %v4062_v32 = vpack.c.bf16 %v3993_v49, %v3990_v23  ;;  %2744 = vrot.lane.b32.xlu0 %v8470_v8, %s6968_s12 }
 0x297   : > { %6879 = vmatprep.mubr.msk.bf16.mxu0 %vm333_vm0, %v4062_v32  ;;  %v8573_v51 = vld [vmem:[#allocation2 + $0x109] sm:$0xff] }
 0x298   : > { %v2618_v58 = vld [vmem:[#allocation2 + $0x108] sm:$0xff]  ;;  %2746 = vrot.lane.b32.xlu1 %v8327_v54, %s6968_s12  ;;  %v6627_v4 = vpop.f32.mrf.mxu0  ;;  %3288 = vst.msk [vmem:[#allocation3 + $0x1e8] sm:$0xff] %vm333_vm0, %v8573_v51 }
 0x299   : > { %2650 = vst.msk [vmem:[#allocation3 + $0x210] sm:$0xff] %vm333_vm0, %v2618_v58  ;;  %3576 = vrot.lane.b32.xlu0 %v8577_v52, %s6969_s13  ;;  %v8650_v58 = vld [vmem:[#allocation2 + $0xc0] sm:$0xff] }
 0x29a   : > { %v6628_v57 = vpop.f32.mrf.mxu0 }
 0x29b   : > { %v2741_v8 = vpop.permute.xlu0 %2740  ;;  %v6629_v19 = vadd.f32 %v6628_v57, %v6627_v4  ;;  %v8587_v26 = vld [vmem:[#allocation2 + $0x111] sm:$0xff] }
 0x29c   : > { %2828 = vst.msk [vmem:[#allocation3 + $0xc0] sm:$0xff] %vm679_vm3, %v2741_v8  ;;  %v8589_v54 = vld [vmem:[#allocation2 + $0x10a] sm:$0xff]  ;;  %3578 = vrot.lane.b32.xlu1 %v8585_v62, %s6969_s13  ;;  %v6630_v60 = vpop.f32.mrf.mxu0  ;;  %v8593_v40 = vld [vmem:[#allocation2 + $0x112] sm:$0xff] }
 0x29d   : > { %3926 = vst.msk [vmem:[#allocation3 + $0x1c0] sm:$0xff] %vm333_vm0, %v8589_v54  ;;  %3289 = vst.msk [vmem:[#allocation3 + $0x200] sm:$0xff] %vm333_vm0, %v8587_v26  ;;  %v2619_v21 = vld [vmem:[#allocation2 + $0x110] sm:$0xff]  ;;  %2936 = vrot.lane.b32.xlu0 %v8317_v16, %s6969_s13  ;;  %v2269_v33 = vadd.f32 %v8488_v39, %v6629_v19 }
 0x29e   : > { %3927 = vst.msk [vmem:[#allocation3 + $0x1d8] sm:$0xff] %vm333_vm0, %v8593_v40  ;;  %2651 = vst.msk [vmem:[#allocation3 + $0x228] sm:$0xff] %vm333_vm0, %v2619_v21  ;;  %v2743_v36 = vpop.permute.xlu1 %2742  ;;  %v6631_v43 = vpop.f32.mrf.mxu0  ;;  %v8610_v16 = vld [vmem:[#allocation2 + $0xa9] sm:$0xff] }
 0x29f   : > { %v3365_v15 = vpop.permute.xlu0 %3364  ;;  %2829 = vst.msk [vmem:[#allocation3 + $0xd8] sm:$0xff] %vm679_vm3, %v2743_v36  ;;  %v2430_v24 = vadd.f32 %v8518_v3, %v2269_v33  ;;  %v6632_v13 = vadd.f32 %v6631_v43, %v6630_v60 }
 0x2a0   : > { %3460 = vst.msk [vmem:[#allocation3 + $0x8] sm:$0xff] %vm679_vm3, %v3365_v15  ;;  %2938 = vrot.lane.b32.xlu1 %v8319_v30, %s6969_s13  ;;  %v8671_v15 = vld [vmem:[#allocation2 + $0xc8] sm:$0xff] }
 0x2a1   : > { %3768 = vrot.lane.b32.xlu0 %v8610_v16, %s6970_s14  ;;  %vm2490_vm1 = vcmp.gt.f32.partialorder %v2430_v24, 0.0  ;;  %v2522_v41 = vmul.f32 0.01, %v2430_v24  ;;  %v2272_v61 = vadd.f32 %v8488_v39, %v6632_v13 }
 0x2a2   : > { %v3367_v42 = vpop.permute.xlu1 %3366 }
 0x2a3   : > { %3461 = vst.msk [vmem:[#allocation3 + $0x20] sm:$0xff] %vm679_vm3, %v3367_v42  ;;  %v3557_v17 = vpop.permute.xlu0 %3556  ;;  %v2554_v3 = vsel %vm2490_vm1, %v2430_v24, %v2522_v41  ;;  %v2433_v30 = vadd.f32 %v8534_v6, %v2272_v61  ;;  %v8630_v6 = vpop.f32.mrf.mxu1 }
 0x2a4   : > { %v3996_v7 = vld [vmem:[#allocation3 + $0x1c0] sm:$0xff]  ;;  %3652 = vst.msk [vmem:[#allocation3 + $0x8] sm:$0xff] %vm872_vm4, %v3557_v17  ;;  %3770 = vrot.lane.b32.xlu1 %v8616_v38, %s6970_s14 }
 0x2a5   : > { %2586 = vst.msk [vmem:[#allocation2 + $0x121] sm:$0xff] %vm333_vm0, %v2554_v3  ;;  %v3999_v14 = vld [vmem:[#allocation3 + $0x1d8] sm:$0xff]  ;;  %3128 = vrot.lane.b32.xlu0 %v8515_v63, %s6970_s14  ;;  %vm2491_vm2 = vcmp.gt.f32.partialorder %v2433_v30, 0.0  ;;  %v2523_v2 = vmul.f32 0.01, %v2433_v30  ;;  %v2437_v12 = vpop.f32.mrf.mxu1 }
 0x2a6   : > { %v4065_v48 = vpack.c.bf16 %v3999_v14, %v3996_v7  ;;  %v3559_v11 = vpop.permute.xlu1 %3558 }
 0x2a7   : > { %3653 = vst.msk [vmem:[#allocation3 + $0x20] sm:$0xff] %vm872_vm4, %v3559_v11  ;;  %v2917_v53 = vpop.permute.xlu0 %2916  ;;  %v2555_v1 = vsel %vm2491_vm2, %v2433_v30, %v2523_v2  ;;  %v8656_v19 = vpop.f32.mrf.mxu1 }
 0x2a8   : > { %6880 = vmatmul.mubr.msk.bf16.gmra.mxu0 %vm333_vm0, %v4065_v48  ;;  %3012 = vst.msk [vmem:[#allocation3] sm:$0xff] %vm872_vm4, %v2917_v53  ;;  %3130 = vrot.lane.b32.xlu1 %v8522_v34, %s6970_s14 }
 0x2a9   : > { %3388 = vrot.lane.b32.xlu0 %v8398_v27, %s6968_s12  ;;  %2587 = vst.msk [vmem:[#allocation2 + $0x129] sm:$0xff] %vm333_vm0, %v2555_v1  ;;  %v2440_v13 = vpop.f32.mrf.mxu1 }
 0x2aa   : > { %v2919_v63 = vpop.permute.xlu1 %2918 }
 0x2ab   : > { %3013 = vst.msk [vmem:[#allocation3 + $0x18] sm:$0xff] %vm872_vm4, %v2919_v63  ;;  %v3749_v18 = vpop.permute.xlu0 %3748 }
 0x2ac   : > { %v8636_v46 = vld [vmem:[#allocation2 + $0x121] sm:$0xff]  ;;  %3844 = vst.msk [vmem:[#allocation3 + $0x8] sm:$0xff] %vm1065_vm5, %v3749_v18  ;;  %3390 = vrot.lane.b32.xlu1 %v8400_v37, %s6968_s12  ;;  %v6633_v34 = vpop.f32.mrf.mxu0 }
 0x2ad   : > { %v2620_v25 = vld [vmem:[#allocation2 + $0x120] sm:$0xff]  ;;  %3290 = vst.msk [vmem:[#allocation3 + $0x218] sm:$0xff] %vm333_vm0, %v8636_v46  ;;  %2748 = vrot.lane.b32.xlu0 %v8349_v31, %s6968_s12 }
 0x2ae   : > { %2652 = vst.msk [vmem:[#allocation3 + $0x240] sm:$0xff] %vm333_vm0, %v2620_v25  ;;  %v3751_v23 = vpop.permute.xlu1 %3750  ;;  %v6634_v49 = vpop.f32.mrf.mxu0 }
 0x2af   : > { %3845 = vst.msk [vmem:[#allocation3 + $0x20] sm:$0xff] %vm1065_vm5, %v3751_v23  ;;  %v3109_v20 = vpop.permute.xlu0 %3108  ;;  %v6635_v32 = vadd.f32 %v6634_v49, %v6633_v34 }
 0x2b0   : > { %3204 = vst.msk [vmem:[#allocation3] sm:$0xff] %vm1065_vm5, %v3109_v20  ;;  %2750 = vrot.lane.b32.xlu1 %v8371_v5, %s6968_s12  ;;  %v6636_v4 = vpop.f32.mrf.mxu0  ;;  %v8652_v8 = vld [vmem:[#allocation2 + $0x122] sm:$0xff]  ;;  %v8654_v57 = vld [vmem:[#allocation2 + $0x12a] sm:$0xff] }
 0x2b1   : > { %3580 = vrot.lane.b32.xlu0 %v8650_v58, %s6969_s13  ;;  %3928 = vst.msk [vmem:[#allocation3 + $0x1f0] sm:$0xff] %vm333_vm0, %v8652_v8  ;;  %3929 = vst.msk [vmem:[#allocation3 + $0x208] sm:$0xff] %vm333_vm0, %v8654_v57  ;;  %v2277_v31 = vadd.f32 %v8488_v39, %v6635_v32  ;;  %v8665_v5 = vld [vmem:[#allocation2 + $0x129] sm:$0xff] }
 0x2b2   : > { %v2621_v60 = vld [vmem:[#allocation2 + $0x128] sm:$0xff]  ;;  %v3111_v21 = vpop.permute.xlu1 %3110  ;;  %v6637_v33 = vpop.f32.mrf.mxu0  ;;  %3291 = vst.msk [vmem:[#allocation3 + $0x230] sm:$0xff] %vm333_vm0, %v8665_v5 }
 0x2b3   : > { %2653 = vst.msk [vmem:[#allocation3 + $0x258] sm:$0xff] %vm333_vm0, %v2621_v60  ;;  %v3369_v36 = vpop.permute.xlu0 %3368  ;;  %v6638_v43 = vadd.f32 %v6637_v33, %v6636_v4  ;;  %v2438_v24 = vadd.f32 %v2437_v12, %v2277_v31  ;;  %v3941_v17 = vld [vmem:[#allocation3 + $0x8] sm:$0xff] }
 0x2b4   : > { %3205 = vst.msk [vmem:[#allocation3 + $0x18] sm:$0xff] %vm1065_vm5, %v3111_v21  ;;  %3582 = vrot.lane.b32.xlu1 %v8671_v15, %s6969_s13 }
 0x2b5   : > { %3462 = vst.msk [vmem:[#allocation3 + $0x38] sm:$0xff] %vm679_vm3, %v3369_v36  ;;  %2940 = vrot.lane.b32.xlu0 %v8361_v44, %s6969_s13  ;;  %vm2492_vm6 = vcmp.gt.f32.partialorder %v2438_v24, 0.0  ;;  %v2524_v41 = vmul.f32 0.01, %v2438_v24  ;;  %v2280_v42 = vadd.f32 %v8488_v39, %v6638_v43 }
 0x2b6   : > { %v3371_v61 = vpop.permute.xlu1 %3370  ;;  %v3944_v3 = vld [vmem:[#allocation3 + $0x20] sm:$0xff] }
 0x2b7   : > { %3463 = vst.msk [vmem:[#allocation3 + $0x50] sm:$0xff] %vm679_vm3, %v3371_v61  ;;  %v3561_v7 = vpop.permute.xlu0 %3560  ;;  %v4037_v30 = vpack.c.bf16 %v3944_v3, %v3941_v17  ;;  %v2556_v14 = vsel %vm2492_vm6, %v2438_v24, %v2524_v41  ;;  %v2441_v48 = vadd.f32 %v2440_v13, %v2280_v42  ;;  %v3940_v63 = vld [vmem:[#allocation3] sm:$0xff] }
 0x2b8   : > { %3654 = vst.msk [vmem:[#allocation3 + $0x38] sm:$0xff] %vm872_vm4, %v3561_v7  ;;  %2942 = vrot.lane.b32.xlu1 %v8363_v47, %s6969_s13  ;;  %v4002_v11 = vld [vmem:[#allocation3 + $0x1f0] sm:$0xff]  ;;  %v4005_v44 = vld [vmem:[#allocation3 + $0x208] sm:$0xff] }
 0x2b9   : > { %2588 = vst.msk [vmem:[#allocation2 + $0x139] sm:$0xff] %vm333_vm0, %v2556_v14  ;;  %3772 = vrot.lane.b32.xlu0 %v8427_v56, %s6970_s14  ;;  %4315 = vmatprep.mubr.bf16.mxu1 %v4037_v30  ;;  %v4068_v2 = vpack.c.bf16 %v4005_v44, %v4002_v11  ;;  %vm2493_vm7 = vcmp.gt.f32.partialorder %v2441_v48, 0.0  ;;  %v2525_v53 = vmul.f32 0.01, %v2441_v48  ;;  %v8736_v11 = vld [vmem:[#allocation2 + $0xe0] sm:$0xff] }
 0x2ba   : > { %v3563_v1 = vpop.permute.xlu1 %3562 }
 0x2bb   : > { %v3943_v18 = vld [vmem:[#allocation3 + $0x18] sm:$0xff]  ;;  %3655 = vst.msk [vmem:[#allocation3 + $0x50] sm:$0xff] %vm872_vm4, %v3563_v1  ;;  %v2921_v25 = vpop.permute.xlu0 %2920  ;;  %6883 = vmatprep.mubr.msk.bf16.mxu0 %vm333_vm0, %v4068_v2  ;;  %v2557_v47 = vsel %vm2493_vm7, %v2441_v48, %v2525_v53 }
 0x2bc   : > { %v4036_v34 = vpack.c.bf16 %v3943_v18, %v3940_v63  ;;  %3014 = vst.msk [vmem:[#allocation3 + $0x30] sm:$0xff] %vm872_vm4, %v2921_v25  ;;  %3774 = vrot.lane.b32.xlu1 %v8452_v55, %s6970_s14 }
 0x2bd   : > { %2589 = vst.msk [vmem:[#allocation2 + $0x141] sm:$0xff] %vm333_vm0, %v2557_v47  ;;  %3132 = vrot.lane.b32.xlu0 %v8577_v52, %s6970_s14 }
 0x2be   : > { %4316 = vmatmul.mubr.bf16.vlgmr.msra.gmra.mxu1 %v4036_v34  ;;  %v2923_v12 = vpop.permute.xlu1 %2922 }
 0x2bf   : > { %3015 = vst.msk [vmem:[#allocation3 + $0x48] sm:$0xff] %vm872_vm4, %v2923_v12  ;;  %v3753_v23 = vpop.permute.xlu0 %3752 }
 0x2c0   : > { %v8695_v49 = vld [vmem:[#allocation2 + $0x139] sm:$0xff]  ;;  %3846 = vst.msk [vmem:[#allocation3 + $0x38] sm:$0xff] %vm1065_vm5, %v3753_v23  ;;  %3134 = vrot.lane.b32.xlu1 %v8585_v62, %s6970_s14  ;;  %v6639_v32 = vpop.f32.mrf.mxu0 }
 0x2c1   : > { %v2622_v20 = vld [vmem:[#allocation2 + $0x138] sm:$0xff]  ;;  %3292 = vst.msk [vmem:[#allocation3 + $0x248] sm:$0xff] %vm333_vm0, %v8695_v49  ;;  %3392 = vrot.lane.b32.xlu0 %v8440_v50, %s6968_s12 }
 0x2c2   : > { %2654 = vst.msk [vmem:[#allocation3 + $0x270] sm:$0xff] %vm333_vm0, %v2622_v20  ;;  %v3755_v52 = vpop.permute.xlu1 %3754  ;;  %v6640_v4 = vpop.f32.mrf.mxu0 }
 0x2c3   : > { %3847 = vst.msk [vmem:[#allocation3 + $0x50] sm:$0xff] %vm1065_vm5, %v3755_v52  ;;  %v3113_v31 = vpop.permute.xlu0 %3112  ;;  %v6641_v60 = vadd.f32 %v6640_v4, %v6639_v32 }
 0x2c4   : > { %v8706_v21 = vld [vmem:[#allocation2 + $0x13a] sm:$0xff]  ;;  %v8708_v33 = vld [vmem:[#allocation2 + $0x142] sm:$0xff]  ;;  %3206 = vst.msk [vmem:[#allocation3 + $0x30] sm:$0xff] %vm1065_vm5, %v3113_v31  ;;  %3394 = vrot.lane.b32.xlu1 %v8442_v9, %s6968_s12  ;;  %v6642_v62 = vpop.f32.mrf.mxu0 }
 0x2c5   : > { %3930 = vst.msk [vmem:[#allocation3 + $0x220] sm:$0xff] %vm333_vm0, %v8706_v21  ;;  %3931 = vst.msk [vmem:[#allocation3 + $0x238] sm:$0xff] %vm333_vm0, %v8708_v33  ;;  %v8717_v36 = vld [vmem:[#allocation2 + $0x141] sm:$0xff]  ;;  %2752 = vrot.lane.b32.xlu0 %v8610_v16, %s6968_s12  ;;  %v2285_v24 = vadd.f32 %v8488_v39, %v6641_v60  ;;  %v8730_v16 = vld [vmem:[#allocation2 + $0xd8] sm:$0xff] }
 0x2c6   : > { %v2623_v43 = vld [vmem:[#allocation2 + $0x140] sm:$0xff]  ;;  %3293 = vst.msk [vmem:[#allocation3 + $0x260] sm:$0xff] %vm333_vm0, %v8717_v36  ;;  %v3115_v13 = vpop.permute.xlu1 %3114  ;;  %v6643_v41 = vpop.f32.mrf.mxu0 }
 0x2c7   : > { %2655 = vst.msk [vmem:[#allocation3 + $0x288] sm:$0xff] %vm333_vm0, %v2623_v43  ;;  %v3373_v42 = vpop.permute.xlu0 %3372  ;;  %v6644_v61 = vadd.f32 %v6643_v41, %v6642_v62  ;;  %v2446_v17 = vadd.f32 %v8630_v6, %v2285_v24  ;;  %v3947_v14 = vld [vmem:[#allocation3 + $0x38] sm:$0xff] }
 0x2c8   : > { %3207 = vst.msk [vmem:[#allocation3 + $0x48] sm:$0xff] %vm1065_vm5, %v3115_v13  ;;  %2754 = vrot.lane.b32.xlu1 %v8616_v38, %s6968_s12 }
 0x2c9   : > { %3464 = vst.msk [vmem:[#allocation3 + $0x68] sm:$0xff] %vm679_vm3, %v3373_v42  ;;  %3584 = vrot.lane.b32.xlu0 %v8730_v16, %s6969_s13  ;;  %vm2494_vm8 = vcmp.gt.f32.partialorder %v2446_v17, 0.0  ;;  %v2526_v3 = vmul.f32 0.01, %v2446_v17  ;;  %v2288_v7 = vadd.f32 %v8488_v39, %v6644_v61 }
 0x2ca   : > { %v3375_v30 = vpop.permute.xlu1 %3374  ;;  %v3950_v48 = vld [vmem:[#allocation3 + $0x50] sm:$0xff] }
 0x2cb   : > { %3465 = vst.msk [vmem:[#allocation3 + $0x80] sm:$0xff] %vm679_vm3, %v3375_v30  ;;  %v3565_v6 = vpop.permute.xlu0 %3564  ;;  %v4040_v44 = vpack.c.bf16 %v3950_v48, %v3947_v14  ;;  %v2558_v2 = vsel %vm2494_vm8, %v2446_v17, %v2526_v3  ;;  %v2449_v38 = vadd.f32 %v8656_v19, %v2288_v7  ;;  %v3946_v34 = vld [vmem:[#allocation3 + $0x30] sm:$0xff] }
 0x2cc   : > { %v4008_v53 = vld [vmem:[#allocation3 + $0x220] sm:$0xff]  ;;  %v4011_v1 = vld [vmem:[#allocation3 + $0x238] sm:$0xff]  ;;  %3656 = vst.msk [vmem:[#allocation3 + $0x68] sm:$0xff] %vm872_vm4, %v3565_v6  ;;  %3586 = vrot.lane.b32.xlu1 %v8736_v11, %s6969_s13 }
 0x2cd   : > { %2590 = vst.msk [vmem:[#allocation2 + $0x151] sm:$0xff] %vm333_vm0, %v2558_v2  ;;  %v4071_v63 = vpack.c.bf16 %v4011_v1, %v4008_v53  ;;  %2944 = vrot.lane.b32.xlu0 %v8398_v27, %s6969_s13  ;;  %4323 = vmatprep.mubr.bf16.mxu1 %v4040_v44  ;;  %vm2495_vm9 = vcmp.gt.f32.partialorder %v2449_v38, 0.0  ;;  %v2527_v18 = vmul.f32 0.01, %v2449_v38  ;;  %v8751_v27 = vpop.f32.mrf.mxu1 }
 0x2ce   : > { %v3567_v25 = vpop.permute.xlu1 %3566 }
 0x2cf   : > { %v3949_v47 = vld [vmem:[#allocation3 + $0x48] sm:$0xff]  ;;  %6884 = vmatmul.mubr.msk.bf16.gmra.mxu0 %vm333_vm0, %v4071_v63  ;;  %3657 = vst.msk [vmem:[#allocation3 + $0x80] sm:$0xff] %vm872_vm4, %v3567_v25  ;;  %v2925_v19 = vpop.permute.xlu0 %2924  ;;  %v2559_v23 = vsel %vm2495_vm9, %v2449_v38, %v2527_v18  ;;  %v2453_v31 = vpop.f32.mrf.mxu1 }
 0x2d0   : > { %v4039_v12 = vpack.c.bf16 %v3949_v47, %v3946_v34  ;;  %3016 = vst.msk [vmem:[#allocation3 + $0x60] sm:$0xff] %vm872_vm4, %v2925_v19  ;;  %2946 = vrot.lane.b32.xlu1 %v8400_v37, %s6969_s13 }
 0x2d1   : > { %2591 = vst.msk [vmem:[#allocation2 + $0x159] sm:$0xff] %vm333_vm0, %v2559_v23  ;;  %3776 = vrot.lane.b32.xlu0 %v8476_v29, %s6970_s14  ;;  %v8779_v17 = vpop.f32.mrf.mxu1 }
 0x2d2   : > { %4324 = vmatmul.mubr.bf16.gmra.mxu1 %v4039_v12  ;;  %v2927_v20 = vpop.permute.xlu1 %2926 }
 0x2d3   : > { %3017 = vst.msk [vmem:[#allocation3 + $0x78] sm:$0xff] %vm872_vm4, %v2927_v20  ;;  %v3757_v32 = vpop.permute.xlu0 %3756  ;;  %v2456_v6 = vpop.f32.mrf.mxu1 }
 0x2d4   : > { %v8756_v52 = vld [vmem:[#allocation2 + $0x150] sm:$0xff]  ;;  %3848 = vst.msk [vmem:[#allocation3 + $0x68] sm:$0xff] %vm1065_vm5, %v3757_v32  ;;  %3778 = vrot.lane.b32.xlu1 %v8503_v28, %s6970_s14 }
 0x2d5   : > { %v8758_v4 = vld [vmem:[#allocation2 + $0x151] sm:$0xff]  ;;  %v6645_v37 = vpop.f32.mrf.mxu0  ;;  %2656 = vst.msk [vmem:[#allocation3 + $0x2a0] sm:$0xff] %vm333_vm0, %v8756_v52  ;;  %3136 = vrot.lane.b32.xlu0 %v8650_v58, %s6970_s14 }
 0x2d6   : > { %3294 = vst.msk [vmem:[#allocation3 + $0x278] sm:$0xff] %vm333_vm0, %v8758_v4  ;;  %v3759_v60 = vpop.permute.xlu1 %3758 }
 0x2d7   : > { %v6646_v62 = vpop.f32.mrf.mxu0  ;;  %3849 = vst.msk [vmem:[#allocation3 + $0x80] sm:$0xff] %vm1065_vm5, %v3759_v60  ;;  %v3117_v43 = vpop.permute.xlu0 %3116 }
 0x2d8   : > { %v6647_v24 = vadd.f32 %v6646_v62, %v6645_v37  ;;  %v8770_v13 = vld [vmem:[#allocation2 + $0x152] sm:$0xff]  ;;  %v8772_v41 = vld [vmem:[#allocation2 + $0x15a] sm:$0xff]  ;;  %3208 = vst.msk [vmem:[#allocation3 + $0x60] sm:$0xff] %vm1065_vm5, %v3117_v43  ;;  %3138 = vrot.lane.b32.xlu1 %v8671_v15, %s6970_s14 }
 0x2d9   : > { %v8774_v42 = vld [vmem:[#allocation2 + $0x158] sm:$0xff]  ;;  %v6648_v61 = vpop.f32.mrf.mxu0  ;;  %3932 = vst.msk [vmem:[#allocation3 + $0x250] sm:$0xff] %vm333_vm0, %v8770_v13  ;;  %3933 = vst.msk [vmem:[#allocation3 + $0x268] sm:$0xff] %vm333_vm0, %v8772_v41  ;;  %3396 = vrot.lane.b32.xlu0 %v8493_v35, %s6968_s12 }
 0x2da   : > { %v8785_v58 = vld [vmem:[#allocation2 + $0x159] sm:$0xff]  ;;  %2657 = vst.msk [vmem:[#allocation3 + $0x2b8] sm:$0xff] %vm333_vm0, %v8774_v42  ;;  %v2293_v3 = vadd.f32 %v8488_v39, %v6647_v24  ;;  %v3119_v15 = vpop.permute.xlu1 %3118 }
 0x2db   : > { %3295 = vst.msk [vmem:[#allocation3 + $0x290] sm:$0xff] %vm333_vm0, %v8785_v58  ;;  %v6649_v7 = vpop.f32.mrf.mxu0  ;;  %v3377_v30 = vpop.permute.xlu0 %3376  ;;  %v3953_v53 = vld [vmem:[#allocation3 + $0x68] sm:$0xff] }
 0x2dc   : > { %3209 = vst.msk [vmem:[#allocation3 + $0x78] sm:$0xff] %vm1065_vm5, %v3119_v15  ;;  %v6650_v14 = vadd.f32 %v6649_v7, %v6648_v61  ;;  %v2454_v48 = vadd.f32 %v2453_v31, %v2293_v3  ;;  %3398 = vrot.lane.b32.xlu1 %v8495_v45, %s6968_s12 }
 0x2dd   : > { %3466 = vst.msk [vmem:[#allocation3 + $0x98] sm:$0xff] %vm679_vm3, %v3377_v30  ;;  %2756 = vrot.lane.b32.xlu0 %v8427_v56, %s6968_s12  ;;  %v8805_v56 = vld [vmem:[#allocation2 + $0xf0] sm:$0xff] }
 0x2de   : > { %vm2496_vm10 = vcmp.gt.f32.partialorder %v2454_v48, 0.0  ;;  %v2528_v44 = vmul.f32 0.01, %v2454_v48  ;;  %v2296_v2 = vadd.f32 %v8488_v39, %v6650_v14  ;;  %v3379_v38 = vpop.permute.xlu1 %3378  ;;  %v3956_v1 = vld [vmem:[#allocation3 + $0x80] sm:$0xff] }
 0x2df   : > { %3467 = vst.msk [vmem:[#allocation3 + $0xb0] sm:$0xff] %vm679_vm3, %v3379_v38  ;;  %v3569_v63 = vpop.permute.xlu0 %3568  ;;  %v4043_v18 = vpack.c.bf16 %v3956_v1, %v3953_v53  ;;  %v3952_v32 = vld [vmem:[#allocation3 + $0x60] sm:$0xff] }
 0x2e0   : > { %v2560_v25 = vsel %vm2496_vm10, %v2454_v48, %v2528_v44  ;;  %v2457_v34 = vadd.f32 %v2456_v6, %v2296_v2  ;;  %v4014_v47 = vld [vmem:[#allocation3 + $0x250] sm:$0xff]  ;;  %v4017_v19 = vld [vmem:[#allocation3 + $0x268] sm:$0xff]  ;;  %3658 = vst.msk [vmem:[#allocation3 + $0x98] sm:$0xff] %vm872_vm4, %v3569_v63  ;;  %2758 = vrot.lane.b32.xlu1 %v8452_v55, %s6968_s12 }
 0x2e1   : > { %2592 = vst.msk [vmem:[#allocation2 + $0x169] sm:$0xff] %vm333_vm0, %v2560_v25  ;;  %v4074_v12 = vpack.c.bf16 %v4017_v19, %v4014_v47  ;;  %3588 = vrot.lane.b32.xlu0 %v8805_v56, %s6969_s13  ;;  %4331 = vmatprep.mubr.bf16.mxu1 %v4043_v18  ;;  %v8812_v55 = vld [vmem:[#allocation2 + $0xf8] sm:$0xff] }
 0x2e2   : > { %vm2497_vm11 = vcmp.gt.f32.partialorder %v2457_v34, 0.0  ;;  %v2529_v23 = vmul.f32 0.01, %v2457_v34  ;;  %v3571_v20 = vpop.permute.xlu1 %3570 }
 0x2e3   : > { %v3955_v37 = vld [vmem:[#allocation3 + $0x78] sm:$0xff]  ;;  %6887 = vmatprep.mubr.msk.bf16.mxu0 %vm333_vm0, %v4074_v12  ;;  %3659 = vst.msk [vmem:[#allocation3 + $0xb0] sm:$0xff] %vm872_vm4, %v3571_v20  ;;  %v2929_v31 = vpop.permute.xlu0 %2928 }
 0x2e4   : > { %v4042_v60 = vpack.c.bf16 %v3955_v37, %v3952_v32  ;;  %v2561_v62 = vsel %vm2497_vm11, %v2457_v34, %v2529_v23  ;;  %3018 = vst.msk [vmem:[#allocation3 + $0x90] sm:$0xff] %vm872_vm4, %v2929_v31  ;;  %3590 = vrot.lane.b32.xlu1 %v8812_v55, %s6969_s13 }
 0x2e5   : > { %2593 = vst.msk [vmem:[#allocation2 + $0x171] sm:$0xff] %vm333_vm0, %v2561_v62  ;;  %2948 = vrot.lane.b32.xlu0 %v8440_v50, %s6969_s13  ;;  %v8873_v62 = vld [vmem:[#allocation2 + $0x108] sm:$0xff] }
 0x2e6   : > { %4332 = vmatmul.mubr.bf16.gmra.mxu1 %v4042_v60  ;;  %v2931_v43 = vpop.permute.xlu1 %2930 }
 0x2e7   : > { %3019 = vst.msk [vmem:[#allocation3 + $0xa8] sm:$0xff] %vm872_vm4, %v2931_v43  ;;  %v3761_v24 = vpop.permute.xlu0 %3760 }
 0x2e8   : > { %v8821_v61 = vld [vmem:[#allocation2 + $0x168] sm:$0xff]  ;;  %3850 = vst.msk [vmem:[#allocation3 + $0x98] sm:$0xff] %vm1065_vm5, %v3761_v24  ;;  %2950 = vrot.lane.b32.xlu1 %v8442_v9, %s6969_s13 }
 0x2e9   : > { %v8823_v3 = vld [vmem:[#allocation2 + $0x169] sm:$0xff]  ;;  %2658 = vst.msk [vmem:[#allocation3 + $0x2d0] sm:$0xff] %vm333_vm0, %v8821_v61  ;;  %3780 = vrot.lane.b32.xlu0 %v8530_v0, %s6970_s14 }
 0x2ea   : > { %v6651_v15 = vpop.f32.mrf.mxu0  ;;  %3296 = vst.msk [vmem:[#allocation3 + $0x2a8] sm:$0xff] %vm333_vm0, %v8823_v3  ;;  %v3763_v7 = vpop.permute.xlu1 %3762 }
 0x2eb   : > { %3851 = vst.msk [vmem:[#allocation3 + $0xb0] sm:$0xff] %vm1065_vm5, %v3763_v7  ;;  %v3121_v14 = vpop.permute.xlu0 %3120 }
 0x2ec   : > { %v6652_v50 = vpop.f32.mrf.mxu0  ;;  %v8835_v48 = vld [vmem:[#allocation2 + $0x16a] sm:$0xff]  ;;  %v8837_v6 = vld [vmem:[#allocation2 + $0x172] sm:$0xff]  ;;  %3210 = vst.msk [vmem:[#allocation3 + $0x90] sm:$0xff] %vm1065_vm5, %v3121_v14  ;;  %3782 = vrot.lane.b32.xlu1 %v8553_v22, %s6970_s14 }
 0x2ed   : > { %v6653_v30 = vadd.f32 %v6652_v50, %v6651_v15  ;;  %v8839_v9 = vld [vmem:[#allocation2 + $0x170] sm:$0xff]  ;;  %3934 = vst.msk [vmem:[#allocation3 + $0x280] sm:$0xff] %vm333_vm0, %v8835_v48  ;;  %3935 = vst.msk [vmem:[#allocation3 + $0x298] sm:$0xff] %vm333_vm0, %v8837_v6  ;;  %3140 = vrot.lane.b32.xlu0 %v8730_v16, %s6970_s14 }
 0x2ee   : > { %v6654_v44 = vpop.f32.mrf.mxu0  ;;  %v8848_v2 = vld [vmem:[#allocation2 + $0x171] sm:$0xff]  ;;  %2659 = vst.msk [vmem:[#allocation3 + $0x2e8] sm:$0xff] %vm333_vm0, %v8839_v9  ;;  %v3123_v1 = vpop.permute.xlu1 %3122 }
 0x2ef   : > { %v2301_v38 = vadd.f32 %v8488_v39, %v6653_v30  ;;  %3297 = vst.msk [vmem:[#allocation3 + $0x2c0] sm:$0xff] %vm333_vm0, %v8848_v2  ;;  %v3381_v18 = vpop.permute.xlu0 %3380  ;;  %v3959_v19 = vld [vmem:[#allocation3 + $0x98] sm:$0xff] }
 0x2f0   : > { %v6655_v53 = vpop.f32.mrf.mxu0  ;;  %3211 = vst.msk [vmem:[#allocation3 + $0xa8] sm:$0xff] %vm1065_vm5, %v3123_v1  ;;  %3142 = vrot.lane.b32.xlu1 %v8736_v11, %s6970_s14 }
 0x2f1   : > { %v6656_v63 = vadd.f32 %v6655_v53, %v6654_v44  ;;  %v2462_v25 = vadd.f32 %v8751_v27, %v2301_v38  ;;  %3468 = vst.msk [vmem:[#allocation3 + $0xc8] sm:$0xff] %vm679_vm3, %v3381_v18  ;;  %3400 = vrot.lane.b32.xlu0 %v8543_v10, %s6968_s12 }
 0x2f2   : > { %v3383_v47 = vpop.permute.xlu1 %3382  ;;  %v3962_v12 = vld [vmem:[#allocation3 + $0xb0] sm:$0xff] }
 0x2f3   : > { %vm2498_vm12 = vcmp.gt.f32.partialorder %v2462_v25, 0.0  ;;  %v2530_v16 = vmul.f32 0.01, %v2462_v25  ;;  %v2304_v34 = vadd.f32 %v8488_v39, %v6656_v63  ;;  %3469 = vst.msk [vmem:[#allocation3 + $0xe0] sm:$0xff] %vm679_vm3, %v3383_v47  ;;  %v3573_v23 = vpop.permute.xlu0 %3572  ;;  %v4046_v20 = vpack.c.bf16 %v3962_v12, %v3959_v19 }
 0x2f4   : > { %v4020_v37 = vld [vmem:[#allocation3 + $0x280] sm:$0xff]  ;;  %v4023_v31 = vld [vmem:[#allocation3 + $0x298] sm:$0xff]  ;;  %3660 = vst.msk [vmem:[#allocation3 + $0xc8] sm:$0xff] %vm872_vm4, %v3573_v23  ;;  %3402 = vrot.lane.b32.xlu1 %v8545_v59, %s6968_s12 }
 0x2f5   : > { %v2562_v27 = vsel %vm2498_vm12, %v2462_v25, %v2530_v16  ;;  %v2465_v32 = vadd.f32 %v8779_v17, %v2304_v34  ;;  %v4077_v39 = vpack.c.bf16 %v4023_v31, %v4020_v37  ;;  %2760 = vrot.lane.b32.xlu0 %v8476_v29, %s6968_s12  ;;  %4339 = vmatprep.mubr.bf16.mxu1 %v4046_v20  ;;  %v3958_v17 = vld [vmem:[#allocation3 + $0x90] sm:$0xff]  ;;  %v8883_v29 = vld [vmem:[#allocation2 + $0x110] sm:$0xff] }
 0x2f6   : > { %2594 = vst.msk [vmem:[#allocation2 + $0x181] sm:$0xff] %vm333_vm0, %v2562_v27  ;;  %v3575_v60 = vpop.permute.xlu1 %3574  ;;  %v8936_v31 = vld [vmem:[#allocation2 + $0x120] sm:$0xff] }
 0x2f7   : > { %vm2499_vm13 = vcmp.gt.f32.partialorder %v2465_v32, 0.0  ;;  %v2531_v11 = vmul.f32 0.01, %v2465_v32  ;;  %v3961_v43 = vld [vmem:[#allocation3 + $0xa8] sm:$0xff]  ;;  %6888 = vmatmul.mubr.msk.bf16.gmra.mxu0 %vm333_vm0, %v4077_v39  ;;  %3661 = vst.msk [vmem:[#allocation3 + $0xe0] sm:$0xff] %vm872_vm4, %v3575_v60  ;;  %v2933_v24 = vpop.permute.xlu0 %2932 }
 0x2f8   : > { %v4045_v15 = vpack.c.bf16 %v3961_v43, %v3958_v17  ;;  %3020 = vst.msk [vmem:[#allocation3 + $0xc0] sm:$0xff] %vm872_vm4, %v2933_v24  ;;  %2762 = vrot.lane.b32.xlu1 %v8503_v28, %s6968_s12 }
 0x2f9   : > { %v2563_v50 = vsel %vm2499_vm13, %v2465_v32, %v2531_v11  ;;  %3592 = vrot.lane.b32.xlu0 %v8873_v62, %s6969_s13 }
 0x2fa   : > { %2595 = vst.msk [vmem:[#allocation2 + $0x189] sm:$0xff] %vm333_vm0, %v2563_v50  ;;  %4340 = vmatmul.mubr.bf16.gmra.mxu1 %v4045_v15  ;;  %v2935_v7 = vpop.permute.xlu1 %2934 }
 0x2fb   : > { %3021 = vst.msk [vmem:[#allocation3 + $0xd8] sm:$0xff] %vm872_vm4, %v2935_v7  ;;  %v3765_v30 = vpop.permute.xlu0 %3764 }
 0x2fc   : > { %3852 = vst.msk [vmem:[#allocation3 + $0xc8] sm:$0xff] %vm1065_vm5, %v3765_v30  ;;  %3594 = vrot.lane.b32.xlu1 %v8883_v29, %s6969_s13 }
 0x2fd   : > { %v8886_v14 = vld [vmem:[#allocation2 + $0x181] sm:$0xff]  ;;  %2952 = vrot.lane.b32.xlu0 %v8493_v35, %s6969_s13 }
 0x2fe   : > { %3298 = vst.msk [vmem:[#allocation3 + $0x2d8] sm:$0xff] %vm333_vm0, %v8886_v14  ;;  %v3767_v28 = vpop.permute.xlu1 %3766 }
 0x2ff   : > { %3853 = vst.msk [vmem:[#allocation3 + $0xe0] sm:$0xff] %vm1065_vm5, %v3767_v28  ;;  %v3125_v44 = vpop.permute.xlu0 %3124 }
 0x300   : > { %3212 = vst.msk [vmem:[#allocation3 + $0xc0] sm:$0xff] %vm1065_vm5, %v3125_v44  ;;  %2954 = vrot.lane.b32.xlu1 %v8495_v45, %s6969_s13 }
 0x301   : > { %v8896_v38 = vld [vmem:[#allocation2 + $0x182] sm:$0xff]  ;;  %v8898_v53 = vld [vmem:[#allocation2 + $0x18a] sm:$0xff]  ;;  %3784 = vrot.lane.b32.xlu0 %v8573_v51, %s6970_s14 }
 0x302   : > { %3936 = vst.msk [vmem:[#allocation3 + $0x2b0] sm:$0xff] %vm333_vm0, %v8896_v38  ;;  %3937 = vst.msk [vmem:[#allocation3 + $0x2c8] sm:$0xff] %vm333_vm0, %v8898_v53  ;;  %v8907_v35 = vld [vmem:[#allocation2 + $0x189] sm:$0xff]  ;;  %v3127_v1 = vpop.permute.xlu1 %3126 }
 0x303   : > { %3299 = vst.msk [vmem:[#allocation3 + $0x2f0] sm:$0xff] %vm333_vm0, %v8907_v35  ;;  %v3385_v63 = vpop.permute.xlu0 %3384  ;;  %v3965_v18 = vld [vmem:[#allocation3 + $0xc8] sm:$0xff] }
 0x304   : > { %3213 = vst.msk [vmem:[#allocation3 + $0xd8] sm:$0xff] %vm1065_vm5, %v3127_v1  ;;  %3786 = vrot.lane.b32.xlu1 %v8587_v26, %s6970_s14  ;;  %v8972_v1 = vld [vmem:[#allocation2 + $0x138] sm:$0xff] }
 0x305   : > { %3470 = vst.msk [vmem:[#allocation3 + $0xf8] sm:$0xff] %vm679_vm3, %v3385_v63  ;;  %3144 = vrot.lane.b32.xlu0 %v8805_v56, %s6970_s14 }
 0x306   : > { %v3387_v45 = vpop.permute.xlu1 %3386  ;;  %v3968_v25 = vld [vmem:[#allocation3 + $0xe0] sm:$0xff] }
 0x307   : > { %3471 = vst.msk [vmem:[#allocation3 + $0x110] sm:$0xff] %vm679_vm3, %v3387_v45  ;;  %v2745_v16 = vpop.permute.xlu0 %2744  ;;  %v4049_v34 = vpack.c.bf16 %v3968_v25, %v3965_v18  ;;  %v3964_v23 = vld [vmem:[#allocation3 + $0xc0] sm:$0xff] }
 0x308   : > { %2830 = vst.msk [vmem:[#allocation3 + $0xf0] sm:$0xff] %vm679_vm3, %v2745_v16  ;;  %3146 = vrot.lane.b32.xlu1 %v8812_v55, %s6970_s14 }
 0x309   : > { %v4026_v47 = vld [vmem:[#allocation3 + $0x2b0] sm:$0xff]  ;;  %v4029_v19 = vld [vmem:[#allocation3 + $0x2c8] sm:$0xff]  ;;  %3404 = vrot.lane.b32.xlu0 %v8589_v54, %s6968_s12  ;;  %4347 = vmatprep.mubr.bf16.mxu1 %v4049_v34 }
 0x30a   : > { %v4080_v12 = vpack.c.bf16 %v4029_v19, %v4026_v47  ;;  %v2747_v56 = vpop.permute.xlu1 %2746 }
 0x30b   : > { %v3967_v20 = vld [vmem:[#allocation3 + $0xd8] sm:$0xff]  ;;  %2831 = vst.msk [vmem:[#allocation3 + $0x108] sm:$0xff] %vm679_vm3, %v2747_v56  ;;  %v3577_v27 = vpop.permute.xlu0 %3576 }
 0x30c   : > { %6891 = vmatprep.mubr.msk.bf16.mxu0 %vm333_vm0, %v4080_v12  ;;  %v4048_v32 = vpack.c.bf16 %v3967_v20, %v3964_v23  ;;  %3662 = vst.msk [vmem:[#allocation3 + $0xf8] sm:$0xff] %vm872_vm4, %v3577_v27  ;;  %3406 = vrot.lane.b32.xlu1 %v8593_v40, %s6968_s12 }
 0x30d   : > { %2764 = vrot.lane.b32.xlu0 %v8530_v0, %s6968_s12  ;;  %v8941_v0 = vld [vmem:[#allocation2 + $0x128] sm:$0xff] }
 0x30e   : > { %4348 = vmatmul.mubr.bf16.gmra.mxu1 %v4048_v32  ;;  %v3579_v55 = vpop.permute.xlu1 %3578 }
 0x30f   : > { %3663 = vst.msk [vmem:[#allocation3 + $0x110] sm:$0xff] %vm872_vm4, %v3579_v55  ;;  %v2937_v37 = vpop.permute.xlu0 %2936 }
 0x310   : > { %3022 = vst.msk [vmem:[#allocation3 + $0xf0] sm:$0xff] %vm872_vm4, %v2937_v37  ;;  %2766 = vrot.lane.b32.xlu1 %v8553_v22, %s6968_s12 }
 0x311   : > { %3596 = vrot.lane.b32.xlu0 %v8936_v31, %s6969_s13 }
 0x312   : > { %v2939_v39 = vpop.permute.xlu1 %2938 }
 0x313   : > { %3023 = vst.msk [vmem:[#allocation3 + $0x108] sm:$0xff] %vm872_vm4, %v2939_v39  ;;  %v3769_v11 = vpop.permute.xlu0 %3768 }
 0x314   : > { %3854 = vst.msk [vmem:[#allocation3 + $0xf8] sm:$0xff] %vm1065_vm5, %v3769_v11  ;;  %3598 = vrot.lane.b32.xlu1 %v8941_v0, %s6969_s13 }
 0x315   : > { %2956 = vrot.lane.b32.xlu0 %v8543_v10, %s6969_s13 }
 0x316   : > { %v3771_v22 = vpop.permute.xlu1 %3770 }
 0x317   : > { %3855 = vst.msk [vmem:[#allocation3 + $0x110] sm:$0xff] %vm1065_vm5, %v3771_v22  ;;  %v3129_v60 = vpop.permute.xlu0 %3128 }
 0x318   : > { %3214 = vst.msk [vmem:[#allocation3 + $0xf0] sm:$0xff] %vm1065_vm5, %v3129_v60  ;;  %2958 = vrot.lane.b32.xlu1 %v8545_v59, %s6969_s13 }
 0x319   : > { %3788 = vrot.lane.b32.xlu0 %v8636_v46, %s6970_s14 }
 0x31a   : > { %v3131_v17 = vpop.permute.xlu1 %3130 }
 0x31b   : > { %3215 = vst.msk [vmem:[#allocation3 + $0x108] sm:$0xff] %vm1065_vm5, %v3131_v17  ;;  %v3389_v43 = vpop.permute.xlu0 %3388  ;;  %v3971_v24 = vld [vmem:[#allocation3 + $0xf8] sm:$0xff] }
 0x31c   : > { %3472 = vst.msk [vmem:[#allocation3 + $0x128] sm:$0xff] %vm679_vm3, %v3389_v43  ;;  %3790 = vrot.lane.b32.xlu1 %v8665_v5, %s6970_s14 }
 0x31d   : > { %3148 = vrot.lane.b32.xlu0 %v8873_v62, %s6970_s14 }
 0x31e   : > { %v3391_v10 = vpop.permute.xlu1 %3390  ;;  %v3974_v15 = vld [vmem:[#allocation3 + $0x110] sm:$0xff] }
 0x31f   : > { %3473 = vst.msk [vmem:[#allocation3 + $0x140] sm:$0xff] %vm679_vm3, %v3391_v10  ;;  %v2749_v59 = vpop.permute.xlu0 %2748  ;;  %v4052_v50 = vpack.c.bf16 %v3974_v15, %v3971_v24  ;;  %v3970_v30 = vld [vmem:[#allocation3 + $0xf0] sm:$0xff] }
 0x320   : > { %2832 = vst.msk [vmem:[#allocation3 + $0x120] sm:$0xff] %vm679_vm3, %v2749_v59  ;;  %3150 = vrot.lane.b32.xlu1 %v8883_v29, %s6970_s14 }
 0x321   : > { %3408 = vrot.lane.b32.xlu0 %v8652_v8, %s6968_s12  ;;  %4355 = vmatprep.mubr.bf16.mxu1 %v4052_v50 }
 0x322   : > { %v2751_v7 = vpop.permute.xlu1 %2750  ;;  %v3973_v28 = vld [vmem:[#allocation3 + $0x108] sm:$0xff] }
 0x323   : > { %2833 = vst.msk [vmem:[#allocation3 + $0x138] sm:$0xff] %vm679_vm3, %v2751_v7  ;;  %v3581_v62 = vpop.permute.xlu0 %3580  ;;  %v4051_v44 = vpack.c.bf16 %v3973_v28, %v3970_v30 }
 0x324   : > { %3664 = vst.msk [vmem:[#allocation3 + $0x128] sm:$0xff] %vm872_vm4, %v3581_v62  ;;  %3410 = vrot.lane.b32.xlu1 %v8654_v57, %s6968_s12 }
 0x325   : > { %2768 = vrot.lane.b32.xlu0 %v8573_v51, %s6968_s12  ;;  %4356 = vmatmul.mubr.bf16.gmra.mxu1 %v4051_v44  ;;  %v8981_v51 = vld [vmem:[#allocation2 + $0x140] sm:$0xff] }
 0x326   : > { %v3583_v29 = vpop.permute.xlu1 %3582 }
 0x327   : > { %3665 = vst.msk [vmem:[#allocation3 + $0x140] sm:$0xff] %vm872_vm4, %v3583_v29  ;;  %v2941_v63 = vpop.permute.xlu0 %2940 }
 0x328   : > { %3024 = vst.msk [vmem:[#allocation3 + $0x120] sm:$0xff] %vm872_vm4, %v2941_v63  ;;  %2770 = vrot.lane.b32.xlu1 %v8587_v26, %s6968_s12 }
 0x329   : > { %3600 = vrot.lane.b32.xlu0 %v8972_v1, %s6969_s13 }
 0x32a   : > { %v2943_v45 = vpop.permute.xlu1 %2942 }
 0x32b   : > { %3025 = vst.msk [vmem:[#allocation3 + $0x138] sm:$0xff] %vm872_vm4, %v2943_v45  ;;  %v3773_v18 = vpop.permute.xlu0 %3772 }
 0x32c   : > { %3856 = vst.msk [vmem:[#allocation3 + $0x128] sm:$0xff] %vm1065_vm5, %v3773_v18  ;;  %3602 = vrot.lane.b32.xlu1 %v8981_v51, %s6969_s13 }
 0x32d   : > { %2960 = vrot.lane.b32.xlu0 %v8589_v54, %s6969_s13 }
 0x32e   : > { %v3775_v25 = vpop.permute.xlu1 %3774 }
 0x32f   : > { %3857 = vst.msk [vmem:[#allocation3 + $0x140] sm:$0xff] %vm1065_vm5, %v3775_v25  ;;  %v3133_v26 = vpop.permute.xlu0 %3132 }
 0x330   : > { %3216 = vst.msk [vmem:[#allocation3 + $0x120] sm:$0xff] %vm1065_vm5, %v3133_v26  ;;  %2962 = vrot.lane.b32.xlu1 %v8593_v40, %s6969_s13 }
 0x331   : > { %3792 = vrot.lane.b32.xlu0 %v8695_v49, %s6970_s14 }
 0x332   : > { %v3135_v16 = vpop.permute.xlu1 %3134 }
 0x333   : > { %3217 = vst.msk [vmem:[#allocation3 + $0x138] sm:$0xff] %vm1065_vm5, %v3135_v16  ;;  %v3393_v34 = vpop.permute.xlu0 %3392  ;;  %v3977_v47 = vld [vmem:[#allocation3 + $0x128] sm:$0xff]  ;;  %v9088_v16 = vld [vmem:[#allocation2 + $0x180] sm:$0xff] }
 0x334   : > { %3474 = vst.msk [vmem:[#allocation3 + $0x158] sm:$0xff] %vm679_vm3, %v3393_v34  ;;  %3794 = vrot.lane.b32.xlu1 %v8717_v36, %s6970_s14 }
 0x335   : > { %3152 = vrot.lane.b32.xlu0 %v8936_v31, %s6970_s14 }
 0x336   : > { %v3395_v54 = vpop.permute.xlu1 %3394  ;;  %v3980_v19 = vld [vmem:[#allocation3 + $0x140] sm:$0xff] }
 0x337   : > { %3475 = vst.msk [vmem:[#allocation3 + $0x170] sm:$0xff] %vm679_vm3, %v3395_v54  ;;  %v2753_v40 = vpop.permute.xlu0 %2752  ;;  %v4055_v12 = vpack.c.bf16 %v3980_v19, %v3977_v47  ;;  %v3976_v23 = vld [vmem:[#allocation3 + $0x120] sm:$0xff]  ;;  %v9106_v19 = vpop.f32.mrf.mxu0 }
 0x338   : > { %2834 = vst.msk [vmem:[#allocation3 + $0x150] sm:$0xff] %vm679_vm3, %v2753_v40  ;;  %3154 = vrot.lane.b32.xlu1 %v8941_v0, %s6970_s14 }
 0x339   : > { %3412 = vrot.lane.b32.xlu0 %v8706_v21, %s6968_s12  ;;  %4363 = vmatprep.mubr.bf16.mxu1 %v4055_v12 }
 0x33a   : > { %v2755_v56 = vpop.permute.xlu1 %2754  ;;  %v3979_v20 = vld [vmem:[#allocation3 + $0x138] sm:$0xff] }
 0x33b   : > { %2835 = vst.msk [vmem:[#allocation3 + $0x168] sm:$0xff] %vm679_vm3, %v2755_v56  ;;  %v3585_v27 = vpop.permute.xlu0 %3584  ;;  %v4054_v32 = vpack.c.bf16 %v3979_v20, %v3976_v23  ;;  %v4478_v56 = vpop.f32.mrf.mxu0 }
 0x33c   : > { %3666 = vst.msk [vmem:[#allocation3 + $0x158] sm:$0xff] %vm872_vm4, %v3585_v27  ;;  %3414 = vrot.lane.b32.xlu1 %v8708_v33, %s6968_s12  ;;  %v9118_v27 = vld [vmem:[%s10256_s5] ss:$0 sm:$0xff] }
 0x33d   : > { %2772 = vrot.lane.b32.xlu0 %v8636_v46, %s6968_s12  ;;  %4364 = vmatmul.mubr.bf16.gmra.mxu1 %v4054_v32 }
 0x33e   : > { %v3587_v55 = vpop.permute.xlu1 %3586 }
 0x33f   : > { %3667 = vst.msk [vmem:[#allocation3 + $0x170] sm:$0xff] %vm872_vm4, %v3587_v55  ;;  %v2945_v37 = vpop.permute.xlu0 %2944 }
 0x340   : > { %3026 = vst.msk [vmem:[#allocation3 + $0x150] sm:$0xff] %vm872_vm4, %v2945_v37  ;;  %2774 = vrot.lane.b32.xlu1 %v8665_v5, %s6968_s12  ;;  %v4035_v37 = vld [vmem:[#allocation3 + $0x2f8] sm:$0xff] }
 0x341   : > { %3604 = vrot.lane.b32.xlu0 %v8756_v52, %s6969_s13 }
 0x342   : > { %v2947_v31 = vpop.permute.xlu1 %2946 }
 0x343   : > { %3027 = vst.msk [vmem:[#allocation3 + $0x168] sm:$0xff] %vm872_vm4, %v2947_v31  ;;  %v3777_v39 = vpop.permute.xlu0 %3776 }
 0x344   : > { %3858 = vst.msk [vmem:[#allocation3 + $0x158] sm:$0xff] %vm1065_vm5, %v3777_v39  ;;  %3606 = vrot.lane.b32.xlu1 %v8774_v42, %s6969_s13 }
 0x345   : > { %2964 = vrot.lane.b32.xlu0 %v8652_v8, %s6969_s13 }
 0x346   : > { %v3779_v46 = vpop.permute.xlu1 %3778 }
 0x347   : > { %3859 = vst.msk [vmem:[#allocation3 + $0x170] sm:$0xff] %vm1065_vm5, %v3779_v46  ;;  %v3137_v11 = vpop.permute.xlu0 %3136  ;;  %v9125_v46 = vpop.f32.mrf.mxu0 }
 0x348   : > { %3218 = vst.msk [vmem:[#allocation3 + $0x150] sm:$0xff] %vm1065_vm5, %v3137_v11  ;;  %2966 = vrot.lane.b32.xlu1 %v8654_v57, %s6969_s13 }
 0x349   : > { %3796 = vrot.lane.b32.xlu0 %v8758_v4, %s6970_s14 }
 0x34a   : > { %v3139_v5 = vpop.permute.xlu1 %3138 }
 0x34b   : > { %3219 = vst.msk [vmem:[#allocation3 + $0x168] sm:$0xff] %vm1065_vm5, %v3139_v5  ;;  %v3397_v0 = vpop.permute.xlu0 %3396  ;;  %v3983_v22 = vld [vmem:[#allocation3 + $0x158] sm:$0xff] }
 0x34c   : > { %3476 = vst.msk [vmem:[#allocation3 + $0x188] sm:$0xff] %vm679_vm3, %v3397_v0  ;;  %3798 = vrot.lane.b32.xlu1 %v8785_v58, %s6970_s14 }
 0x34d   : > { %3156 = vrot.lane.b32.xlu0 %v8972_v1, %s6970_s14 }
 0x34e   : > { %v3399_v8 = vpop.permute.xlu1 %3398  ;;  %v3986_v60 = vld [vmem:[#allocation3 + $0x170] sm:$0xff] }
 0x34f   : > { %3477 = vst.msk [vmem:[#allocation3 + $0x1a0] sm:$0xff] %vm679_vm3, %v3399_v8  ;;  %v2757_v57 = vpop.permute.xlu0 %2756  ;;  %v4058_v17 = vpack.c.bf16 %v3986_v60, %v3983_v22  ;;  %v3982_v10 = vld [vmem:[#allocation3 + $0x150] sm:$0xff] }
 0x350   : > { %2836 = vst.msk [vmem:[#allocation3 + $0x180] sm:$0xff] %vm679_vm3, %v2757_v57  ;;  %3158 = vrot.lane.b32.xlu1 %v8981_v51, %s6970_s14 }
 0x351   : > { %3416 = vrot.lane.b32.xlu0 %v8770_v13, %s6968_s12  ;;  %4371 = vmatprep.mubr.bf16.mxu1 %v4058_v17 }
 0x352   : > { %v2759_v43 = vpop.permute.xlu1 %2758  ;;  %v3985_v24 = vld [vmem:[#allocation3 + $0x168] sm:$0xff] }
 0x353   : > { %2837 = vst.msk [vmem:[#allocation3 + $0x198] sm:$0xff] %vm679_vm3, %v2759_v43  ;;  %v3589_v15 = vpop.permute.xlu0 %3588  ;;  %v4057_v59 = vpack.c.bf16 %v3985_v24, %v3982_v10  ;;  %v3522_v24 = vld [vmem:[#allocation2 + $0x198] sm:$0xff] }
 0x354   : > { %3668 = vst.msk [vmem:[#allocation3 + $0x188] sm:$0xff] %vm872_vm4, %v3589_v15  ;;  %3418 = vrot.lane.b32.xlu1 %v8772_v41, %s6968_s12  ;;  %v4481_v15 = vpop.f32.mrf.mxu0 }
 0x355   : > { %2776 = vrot.lane.b32.xlu0 %v8695_v49, %s6968_s12  ;;  %4372 = vmatmul.mubr.bf16.gmra.mxu1 %v4057_v59 }
 0x356   : > { %v3591_v50 = vpop.permute.xlu1 %3590 }
 0x357   : > { %3669 = vst.msk [vmem:[#allocation3 + $0x1a0] sm:$0xff] %vm872_vm4, %v3591_v50  ;;  %v2949_v7 = vpop.permute.xlu0 %2948 }
 0x358   : > { %3028 = vst.msk [vmem:[#allocation3 + $0x180] sm:$0xff] %vm872_vm4, %v2949_v7  ;;  %2778 = vrot.lane.b32.xlu1 %v8717_v36, %s6968_s12 }
 0x359   : > { %3608 = vrot.lane.b32.xlu0 %v8821_v61, %s6969_s13 }
 0x35a   : > { %v2951_v30 = vpop.permute.xlu1 %2950 }
 0x35b   : > { %3029 = vst.msk [vmem:[#allocation3 + $0x198] sm:$0xff] %vm872_vm4, %v2951_v30  ;;  %v3781_v28 = vpop.permute.xlu0 %3780  ;;  %v6044_v30 = vld [vmem:[#allocation2 + $0x1a2] sm:$0xff] }
 0x35c   : > { %3860 = vst.msk [vmem:[#allocation3 + $0x188] sm:$0xff] %vm1065_vm5, %v3781_v28  ;;  %3610 = vrot.lane.b32.xlu1 %v8839_v9, %s6969_s13 }
 0x35d   : > { %2968 = vrot.lane.b32.xlu0 %v8706_v21, %s6969_s13  ;;  %6076 = vst.msk [vmem:[#allocation3 + $0x2f8] sm:$0xff] %vm333_vm0, %v6044_v30 }
 0x35e   : > { %v3783_v49 = vpop.permute.xlu1 %3782 }
 0x35f   : > { %3861 = vst.msk [vmem:[#allocation3 + $0x1a0] sm:$0xff] %vm1065_vm5, %v3783_v49  ;;  %v3141_v62 = vpop.permute.xlu0 %3140 }
 0x360   : > { %3220 = vst.msk [vmem:[#allocation3 + $0x180] sm:$0xff] %vm1065_vm5, %v3141_v62  ;;  %2970 = vrot.lane.b32.xlu1 %v8708_v33, %s6969_s13 }
 0x361   : > { %3800 = vrot.lane.b32.xlu0 %v8823_v3, %s6970_s14 }
 0x362   : > { %v3143_v36 = vpop.permute.xlu1 %3142 }
 0x363   : > { %3221 = vst.msk [vmem:[#allocation3 + $0x198] sm:$0xff] %vm1065_vm5, %v3143_v36  ;;  %v3401_v44 = vpop.permute.xlu0 %3400  ;;  %v3989_v29 = vld [vmem:[#allocation3 + $0x188] sm:$0xff] }
 0x364   : > { %3478 = vst.msk [vmem:[#allocation3 + $0x1b8] sm:$0xff] %vm679_vm3, %v3401_v44  ;;  %3802 = vrot.lane.b32.xlu1 %v8848_v2, %s6970_s14  ;;  %v3714_v44 = vld [vmem:[#allocation2 + $0x199] sm:$0xff] }
 0x365   : > { %3160 = vrot.lane.b32.xlu0 %v8756_v52, %s6970_s14 }
 0x366   : > { %v3403_v21 = vpop.permute.xlu1 %3402  ;;  %v3992_v1 = vld [vmem:[#allocation3 + $0x1a0] sm:$0xff] }
 0x367   : > { %3479 = vst.msk [vmem:[#allocation3 + $0x1d0] sm:$0xff] %vm679_vm3, %v3403_v21  ;;  %v2761_v33 = vpop.permute.xlu0 %2760  ;;  %v4061_v63 = vpack.c.bf16 %v3992_v1, %v3989_v29  ;;  %v3988_v18 = vld [vmem:[#allocation3 + $0x180] sm:$0xff] }
 0x368   : > { %2838 = vst.msk [vmem:[#allocation3 + $0x1b0] sm:$0xff] %vm679_vm3, %v2761_v33  ;;  %3162 = vrot.lane.b32.xlu1 %v8774_v42, %s6970_s14 }
 0x369   : > { %3420 = vrot.lane.b32.xlu0 %v8835_v48, %s6968_s12  ;;  %4379 = vmatprep.mubr.bf16.mxu1 %v4061_v63  ;;  %v3715_v63 = vld [vmem:[#allocation2 + $0x1a1] sm:$0xff] }
 0x36a   : > { %v2763_v45 = vpop.permute.xlu1 %2762  ;;  %v3991_v51 = vld [vmem:[#allocation3 + $0x198] sm:$0xff] }
 0x36b   : > { %2839 = vst.msk [vmem:[#allocation3 + $0x1c8] sm:$0xff] %vm679_vm3, %v2763_v45  ;;  %v3593_v52 = vpop.permute.xlu0 %3592  ;;  %v4060_v25 = vpack.c.bf16 %v3991_v51, %v3988_v18 }
 0x36c   : > { %3670 = vst.msk [vmem:[#allocation3 + $0x1b8] sm:$0xff] %vm872_vm4, %v3593_v52  ;;  %3422 = vrot.lane.b32.xlu1 %v8837_v6, %s6968_s12 }
 0x36d   : > { %2780 = vrot.lane.b32.xlu0 %v8758_v4, %s6968_s12  ;;  %4380 = vmatmul.mubr.bf16.gmra.mxu1 %v4060_v25  ;;  %v9093_v4 = vld [vmem:[#allocation2 + $0x188] sm:$0xff] }
 0x36e   : > { %v3595_v42 = vpop.permute.xlu1 %3594 }
 0x36f   : > { %3671 = vst.msk [vmem:[#allocation3 + $0x1d0] sm:$0xff] %vm872_vm4, %v3595_v42  ;;  %v2953_v26 = vpop.permute.xlu0 %2952 }
 0x370   : > { %3030 = vst.msk [vmem:[#allocation3 + $0x1b0] sm:$0xff] %vm872_vm4, %v2953_v26  ;;  %2782 = vrot.lane.b32.xlu1 %v8785_v58, %s6968_s12 }
 0x371   : > { %3612 = vrot.lane.b32.xlu0 %v9088_v16, %s6969_s13 }
 0x372   : > { %v2955_v34 = vpop.permute.xlu1 %2954 }
 0x373   : > { %3031 = vst.msk [vmem:[#allocation3 + $0x1c8] sm:$0xff] %vm872_vm4, %v2955_v34  ;;  %v3785_v54 = vpop.permute.xlu0 %3784 }
 0x374   : > { %3862 = vst.msk [vmem:[#allocation3 + $0x1b8] sm:$0xff] %vm1065_vm5, %v3785_v54  ;;  %3614 = vrot.lane.b32.xlu1 %v9093_v4, %s6969_s13 }
 0x375   : > { %2972 = vrot.lane.b32.xlu0 %v8770_v13, %s6969_s13 }
 0x376   : > { %v3787_v58 = vpop.permute.xlu1 %3786 }
 0x377   : > { %3863 = vst.msk [vmem:[#allocation3 + $0x1d0] sm:$0xff] %vm1065_vm5, %v3787_v58  ;;  %v3145_v47 = vpop.permute.xlu0 %3144 }
 0x378   : > { %3222 = vst.msk [vmem:[#allocation3 + $0x1b0] sm:$0xff] %vm1065_vm5, %v3145_v47  ;;  %2974 = vrot.lane.b32.xlu1 %v8772_v41, %s6969_s13 }
 0x379   : > { %3804 = vrot.lane.b32.xlu0 %v8886_v14, %s6970_s14 }
 0x37a   : > { %v3147_v40 = vpop.permute.xlu1 %3146 }
 0x37b   : > { %3223 = vst.msk [vmem:[#allocation3 + $0x1c8] sm:$0xff] %vm1065_vm5, %v3147_v40  ;;  %v3405_v12 = vpop.permute.xlu0 %3404  ;;  %v3995_v23 = vld [vmem:[#allocation3 + $0x1b8] sm:$0xff] }
 0x37c   : > { %3480 = vst.msk [vmem:[#allocation3 + $0x1e8] sm:$0xff] %vm679_vm3, %v3405_v12  ;;  %3806 = vrot.lane.b32.xlu1 %v8907_v35, %s6970_s14 }
 0x37d   : > { %3164 = vrot.lane.b32.xlu0 %v8821_v61, %s6970_s14  ;;  %v4032_v61 = vld [vmem:[#allocation3 + $0x2e0] sm:$0xff] }
 0x37e   : > { %v6691_v13 = vpop.f32.mrf.mxu1  ;;  %v3407_v41 = vpop.permute.xlu1 %3406  ;;  %v3998_v20 = vld [vmem:[#allocation3 + $0x1d0] sm:$0xff]  ;;  %v4083_v39 = vpack.c.bf16 %v4035_v37, %v4032_v61 }
 0x37f   : > { %3481 = vst.msk [vmem:[#allocation3 + $0x200] sm:$0xff] %vm679_vm3, %v3407_v41  ;;  %v2765_v14 = vpop.permute.xlu0 %2764  ;;  %v4064_v55 = vpack.c.bf16 %v3998_v20, %v3995_v23  ;;  %v3994_v0 = vld [vmem:[#allocation3 + $0x1b0] sm:$0xff] }
 0x380   : > { %v6692_v32 = vpop.f32.mrf.mxu1  ;;  %2840 = vst.msk [vmem:[#allocation3 + $0x1e0] sm:$0xff] %vm679_vm3, %v2765_v14  ;;  %3166 = vrot.lane.b32.xlu1 %v8839_v9, %s6970_s14  ;;  %6892 = vmatmul.mubr.msk.bf16.gmra.mxu0 %vm333_vm0, %v4083_v39 }
 0x381   : > { %v6693_v35 = vadd.f32 %v6692_v32, %v6691_v13  ;;  %3424 = vrot.lane.b32.xlu0 %v8896_v38, %s6968_s12  ;;  %4387 = vmatprep.mubr.bf16.mxu1 %v4064_v55 }
 0x382   : > { %v6694_v31 = vpop.f32.mrf.mxu1  ;;  %v2767_v5 = vpop.permute.xlu1 %2766  ;;  %v3997_v8 = vld [vmem:[#allocation3 + $0x1c8] sm:$0xff] }
 0x383   : > { %v4318_v11 = vadd.f32 %v6693_v35, %v9118_v27  ;;  %2841 = vst.msk [vmem:[#allocation3 + $0x1f8] sm:$0xff] %vm679_vm3, %v2767_v5  ;;  %v3597_v22 = vpop.permute.xlu0 %3596  ;;  %v4063_v9 = vpack.c.bf16 %v3997_v8, %v3994_v0 }
 0x384   : > { %v6695_v60 = vpop.f32.mrf.mxu1  ;;  %3672 = vst.msk [vmem:[#allocation3 + $0x1e8] sm:$0xff] %vm872_vm4, %v3597_v22  ;;  %3426 = vrot.lane.b32.xlu1 %v8898_v53, %s6968_s12  ;;  %v6043_v53 = vld [vmem:[#allocation2 + $0x19a] sm:$0xff] }
 0x385   : > { %v4479_v57 = vadd.f32 %v4478_v56, %v4318_v11  ;;  %v6696_v38 = vadd.f32 %v6695_v60, %v6694_v31  ;;  %2784 = vrot.lane.b32.xlu0 %v8823_v3, %s6968_s12  ;;  %4388 = vmatmul.mubr.bf16.gmra.mxu1 %v4063_v9  ;;  %v3523_v3 = vld [vmem:[#allocation2 + $0x1a0] sm:$0xff]  ;;  %6075 = vst.msk [vmem:[#allocation3 + $0x2e0] sm:$0xff] %vm333_vm0, %v6043_v53  ;;  %v9190_v31 = vpop.f32.mrf.mxu0 }
 0x386   : > { %v3599_v10 = vpop.permute.xlu1 %3598 }
 0x387   : > { %vm4605_vm14 = vcmp.gt.f32.partialorder %v4479_v57, 0.0  ;;  %v4637_v17 = vmul.f32 0.01, %v4479_v57  ;;  %v4321_v43 = vadd.f32 %v6696_v38, %v9118_v27  ;;  %3673 = vst.msk [vmem:[#allocation3 + $0x200] sm:$0xff] %vm872_vm4, %v3599_v10  ;;  %v2957_v59 = vpop.permute.xlu0 %2956  ;;  %v4494_v8 = vpop.f32.mrf.mxu0 }
 0x388   : > { %3032 = vst.msk [vmem:[#allocation3 + $0x1e0] sm:$0xff] %vm872_vm4, %v2957_v59  ;;  %2786 = vrot.lane.b32.xlu1 %v8848_v2, %s6968_s12 }
 0x389   : > { %v4669_v50 = vsel %vm4605_vm14, %v4479_v57, %v4637_v17  ;;  %v4482_v7 = vadd.f32 %v4481_v15, %v4321_v43  ;;  %3616 = vrot.lane.b32.xlu0 %v3522_v24, %s6969_s13  ;;  %v9218_v15 = vpop.f32.mrf.mxu0 }
 0x38a   : > { %4701 = vst.msk [vmem:[#allocation2 + $0x19] sm:$0xff] %vm333_vm0, %v4669_v50  ;;  %v2959_v49 = vpop.permute.xlu1 %2958 }
 0x38b   : > { %vm4606_vm15 = vcmp.gt.f32.partialorder %v4482_v7, 0.0  ;;  %v4638_v28 = vmul.f32 0.01, %v4482_v7  ;;  %3033 = vst.msk [vmem:[#allocation3 + $0x1f8] sm:$0xff] %vm872_vm4, %v2959_v49  ;;  %v3789_v62 = vpop.permute.xlu0 %3788 }
 0x38c   : > { %3864 = vst.msk [vmem:[#allocation3 + $0x1e8] sm:$0xff] %vm1065_vm5, %v3789_v62  ;;  %3618 = vrot.lane.b32.xlu1 %v3523_v3, %s6969_s13 }
 0x38d   : > { %v4670_v36 = vsel %vm4606_vm15, %v4482_v7, %v4638_v28  ;;  %2976 = vrot.lane.b32.xlu0 %v8835_v48, %s6969_s13 }
 0x38e   : > { %4702 = vst.msk [vmem:[#allocation2 + $0x21] sm:$0xff] %vm333_vm0, %v4670_v36  ;;  %v3791_v2 = vpop.permute.xlu1 %3790 }
 0x38f   : > { %3865 = vst.msk [vmem:[#allocation3 + $0x200] sm:$0xff] %vm1065_vm5, %v3791_v2  ;;  %v3149_v21 = vpop.permute.xlu0 %3148 }
 0x390   : > { %3224 = vst.msk [vmem:[#allocation3 + $0x1e0] sm:$0xff] %vm1065_vm5, %v3149_v21  ;;  %2978 = vrot.lane.b32.xlu1 %v8837_v6, %s6969_s13 }
 0x391   : > { %v9154_v29 = vld [vmem:[#allocation2 + $0x19] sm:$0xff]  ;;  %3808 = vrot.lane.b32.xlu0 %v3714_v44, %s6970_s14  ;;  %v4497_v44 = vpop.f32.mrf.mxu0 }
 0x392   : > { %v9156_v1 = vld [vmem:[#allocation2 + $0x18] sm:$0xff]  ;;  %v6697_v33 = vpop.f32.mrf.mxu1  ;;  %5405 = vst.msk [vmem:[#allocation3 + $0x8] sm:$0xff] %vm333_vm0, %v9154_v29  ;;  %v3151_v48 = vpop.permute.xlu1 %3150 }
 0x393   : > { %4767 = vst.msk [vmem:[#allocation3 + $0x30] sm:$0xff] %vm333_vm0, %v9156_v1  ;;  %v3409_v45 = vpop.permute.xlu0 %3408  ;;  %v4001_v34 = vld [vmem:[#allocation3 + $0x1e8] sm:$0xff] }
 0x394   : > { %3225 = vst.msk [vmem:[#allocation3 + $0x1f8] sm:$0xff] %vm1065_vm5, %v3151_v48  ;;  %v6698_v18 = vpop.f32.mrf.mxu1  ;;  %3810 = vrot.lane.b32.xlu1 %v3715_v63, %s6970_s14 }
 0x395   : > { %3482 = vst.msk [vmem:[#allocation3 + $0x218] sm:$0xff] %vm679_vm3, %v3409_v45  ;;  %v6699_v6 = vadd.f32 %v6698_v18, %v6697_v33  ;;  %v9166_v51 = vld [vmem:[#allocation2 + $0x21] sm:$0xff]  ;;  %3168 = vrot.lane.b32.xlu0 %v9088_v16, %s6970_s14 }
 0x396   : > { %v6700_v52 = vpop.f32.mrf.mxu1  ;;  %v9170_v25 = vld [vmem:[#allocation2 + $0x20] sm:$0xff]  ;;  %5406 = vst.msk [vmem:[#allocation3 + $0x20] sm:$0xff] %vm333_vm0, %v9166_v51  ;;  %v3411_v26 = vpop.permute.xlu1 %3410  ;;  %v4004_v54 = vld [vmem:[#allocation3 + $0x200] sm:$0xff] }
 0x397   : > { %v4326_v42 = vadd.f32 %v6699_v6, %v9118_v27  ;;  %4768 = vst.msk [vmem:[#allocation3 + $0x48] sm:$0xff] %vm333_vm0, %v9170_v25  ;;  %v2769_v58 = vpop.permute.xlu0 %2768  ;;  %v4067_v40 = vpack.c.bf16 %v4004_v54, %v4001_v34  ;;  %v4000_v23 = vld [vmem:[#allocation3 + $0x1e0] sm:$0xff] }
 0x398   : > { %3483 = vst.msk [vmem:[#allocation3 + $0x230] sm:$0xff] %vm679_vm3, %v3411_v26  ;;  %v6701_v47 = vpop.f32.mrf.mxu1  ;;  %2842 = vst.msk [vmem:[#allocation3 + $0x210] sm:$0xff] %vm679_vm3, %v2769_v58  ;;  %3170 = vrot.lane.b32.xlu1 %v9093_v4, %s6970_s14 }
 0x399   : > { %v4487_v16 = vadd.f32 %v9106_v19, %v4326_v42  ;;  %v6702_v12 = vadd.f32 %v6701_v47, %v6700_v52  ;;  %4395 = vmatprep.mubr.bf16.mxu1 %v4067_v40 }
 0x39a   : > { %v2771_v41 = vpop.permute.xlu1 %2770 }
 0x39b   : > { %vm4607_vm1 = vcmp.gt.f32.partialorder %v4487_v16, 0.0  ;;  %v4639_v13 = vmul.f32 0.01, %v4487_v16  ;;  %v4329_v56 = vadd.f32 %v6702_v12, %v9118_v27  ;;  %v4003_v20 = vld [vmem:[#allocation3 + $0x1f8] sm:$0xff]  ;;  %2843 = vst.msk [vmem:[#allocation3 + $0x228] sm:$0xff] %vm679_vm3, %v2771_v41  ;;  %v3601_v14 = vpop.permute.xlu0 %3600 }
 0x39c   : > { %v4066_v32 = vpack.c.bf16 %v4003_v20, %v4000_v23  ;;  %3674 = vst.msk [vmem:[#allocation3 + $0x218] sm:$0xff] %vm872_vm4, %v3601_v14 }
 0x39d   : > { %v4671_v55 = vsel %vm4607_vm1, %v4487_v16, %v4639_v13  ;;  %v4490_v19 = vadd.f32 %v9125_v46, %v4329_v56 }
 0x39e   : > { %4703 = vst.msk [vmem:[#allocation2 + $0x31] sm:$0xff] %vm333_vm0, %v4671_v55  ;;  %4396 = vmatmul.mubr.bf16.gmra.mxu1 %v4066_v32  ;;  %v3603_v35 = vpop.permute.xlu1 %3602 }
 0x39f   : > { %vm4608_vm2 = vcmp.gt.f32.partialorder %v4490_v19, 0.0  ;;  %v4640_v4 = vmul.f32 0.01, %v4490_v19  ;;  %3675 = vst.msk [vmem:[#allocation3 + $0x230] sm:$0xff] %vm872_vm4, %v3603_v35  ;;  %v2961_v61 = vpop.permute.xlu0 %2960 }
 0x3a0   : > { %3034 = vst.msk [vmem:[#allocation3 + $0x210] sm:$0xff] %vm872_vm4, %v2961_v61 }
 0x3a1   : > { %v4672_v37 = vsel %vm4608_vm2, %v4490_v19, %v4640_v4 }
 0x3a2   : > { %4704 = vst.msk [vmem:[#allocation2 + $0x39] sm:$0xff] %vm333_vm0, %v4672_v37  ;;  %v2963_v39 = vpop.permute.xlu1 %2962 }
 0x3a3   : > { %3035 = vst.msk [vmem:[#allocation3 + $0x228] sm:$0xff] %vm872_vm4, %v2963_v39  ;;  %v3793_v46 = vpop.permute.xlu0 %3792 }
 0x3a4   : > { %3866 = vst.msk [vmem:[#allocation3 + $0x218] sm:$0xff] %vm1065_vm5, %v3793_v46 }
 0x3a5   : > { %v9194_v11 = vld [vmem:[#allocation2 + $0x31] sm:$0xff] }
 0x3a6   : > { %v9196_v5 = vld [vmem:[#allocation2 + $0x30] sm:$0xff]  ;;  %v6703_v0 = vpop.f32.mrf.mxu1  ;;  %5407 = vst.msk [vmem:[#allocation3 + $0x38] sm:$0xff] %vm333_vm0, %v9194_v11  ;;  %v3795_v22 = vpop.permute.xlu1 %3794 }
 0x3a7   : > { %4769 = vst.msk [vmem:[#allocation3 + $0x60] sm:$0xff] %vm333_vm0, %v9196_v5  ;;  %v3153_v60 = vpop.permute.xlu0 %3152 }
 0x3a8   : > { %3867 = vst.msk [vmem:[#allocation3 + $0x230] sm:$0xff] %vm1065_vm5, %v3795_v22  ;;  %v6704_v9 = vpop.f32.mrf.mxu1  ;;  %3226 = vst.msk [vmem:[#allocation3 + $0x210] sm:$0xff] %vm1065_vm5, %v3153_v60 }
 0x3a9   : > { %v6705_v57 = vadd.f32 %v6704_v9, %v6703_v0  ;;  %v9204_v38 = vld [vmem:[#allocation2 + $0x39] sm:$0xff] }
 0x3aa   : > { %v9206_v17 = vld [vmem:[#allocation2 + $0x32] sm:$0xff]  ;;  %v9208_v43 = vld [vmem:[#allocation2 + $0x3a] sm:$0xff]  ;;  %v6706_v10 = vpop.f32.mrf.mxu1  ;;  %5408 = vst.msk [vmem:[#allocation3 + $0x50] sm:$0xff] %vm333_vm0, %v9204_v38  ;;  %v3155_v50 = vpop.permute.xlu1 %3154 }
 0x3ab   : > { %v9210_v24 = vld [vmem:[#allocation2 + $0x38] sm:$0xff]  ;;  %6045 = vst.msk [vmem:[#allocation3 + $0x10] sm:$0xff] %vm333_vm0, %v9206_v17  ;;  %6046 = vst.msk [vmem:[#allocation3 + $0x28] sm:$0xff] %vm333_vm0, %v9208_v43  ;;  %v4334_v59 = vadd.f32 %v6705_v57, %v9118_v27  ;;  %v3413_v7 = vpop.permute.xlu0 %3412  ;;  %v4007_v36 = vld [vmem:[#allocation3 + $0x218] sm:$0xff] }
 0x3ac   : > { %4770 = vst.msk [vmem:[#allocation3 + $0x78] sm:$0xff] %vm333_vm0, %v9210_v24  ;;  %v6707_v3 = vpop.f32.mrf.mxu1 }
 0x3ad   : > { %3227 = vst.msk [vmem:[#allocation3 + $0x228] sm:$0xff] %vm1065_vm5, %v3155_v50  ;;  %v4495_v53 = vadd.f32 %v4494_v8, %v4334_v59  ;;  %v6708_v30 = vadd.f32 %v6707_v3, %v6706_v10 }
 0x3ae   : > { %3484 = vst.msk [vmem:[#allocation3 + $0x248] sm:$0xff] %vm679_vm3, %v3413_v7  ;;  %v3415_v62 = vpop.permute.xlu1 %3414 }
 0x3af   : > { %vm4609_vm6 = vcmp.gt.f32.partialorder %v4495_v53, 0.0  ;;  %v4641_v28 = vmul.f32 0.01, %v4495_v53  ;;  %v4337_v49 = vadd.f32 %v6708_v30, %v9118_v27  ;;  %v4010_v2 = vld [vmem:[#allocation3 + $0x230] sm:$0xff]  ;;  %3485 = vst.msk [vmem:[#allocation3 + $0x260] sm:$0xff] %vm679_vm3, %v3415_v62  ;;  %v2773_v21 = vpop.permute.xlu0 %2772 }
 0x3b0   : > { %v4070_v33 = vpack.c.bf16 %v4010_v2, %v4007_v36  ;;  %2844 = vst.msk [vmem:[#allocation3 + $0x240] sm:$0xff] %vm679_vm3, %v2773_v21  ;;  %v4006_v6 = vld [vmem:[#allocation3 + $0x210] sm:$0xff] }
 0x3b1   : > { %v4673_v63 = vsel %vm4609_vm6, %v4495_v53, %v4641_v28  ;;  %v4498_v48 = vadd.f32 %v4497_v44, %v4337_v49 }
 0x3b2   : > { %4705 = vst.msk [vmem:[#allocation2 + $0x49] sm:$0xff] %vm333_vm0, %v4673_v63  ;;  %4403 = vmatprep.mubr.bf16.mxu1 %v4070_v33  ;;  %v2775_v18 = vpop.permute.xlu1 %2774  ;;  %v6169_v63 = vld [vmem:[#allocation3 + $0x2e0] sm:$0xff] }
 0x3b3   : > { %vm4610_vm7 = vcmp.gt.f32.partialorder %v4498_v48, 0.0  ;;  %v4642_v45 = vmul.f32 0.01, %v4498_v48  ;;  %2845 = vst.msk [vmem:[#allocation3 + $0x258] sm:$0xff] %vm679_vm3, %v2775_v18  ;;  %v3605_v42 = vpop.permute.xlu0 %3604 }
 0x3b4   : > { %v4009_v52 = vld [vmem:[#allocation3 + $0x228] sm:$0xff]  ;;  %3676 = vst.msk [vmem:[#allocation3 + $0x248] sm:$0xff] %vm872_vm4, %v3605_v42 }
 0x3b5   : > { %v4069_v26 = vpack.c.bf16 %v4009_v52, %v4006_v6  ;;  %v4674_v34 = vsel %vm4610_vm7, %v4498_v48, %v4642_v45  ;;  %v6172_v48 = vld [vmem:[#allocation3 + $0x2f8] sm:$0xff] }
 0x3b6   : > { %4706 = vst.msk [vmem:[#allocation2 + $0x51] sm:$0xff] %vm333_vm0, %v4674_v34  ;;  %v3607_v54 = vpop.permute.xlu1 %3606  ;;  %v6220_v6 = vpack.c.bf16 %v6172_v48, %v6169_v63 }
 0x3b7   : > { %4404 = vmatmul.mubr.bf16.gmra.mxu1 %v4069_v26  ;;  %3677 = vst.msk [vmem:[#allocation3 + $0x260] sm:$0xff] %vm872_vm4, %v3607_v54  ;;  %v2965_v58 = vpop.permute.xlu0 %2964 }
 0x3b8   : > { %3036 = vst.msk [vmem:[#allocation3 + $0x240] sm:$0xff] %vm872_vm4, %v2965_v58  ;;  %6895 = vmatprep.subr.msk.bf16.mxu0 %vm333_vm0, %v6220_v6 }
 0x3b9   : > { %v9234_v47 = vld [vmem:[#allocation2 + $0x49] sm:$0xff] }
 0x3ba   : > { %v9236_v40 = vld [vmem:[#allocation2 + $0x48] sm:$0xff]  ;;  %v6709_v16 = vpop.f32.mrf.mxu1  ;;  %5409 = vst.msk [vmem:[#allocation3 + $0x68] sm:$0xff] %vm333_vm0, %v9234_v47  ;;  %v2967_v12 = vpop.permute.xlu1 %2966 }
 0x3bb   : > { %4771 = vst.msk [vmem:[#allocation3 + $0x90] sm:$0xff] %vm333_vm0, %v9236_v40  ;;  %v3797_v13 = vpop.permute.xlu0 %3796 }
 0x3bc   : > { %3037 = vst.msk [vmem:[#allocation3 + $0x258] sm:$0xff] %vm872_vm4, %v2967_v12  ;;  %v6710_v56 = vpop.f32.mrf.mxu1 }
 0x3bd   : > { %3868 = vst.msk [vmem:[#allocation3 + $0x248] sm:$0xff] %vm1065_vm5, %v3797_v13  ;;  %v6711_v41 = vadd.f32 %v6710_v56, %v6709_v16  ;;  %v9244_v23 = vld [vmem:[#allocation2 + $0x51] sm:$0xff] }
 0x3be   : > { %v9246_v20 = vld [vmem:[#allocation2 + $0x4a] sm:$0xff]  ;;  %v9248_v14 = vld [vmem:[#allocation2 + $0x52] sm:$0xff]  ;;  %v6712_v32 = vpop.f32.mrf.mxu1  ;;  %5410 = vst.msk [vmem:[#allocation3 + $0x80] sm:$0xff] %vm333_vm0, %v9244_v23  ;;  %v3799_v4 = vpop.permute.xlu1 %3798 }
 0x3bf   : > { %v9250_v55 = vld [vmem:[#allocation2 + $0x50] sm:$0xff]  ;;  %6047 = vst.msk [vmem:[#allocation3 + $0x40] sm:$0xff] %vm333_vm0, %v9246_v20  ;;  %6048 = vst.msk [vmem:[#allocation3 + $0x58] sm:$0xff] %vm333_vm0, %v9248_v14  ;;  %v4342_v19 = vadd.f32 %v6711_v41, %v9118_v27  ;;  %v3157_v35 = vpop.permute.xlu0 %3156 }
 0x3c0   : > { %4772 = vst.msk [vmem:[#allocation3 + $0xa8] sm:$0xff] %vm333_vm0, %v9250_v55  ;;  %v6713_v61 = vpop.f32.mrf.mxu1 }
 0x3c1   : > { %3869 = vst.msk [vmem:[#allocation3 + $0x260] sm:$0xff] %vm1065_vm5, %v3799_v4  ;;  %v4503_v37 = vadd.f32 %v9190_v31, %v4342_v19  ;;  %3228 = vst.msk [vmem:[#allocation3 + $0x240] sm:$0xff] %vm1065_vm5, %v3157_v35  ;;  %v6714_v39 = vadd.f32 %v6713_v61, %v6712_v32 }
 0x3c2   : > { %v3159_v8 = vpop.permute.xlu1 %3158 }
 0x3c3   : > { %vm4611_vm8 = vcmp.gt.f32.partialorder %v4503_v37, 0.0  ;;  %v4643_v46 = vmul.f32 0.01, %v4503_v37  ;;  %v4345_v0 = vadd.f32 %v6714_v39, %v9118_v27  ;;  %3229 = vst.msk [vmem:[#allocation3 + $0x258] sm:$0xff] %vm1065_vm5, %v3159_v8  ;;  %v3417_v22 = vpop.permute.xlu0 %3416 }
 0x3c4   : > { %3486 = vst.msk [vmem:[#allocation3 + $0x278] sm:$0xff] %vm679_vm3, %v3417_v22  ;;  %v4013_v10 = vld [vmem:[#allocation3 + $0x248] sm:$0xff] }
 0x3c5   : > { %v4675_v60 = vsel %vm4611_vm8, %v4503_v37, %v4643_v46  ;;  %v4506_v9 = vadd.f32 %v9218_v15, %v4345_v0  ;;  %v9272_v15 = vpop.f32.mrf.mxu0 }
 0x3c6   : > { %4707 = vst.msk [vmem:[#allocation2 + $0x61] sm:$0xff] %vm333_vm0, %v4675_v60  ;;  %v3419_v57 = vpop.permute.xlu1 %3418 }
 0x3c7   : > { %vm4612_vm9 = vcmp.gt.f32.partialorder %v4506_v9, 0.0  ;;  %v4644_v31 = vmul.f32 0.01, %v4506_v9  ;;  %3487 = vst.msk [vmem:[#allocation3 + $0x290] sm:$0xff] %vm679_vm3, %v3419_v57  ;;  %v2777_v50 = vpop.permute.xlu0 %2776  ;;  %v4510_v21 = vpop.f32.mrf.mxu0 }
 0x3c8   : > { %v4016_v59 = vld [vmem:[#allocation3 + $0x260] sm:$0xff]  ;;  %2846 = vst.msk [vmem:[#allocation3 + $0x270] sm:$0xff] %vm679_vm3, %v2777_v50 }
 0x3c9   : > { %v4073_v7 = vpack.c.bf16 %v4016_v59, %v4013_v10  ;;  %v4676_v3 = vsel %vm4612_vm9, %v4506_v9, %v4644_v31  ;;  %v4012_v30 = vld [vmem:[#allocation3 + $0x240] sm:$0xff]  ;;  %v9301_v16 = vpop.f32.mrf.mxu0 }
 0x3ca   : > { %4708 = vst.msk [vmem:[#allocation2 + $0x69] sm:$0xff] %vm333_vm0, %v4676_v3  ;;  %v2779_v53 = vpop.permute.xlu1 %2778  ;;  %v4015_v28 = vld [vmem:[#allocation3 + $0x258] sm:$0xff] }
 0x3cb   : > { %4411 = vmatprep.mubr.bf16.mxu1 %v4073_v7  ;;  %2847 = vst.msk [vmem:[#allocation3 + $0x288] sm:$0xff] %vm679_vm3, %v2779_v53  ;;  %v3609_v49 = vpop.permute.xlu0 %3608  ;;  %v4072_v62 = vpack.c.bf16 %v4015_v28, %v4012_v30  ;;  %v4513_v37 = vpop.f32.mrf.mxu0 }
 0x3cc   : > { %3678 = vst.msk [vmem:[#allocation3 + $0x278] sm:$0xff] %vm872_vm4, %v3609_v49 }
 0x3cd   : > { %v9276_v36 = vld [vmem:[#allocation2 + $0x61] sm:$0xff]  ;;  %4412 = vmatmul.mubr.bf16.gmra.mxu1 %v4072_v62 }
 0x3ce   : > { %v9278_v2 = vld [vmem:[#allocation2 + $0x60] sm:$0xff]  ;;  %v6715_v44 = vpop.f32.mrf.mxu1  ;;  %5411 = vst.msk [vmem:[#allocation3 + $0x98] sm:$0xff] %vm333_vm0, %v9276_v36  ;;  %v3611_v33 = vpop.permute.xlu1 %3610 }
 0x3cf   : > { %4773 = vst.msk [vmem:[#allocation3 + $0xc0] sm:$0xff] %vm333_vm0, %v9278_v2  ;;  %v2969_v45 = vpop.permute.xlu0 %2968 }
 0x3d0   : > { %3679 = vst.msk [vmem:[#allocation3 + $0x290] sm:$0xff] %vm872_vm4, %v3611_v33  ;;  %v6716_v18 = vpop.f32.mrf.mxu1  ;;  %3038 = vst.msk [vmem:[#allocation3 + $0x270] sm:$0xff] %vm872_vm4, %v2969_v45 }
 0x3d1   : > { %v6717_v52 = vadd.f32 %v6716_v18, %v6715_v44  ;;  %v9286_v42 = vld [vmem:[#allocation2 + $0x69] sm:$0xff] }
 0x3d2   : > { %v9288_v26 = vld [vmem:[#allocation2 + $0x62] sm:$0xff]  ;;  %v9290_v34 = vld [vmem:[#allocation2 + $0x6a] sm:$0xff]  ;;  %v6718_v54 = vpop.f32.mrf.mxu1  ;;  %5412 = vst.msk [vmem:[#allocation3 + $0xb0] sm:$0xff] %vm333_vm0, %v9286_v42  ;;  %v2971_v13 = vpop.permute.xlu1 %2970 }
 0x3d3   : > { %v9293_v58 = vld [vmem:[#allocation2 + $0x68] sm:$0xff]  ;;  %6049 = vst.msk [vmem:[#allocation3 + $0x70] sm:$0xff] %vm333_vm0, %v9288_v26  ;;  %6050 = vst.msk [vmem:[#allocation3 + $0x88] sm:$0xff] %vm333_vm0, %v9290_v34  ;;  %v4350_v12 = vadd.f32 %v6717_v52, %v9118_v27  ;;  %v3801_v56 = vpop.permute.xlu0 %3800 }
 0x3d4   : > { %4774 = vst.msk [vmem:[#allocation3 + $0xd8] sm:$0xff] %vm333_vm0, %v9293_v58  ;;  %v6719_v41 = vpop.f32.mrf.mxu1 }
 0x3d5   : > { %3039 = vst.msk [vmem:[#allocation3 + $0x288] sm:$0xff] %vm872_vm4, %v2971_v13  ;;  %v4511_v32 = vadd.f32 %v4510_v21, %v4350_v12  ;;  %v6720_v19 = vadd.f32 %v6719_v41, %v6718_v54 }
 0x3d6   : > { %3870 = vst.msk [vmem:[#allocation3 + $0x278] sm:$0xff] %vm1065_vm5, %v3801_v56  ;;  %v3803_v61 = vpop.permute.xlu1 %3802 }
 0x3d7   : > { %vm4613_vm10 = vcmp.gt.f32.partialorder %v4511_v32, 0.0  ;;  %v4645_v4 = vmul.f32 0.01, %v4511_v32  ;;  %v4353_v35 = vadd.f32 %v6720_v19, %v9118_v27  ;;  %3871 = vst.msk [vmem:[#allocation3 + $0x290] sm:$0xff] %vm1065_vm5, %v3803_v61  ;;  %v3161_v39 = vpop.permute.xlu0 %3160 }
 0x3d8   : > { %3230 = vst.msk [vmem:[#allocation3 + $0x270] sm:$0xff] %vm1065_vm5, %v3161_v39 }
 0x3d9   : > { %v4677_v46 = vsel %vm4613_vm10, %v4511_v32, %v4645_v4  ;;  %v4514_v0 = vadd.f32 %v4513_v37, %v4353_v35 }
 0x3da   : > { %4709 = vst.msk [vmem:[#allocation2 + $0x79] sm:$0xff] %vm333_vm0, %v4677_v46  ;;  %v3163_v22 = vpop.permute.xlu1 %3162 }
 0x3db   : > { %vm4614_vm11 = vcmp.gt.f32.partialorder %v4514_v0, 0.0  ;;  %v4646_v8 = vmul.f32 0.01, %v4514_v0  ;;  %3231 = vst.msk [vmem:[#allocation3 + $0x288] sm:$0xff] %vm1065_vm5, %v3163_v22  ;;  %v3421_v60 = vpop.permute.xlu0 %3420 }
 0x3dc   : > { %3488 = vst.msk [vmem:[#allocation3 + $0x2a8] sm:$0xff] %vm679_vm3, %v3421_v60 }
 0x3dd   : > { %v4678_v9 = vsel %vm4614_vm11, %v4514_v0, %v4646_v8  ;;  %v4019_v57 = vld [vmem:[#allocation3 + $0x278] sm:$0xff] }
 0x3de   : > { %4710 = vst.msk [vmem:[#allocation2 + $0x81] sm:$0xff] %vm333_vm0, %v4678_v9  ;;  %v3423_v31 = vpop.permute.xlu1 %3422  ;;  %v4022_v10 = vld [vmem:[#allocation3 + $0x290] sm:$0xff] }
 0x3df   : > { %3489 = vst.msk [vmem:[#allocation3 + $0x2c0] sm:$0xff] %vm679_vm3, %v3423_v31  ;;  %v2781_v59 = vpop.permute.xlu0 %2780  ;;  %v4076_v50 = vpack.c.bf16 %v4022_v10, %v4019_v57  ;;  %v4018_v30 = vld [vmem:[#allocation3 + $0x270] sm:$0xff] }
 0x3e0   : > { %2848 = vst.msk [vmem:[#allocation3 + $0x2a0] sm:$0xff] %vm679_vm3, %v2781_v59 }
 0x3e1   : > { %v9317_v7 = vld [vmem:[#allocation2 + $0x79] sm:$0xff]  ;;  %4419 = vmatprep.mubr.bf16.mxu1 %v4076_v50  ;;  %v9367_v50 = vpop.f32.mrf.mxu0 }
 0x3e2   : > { %v9319_v3 = vld [vmem:[#allocation2 + $0x78] sm:$0xff]  ;;  %5413 = vst.msk [vmem:[#allocation3 + $0xc8] sm:$0xff] %vm333_vm0, %v9317_v7  ;;  %v2783_v53 = vpop.permute.xlu1 %2782 }
 0x3e3   : > { %4775 = vst.msk [vmem:[#allocation3 + $0xf0] sm:$0xff] %vm333_vm0, %v9319_v3  ;;  %v4021_v28 = vld [vmem:[#allocation3 + $0x288] sm:$0xff]  ;;  %v3613_v49 = vpop.permute.xlu0 %3612 }
 0x3e4   : > { %2849 = vst.msk [vmem:[#allocation3 + $0x2b8] sm:$0xff] %vm679_vm3, %v2783_v53  ;;  %v4075_v62 = vpack.c.bf16 %v4021_v28, %v4018_v30 }
 0x3e5   : > { %3680 = vst.msk [vmem:[#allocation3 + $0x2a8] sm:$0xff] %vm872_vm4, %v3613_v49  ;;  %v9327_v44 = vld [vmem:[#allocation2 + $0x81] sm:$0xff]  ;;  %v6721_v63 = vpop.f32.mrf.mxu1 }
 0x3e6   : > { %v9329_v21 = vld [vmem:[#allocation2 + $0x7a] sm:$0xff]  ;;  %v9331_v33 = vld [vmem:[#allocation2 + $0x82] sm:$0xff]  ;;  %4420 = vmatmul.mubr.bf16.gmra.mxu1 %v4075_v62  ;;  %5414 = vst.msk [vmem:[#allocation3 + $0xe0] sm:$0xff] %vm333_vm0, %v9327_v44  ;;  %v3615_v45 = vpop.permute.xlu1 %3614 }
 0x3e7   : > { %v9333_v48 = vld [vmem:[#allocation2 + $0x80] sm:$0xff]  ;;  %6051 = vst.msk [vmem:[#allocation3 + $0xa0] sm:$0xff] %vm333_vm0, %v9329_v21  ;;  %6052 = vst.msk [vmem:[#allocation3 + $0xb8] sm:$0xff] %vm333_vm0, %v9331_v33  ;;  %v2973_v18 = vpop.permute.xlu0 %2972  ;;  %v6722_v6 = vpop.f32.mrf.mxu1 }
 0x3e8   : > { %4776 = vst.msk [vmem:[#allocation3 + $0x108] sm:$0xff] %vm333_vm0, %v9333_v48  ;;  %v6723_v52 = vadd.f32 %v6722_v6, %v6721_v63 }
 0x3e9   : > { %3681 = vst.msk [vmem:[#allocation3 + $0x2c0] sm:$0xff] %vm872_vm4, %v3615_v45  ;;  %3040 = vst.msk [vmem:[#allocation3 + $0x2a0] sm:$0xff] %vm872_vm4, %v2973_v18  ;;  %v6724_v54 = vpop.f32.mrf.mxu1 }
 0x3ea   : > { %v4358_v12 = vadd.f32 %v6723_v52, %v9118_v27  ;;  %v2975_v13 = vpop.permute.xlu1 %2974 }
 0x3eb   : > { %3041 = vst.msk [vmem:[#allocation3 + $0x2b8] sm:$0xff] %vm872_vm4, %v2975_v13  ;;  %v3805_v56 = vpop.permute.xlu0 %3804  ;;  %v6725_v41 = vpop.f32.mrf.mxu1 }
 0x3ec   : > { %v4519_v32 = vadd.f32 %v9272_v15, %v4358_v12  ;;  %3872 = vst.msk [vmem:[#allocation3 + $0x2a8] sm:$0xff] %vm1065_vm5, %v3805_v56  ;;  %v6726_v19 = vadd.f32 %v6725_v41, %v6724_v54  ;;  %v4526_v54 = vpop.f32.mrf.mxu0 }
 0x3ee   : > { %vm4615_vm12 = vcmp.gt.f32.partialorder %v4519_v32, 0.0  ;;  %v4647_v4 = vmul.f32 0.01, %v4519_v32  ;;  %v4361_v35 = vadd.f32 %v6726_v19, %v9118_v27  ;;  %v3807_v61 = vpop.permute.xlu1 %3806  ;;  %v6878_v19 = vpop.f32.mrf.mxu0 }
 0x3ef   : > { %3873 = vst.msk [vmem:[#allocation3 + $0x2c0] sm:$0xff] %vm1065_vm5, %v3807_v61  ;;  %v3165_v37 = vpop.permute.xlu0 %3164 }
 0x3f0   : > { %v4679_v39 = vsel %vm4615_vm12, %v4519_v32, %v4647_v4  ;;  %v4522_v46 = vadd.f32 %v9301_v16, %v4361_v35  ;;  %3232 = vst.msk [vmem:[#allocation3 + $0x2a0] sm:$0xff] %vm1065_vm5, %v3165_v37 }
 0x3f1   : > { %4711 = vst.msk [vmem:[#allocation2 + $0x91] sm:$0xff] %vm333_vm0, %v4679_v39 }
 0x3f2   : > { %vm4616_vm13 = vcmp.gt.f32.partialorder %v4522_v46, 0.0  ;;  %v4648_v15 = vmul.f32 0.01, %v4522_v46  ;;  %v3167_v0 = vpop.permute.xlu1 %3166 }
 0x3f3   : > { %3233 = vst.msk [vmem:[#allocation3 + $0x2b8] sm:$0xff] %vm1065_vm5, %v3167_v0  ;;  %v3425_v8 = vpop.permute.xlu0 %3424  ;;  %v4025_v9 = vld [vmem:[#allocation3 + $0x2a8] sm:$0xff] }
 0x3f4   : > { %v4680_v22 = vsel %vm4616_vm13, %v4522_v46, %v4648_v15  ;;  %3490 = vst.msk [vmem:[#allocation3 + $0x2d8] sm:$0xff] %vm679_vm3, %v3425_v8 }
 0x3f5   : > { %4712 = vst.msk [vmem:[#allocation2 + $0x99] sm:$0xff] %vm333_vm0, %v4680_v22  ;;  %v4529_v22 = vpop.f32.mrf.mxu0 }
 0x3f6   : > { %v3427_v60 = vpop.permute.xlu1 %3426  ;;  %v4028_v31 = vld [vmem:[#allocation3 + $0x2c0] sm:$0xff] }
 0x3f7   : > { %3491 = vst.msk [vmem:[#allocation3 + $0x2f0] sm:$0xff] %vm679_vm3, %v3427_v60  ;;  %v2785_v16 = vpop.permute.xlu0 %2784  ;;  %v4079_v57 = vpack.c.bf16 %v4028_v31, %v4025_v9  ;;  %v4024_v30 = vld [vmem:[#allocation3 + $0x2a0] sm:$0xff] }
 0x3f8   : > { %2850 = vst.msk [vmem:[#allocation3 + $0x2d0] sm:$0xff] %vm679_vm3, %v2785_v16  ;;  %v9359_v10 = vld [vmem:[#allocation2 + $0x91] sm:$0xff] }
 0x3f9   : > { %v9361_v59 = vld [vmem:[#allocation2 + $0x90] sm:$0xff]  ;;  %4427 = vmatprep.mubr.bf16.mxu1 %v4079_v57  ;;  %5415 = vst.msk [vmem:[#allocation3 + $0xf8] sm:$0xff] %vm333_vm0, %v9359_v10 }
 0x3fa   : > { %4777 = vst.msk [vmem:[#allocation3 + $0x120] sm:$0xff] %vm333_vm0, %v9361_v59  ;;  %v2787_v53 = vpop.permute.xlu1 %2786  ;;  %v4027_v28 = vld [vmem:[#allocation3 + $0x2b8] sm:$0xff] }
 0x3fb   : > { %2851 = vst.msk [vmem:[#allocation3 + $0x2e8] sm:$0xff] %vm679_vm3, %v2787_v53  ;;  %v3617_v49 = vpop.permute.xlu0 %3616  ;;  %v4078_v62 = vpack.c.bf16 %v4027_v28, %v4024_v30 }
 0x3fc   : > { %3682 = vst.msk [vmem:[#allocation3 + $0x2d8] sm:$0xff] %vm872_vm4, %v3617_v49  ;;  %v9371_v63 = vld [vmem:[#allocation2 + $0x99] sm:$0xff] }
 0x3fd   : > { %v9373_v45 = vld [vmem:[#allocation2 + $0x92] sm:$0xff]  ;;  %v9375_v18 = vld [vmem:[#allocation2 + $0x9a] sm:$0xff]  ;;  %v6727_v6 = vpop.f32.mrf.mxu1  ;;  %4428 = vmatmul.mubr.bf16.gmra.mxu1 %v4078_v62  ;;  %5416 = vst.msk [vmem:[#allocation3 + $0x110] sm:$0xff] %vm333_vm0, %v9371_v63 }
 0x3fe   : > { %v9377_v52 = vld [vmem:[#allocation2 + $0x98] sm:$0xff]  ;;  %6053 = vst.msk [vmem:[#allocation3 + $0xd0] sm:$0xff] %vm333_vm0, %v9373_v45  ;;  %6054 = vst.msk [vmem:[#allocation3 + $0xe8] sm:$0xff] %vm333_vm0, %v9375_v18  ;;  %v3619_v12 = vpop.permute.xlu1 %3618 }
 0x3ff   : > { %4778 = vst.msk [vmem:[#allocation3 + $0x138] sm:$0xff] %vm333_vm0, %v9377_v52  ;;  %v2977_v13 = vpop.permute.xlu0 %2976  ;;  %v6728_v56 = vpop.f32.mrf.mxu1 }
 0x400   : > { %3683 = vst.msk [vmem:[#allocation3 + $0x2f0] sm:$0xff] %vm872_vm4, %v3619_v12  ;;  %3042 = vst.msk [vmem:[#allocation3 + $0x2d0] sm:$0xff] %vm872_vm4, %v2977_v13  ;;  %v6729_v41 = vadd.f32 %v6728_v56, %v6727_v6 }
 0x401   : > { %v6730_v32 = vpop.f32.mrf.mxu1 }
 0x402   : > { %v4366_v4 = vadd.f32 %v6729_v41, %v9118_v27  ;;  %v2979_v35 = vpop.permute.xlu1 %2978 }
 0x403   : > { %3043 = vst.msk [vmem:[#allocation3 + $0x2e8] sm:$0xff] %vm872_vm4, %v2979_v35  ;;  %v3809_v61 = vpop.permute.xlu0 %3808  ;;  %v6731_v37 = vpop.f32.mrf.mxu1 }
 0x404   : > { %v4527_v39 = vadd.f32 %v4526_v54, %v4366_v4  ;;  %3874 = vst.msk [vmem:[#allocation3 + $0x2d8] sm:$0xff] %vm1065_vm5, %v3809_v61  ;;  %v6732_v46 = vadd.f32 %v6731_v37, %v6730_v32 }
 0x406   : > { %vm4617_vm14 = vcmp.gt.f32.partialorder %v4527_v39, 0.0  ;;  %v4649_v15 = vmul.f32 0.01, %v4527_v39  ;;  %v4369_v0 = vadd.f32 %v6732_v46, %v9118_v27  ;;  %v3811_v8 = vpop.permute.xlu1 %3810 }
 0x407   : > { %3875 = vst.msk [vmem:[#allocation3 + $0x2f0] sm:$0xff] %vm1065_vm5, %v3811_v8  ;;  %v3169_v60 = vpop.permute.xlu0 %3168 }
 0x408   : > { %v4681_v9 = vsel %vm4617_vm14, %v4527_v39, %v4649_v15  ;;  %v4530_v31 = vadd.f32 %v4529_v22, %v4369_v0  ;;  %3234 = vst.msk [vmem:[#allocation3 + $0x2d0] sm:$0xff] %vm1065_vm5, %v3169_v60 }
 0x409   : > { %4713 = vst.msk [vmem:[#allocation2 + $0xa9] sm:$0xff] %vm333_vm0, %v4681_v9 }
 0x40a   : > { %vm4618_vm15 = vcmp.gt.f32.partialorder %v4530_v31, 0.0  ;;  %v4650_v16 = vmul.f32 0.01, %v4530_v31  ;;  %v3171_v57 = vpop.permute.xlu1 %3170 }
 0x40b   : > { %3235 = vst.msk [vmem:[#allocation3 + $0x2e8] sm:$0xff] %vm1065_vm5, %v3171_v57  ;;  %v4031_v30 = vld [vmem:[#allocation3 + $0x2d8] sm:$0xff] }
 0x40c   : > { %v4682_v53 = vsel %vm4618_vm15, %v4530_v31, %v4650_v16 }
 0x40d   : > { %4714 = vst.msk [vmem:[#allocation2 + $0xb1] sm:$0xff] %vm333_vm0, %v4682_v53 }
 0x40e   : > { %v4034_v28 = vld [vmem:[#allocation3 + $0x2f0] sm:$0xff] }
 0x40f   : > { %v4082_v49 = vpack.c.bf16 %v4034_v28, %v4031_v30  ;;  %v4030_v54 = vld [vmem:[#allocation3 + $0x2d0] sm:$0xff]  ;;  %v6881_v30 = vpop.f32.mrf.mxu0 }
 0x410   : > { %v9398_v62 = vld [vmem:[#allocation2 + $0xa9] sm:$0xff] }
 0x411   : > { %v9400_v6 = vld [vmem:[#allocation2 + $0xa8] sm:$0xff]  ;;  %4435 = vmatprep.mubr.bf16.mxu1 %v4082_v49  ;;  %5417 = vst.msk [vmem:[#allocation3 + $0x128] sm:$0xff] %vm333_vm0, %v9398_v62 }
 0x412   : > { %4779 = vst.msk [vmem:[#allocation3 + $0x150] sm:$0xff] %vm333_vm0, %v9400_v6  ;;  %v4033_v12 = vld [vmem:[#allocation3 + $0x2e8] sm:$0xff] }
 0x413   : > { %v4081_v13 = vpack.c.bf16 %v4033_v12, %v4030_v54 }
 0x414   : > { %v9406_v56 = vld [vmem:[#allocation2 + $0xb1] sm:$0xff] }
 0x415   : > { %v9408_v41 = vld [vmem:[#allocation2 + $0xaa] sm:$0xff]  ;;  %v9410_v32 = vld [vmem:[#allocation2 + $0xb2] sm:$0xff]  ;;  %v6733_v4 = vpop.f32.mrf.mxu1  ;;  %4436 = vmatmul.mubr.bf16.gmra.mxu1 %v4081_v13  ;;  %5418 = vst.msk [vmem:[#allocation3 + $0x140] sm:$0xff] %vm333_vm0, %v9406_v56  ;;  %v4542_v13 = vpop.f32.mrf.mxu0 }
 0x416   : > { %v9412_v35 = vld [vmem:[#allocation2 + $0xb0] sm:$0xff]  ;;  %6055 = vst.msk [vmem:[#allocation3 + $0x100] sm:$0xff] %vm333_vm0, %v9408_v41  ;;  %6056 = vst.msk [vmem:[#allocation3 + $0x118] sm:$0xff] %vm333_vm0, %v9410_v32 }
 0x417   : > { %4780 = vst.msk [vmem:[#allocation3 + $0x168] sm:$0xff] %vm333_vm0, %v9412_v35  ;;  %v6734_v61 = vpop.f32.mrf.mxu1 }
 0x418   : > { %v6735_v37 = vadd.f32 %v6734_v61, %v6733_v4 }
 0x419   : > { %v6736_v39 = vpop.f32.mrf.mxu1 }
 0x41a   : > { %v4374_v46 = vadd.f32 %v6735_v37, %v9118_v27 }
 0x41b   : > { %v6737_v15 = vpop.f32.mrf.mxu1 }
 0x41c   : > { %v4535_v0 = vadd.f32 %v9367_v50, %v4374_v46  ;;  %v6738_v8 = vadd.f32 %v6737_v15, %v6736_v39  ;;  %v6882_v46 = vpop.f32.mrf.mxu0 }
 0x41e   : > { %vm4619_vm1 = vcmp.gt.f32.partialorder %v4535_v0, 0.0  ;;  %v4651_v22 = vmul.f32 0.01, %v4535_v0  ;;  %v4377_v60 = vadd.f32 %v6738_v8, %v9118_v27 }
 0x420   : > { %v4683_v9 = vsel %vm4619_vm1, %v4535_v0, %v4651_v22  ;;  %v4538_v31 = vadd.f32 %v6878_v19, %v4377_v60 }
 0x421   : > { %4715 = vst.msk [vmem:[#allocation2 + $0xc1] sm:$0xff] %vm333_vm0, %v4683_v9  ;;  %v4545_v9 = vpop.f32.mrf.mxu0 }
 0x422   : > { %vm4620_vm2 = vcmp.gt.f32.partialorder %v4538_v31, 0.0  ;;  %v4652_v16 = vmul.f32 0.01, %v4538_v31 }
 0x424   : > { %v4684_v57 = vsel %vm4620_vm2, %v4538_v31, %v4652_v16 }
 0x425   : > { %4716 = vst.msk [vmem:[#allocation2 + $0xc9] sm:$0xff] %vm333_vm0, %v4684_v57 }
 0x428   : > { %v9427_v53 = vld [vmem:[#allocation2 + $0xc1] sm:$0xff] }
 0x429   : > { %5419 = vst.msk [vmem:[#allocation3 + $0x158] sm:$0xff] %vm333_vm0, %v9427_v53  ;;  %v4749_v50 = vld [vmem:[#allocation2 + $0xc0] sm:$0xff] }
 0x42a   : > { %4781 = vst.msk [vmem:[#allocation3 + $0x180] sm:$0xff] %vm333_vm0, %v4749_v50 }
 0x42c   : > { %v5452_v28 = vld [vmem:[#allocation2 + $0xca] sm:$0xff]  ;;  %v5451_v49 = vld [vmem:[#allocation2 + $0xc2] sm:$0xff] }
 0x42d   : > { %v6739_v54 = vpop.f32.mrf.mxu1  ;;  %5531 = vrot.lane.b32.xlu1 %v5452_v28, %s6968_s12  ;;  %5529 = vrot.lane.b32.xlu0 %v5451_v49, %s6968_s12  ;;  %v9434_v19 = vld [vmem:[#allocation2 + $0xc9] sm:$0xff]  ;;  %6057 = vst.msk [vmem:[#allocation3 + $0x130] sm:$0xff] %vm333_vm0, %v5451_v49  ;;  %6058 = vst.msk [vmem:[#allocation3 + $0x148] sm:$0xff] %vm333_vm0, %v5452_v28 }
 0x42e   : > { %5420 = vst.msk [vmem:[#allocation3 + $0x170] sm:$0xff] %vm333_vm0, %v9434_v19  ;;  %v4750_v12 = vld [vmem:[#allocation2 + $0xc8] sm:$0xff] }
 0x42f   : > { %v6740_v4 = vpop.f32.mrf.mxu1  ;;  %4782 = vst.msk [vmem:[#allocation3 + $0x198] sm:$0xff] %vm333_vm0, %v4750_v12 }
 0x430   : > { %v6741_v61 = vadd.f32 %v6740_v4, %v6739_v54 }
 0x431   : > { %v6742_v37 = vpop.f32.mrf.mxu1  ;;  %4891 = vrot.lane.b32.xlu1 %v9406_v56, %s6968_s12  ;;  %4889 = vrot.lane.b32.xlu0 %v9398_v62, %s6968_s12 }
 0x432   : > { %v4382_v39 = vadd.f32 %v6741_v61, %v9118_v27 }
 0x433   : > { %v6743_v15 = vpop.f32.mrf.mxu1 }
 0x434   : > { %v4543_v0 = vadd.f32 %v4542_v13, %v4382_v39  ;;  %v6744_v8 = vadd.f32 %v6743_v15, %v6742_v37 }
 0x436   : > { %vm4621_vm6 = vcmp.gt.f32.partialorder %v4543_v0, 0.0  ;;  %v4653_v22 = vmul.f32 0.01, %v4543_v0  ;;  %v4385_v60 = vadd.f32 %v6744_v8, %v9118_v27 }
 0x438   : > { %v4685_v31 = vsel %vm4621_vm6, %v4543_v0, %v4653_v22  ;;  %v4546_v16 = vadd.f32 %v4545_v9, %v4385_v60  ;;  %v9477_v22 = vld [vmem:[%s10256_s5] ss:$0 sm:$0xff] }
 0x439   : > { %4717 = vst.msk [vmem:[#allocation2 + $0xd9] sm:$0xff] %vm333_vm0, %v4685_v31 }
 0x43a   : > { %vm4622_vm7 = vcmp.gt.f32.partialorder %v4546_v16, 0.0  ;;  %v4654_v57 = vmul.f32 0.01, %v4546_v16 }
 0x43c   : > { %v4686_v50 = vsel %vm4622_vm7, %v4546_v16, %v4654_v57 }
 0x43d   : > { %4718 = vst.msk [vmem:[#allocation2 + $0xe1] sm:$0xff] %vm333_vm0, %v4686_v50  ;;  %v5195_v50 = vld [vmem:[#allocation2 + $0xc0] sm:$0xff] }
 0x440   : > { %v5643_v28 = vld [vmem:[#allocation2 + $0xd8] sm:$0xff] }
 0x441   : > { %v9449_v49 = vld [vmem:[#allocation2 + $0xd9] sm:$0xff]  ;;  %5721 = vrot.lane.b32.xlu0 %v5643_v28, %s6969_s13 }
 0x442   : > { %v9452_v54 = vld [vmem:[#allocation2 + $0xd8] sm:$0xff]  ;;  %5421 = vst.msk [vmem:[#allocation3 + $0x188] sm:$0xff] %vm333_vm0, %v9449_v49 }
 0x443   : > { %4783 = vst.msk [vmem:[#allocation3 + $0x1b0] sm:$0xff] %vm333_vm0, %v9452_v54  ;;  %v5835_v0 = vld [vmem:[#allocation2 + $0xd9] sm:$0xff] }
 0x444   : > { %v5644_v27 = vld [vmem:[#allocation2 + $0xe0] sm:$0xff] }
 0x445   : > { %v6027_v12 = vld [vmem:[#allocation2 + $0xda] sm:$0xff]  ;;  %v6745_v13 = vpop.f32.mrf.mxu1  ;;  %5723 = vrot.lane.b32.xlu1 %v5644_v27, %s6969_s13  ;;  %5081 = vrot.lane.b32.xlu0 %v9408_v41, %s6969_s13  ;;  %v6028_v4 = vld [vmem:[#allocation2 + $0xe2] sm:$0xff] }
 0x446   : > { %6059 = vst.msk [vmem:[#allocation3 + $0x160] sm:$0xff] %vm333_vm0, %v6027_v12  ;;  %v9462_v61 = vld [vmem:[#allocation2 + $0xe1] sm:$0xff]  ;;  %6060 = vst.msk [vmem:[#allocation3 + $0x178] sm:$0xff] %vm333_vm0, %v6028_v4 }
 0x447   : > { %v9465_v37 = vld [vmem:[#allocation2 + $0xe0] sm:$0xff]  ;;  %5422 = vst.msk [vmem:[#allocation3 + $0x1a0] sm:$0xff] %vm333_vm0, %v9462_v61  ;;  %v6746_v39 = vpop.f32.mrf.mxu1 }
 0x448   : > { %10298 = vst [vmem:[#allocation4_spill] sm:$0xff] %v9465_v37  ;;  %4784 = vst.msk [vmem:[#allocation3 + $0x1c8] sm:$0xff] %vm333_vm0, %v9465_v37  ;;  %v6747_v15 = vadd.f32 %v6746_v39, %v6745_v13  ;;  %v5836_v57 = vld [vmem:[#allocation2 + $0xe1] sm:$0xff] }
 0x449   : > { %v6748_v8 = vpop.f32.mrf.mxu1  ;;  %5083 = vrot.lane.b32.xlu1 %v9410_v32, %s6969_s13  ;;  %5913 = vrot.lane.b32.xlu0 %v5835_v0, %s6970_s14  ;;  %v5196_v37 = vld [vmem:[#allocation2 + $0xc8] sm:$0xff] }
 0x44a   : > { %v4390_v60 = vadd.f32 %v9477_v22, %v6747_v15 }
 0x44b   : > { %v6749_v9 = vpop.f32.mrf.mxu1 }
 0x44c   : > { %v4551_v31 = vadd.f32 %v6881_v30, %v4390_v60  ;;  %v6750_v16 = vadd.f32 %v6749_v9, %v6748_v8 }
 0x44d   : > { %v6121_v28 = vld [vmem:[#allocation3 + $0x160] sm:$0xff]  ;;  %5915 = vrot.lane.b32.xlu1 %v5836_v57, %s6970_s14  ;;  %5273 = vrot.lane.b32.xlu0 %v5195_v50, %s6970_s14  ;;  %v6124_v27 = vld [vmem:[#allocation3 + $0x178] sm:$0xff] }
 0x44e   : > { %vm4623_vm8 = vcmp.gt.f32.partialorder %v4551_v31, 0.0  ;;  %v4655_v12 = vmul.f32 0.01, %v4551_v31  ;;  %v4393_v13 = vadd.f32 %v9477_v22, %v6750_v16  ;;  %v6196_v4 = vpack.c.bf16 %v6124_v27, %v6121_v28 }
 0x450   : > { %v4687_v39 = vsel %vm4623_vm8, %v4551_v31, %v4655_v12  ;;  %v4554_v0 = vadd.f32 %v6882_v46, %v4393_v13  ;;  %v6264_v15 = vsel %vm333_vm0, %v6196_v4, 0 }
 0x451   : > { %4719 = vst.msk [vmem:[#allocation2 + $0xf1] sm:$0xff] %vm333_vm0, %v4687_v39  ;;  %6806 = vmatpush3.bf16.xpose.msra.mxu0 %v6264_v15  ;;  %5275 = vrot.lane.b32.xlu1 %v5196_v37, %s6970_s14 }
 0x452   : > { %vm4624_vm9 = vcmp.gt.f32.partialorder %v4554_v0, 0.0  ;;  %v4656_v30 = vmul.f32 0.01, %v4554_v0  ;;  %5525 = vrot.lane.b32.xlu0 %v9408_v41, %s6968_s12  ;;  %v9504_v41 = vpop.f32.mrf.mxu0 }
 0x454   : > { %v4688_v8 = vsel %vm4624_vm9, %v4554_v0, %v4656_v30 }
 0x455   : > { %4720 = vst.msk [vmem:[#allocation2 + $0xf9] sm:$0xff] %vm333_vm0, %v4688_v8  ;;  %5527 = vrot.lane.b32.xlu1 %v9410_v32, %s6968_s12 }
 0x456   : > { %4885 = vrot.lane.b32.xlu0 %v9359_v10, %s6968_s12 }
 0x458   : > { %v9493_v46 = vld [vmem:[#allocation2 + $0xf1] sm:$0xff] }
 0x459   : > { %v9495_v60 = vld [vmem:[#allocation2 + $0xf0] sm:$0xff]  ;;  %4887 = vrot.lane.b32.xlu1 %v9371_v63, %s6968_s12  ;;  %5423 = vst.msk [vmem:[#allocation3 + $0x1b8] sm:$0xff] %vm333_vm0, %v9493_v46 }
 0x45a   : > { %4785 = vst.msk [vmem:[#allocation3 + $0x1e0] sm:$0xff] %vm333_vm0, %v9495_v60  ;;  %5717 = vrot.lane.b32.xlu0 %v5195_v50, %s6969_s13  ;;  %v4558_v50 = vpop.f32.mrf.mxu0 }
 0x45c   : > { %v9506_v32 = vld [vmem:[#allocation2 + $0xf2] sm:$0xff]  ;;  %v9508_v9 = vld [vmem:[#allocation2 + $0xfa] sm:$0xff]  ;;  %v6886_v13 = vpop.f32.mrf.mxu0 }
 0x45d   : > { %v9510_v31 = vld [vmem:[#allocation2 + $0xf9] sm:$0xff]  ;;  %5719 = vrot.lane.b32.xlu1 %v5196_v37, %s6969_s13  ;;  %6061 = vst.msk [vmem:[#allocation3 + $0x190] sm:$0xff] %vm333_vm0, %v9506_v32  ;;  %6062 = vst.msk [vmem:[#allocation3 + $0x1a8] sm:$0xff] %vm333_vm0, %v9508_v9 }
 0x45e   : > { %v6751_v16 = vpop.f32.mrf.mxu1  ;;  %v9517_v57 = vld [vmem:[#allocation2 + $0xf8] sm:$0xff]  ;;  %5424 = vst.msk [vmem:[#allocation3 + $0x1d0] sm:$0xff] %vm333_vm0, %v9510_v31  ;;  %5077 = vrot.lane.b32.xlu0 %v9373_v45, %s6969_s13  ;;  %v4561_v8 = vpop.f32.mrf.mxu0 }
 0x45f   : > { %4786 = vst.msk [vmem:[#allocation3 + $0x1f8] sm:$0xff] %vm333_vm0, %v9517_v57 }
 0x460   : > { %v6752_v28 = vpop.f32.mrf.mxu1 }
 0x461   : > { %v6753_v37 = vadd.f32 %v6752_v28, %v6751_v16  ;;  %5079 = vrot.lane.b32.xlu1 %v9375_v18, %s6969_s13 }
 0x462   : > { %v6754_v27 = vpop.f32.mrf.mxu1  ;;  %5909 = vrot.lane.b32.xlu0 %v9427_v53, %s6970_s14 }
 0x463   : > { %v4398_v12 = vadd.f32 %v9477_v22, %v6753_v37 }
 0x464   : > { %v6755_v4 = vpop.f32.mrf.mxu1 }
 0x465   : > { %v4559_v39 = vadd.f32 %v4558_v50, %v4398_v12  ;;  %v6756_v0 = vadd.f32 %v6755_v4, %v6754_v27  ;;  %5911 = vrot.lane.b32.xlu1 %v9434_v19, %s6970_s14 }
 0x466   : > { %5269 = vrot.lane.b32.xlu0 %v9400_v6, %s6970_s14 }
 0x467   : > { %vm4625_vm10 = vcmp.gt.f32.partialorder %v4559_v39, 0.0  ;;  %v4657_v15 = vmul.f32 0.01, %v4559_v39  ;;  %v4401_v30 = vadd.f32 %v9477_v22, %v6756_v0 }
 0x469   : > { %v4689_v16 = vsel %vm4625_vm10, %v4559_v39, %v4657_v15  ;;  %v4562_v28 = vadd.f32 %v4561_v8, %v4401_v30  ;;  %5271 = vrot.lane.b32.xlu1 %v9412_v35, %s6970_s14 }
 0x46a   : > { %4721 = vst.msk [vmem:[#allocation2 + $0x109] sm:$0xff] %vm333_vm0, %v4689_v16  ;;  %5521 = vrot.lane.b32.xlu0 %v9373_v45, %s6968_s12 }
 0x46b   : > { %vm4626_vm11 = vcmp.gt.f32.partialorder %v4562_v28, 0.0  ;;  %v4658_v53 = vmul.f32 0.01, %v4562_v28 }
 0x46d   : > { %v4690_v19 = vsel %vm4626_vm11, %v4562_v28, %v4658_v53  ;;  %5523 = vrot.lane.b32.xlu1 %v9375_v18, %s6968_s12 }
 0x46e   : > { %4722 = vst.msk [vmem:[#allocation2 + $0x111] sm:$0xff] %vm333_vm0, %v4690_v19  ;;  %4881 = vrot.lane.b32.xlu0 %v9317_v7, %s6968_s12 }
 0x471   : > { %v9545_v50 = vld [vmem:[#allocation2 + $0x109] sm:$0xff]  ;;  %4883 = vrot.lane.b32.xlu1 %v9327_v44, %s6968_s12 }
 0x472   : > { %v9547_v37 = vld [vmem:[#allocation2 + $0x108] sm:$0xff]  ;;  %5425 = vst.msk [vmem:[#allocation3 + $0x1e8] sm:$0xff] %vm333_vm0, %v9545_v50  ;;  %5713 = vrot.lane.b32.xlu0 %v9400_v6, %s6969_s13 }
 0x473   : > { %4787 = vst.msk [vmem:[#allocation3 + $0x210] sm:$0xff] %vm333_vm0, %v9547_v37 }
 0x475   : > { %v9557_v45 = vld [vmem:[#allocation2 + $0x10a] sm:$0xff]  ;;  %v9559_v18 = vld [vmem:[#allocation2 + $0x112] sm:$0xff]  ;;  %5715 = vrot.lane.b32.xlu1 %v9412_v35, %s6969_s13 }
 0x476   : > { %v9561_v27 = vld [vmem:[#allocation2 + $0x111] sm:$0xff]  ;;  %6063 = vst.msk [vmem:[#allocation3 + $0x1c0] sm:$0xff] %vm333_vm0, %v9557_v45  ;;  %6064 = vst.msk [vmem:[#allocation3 + $0x1d8] sm:$0xff] %vm333_vm0, %v9559_v18  ;;  %5073 = vrot.lane.b32.xlu0 %v9329_v21, %s6969_s13 }
 0x477   : > { %v6757_v12 = vpop.f32.mrf.mxu1  ;;  %v9569_v4 = vld [vmem:[#allocation2 + $0x110] sm:$0xff]  ;;  %5426 = vst.msk [vmem:[#allocation3 + $0x200] sm:$0xff] %vm333_vm0, %v9561_v27 }
 0x478   : > { %4788 = vst.msk [vmem:[#allocation3 + $0x228] sm:$0xff] %vm333_vm0, %v9569_v4 }
 0x479   : > { %v6758_v6 = vpop.f32.mrf.mxu1  ;;  %5075 = vrot.lane.b32.xlu1 %v9331_v33, %s6969_s13 }
 0x47a   : > { %v6759_v39 = vadd.f32 %v6758_v6, %v6757_v12  ;;  %5905 = vrot.lane.b32.xlu0 %v9398_v62, %s6970_s14 }
 0x47b   : > { %v6760_v35 = vpop.f32.mrf.mxu1 }
 0x47c   : > { %v4406_v0 = vadd.f32 %v9477_v22, %v6759_v39 }
 0x47d   : > { %v6761_v15 = vpop.f32.mrf.mxu1  ;;  %5907 = vrot.lane.b32.xlu1 %v9406_v56, %s6970_s14 }
 0x47e   : > { %v4567_v30 = vadd.f32 %v9504_v41, %v4406_v0  ;;  %v6762_v8 = vadd.f32 %v6761_v15, %v6760_v35  ;;  %5265 = vrot.lane.b32.xlu0 %v9361_v59, %s6970_s14 }
 0x480   : > { %vm4627_vm12 = vcmp.gt.f32.partialorder %v4567_v30, 0.0  ;;  %v4659_v16 = vmul.f32 0.01, %v4567_v30  ;;  %v4409_v28 = vadd.f32 %v9477_v22, %v6762_v8 }
 0x481   : > { %5267 = vrot.lane.b32.xlu1 %v9377_v52, %s6970_s14 }
 0x482   : > { %v4691_v53 = vsel %vm4627_vm12, %v4567_v30, %v4659_v16  ;;  %v4570_v19 = vadd.f32 %v6886_v13, %v4409_v28  ;;  %5517 = vrot.lane.b32.xlu0 %v9329_v21, %s6968_s12  ;;  %v9610_v21 = vpop.f32.mrf.mxu0 }
 0x483   : > { %4723 = vst.msk [vmem:[#allocation2 + $0x121] sm:$0xff] %vm333_vm0, %v4691_v53 }
 0x484   : > { %vm4628_vm13 = vcmp.gt.f32.partialorder %v4570_v19, 0.0  ;;  %v4660_v62 = vmul.f32 0.01, %v4570_v19 }
 0x485   : > { %5519 = vrot.lane.b32.xlu1 %v9331_v33, %s6968_s12 }
 0x486   : > { %v4692_v56 = vsel %vm4628_vm13, %v4570_v19, %v4660_v62  ;;  %4877 = vrot.lane.b32.xlu0 %v9276_v36, %s6968_s12 }
 0x487   : > { %4724 = vst.msk [vmem:[#allocation2 + $0x129] sm:$0xff] %vm333_vm0, %v4692_v56 }
 0x489   : > { %4879 = vrot.lane.b32.xlu1 %v9286_v42, %s6968_s12 }
 0x48a   : > { %v9598_v41 = vld [vmem:[#allocation2 + $0x121] sm:$0xff]  ;;  %5709 = vrot.lane.b32.xlu0 %v9361_v59, %s6969_s13  ;;  %v4574_v59 = vpop.f32.mrf.mxu0 }
 0x48b   : > { %v9600_v13 = vld [vmem:[#allocation2 + $0x120] sm:$0xff]  ;;  %5427 = vst.msk [vmem:[#allocation3 + $0x218] sm:$0xff] %vm333_vm0, %v9598_v41 }
 0x48c   : > { %4789 = vst.msk [vmem:[#allocation3 + $0x240] sm:$0xff] %vm333_vm0, %v9600_v13  ;;  %v6890_v8 = vpop.f32.mrf.mxu0 }
 0x48d   : > { %v6763_v39 = vpop.f32.mrf.mxu1  ;;  %5711 = vrot.lane.b32.xlu1 %v9377_v52, %s6969_s13 }
 0x48e   : > { %v9612_v33 = vld [vmem:[#allocation2 + $0x122] sm:$0xff]  ;;  %v9614_v12 = vld [vmem:[#allocation2 + $0x12a] sm:$0xff]  ;;  %5069 = vrot.lane.b32.xlu0 %v9288_v26, %s6969_s13  ;;  %v4577_v56 = vpop.f32.mrf.mxu0 }
 0x48f   : > { %v9616_v6 = vld [vmem:[#allocation2 + $0x129] sm:$0xff]  ;;  %6065 = vst.msk [vmem:[#allocation3 + $0x1f0] sm:$0xff] %vm333_vm0, %v9612_v33  ;;  %6066 = vst.msk [vmem:[#allocation3 + $0x208] sm:$0xff] %vm333_vm0, %v9614_v12  ;;  %v6764_v0 = vpop.f32.mrf.mxu1 }
 0x490   : > { %v9624_v35 = vld [vmem:[#allocation2 + $0x128] sm:$0xff]  ;;  %5428 = vst.msk [vmem:[#allocation3 + $0x230] sm:$0xff] %vm333_vm0, %v9616_v6  ;;  %v6765_v52 = vadd.f32 %v6764_v0, %v6763_v39 }
 0x491   : > { %4790 = vst.msk [vmem:[#allocation3 + $0x258] sm:$0xff] %vm333_vm0, %v9624_v35  ;;  %v6766_v15 = vpop.f32.mrf.mxu1  ;;  %5071 = vrot.lane.b32.xlu1 %v9290_v34, %s6969_s13 }
 0x492   : > { %v4414_v30 = vadd.f32 %v9477_v22, %v6765_v52  ;;  %5901 = vrot.lane.b32.xlu0 %v9359_v10, %s6970_s14 }
 0x493   : > { %v6767_v16 = vpop.f32.mrf.mxu1 }
 0x494   : > { %v4575_v28 = vadd.f32 %v4574_v59, %v4414_v30  ;;  %v6768_v53 = vadd.f32 %v6767_v16, %v6766_v15 }
 0x495   : > { %5903 = vrot.lane.b32.xlu1 %v9371_v63, %s6970_s14 }
 0x496   : > { %vm4629_vm14 = vcmp.gt.f32.partialorder %v4575_v28, 0.0  ;;  %v4661_v19 = vmul.f32 0.01, %v4575_v28  ;;  %v4417_v62 = vadd.f32 %v9477_v22, %v6768_v53  ;;  %5261 = vrot.lane.b32.xlu0 %v9319_v3, %s6970_s14 }
 0x498   : > { %v4693_v39 = vsel %vm4629_vm14, %v4575_v28, %v4661_v19  ;;  %v4578_v0 = vadd.f32 %v4577_v56, %v4417_v62 }
 0x499   : > { %4725 = vst.msk [vmem:[#allocation2 + $0x139] sm:$0xff] %vm333_vm0, %v4693_v39  ;;  %5263 = vrot.lane.b32.xlu1 %v9333_v48, %s6970_s14 }
 0x49a   : > { %vm4630_vm15 = vcmp.gt.f32.partialorder %v4578_v0, 0.0  ;;  %v4662_v10 = vmul.f32 0.01, %v4578_v0  ;;  %5513 = vrot.lane.b32.xlu0 %v9288_v26, %s6968_s12 }
 0x49c   : > { %v4694_v63 = vsel %vm4630_vm15, %v4578_v0, %v4662_v10 }
 0x49d   : > { %4726 = vst.msk [vmem:[#allocation2 + $0x141] sm:$0xff] %vm333_vm0, %v4694_v63  ;;  %5515 = vrot.lane.b32.xlu1 %v9290_v34, %s6968_s12 }
 0x49e   : > { %4873 = vrot.lane.b32.xlu0 %v9234_v47, %s6968_s12 }
 0x49f   : > { %v5532_v59 = vpop.permute.xlu1 %5531  ;;  %v5530_v52 = vpop.permute.xlu0 %5529 }
 0x4a0   : > { %5612 = vst.msk [vmem:[#allocation3 + $0x170] sm:$0xff] %vm679_vm3, %v5532_v59  ;;  %5611 = vst.msk [vmem:[#allocation3 + $0x158] sm:$0xff] %vm679_vm3, %v5530_v52  ;;  %v9654_v15 = vld [vmem:[#allocation2 + $0x139] sm:$0xff] }
 0x4a1   : > { %v9656_v30 = vld [vmem:[#allocation2 + $0x138] sm:$0xff]  ;;  %4875 = vrot.lane.b32.xlu1 %v9244_v23, %s6968_s12  ;;  %5429 = vst.msk [vmem:[#allocation3 + $0x248] sm:$0xff] %vm333_vm0, %v9654_v15 }
 0x4a2   : > { %4791 = vst.msk [vmem:[#allocation3 + $0x270] sm:$0xff] %vm333_vm0, %v9656_v30  ;;  %5705 = vrot.lane.b32.xlu0 %v9319_v3, %s6969_s13 }
 0x4a3   : > { %v4892_v26 = vpop.permute.xlu1 %4891  ;;  %v4890_v34 = vpop.permute.xlu0 %4889 }
 0x4a4   : > { %4972 = vst.msk [vmem:[#allocation3 + $0x168] sm:$0xff] %vm679_vm3, %v4892_v26  ;;  %4971 = vst.msk [vmem:[#allocation3 + $0x150] sm:$0xff] %vm679_vm3, %v4890_v34  ;;  %v9668_v16 = vld [vmem:[#allocation2 + $0x13a] sm:$0xff]  ;;  %v9670_v28 = vld [vmem:[#allocation2 + $0x142] sm:$0xff] }
 0x4a5   : > { %v9672_v53 = vld [vmem:[#allocation2 + $0x141] sm:$0xff]  ;;  %5707 = vrot.lane.b32.xlu1 %v9333_v48, %s6969_s13  ;;  %6067 = vst.msk [vmem:[#allocation3 + $0x220] sm:$0xff] %vm333_vm0, %v9668_v16  ;;  %6068 = vst.msk [vmem:[#allocation3 + $0x238] sm:$0xff] %vm333_vm0, %v9670_v28 }
 0x4a6   : > { %v6769_v19 = vpop.f32.mrf.mxu1  ;;  %v9680_v3 = vld [vmem:[#allocation2 + $0x140] sm:$0xff]  ;;  %5430 = vst.msk [vmem:[#allocation3 + $0x260] sm:$0xff] %vm333_vm0, %v9672_v53  ;;  %5065 = vrot.lane.b32.xlu0 %v9246_v20, %s6969_s13 }
 0x4a7   : > { %4792 = vst.msk [vmem:[#allocation3 + $0x288] sm:$0xff] %vm333_vm0, %v9680_v3 }
 0x4a8   : > { %v6770_v62 = vpop.f32.mrf.mxu1 }
 0x4a9   : > { %v6771_v56 = vadd.f32 %v6770_v62, %v6769_v19  ;;  %5067 = vrot.lane.b32.xlu1 %v9248_v14, %s6969_s13 }
 0x4aa   : > { %v6772_v48 = vpop.f32.mrf.mxu1  ;;  %5897 = vrot.lane.b32.xlu0 %v9317_v7, %s6970_s14 }
 0x4ab   : > { %v4422_v39 = vadd.f32 %v9477_v22, %v6771_v56  ;;  %v9718_v56 = vpop.f32.mrf.mxu0 }
 0x4ac   : > { %v6773_v0 = vpop.f32.mrf.mxu1 }
 0x4ad   : > { %v4583_v10 = vadd.f32 %v9610_v21, %v4422_v39  ;;  %v6774_v63 = vadd.f32 %v6773_v0, %v6772_v48  ;;  %5899 = vrot.lane.b32.xlu1 %v9327_v44, %s6970_s14 }
 0x4ae   : > { %5257 = vrot.lane.b32.xlu0 %v9278_v2, %s6970_s14 }
 0x4af   : > { %vm4631_vm1 = vcmp.gt.f32.partialorder %v4583_v10, 0.0  ;;  %v4663_v59 = vmul.f32 0.01, %v4583_v10  ;;  %v4425_v52 = vadd.f32 %v9477_v22, %v6774_v63 }
 0x4b1   : > { %v4695_v26 = vsel %vm4631_vm1, %v4583_v10, %v4663_v59  ;;  %v4586_v34 = vadd.f32 %v6890_v8, %v4425_v52  ;;  %5259 = vrot.lane.b32.xlu1 %v9293_v58, %s6970_s14  ;;  %v4590_v59 = vpop.f32.mrf.mxu0 }
 0x4b2   : > { %4727 = vst.msk [vmem:[#allocation2 + $0x151] sm:$0xff] %vm333_vm0, %v4695_v26  ;;  %5509 = vrot.lane.b32.xlu0 %v9246_v20, %s6968_s12 }
 0x4b3   : > { %vm4632_vm2 = vcmp.gt.f32.partialorder %v4586_v34, 0.0  ;;  %v4664_v7 = vmul.f32 0.01, %v4586_v34  ;;  %v5722_v44 = vpop.permute.xlu0 %5721 }
 0x4b4   : > { %5803 = vst.msk [vmem:[#allocation3 + $0x158] sm:$0xff] %vm872_vm4, %v5722_v44  ;;  %v9752_v44 = vpop.f32.mrf.mxu0 }
 0x4b5   : > { %v4696_v21 = vsel %vm4632_vm2, %v4586_v34, %v4664_v7  ;;  %5511 = vrot.lane.b32.xlu1 %v9248_v14, %s6968_s12 }
 0x4b6   : > { %4728 = vst.msk [vmem:[#allocation2 + $0x159] sm:$0xff] %vm333_vm0, %v4696_v21  ;;  %4869 = vrot.lane.b32.xlu0 %v9194_v11, %s6968_s12 }
 0x4b7   : > { %v5724_v8 = vpop.permute.xlu1 %5723  ;;  %v5082_v19 = vpop.permute.xlu0 %5081 }
 0x4b8   : > { %5804 = vst.msk [vmem:[#allocation3 + $0x170] sm:$0xff] %vm872_vm4, %v5724_v8  ;;  %5163 = vst.msk [vmem:[#allocation3 + $0x150] sm:$0xff] %vm872_vm4, %v5082_v19 }
 0x4b9   : > { %v9712_v62 = vld [vmem:[#allocation2 + $0x151] sm:$0xff]  ;;  %4871 = vrot.lane.b32.xlu1 %v9204_v38, %s6968_s12 }
 0x4ba   : > { %v9714_v20 = vld [vmem:[#allocation2 + $0x150] sm:$0xff]  ;;  %5431 = vst.msk [vmem:[#allocation3 + $0x278] sm:$0xff] %vm333_vm0, %v9712_v62  ;;  %5701 = vrot.lane.b32.xlu0 %v9278_v2, %s6969_s13 }
 0x4bb   : > { %4793 = vst.msk [vmem:[#allocation3 + $0x2a0] sm:$0xff] %vm333_vm0, %v9714_v20  ;;  %v5084_v14 = vpop.permute.xlu1 %5083  ;;  %v5914_v48 = vpop.permute.xlu0 %5913 }
 0x4bc   : > { %5164 = vst.msk [vmem:[#allocation3 + $0x168] sm:$0xff] %vm872_vm4, %v5084_v14 }
 0x4bd   : > { %5995 = vst.msk [vmem:[#allocation3 + $0x158] sm:$0xff] %vm1065_vm5, %v5914_v48  ;;  %v9728_v39 = vld [vmem:[#allocation2 + $0x152] sm:$0xff]  ;;  %v9730_v0 = vld [vmem:[#allocation2 + $0x15a] sm:$0xff]  ;;  %v6775_v63 = vpop.f32.mrf.mxu1  ;;  %5703 = vrot.lane.b32.xlu1 %v9293_v58, %s6969_s13 }
 0x4be   : > { %v9732_v10 = vld [vmem:[#allocation2 + $0x159] sm:$0xff]  ;;  %6069 = vst.msk [vmem:[#allocation3 + $0x250] sm:$0xff] %vm333_vm0, %v9728_v39  ;;  %6070 = vst.msk [vmem:[#allocation3 + $0x268] sm:$0xff] %vm333_vm0, %v9730_v0  ;;  %5061 = vrot.lane.b32.xlu0 %v9206_v17, %s6969_s13 }
 0x4bf   : > { %v9740_v2 = vld [vmem:[#allocation2 + $0x158] sm:$0xff]  ;;  %5432 = vst.msk [vmem:[#allocation3 + $0x290] sm:$0xff] %vm333_vm0, %v9732_v10  ;;  %v6776_v52 = vpop.f32.mrf.mxu1  ;;  %v5916_v58 = vpop.permute.xlu1 %5915 }
 0x4c0   : > { %4794 = vst.msk [vmem:[#allocation3 + $0x2b8] sm:$0xff] %vm333_vm0, %v9740_v2  ;;  %v6777_v26 = vadd.f32 %v6776_v52, %v6775_v63  ;;  %v5274_v34 = vpop.permute.xlu0 %5273  ;;  %v4593_v52 = vpop.f32.mrf.mxu0 }
 0x4c1   : > { %5996 = vst.msk [vmem:[#allocation3 + $0x170] sm:$0xff] %vm1065_vm5, %v5916_v58  ;;  %5355 = vst.msk [vmem:[#allocation3 + $0x150] sm:$0xff] %vm1065_vm5, %v5274_v34  ;;  %v6778_v7 = vpop.f32.mrf.mxu1  ;;  %5063 = vrot.lane.b32.xlu1 %v9208_v43, %s6969_s13 }
 0x4c2   : > { %5893 = vrot.lane.b32.xlu0 %v9276_v36, %s6970_s14  ;;  %v4430_v21 = vadd.f32 %v9477_v22, %v6777_v26 }
 0x4c3   : > { %v6779_v8 = vpop.f32.mrf.mxu1  ;;  %v5276_v19 = vpop.permute.xlu1 %5275 }
 0x4c4   : > { %v6780_v14 = vadd.f32 %v6779_v8, %v6778_v7  ;;  %v4591_v48 = vadd.f32 %v4590_v59, %v4430_v21  ;;  %5356 = vst.msk [vmem:[#allocation3 + $0x168] sm:$0xff] %vm1065_vm5, %v5276_v19  ;;  %v5526_v63 = vpop.permute.xlu0 %5525  ;;  %v6120_v34 = vld [vmem:[#allocation3 + $0x158] sm:$0xff] }
 0x4c5   : > { %5609 = vst.msk [vmem:[#allocation3 + $0x128] sm:$0xff] %vm679_vm3, %v5526_v63  ;;  %5895 = vrot.lane.b32.xlu1 %v9286_v42, %s6970_s14 }
 0x4c6   : > { %vm4633_vm6 = vcmp.gt.f32.partialorder %v4591_v48, 0.0  ;;  %v4665_v58 = vmul.f32 0.01, %v4591_v48  ;;  %5253 = vrot.lane.b32.xlu0 %v9236_v40, %s6970_s14  ;;  %v4433_v36 = vadd.f32 %v9477_v22, %v6780_v14 }
 0x4c7   : > { %v5528_v26 = vpop.permute.xlu1 %5527 }
 0x4c8   : > { %v6123_v7 = vld [vmem:[#allocation3 + $0x170] sm:$0xff]  ;;  %v4697_v59 = vsel %vm4633_vm6, %v4591_v48, %v4665_v58  ;;  %v4594_v21 = vadd.f32 %v4593_v52, %v4433_v36  ;;  %5610 = vst.msk [vmem:[#allocation3 + $0x140] sm:$0xff] %vm679_vm3, %v5528_v26  ;;  %v4886_v8 = vpop.permute.xlu0 %4885 }
 0x4c9   : > { %v6195_v19 = vpack.c.bf16 %v6123_v7, %v6120_v34  ;;  %4729 = vst.msk [vmem:[#allocation2 + $0x169] sm:$0xff] %vm333_vm0, %v4697_v59  ;;  %5255 = vrot.lane.b32.xlu1 %v9250_v55, %s6970_s14  ;;  %v6119_v48 = vld [vmem:[#allocation3 + $0x150] sm:$0xff] }
 0x4ca   : > { %4969 = vst.msk [vmem:[#allocation3 + $0x120] sm:$0xff] %vm679_vm3, %v4886_v8  ;;  %vm4634_vm7 = vcmp.gt.f32.partialorder %v4594_v21, 0.0  ;;  %v4666_v42 = vmul.f32 0.01, %v4594_v21  ;;  %5505 = vrot.lane.b32.xlu0 %v9206_v17, %s6968_s12 }
 0x4cb   : > { %6290 = vmatprep.subr.bf16.mxu1 %v6195_v19  ;;  %v4888_v14 = vpop.permute.xlu1 %4887  ;;  %v6122_v63 = vld [vmem:[#allocation3 + $0x168] sm:$0xff] }
 0x4cc   : > { %v4698_v52 = vsel %vm4634_vm7, %v4594_v21, %v4666_v42  ;;  %4970 = vst.msk [vmem:[#allocation3 + $0x138] sm:$0xff] %vm679_vm3, %v4888_v14  ;;  %v5718_v58 = vpop.permute.xlu0 %5717  ;;  %v6194_v36 = vpack.c.bf16 %v6122_v63, %v6119_v48  ;;  %v4991_v19 = vld [vmem:[#allocation2 + $0x1a] sm:$0xff]  ;;  %v4992_v63 = vld [vmem:[#allocation2 + $0x22] sm:$0xff] }
 0x4cd   : > { %4730 = vst.msk [vmem:[#allocation2 + $0x171] sm:$0xff] %vm333_vm0, %v4698_v52  ;;  %5507 = vrot.lane.b32.xlu1 %v9208_v43, %s6968_s12  ;;  %v4733_v52 = vld [vmem:[#allocation2] sm:$0xff] }
 0x4ce   : > { %5801 = vst.msk [vmem:[#allocation3 + $0x128] sm:$0xff] %vm872_vm4, %v5718_v58  ;;  %4865 = vrot.lane.b32.xlu0 %v9154_v29, %s6968_s12  ;;  %6291 = vmatpush1.bf16.xpose.msra.mxu1 %v6194_v36 }
 0x4cf   : > { %v5720_v17 = vpop.permute.xlu1 %5719  ;;  %4765 = vst.msk [vmem:[#allocation3] sm:$0xff] %vm333_vm0, %v4733_v52 }
 0x4d0   : > { %5802 = vst.msk [vmem:[#allocation3 + $0x140] sm:$0xff] %vm872_vm4, %v5720_v17  ;;  %v5078_v26 = vpop.permute.xlu0 %5077  ;;  %v9779_v34 = vld [vmem:[#allocation2 + $0x169] sm:$0xff] }
 0x4d1   : > { %v9781_v7 = vld [vmem:[#allocation2 + $0x168] sm:$0xff]  ;;  %5161 = vst.msk [vmem:[#allocation3 + $0x120] sm:$0xff] %vm872_vm4, %v5078_v26  ;;  %4867 = vrot.lane.b32.xlu1 %v9166_v51, %s6968_s12 }
 0x4d2   : > { %4795 = vst.msk [vmem:[#allocation3 + $0x2d0] sm:$0xff] %vm333_vm0, %v9781_v7  ;;  %5433 = vst.msk [vmem:[#allocation3 + $0x2a8] sm:$0xff] %vm333_vm0, %v9779_v34  ;;  %5697 = vrot.lane.b32.xlu0 %v9236_v40, %s6969_s13  ;;  %v4734_v17 = vld [vmem:[#allocation2 + $0x8] sm:$0xff] }
 0x4d3   : > { %v5080_v29 = vpop.permute.xlu1 %5079  ;;  %4766 = vst.msk [vmem:[#allocation3 + $0x18] sm:$0xff] %vm333_vm0, %v4734_v17 }
 0x4d4   : > { %5162 = vst.msk [vmem:[#allocation3 + $0x138] sm:$0xff] %vm872_vm4, %v5080_v29  ;;  %v5910_v43 = vpop.permute.xlu0 %5909  ;;  %v9793_v59 = vld [vmem:[#allocation2 + $0x16a] sm:$0xff]  ;;  %v9795_v21 = vld [vmem:[#allocation2 + $0x172] sm:$0xff] }
 0x4d5   : > { %v9797_v8 = vld [vmem:[#allocation2 + $0x171] sm:$0xff]  ;;  %5993 = vst.msk [vmem:[#allocation3 + $0x128] sm:$0xff] %vm1065_vm5, %v5910_v43  ;;  %v6781_v51 = vpop.f32.mrf.mxu1  ;;  %5699 = vrot.lane.b32.xlu1 %v9250_v55, %s6969_s13 }
 0x4d6   : > { %6071 = vst.msk [vmem:[#allocation3 + $0x280] sm:$0xff] %vm333_vm0, %v9793_v59  ;;  %6072 = vst.msk [vmem:[#allocation3 + $0x298] sm:$0xff] %vm333_vm0, %v9795_v21  ;;  %v9806_v40 = vld [vmem:[#allocation2 + $0x170] sm:$0xff]  ;;  %5057 = vrot.lane.b32.xlu0 %v4991_v19, %s6969_s13 }
 0x4d7   : > { %5434 = vst.msk [vmem:[#allocation3 + $0x2c0] sm:$0xff] %vm333_vm0, %v9797_v8  ;;  %4796 = vst.msk [vmem:[#allocation3 + $0x2e8] sm:$0xff] %vm333_vm0, %v9806_v40  ;;  %v6782_v42 = vpop.f32.mrf.mxu1  ;;  %v5912_v14 = vpop.permute.xlu1 %5911 }
 0x4d8   : > { %v6783_v55 = vadd.f32 %v6782_v42, %v6781_v51  ;;  %5994 = vst.msk [vmem:[#allocation3 + $0x140] sm:$0xff] %vm1065_vm5, %v5912_v14  ;;  %v5270_v48 = vpop.permute.xlu0 %5269 }
 0x4d9   : > { %5353 = vst.msk [vmem:[#allocation3 + $0x120] sm:$0xff] %vm1065_vm5, %v5270_v48  ;;  %v6784_v58 = vpop.f32.mrf.mxu1  ;;  %5059 = vrot.lane.b32.xlu1 %v4992_v63, %s6969_s13 }
 0x4da   : > { %v4438_v36 = vadd.f32 %v9477_v22, %v6783_v55  ;;  %5889 = vrot.lane.b32.xlu0 %v9234_v47, %s6970_s14 }
 0x4db   : > { %v6785_v26 = vpop.f32.mrf.mxu1  ;;  %v5272_v29 = vpop.permute.xlu1 %5271 }
 0x4dc   : > { %v4599_v43 = vadd.f32 %v9718_v56, %v4438_v36  ;;  %v6786_v51 = vadd.f32 %v6785_v26, %v6784_v58  ;;  %5354 = vst.msk [vmem:[#allocation3 + $0x138] sm:$0xff] %vm1065_vm5, %v5272_v29  ;;  %v5522_v42 = vpop.permute.xlu0 %5521  ;;  %v6114_v48 = vld [vmem:[#allocation3 + $0x128] sm:$0xff]  ;;  %v4797_v26 = vld [vmem:[#allocation2 + $0x1] sm:$0xff] }
 0x4dd   : > { %5607 = vst.msk [vmem:[#allocation3 + $0xf8] sm:$0xff] %vm679_vm3, %v5522_v42  ;;  %5891 = vrot.lane.b32.xlu1 %v9244_v23, %s6970_s14 }
 0x4de   : > { %vm4635_vm8 = vcmp.gt.f32.partialorder %v4599_v43, 0.0  ;;  %v4667_v14 = vmul.f32 0.01, %v4599_v43  ;;  %v4441_v47 = vadd.f32 %v9477_v22, %v6786_v51  ;;  %5249 = vrot.lane.b32.xlu0 %v9196_v5, %s6970_s14 }
 0x4df   : > { %v5524_v55 = vpop.permute.xlu1 %5523  ;;  %v6117_v52 = vld [vmem:[#allocation3 + $0x140] sm:$0xff] }
 0x4e0   : > { %v4699_v56 = vsel %vm4635_vm8, %v4599_v43, %v4667_v14  ;;  %v4602_v58 = vadd.f32 %v9752_v44, %v4441_v47  ;;  %5608 = vst.msk [vmem:[#allocation3 + $0x110] sm:$0xff] %vm679_vm3, %v5524_v55  ;;  %v4882_v36 = vpop.permute.xlu0 %4881  ;;  %v6192_v17 = vpack.c.bf16 %v6117_v52, %v6114_v48  ;;  %v6113_v29 = vld [vmem:[#allocation3 + $0x120] sm:$0xff]  ;;  %v4989_v48 = vld [vmem:[#allocation2 + $0x2] sm:$0xff] }
 0x4e1   : > { %4731 = vst.msk [vmem:[#allocation2 + $0x181] sm:$0xff] %vm333_vm0, %v4699_v56  ;;  %5251 = vrot.lane.b32.xlu1 %v9210_v24, %s6970_s14 }
 0x4e2   : > { %4967 = vst.msk [vmem:[#allocation3 + $0xf0] sm:$0xff] %vm679_vm3, %v4882_v36  ;;  %vm4636_vm9 = vcmp.gt.f32.partialorder %v4602_v58, 0.0  ;;  %v4668_v23 = vmul.f32 0.01, %v4602_v58  ;;  %5501 = vrot.lane.b32.xlu0 %v4991_v19, %s6968_s12  ;;  %6292 = vmatprep.subr.bf16.mxu1 %v6192_v17  ;;  %v4798_v19 = vld [vmem:[#allocation2 + $0x9] sm:$0xff] }
 0x4e3   : > { %v4884_v22 = vpop.permute.xlu1 %4883  ;;  %v6116_v44 = vld [vmem:[#allocation3 + $0x138] sm:$0xff] }
 0x4e4   : > { %v4700_v43 = vsel %vm4636_vm9, %v4602_v58, %v4668_v23  ;;  %4968 = vst.msk [vmem:[#allocation3 + $0x108] sm:$0xff] %vm679_vm3, %v4884_v22  ;;  %v5714_v51 = vpop.permute.xlu0 %5713  ;;  %v6191_v42 = vpack.c.bf16 %v6116_v44, %v6113_v29  ;;  %v6115_v22 = vld [vmem:[#allocation3 + $0x130] sm:$0xff]  ;;  %v6157_v44 = vld [vmem:[#allocation3 + $0x280] sm:$0xff] }
 0x4e5   : > { %4732 = vst.msk [vmem:[#allocation2 + $0x189] sm:$0xff] %vm333_vm0, %v4700_v43  ;;  %5503 = vrot.lane.b32.xlu1 %v4992_v63, %s6968_s12 }
 0x4e6   : > { %5799 = vst.msk [vmem:[#allocation3 + $0xf8] sm:$0xff] %vm872_vm4, %v5714_v51  ;;  %4861 = vrot.lane.b32.xlu0 %v4797_v26, %s6968_s12  ;;  %6293 = vmatpush1.bf16.xpose.msra.mxu1 %v6191_v42  ;;  %v6118_v26 = vld [vmem:[#allocation3 + $0x148] sm:$0xff] }
 0x4e7   : > { %v5716_v14 = vpop.permute.xlu1 %5715  ;;  %v6193_v29 = vpack.c.bf16 %v6118_v26, %v6115_v22  ;;  %v6112_v22 = vld [vmem:[#allocation3 + $0x118] sm:$0xff] }
 0x4e8   : > { %5800 = vst.msk [vmem:[#allocation3 + $0x110] sm:$0xff] %vm872_vm4, %v5716_v14  ;;  %v5074_v47 = vpop.permute.xlu0 %5073  ;;  %v9842_v55 = vld [vmem:[#allocation2 + $0x181] sm:$0xff] }
 0x4e9   : > { %5159 = vst.msk [vmem:[#allocation3 + $0xf0] sm:$0xff] %vm872_vm4, %v5074_v47  ;;  %4863 = vrot.lane.b32.xlu1 %v4798_v19, %s6968_s12  ;;  %v6160_v19 = vld [vmem:[#allocation3 + $0x298] sm:$0xff]  ;;  %v6261_v47 = vsel %vm333_vm0, %v6193_v29, 0 }
 0x4ea   : > { %5435 = vst.msk [vmem:[#allocation3 + $0x2d8] sm:$0xff] %vm333_vm0, %v9842_v55  ;;  %5693 = vrot.lane.b32.xlu0 %v9196_v5, %s6969_s13  ;;  %v4990_v5 = vld [vmem:[#allocation2 + $0xa] sm:$0xff] }
 0x4eb   : > { %v5076_v63 = vpop.permute.xlu1 %5075 }
 0x4ec   : > { %5160 = vst.msk [vmem:[#allocation3 + $0x108] sm:$0xff] %vm872_vm4, %v5076_v63  ;;  %v5906_v52 = vpop.permute.xlu0 %5905  ;;  %v6041_v56 = vld [vmem:[#allocation2 + $0x182] sm:$0xff]  ;;  %v6042_v58 = vld [vmem:[#allocation2 + $0x18a] sm:$0xff]  ;;  %v6214_v63 = vpack.c.bf16 %v6160_v19, %v6157_v44  ;;  %v5659_v19 = vld [vmem:[#allocation2 + $0x198] sm:$0xff] }
 0x4ed   : > { %5991 = vst.msk [vmem:[#allocation3 + $0xf8] sm:$0xff] %vm1065_vm5, %v5906_v52  ;;  %5695 = vrot.lane.b32.xlu1 %v9210_v24, %s6969_s13  ;;  %v9856_v36 = vld [vmem:[#allocation2 + $0x189] sm:$0xff] }
 0x4ee   : > { %6073 = vst.msk [vmem:[#allocation3 + $0x2b0] sm:$0xff] %vm333_vm0, %v6041_v56  ;;  %6074 = vst.msk [vmem:[#allocation3 + $0x2c8] sm:$0xff] %vm333_vm0, %v6042_v58  ;;  %5053 = vrot.lane.b32.xlu0 %v4989_v48, %s6969_s13 }
 0x4ef   : > { %5436 = vst.msk [vmem:[#allocation3 + $0x2f0] sm:$0xff] %vm333_vm0, %v9856_v36  ;;  %v5908_v17 = vpop.permute.xlu1 %5907 }
 0x4f0   : > { %5992 = vst.msk [vmem:[#allocation3 + $0x110] sm:$0xff] %vm1065_vm5, %v5908_v17  ;;  %v5266_v23 = vpop.permute.xlu0 %5265 }
 0x4f1   : > { %5351 = vst.msk [vmem:[#allocation3 + $0xf0] sm:$0xff] %vm1065_vm5, %v5266_v23  ;;  %5055 = vrot.lane.b32.xlu1 %v4990_v5, %s6969_s13  ;;  %v6109_v23 = vld [vmem:[#allocation3 + $0x100] sm:$0xff] }
 0x4f2   : > { %5885 = vrot.lane.b32.xlu0 %v9194_v11, %s6970_s14 }
 0x4f3   : > { %v5268_v24 = vpop.permute.xlu1 %5267 }
 0x4f4   : > { %5352 = vst.msk [vmem:[#allocation3 + $0x108] sm:$0xff] %vm1065_vm5, %v5268_v24  ;;  %v5518_v43 = vpop.permute.xlu0 %5517  ;;  %v6108_v48 = vld [vmem:[#allocation3 + $0xf8] sm:$0xff]  ;;  %v6190_v24 = vpack.c.bf16 %v6112_v22, %v6109_v23 }
 0x4f5   : > { %v6163_v51 = vld [vmem:[#allocation3 + $0x2b0] sm:$0xff]  ;;  %v6166_v42 = vld [vmem:[#allocation3 + $0x2c8] sm:$0xff]  ;;  %5605 = vst.msk [vmem:[#allocation3 + $0xc8] sm:$0xff] %vm679_vm3, %v5518_v43  ;;  %5887 = vrot.lane.b32.xlu1 %v9204_v38, %s6970_s14 }
 0x4f6   : > { %v6217_v14 = vpack.c.bf16 %v6166_v42, %v6163_v51  ;;  %5245 = vrot.lane.b32.xlu0 %v9156_v1, %s6970_s14  ;;  %v6151_v43 = vld [vmem:[#allocation3 + $0x250] sm:$0xff]  ;;  %v6154_v51 = vld [vmem:[#allocation3 + $0x268] sm:$0xff] }
 0x4f7   : > { %v5520_v11 = vpop.permute.xlu1 %5519  ;;  %v6111_v52 = vld [vmem:[#allocation3 + $0x110] sm:$0xff]  ;;  %v6211_v42 = vpack.c.bf16 %v6154_v51, %v6151_v43 }
 0x4f8   : > { %6896 = vmatprep.subr.msk.bf16.mxu0 %vm333_vm0, %v6217_v14  ;;  %5606 = vst.msk [vmem:[#allocation3 + $0xe0] sm:$0xff] %vm679_vm3, %v5520_v11  ;;  %v4878_v5 = vpop.permute.xlu0 %4877  ;;  %v6189_v17 = vpack.c.bf16 %v6111_v52, %v6108_v48  ;;  %v6107_v38 = vld [vmem:[#allocation3 + $0xf0] sm:$0xff] }
 0x4f9   : > { %6808 = vmatpush3.bf16.xpose.msra.mxu0 %v6261_v47  ;;  %4965 = vst.msk [vmem:[#allocation3 + $0xc0] sm:$0xff] %vm679_vm3, %v4878_v5  ;;  %5247 = vrot.lane.b32.xlu1 %v9170_v25, %s6970_s14  ;;  %v6103_v11 = vld [vmem:[#allocation3 + $0xd0] sm:$0xff]  ;;  %v6106_v47 = vld [vmem:[#allocation3 + $0xe8] sm:$0xff]  ;;  %v6145_v5 = vld [vmem:[#allocation3 + $0x220] sm:$0xff] }
 0x4fa   : > { %6897 = vmatprep.subr.msk.bf16.mxu0 %vm333_vm0, %v6214_v63  ;;  %5561 = vrot.lane.b32.xlu0 %v6041_v56, %s6968_s12  ;;  %v6258_v56 = vsel %vm333_vm0, %v6190_v24, 0  ;;  %v6187_v48 = vpack.c.bf16 %v6106_v47, %v6103_v11  ;;  %v6097_v24 = vld [vmem:[#allocation3 + $0xa0] sm:$0xff] }
 0x4fb   : > { %6294 = vmatprep.subr.bf16.mxu1 %v6189_v17  ;;  %v4880_v1 = vpop.permute.xlu1 %4879  ;;  %v6110_v26 = vld [vmem:[#allocation3 + $0x108] sm:$0xff]  ;;  %v6148_v17 = vld [vmem:[#allocation3 + $0x238] sm:$0xff] }
 0x4fc   : > { %4966 = vst.msk [vmem:[#allocation3 + $0xd8] sm:$0xff] %vm679_vm3, %v4880_v1  ;;  %v5710_v29 = vpop.permute.xlu0 %5709  ;;  %v6188_v44 = vpack.c.bf16 %v6110_v26, %v6107_v38  ;;  %v6255_v22 = vsel %vm333_vm0, %v6187_v48, 0  ;;  %v6208_v1 = vpack.c.bf16 %v6148_v17, %v6145_v5  ;;  %v5851_v38 = vld [vmem:[#allocation2 + $0x199] sm:$0xff] }
 0x4fd   : > { %5797 = vst.msk [vmem:[#allocation3 + $0xc8] sm:$0xff] %vm872_vm4, %v5710_v29  ;;  %5563 = vrot.lane.b32.xlu1 %v6042_v58, %s6968_s12  ;;  %v5660_v58 = vld [vmem:[#allocation2 + $0x1a0] sm:$0xff]  ;;  %v6100_v29 = vld [vmem:[#allocation3 + $0xb8] sm:$0xff] }
 0x4fe   : > { %4921 = vrot.lane.b32.xlu0 %v9779_v34, %s6968_s12  ;;  %6295 = vmatpush1.bf16.xpose.msra.mxu1 %v6188_v44  ;;  %v5852_v44 = vld [vmem:[#allocation2 + $0x1a1] sm:$0xff]  ;;  %v6184_v51 = vpack.c.bf16 %v6100_v29, %v6097_v24 }
 0x4ff   : > { %v5712_v25 = vpop.permute.xlu1 %5711  ;;  %v6091_v17 = vld [vmem:[#allocation3 + $0x70] sm:$0xff] }
 0x500   : > { %5798 = vst.msk [vmem:[#allocation3 + $0xe0] sm:$0xff] %vm872_vm4, %v5712_v25  ;;  %v5070_v14 = vpop.permute.xlu0 %5069  ;;  %v6252_v11 = vsel %vm333_vm0, %v6184_v51, 0 }
 0x501   : > { %6810 = vmatpush3.bf16.xpose.msra.mxu0 %v6258_v56  ;;  %5157 = vst.msk [vmem:[#allocation3 + $0xc0] sm:$0xff] %vm872_vm4, %v5070_v14  ;;  %4923 = vrot.lane.b32.xlu1 %v9797_v8, %s6968_s12  ;;  %v6139_v56 = vld [vmem:[#allocation3 + $0x1f0] sm:$0xff] }
 0x502   : > { %6898 = vmatprep.subr.msk.bf16.mxu0 %vm333_vm0, %v6211_v42  ;;  %5753 = vrot.lane.b32.xlu0 %v5659_v19, %s6969_s13  ;;  %v6142_v42 = vld [vmem:[#allocation3 + $0x208] sm:$0xff]  ;;  %v5211_v19 = vld [vmem:[#allocation2 + $0x180] sm:$0xff] }
 0x503   : > { %v5072_v63 = vpop.permute.xlu1 %5071  ;;  %v6205_v47 = vpack.c.bf16 %v6142_v42, %v6139_v56  ;;  %v6085_v42 = vld [vmem:[#allocation3 + $0x40] sm:$0xff] }
 0x504   : > { %5158 = vst.msk [vmem:[#allocation3 + $0xd8] sm:$0xff] %vm872_vm4, %v5072_v63  ;;  %v5902_v52 = vpop.permute.xlu0 %5901 }
 0x505   : > { %5989 = vst.msk [vmem:[#allocation3 + $0xc8] sm:$0xff] %vm1065_vm5, %v5902_v52  ;;  %5755 = vrot.lane.b32.xlu1 %v5660_v58, %s6969_s13  ;;  %v5212_v52 = vld [vmem:[#allocation2 + $0x188] sm:$0xff] }
 0x506   : > { %5113 = vrot.lane.b32.xlu0 %v9793_v59, %s6969_s13 }
 0x507   : > { %v5904_v23 = vpop.permute.xlu1 %5903 }
 0x508   : > { %5990 = vst.msk [vmem:[#allocation3 + $0xe0] sm:$0xff] %vm1065_vm5, %v5904_v23  ;;  %v5262_v26 = vpop.permute.xlu0 %5261  ;;  %v6094_v23 = vld [vmem:[#allocation3 + $0x88] sm:$0xff] }
 0x509   : > { %6812 = vmatpush3.bf16.xpose.msra.mxu0 %v6255_v22  ;;  %5349 = vst.msk [vmem:[#allocation3 + $0xc0] sm:$0xff] %vm1065_vm5, %v5262_v26  ;;  %5115 = vrot.lane.b32.xlu1 %v9795_v21, %s6969_s13  ;;  %v6181_v26 = vpack.c.bf16 %v6094_v23, %v6091_v17  ;;  %v6079_v23 = vld [vmem:[#allocation3 + $0x10] sm:$0xff] }
 0x50a   : > { %6899 = vmatprep.subr.msk.bf16.mxu0 %vm333_vm0, %v6208_v1  ;;  %5945 = vrot.lane.b32.xlu0 %v5851_v38, %s6970_s14 }
 0x50b   : > { %v5264_v43 = vpop.permute.xlu1 %5263  ;;  %v6249_v51 = vsel %vm333_vm0, %v6181_v26, 0 }
 0x50c   : > { %5350 = vst.msk [vmem:[#allocation3 + $0xd8] sm:$0xff] %vm1065_vm5, %v5264_v43  ;;  %v5514_v25 = vpop.permute.xlu0 %5513  ;;  %v6102_v58 = vld [vmem:[#allocation3 + $0xc8] sm:$0xff]  ;;  %v6136_v43 = vld [vmem:[#allocation3 + $0x1d8] sm:$0xff] }
 0x50d   : > { %5603 = vst.msk [vmem:[#allocation3 + $0x98] sm:$0xff] %vm679_vm3, %v5514_v25  ;;  %5947 = vrot.lane.b32.xlu1 %v5852_v44, %s6970_s14  ;;  %v6133_v44 = vld [vmem:[#allocation3 + $0x1c0] sm:$0xff] }
 0x50e   : > { %5305 = vrot.lane.b32.xlu0 %v5211_v19, %s6970_s14  ;;  %v6202_v25 = vpack.c.bf16 %v6136_v43, %v6133_v44 }
 0x50f   : > { %v5516_v14 = vpop.permute.xlu1 %5515  ;;  %v6105_v63 = vld [vmem:[#allocation3 + $0xe0] sm:$0xff] }
 0x510   : > { %5604 = vst.msk [vmem:[#allocation3 + $0xb0] sm:$0xff] %vm679_vm3, %v5516_v14  ;;  %v4874_v48 = vpop.permute.xlu0 %4873  ;;  %v6186_v5 = vpack.c.bf16 %v6105_v63, %v6102_v58  ;;  %v6101_v1 = vld [vmem:[#allocation3 + $0xc0] sm:$0xff]  ;;  %v6088_v14 = vld [vmem:[#allocation3 + $0x58] sm:$0xff]  ;;  %v6127_v58 = vld [vmem:[#allocation3 + $0x190] sm:$0xff] }
 0x511   : > { %6814 = vmatpush3.bf16.xpose.msra.mxu0 %v6252_v11  ;;  %4963 = vst.msk [vmem:[#allocation3 + $0x90] sm:$0xff] %vm679_vm3, %v4874_v48  ;;  %5307 = vrot.lane.b32.xlu1 %v5212_v52, %s6970_s14  ;;  %v6178_v11 = vpack.c.bf16 %v6088_v14, %v6085_v42  ;;  %v6130_v63 = vld [vmem:[#allocation3 + $0x1a8] sm:$0xff] }
 0x512   : > { %6900 = vmatprep.subr.msk.bf16.mxu0 %vm333_vm0, %v6205_v47  ;;  %5557 = vrot.lane.b32.xlu0 %v9793_v59, %s6968_s12  ;;  %v6199_v17 = vpack.c.bf16 %v6130_v63, %v6127_v58 }
 0x513   : > { %6296 = vmatprep.subr.bf16.mxu1 %v6186_v5  ;;  %v4876_v22 = vpop.permute.xlu1 %4875  ;;  %v6104_v38 = vld [vmem:[#allocation3 + $0xd8] sm:$0xff]  ;;  %v6246_v5 = vsel %vm333_vm0, %v6178_v11, 0 }
 0x514   : > { %4964 = vst.msk [vmem:[#allocation3 + $0xa8] sm:$0xff] %vm679_vm3, %v4876_v22  ;;  %v5706_v24 = vpop.permute.xlu0 %5705  ;;  %v6185_v29 = vpack.c.bf16 %v6104_v38, %v6101_v1  ;;  %v6082_v22 = vld [vmem:[#allocation3 + $0x28] sm:$0xff] }
 0x515   : > { %5795 = vst.msk [vmem:[#allocation3 + $0x98] sm:$0xff] %vm872_vm4, %v5706_v24  ;;  %5559 = vrot.lane.b32.xlu1 %v9795_v21, %s6968_s12  ;;  %v6175_v1 = vpack.c.bf16 %v6082_v22, %v6079_v23 }
 0x516   : > { %4917 = vrot.lane.b32.xlu0 %v9712_v62, %s6968_s12  ;;  %6297 = vmatpush1.bf16.xpose.msra.mxu1 %v6185_v29 }
 0x517   : > { %v5708_v59 = vpop.permute.xlu1 %5707  ;;  %v6243_v24 = vsel %vm333_vm0, %v6175_v1, 0 }
 0x518   : > { %5796 = vst.msk [vmem:[#allocation3 + $0xb0] sm:$0xff] %vm872_vm4, %v5708_v59  ;;  %v5066_v56 = vpop.permute.xlu0 %5065 }
 0x519   : > { %6816 = vmatpush3.bf16.xpose.msra.mxu0 %v6249_v51  ;;  %5155 = vst.msk [vmem:[#allocation3 + $0x90] sm:$0xff] %vm872_vm4, %v5066_v56  ;;  %4919 = vrot.lane.b32.xlu1 %v9732_v10, %s6968_s12 }
 0x51a   : > { %6901 = vmatprep.subr.msk.bf16.mxu0 %vm333_vm0, %v6202_v25  ;;  %5749 = vrot.lane.b32.xlu0 %v5211_v19, %s6969_s13 }
 0x51b   : > { %v5068_v21 = vpop.permute.xlu1 %5067 }
 0x51c   : > { %5156 = vst.msk [vmem:[#allocation3 + $0xa8] sm:$0xff] %vm872_vm4, %v5068_v21  ;;  %v5898_v47 = vpop.permute.xlu0 %5897 }
 0x51d   : > { %5987 = vst.msk [vmem:[#allocation3 + $0x98] sm:$0xff] %vm1065_vm5, %v5898_v47  ;;  %5751 = vrot.lane.b32.xlu1 %v5212_v52, %s6969_s13 }
 0x51e   : > { %5109 = vrot.lane.b32.xlu0 %v9728_v39, %s6969_s13 }
 0x51f   : > { %v5900_v48 = vpop.permute.xlu1 %5899 }
 0x520   : > { %5988 = vst.msk [vmem:[#allocation3 + $0xb0] sm:$0xff] %vm1065_vm5, %v5900_v48  ;;  %v5258_v19 = vpop.permute.xlu0 %5257 }
 0x521   : > { %6818 = vmatpush3.bf16.xpose.msra.mxu0 %v6246_v5  ;;  %5347 = vst.msk [vmem:[#allocation3 + $0x90] sm:$0xff] %vm1065_vm5, %v5258_v19  ;;  %5111 = vrot.lane.b32.xlu1 %v9730_v0, %s6969_s13 }
 0x522   : > { %6902 = vmatprep.subr.msk.bf16.mxu0 %vm333_vm0, %v6199_v17  ;;  %5941 = vrot.lane.b32.xlu0 %v9842_v55, %s6970_s14 }
 0x523   : > { %v5260_v52 = vpop.permute.xlu1 %5259 }
 0x524   : > { %5348 = vst.msk [vmem:[#allocation3 + $0xa8] sm:$0xff] %vm1065_vm5, %v5260_v52  ;;  %v5510_v38 = vpop.permute.xlu0 %5509  ;;  %v6096_v29 = vld [vmem:[#allocation3 + $0x98] sm:$0xff] }
 0x525   : > { %5601 = vst.msk [vmem:[#allocation3 + $0x68] sm:$0xff] %vm679_vm3, %v5510_v38  ;;  %5943 = vrot.lane.b32.xlu1 %v9856_v36, %s6970_s14 }
 0x526   : > { %5301 = vrot.lane.b32.xlu0 %v9781_v7, %s6970_s14 }
 0x527   : > { %v5512_v26 = vpop.permute.xlu1 %5511  ;;  %v6099_v44 = vld [vmem:[#allocation3 + $0xb0] sm:$0xff] }
 0x528   : > { %5602 = vst.msk [vmem:[#allocation3 + $0x80] sm:$0xff] %vm679_vm3, %v5512_v26  ;;  %v4870_v55 = vpop.permute.xlu0 %4869  ;;  %v6183_v43 = vpack.c.bf16 %v6099_v44, %v6096_v29  ;;  %v6095_v59 = vld [vmem:[#allocation3 + $0x90] sm:$0xff] }
 0x529   : > { %6820 = vmatpush3.bf16.xpose.msra.mxu0 %v6243_v24  ;;  %4961 = vst.msk [vmem:[#allocation3 + $0x60] sm:$0xff] %vm679_vm3, %v4870_v55  ;;  %5303 = vrot.lane.b32.xlu1 %v9806_v40, %s6970_s14 }
 0x52a   : > { %5553 = vrot.lane.b32.xlu0 %v9728_v39, %s6968_s12  ;;  %6298 = vmatprep.subr.bf16.mxu1 %v6183_v43 }
 0x52b   : > { %v4872_v36 = vpop.permute.xlu1 %4871  ;;  %v6098_v51 = vld [vmem:[#allocation3 + $0xa8] sm:$0xff] }
 0x52c   : > { %4962 = vst.msk [vmem:[#allocation3 + $0x78] sm:$0xff] %vm679_vm3, %v4872_v36  ;;  %v5702_v25 = vpop.permute.xlu0 %5701  ;;  %v6182_v56 = vpack.c.bf16 %v6098_v51, %v6095_v59 }
 0x52d   : > { %5793 = vst.msk [vmem:[#allocation3 + $0x68] sm:$0xff] %vm872_vm4, %v5702_v25  ;;  %5555 = vrot.lane.b32.xlu1 %v9730_v0, %s6968_s12 }
 0x52e   : > { %4913 = vrot.lane.b32.xlu0 %v9654_v15, %s6968_s12  ;;  %6299 = vmatpush1.bf16.xpose.msra.mxu1 %v6182_v56 }
 0x52f   : > { %v5704_v42 = vpop.permute.xlu1 %5703 }
 0x530   : > { %5794 = vst.msk [vmem:[#allocation3 + $0x80] sm:$0xff] %vm872_vm4, %v5704_v42  ;;  %v5062_v39 = vpop.permute.xlu0 %5061 }
 0x531   : > { %5153 = vst.msk [vmem:[#allocation3 + $0x60] sm:$0xff] %vm872_vm4, %v5062_v39  ;;  %4915 = vrot.lane.b32.xlu1 %v9672_v53, %s6968_s12 }
 0x532   : > { %5745 = vrot.lane.b32.xlu0 %v9781_v7, %s6969_s13 }
 0x533   : > { %v5064_v14 = vpop.permute.xlu1 %5063 }
 0x534   : > { %5154 = vst.msk [vmem:[#allocation3 + $0x78] sm:$0xff] %vm872_vm4, %v5064_v14  ;;  %v5894_v0 = vpop.permute.xlu0 %5893 }
 0x535   : > { %5985 = vst.msk [vmem:[#allocation3 + $0x68] sm:$0xff] %vm1065_vm5, %v5894_v0  ;;  %5747 = vrot.lane.b32.xlu1 %v9806_v40, %s6969_s13 }
 0x536   : > { %5105 = vrot.lane.b32.xlu0 %v9668_v16, %s6969_s13 }
 0x537   : > { %v5896_v21 = vpop.permute.xlu1 %5895 }
 0x538   : > { %5986 = vst.msk [vmem:[#allocation3 + $0x80] sm:$0xff] %vm1065_vm5, %v5896_v21  ;;  %v5254_v11 = vpop.permute.xlu0 %5253 }
 0x539   : > { %5345 = vst.msk [vmem:[#allocation3 + $0x60] sm:$0xff] %vm1065_vm5, %v5254_v11  ;;  %5107 = vrot.lane.b32.xlu1 %v9670_v28, %s6969_s13 }
 0x53a   : > { %5937 = vrot.lane.b32.xlu0 %v9779_v34, %s6970_s14 }
 0x53b   : > { %v5256_v7 = vpop.permute.xlu1 %5255 }
 0x53c   : > { %5346 = vst.msk [vmem:[#allocation3 + $0x78] sm:$0xff] %vm1065_vm5, %v5256_v7  ;;  %v5506_v47 = vpop.permute.xlu0 %5505  ;;  %v6090_v58 = vld [vmem:[#allocation3 + $0x68] sm:$0xff] }
 0x53d   : > { %5599 = vst.msk [vmem:[#allocation3 + $0x38] sm:$0xff] %vm679_vm3, %v5506_v47  ;;  %5939 = vrot.lane.b32.xlu1 %v9797_v8, %s6970_s14 }
 0x53e   : > { %5297 = vrot.lane.b32.xlu0 %v9714_v20, %s6970_s14 }
 0x53f   : > { %v5508_v40 = vpop.permute.xlu1 %5507  ;;  %v6093_v63 = vld [vmem:[#allocation3 + $0x80] sm:$0xff] }
 0x540   : > { %5600 = vst.msk [vmem:[#allocation3 + $0x50] sm:$0xff] %vm679_vm3, %v5508_v40  ;;  %v4866_v48 = vpop.permute.xlu0 %4865  ;;  %v6180_v5 = vpack.c.bf16 %v6093_v63, %v6090_v58  ;;  %v6089_v8 = vld [vmem:[#allocation3 + $0x60] sm:$0xff] }
 0x541   : > { %4959 = vst.msk [vmem:[#allocation3 + $0x30] sm:$0xff] %vm679_vm3, %v4866_v48  ;;  %5299 = vrot.lane.b32.xlu1 %v9740_v2, %s6970_s14 }
 0x542   : > { %5549 = vrot.lane.b32.xlu0 %v9668_v16, %s6968_s12  ;;  %6300 = vmatprep.subr.bf16.mxu1 %v6180_v5 }
 0x543   : > { %v4868_v34 = vpop.permute.xlu1 %4867  ;;  %v6092_v17 = vld [vmem:[#allocation3 + $0x78] sm:$0xff] }
 0x544   : > { %4960 = vst.msk [vmem:[#allocation3 + $0x48] sm:$0xff] %vm679_vm3, %v4868_v34  ;;  %v5698_v19 = vpop.permute.xlu0 %5697  ;;  %v6179_v23 = vpack.c.bf16 %v6092_v17, %v6089_v8 }
 0x545   : > { %5791 = vst.msk [vmem:[#allocation3 + $0x38] sm:$0xff] %vm872_vm4, %v5698_v19  ;;  %5551 = vrot.lane.b32.xlu1 %v9670_v28, %s6968_s12 }
 0x546   : > { %4909 = vrot.lane.b32.xlu0 %v9598_v41, %s6968_s12  ;;  %6301 = vmatpush1.bf16.xpose.msra.mxu1 %v6179_v23 }
 0x547   : > { %v5700_v22 = vpop.permute.xlu1 %5699 }
 0x548   : > { %5792 = vst.msk [vmem:[#allocation3 + $0x50] sm:$0xff] %vm872_vm4, %v5700_v22  ;;  %v5058_v16 = vpop.permute.xlu0 %5057 }
 0x549   : > { %5151 = vst.msk [vmem:[#allocation3 + $0x30] sm:$0xff] %vm872_vm4, %v5058_v16  ;;  %4911 = vrot.lane.b32.xlu1 %v9616_v6, %s6968_s12 }
 0x54a   : > { %5741 = vrot.lane.b32.xlu0 %v9714_v20, %s6969_s13 }
 0x54b   : > { %v5060_v52 = vpop.permute.xlu1 %5059 }
 0x54c   : > { %5152 = vst.msk [vmem:[#allocation3 + $0x48] sm:$0xff] %vm872_vm4, %v5060_v52  ;;  %v5890_v28 = vpop.permute.xlu0 %5889 }
 0x54d   : > { %5983 = vst.msk [vmem:[#allocation3 + $0x38] sm:$0xff] %vm1065_vm5, %v5890_v28  ;;  %5743 = vrot.lane.b32.xlu1 %v9740_v2, %s6969_s13 }
 0x54e   : > { %5101 = vrot.lane.b32.xlu0 %v9612_v33, %s6969_s13 }
 0x54f   : > { %v5892_v1 = vpop.permute.xlu1 %5891 }
 0x550   : > { %5984 = vst.msk [vmem:[#allocation3 + $0x50] sm:$0xff] %vm1065_vm5, %v5892_v1  ;;  %v5250_v38 = vpop.permute.xlu0 %5249 }
 0x551   : > { %5343 = vst.msk [vmem:[#allocation3 + $0x30] sm:$0xff] %vm1065_vm5, %v5250_v38  ;;  %5103 = vrot.lane.b32.xlu1 %v9614_v12, %s6969_s13 }
 0x552   : > { %5933 = vrot.lane.b32.xlu0 %v9712_v62, %s6970_s14 }
 0x553   : > { %v5252_v20 = vpop.permute.xlu1 %5251 }
 0x554   : > { %5344 = vst.msk [vmem:[#allocation3 + $0x48] sm:$0xff] %vm1065_vm5, %v5252_v20  ;;  %v5502_v26 = vpop.permute.xlu0 %5501  ;;  %v6084_v24 = vld [vmem:[#allocation3 + $0x38] sm:$0xff] }
 0x555   : > { %5597 = vst.msk [vmem:[#allocation3 + $0x8] sm:$0xff] %vm679_vm3, %v5502_v26  ;;  %5935 = vrot.lane.b32.xlu1 %v9732_v10, %s6970_s14 }
 0x556   : > { %5293 = vrot.lane.b32.xlu0 %v9656_v30, %s6970_s14 }
 0x557   : > { %v5504_v2 = vpop.permute.xlu1 %5503  ;;  %v6087_v29 = vld [vmem:[#allocation3 + $0x50] sm:$0xff] }
 0x558   : > { %5598 = vst.msk [vmem:[#allocation3 + $0x20] sm:$0xff] %vm679_vm3, %v5504_v2  ;;  %v4862_v44 = vpop.permute.xlu0 %4861  ;;  %v6177_v55 = vpack.c.bf16 %v6087_v29, %v6084_v24  ;;  %v6083_v10 = vld [vmem:[#allocation3 + $0x30] sm:$0xff] }
 0x559   : > { %4957 = vst.msk [vmem:[#allocation3] sm:$0xff] %vm679_vm3, %v4862_v44  ;;  %5295 = vrot.lane.b32.xlu1 %v9680_v3, %s6970_s14 }
 0x55a   : > { %5545 = vrot.lane.b32.xlu0 %v9612_v33, %s6968_s12  ;;  %6302 = vmatprep.subr.bf16.mxu1 %v6177_v55 }
 0x55b   : > { %v4864_v62 = vpop.permute.xlu1 %4863  ;;  %v6086_v43 = vld [vmem:[#allocation3 + $0x48] sm:$0xff] }
 0x55c   : > { %4958 = vst.msk [vmem:[#allocation3 + $0x18] sm:$0xff] %vm679_vm3, %v4864_v62  ;;  %v5694_v36 = vpop.permute.xlu0 %5693  ;;  %v6176_v59 = vpack.c.bf16 %v6086_v43, %v6083_v10  ;;  %v4813_v43 = vld [vmem:[#allocation2 + $0xc1] sm:$0xff] }
 0x55d   : > { %5789 = vst.msk [vmem:[#allocation3 + $0x8] sm:$0xff] %vm872_vm4, %v5694_v36  ;;  %5547 = vrot.lane.b32.xlu1 %v9614_v12, %s6968_s12 }
 0x55e   : > { %4905 = vrot.lane.b32.xlu0 %v9545_v50, %s6968_s12  ;;  %6303 = vmatpush1.bf16.xpose.msra.mxu1 %v6176_v59 }
 0x55f   : > { %v5696_v51 = vpop.permute.xlu1 %5695 }
 0x560   : > { %5790 = vst.msk [vmem:[#allocation3 + $0x20] sm:$0xff] %vm872_vm4, %v5696_v51  ;;  %v5054_v33 = vpop.permute.xlu0 %5053  ;;  %v4814_v51 = vld [vmem:[#allocation2 + $0xc9] sm:$0xff] }
 0x561   : > { %5149 = vst.msk [vmem:[#allocation3] sm:$0xff] %vm872_vm4, %v5054_v33  ;;  %4907 = vrot.lane.b32.xlu1 %v9561_v27, %s6968_s12 }
 0x562   : > { %5737 = vrot.lane.b32.xlu0 %v9656_v30, %s6969_s13 }
 0x563   : > { %v5056_v25 = vpop.permute.xlu1 %5055 }
 0x564   : > { %5150 = vst.msk [vmem:[#allocation3 + $0x18] sm:$0xff] %vm872_vm4, %v5056_v25  ;;  %v5886_v12 = vpop.permute.xlu0 %5885 }
 0x565   : > { %5981 = vst.msk [vmem:[#allocation3 + $0x8] sm:$0xff] %vm1065_vm5, %v5886_v12  ;;  %5739 = vrot.lane.b32.xlu1 %v9680_v3, %s6969_s13  ;;  %v5005_v12 = vld [vmem:[#allocation2 + $0xc2] sm:$0xff] }
 0x566   : > { %5097 = vrot.lane.b32.xlu0 %v9557_v45, %s6969_s13 }
 0x567   : > { %v5888_v56 = vpop.permute.xlu1 %5887 }
 0x568   : > { %5982 = vst.msk [vmem:[#allocation3 + $0x20] sm:$0xff] %vm1065_vm5, %v5888_v56  ;;  %v5246_v42 = vpop.permute.xlu0 %5245 }
 0x569   : > { %5341 = vst.msk [vmem:[#allocation3] sm:$0xff] %vm1065_vm5, %v5246_v42  ;;  %5099 = vrot.lane.b32.xlu1 %v9559_v18, %s6969_s13 }
 0x56a   : > { %5929 = vrot.lane.b32.xlu0 %v9654_v15, %s6970_s14 }
 0x56b   : > { %v5248_v30 = vpop.permute.xlu1 %5247 }
 0x56c   : > { %5342 = vst.msk [vmem:[#allocation3 + $0x18] sm:$0xff] %vm1065_vm5, %v5248_v30  ;;  %v5562_v39 = vpop.permute.xlu0 %5561  ;;  %v6078_v14 = vld [vmem:[#allocation3 + $0x8] sm:$0xff]  ;;  %v5006_v30 = vld [vmem:[#allocation2 + $0xca] sm:$0xff] }
 0x56d   : > { %5627 = vst.msk [vmem:[#allocation3 + $0x2d8] sm:$0xff] %vm679_vm3, %v5562_v39  ;;  %5931 = vrot.lane.b32.xlu1 %v9672_v53, %s6970_s14 }
 0x56e   : > { %5289 = vrot.lane.b32.xlu0 %v9600_v13, %s6970_s14 }
 0x56f   : > { %v5564_v3 = vpop.permute.xlu1 %5563  ;;  %v6081_v0 = vld [vmem:[#allocation3 + $0x20] sm:$0xff] }
 0x570   : > { %5628 = vst.msk [vmem:[#allocation3 + $0x2f0] sm:$0xff] %vm679_vm3, %v5564_v3  ;;  %v4922_v21 = vpop.permute.xlu0 %4921  ;;  %v6174_v11 = vpack.c.bf16 %v6081_v0, %v6078_v14  ;;  %v6077_v53 = vld [vmem:[#allocation3] sm:$0xff] }
 0x571   : > { %4987 = vst.msk [vmem:[#allocation3 + $0x2d0] sm:$0xff] %vm679_vm3, %v4922_v21  ;;  %5291 = vrot.lane.b32.xlu1 %v9624_v35, %s6970_s14 }
 0x572   : > { %5541 = vrot.lane.b32.xlu0 %v9557_v45, %s6968_s12  ;;  %6304 = vmatprep.subr.bf16.mxu1 %v6174_v11 }
 0x573   : > { %v4924_v15 = vpop.permute.xlu1 %4923  ;;  %v6080_v7 = vld [vmem:[#allocation3 + $0x18] sm:$0xff] }
 0x574   : > { %4988 = vst.msk [vmem:[#allocation3 + $0x2e8] sm:$0xff] %vm679_vm3, %v4924_v15  ;;  %v5754_v47 = vpop.permute.xlu0 %5753  ;;  %v6173_v40 = vpack.c.bf16 %v6080_v7, %v6077_v53 }
 0x575   : > { %5819 = vst.msk [vmem:[#allocation3 + $0x2d8] sm:$0xff] %vm872_vm4, %v5754_v47  ;;  %5543 = vrot.lane.b32.xlu1 %v9559_v18, %s6968_s12 }
 0x576   : > { %4901 = vrot.lane.b32.xlu0 %v9493_v46, %s6968_s12  ;;  %6305 = vmatpush1.bf16.xpose.msra.mxu1 %v6173_v40 }
 0x577   : > { %v5756_v58 = vpop.permute.xlu1 %5755 }
 0x578   : > { %5820 = vst.msk [vmem:[#allocation3 + $0x2f0] sm:$0xff] %vm872_vm4, %v5756_v58  ;;  %v5114_v45 = vpop.permute.xlu0 %5113  ;;  %v6223_v58 = vld [vmem:[%s10258_s7] sm:$0xff] }
 0x579   : > { %5179 = vst.msk [vmem:[#allocation3 + $0x2d0] sm:$0xff] %vm872_vm4, %v5114_v45  ;;  %4903 = vrot.lane.b32.xlu1 %v9510_v31, %s6968_s12  ;;  %v6971_v45 = vmov 0  }
 0x57a   : > { %5733 = vrot.lane.b32.xlu0 %v9600_v13, %s6969_s13 }
 0x57b   : > { %v5116_v63 = vpop.permute.xlu1 %5115  ;;  %6916 = vset.pattern.permute.xlu0 %v6971_v45 }
 0x57c   : > { %5180 = vst.msk [vmem:[#allocation3 + $0x2e8] sm:$0xff] %vm872_vm4, %v5116_v63  ;;  %v5946_v18 = vpop.permute.xlu0 %5945 }
 0x57d   : > { %6011 = vst.msk [vmem:[#allocation3 + $0x2d8] sm:$0xff] %vm1065_vm5, %v5946_v18  ;;  %5735 = vrot.lane.b32.xlu1 %v9624_v35, %s6969_s13 }
 0x57e   : > { %5093 = vrot.lane.b32.xlu0 %v9506_v32, %s6969_s13 }
 0x57f   : > { %v5948_v48 = vpop.permute.xlu1 %5947 }
 0x580   : > { %6012 = vst.msk [vmem:[#allocation3 + $0x2f0] sm:$0xff] %vm1065_vm5, %v5948_v48  ;;  %v5306_v5 = vpop.permute.xlu0 %5305 }
 0x581   : > { %5371 = vst.msk [vmem:[#allocation3 + $0x2d0] sm:$0xff] %vm1065_vm5, %v5306_v5  ;;  %5095 = vrot.lane.b32.xlu1 %v9508_v9, %s6969_s13 }
 0x582   : > { %5925 = vrot.lane.b32.xlu0 %v9598_v41, %s6970_s14 }
 0x583   : > { %v5308_v13 = vpop.permute.xlu1 %5307 }
 0x584   : > { %5372 = vst.msk [vmem:[#allocation3 + $0x2e8] sm:$0xff] %vm1065_vm5, %v5308_v13  ;;  %v5558_v34 = vpop.permute.xlu0 %5557  ;;  %v6168_v35 = vld [vmem:[#allocation3 + $0x2d8] sm:$0xff] }
 0x585   : > { %5625 = vst.msk [vmem:[#allocation3 + $0x2a8] sm:$0xff] %vm679_vm3, %v5558_v34  ;;  %5927 = vrot.lane.b32.xlu1 %v9616_v6, %s6970_s14 }
 0x586   : > { %5285 = vrot.lane.b32.xlu0 %v9547_v37, %s6970_s14 }
 0x587   : > { %v5560_v8 = vpop.permute.xlu1 %5559  ;;  %v6171_v17 = vld [vmem:[#allocation3 + $0x2f0] sm:$0xff] }
 0x588   : > { %5626 = vst.msk [vmem:[#allocation3 + $0x2c0] sm:$0xff] %vm679_vm3, %v5560_v8  ;;  %v4918_v19 = vpop.permute.xlu0 %4917  ;;  %v6219_v23 = vpack.c.bf16 %v6171_v17, %v6168_v35  ;;  %v6167_v6 = vld [vmem:[#allocation3 + $0x2d0] sm:$0xff] }
 0x589   : > { %4985 = vst.msk [vmem:[#allocation3 + $0x2a0] sm:$0xff] %vm679_vm3, %v4918_v19  ;;  %5287 = vrot.lane.b32.xlu1 %v9569_v4, %s6970_s14 }
 0x58a   : > { %5537 = vrot.lane.b32.xlu0 %v9506_v32, %s6968_s12  ;;  %6306 = vmatprep.subr.bf16.mxu1 %v6219_v23 }
 0x58b   : > { %v4920_v41 = vpop.permute.xlu1 %4919  ;;  %v6170_v22 = vld [vmem:[#allocation3 + $0x2e8] sm:$0xff] }
 0x58c   : > { %4986 = vst.msk [vmem:[#allocation3 + $0x2b8] sm:$0xff] %vm679_vm3, %v4920_v41  ;;  %v5750_v16 = vpop.permute.xlu0 %5749  ;;  %v6218_v52 = vpack.c.bf16 %v6170_v22, %v6167_v6 }
 0x58d   : > { %5817 = vst.msk [vmem:[#allocation3 + $0x2a8] sm:$0xff] %vm872_vm4, %v5750_v16  ;;  %5539 = vrot.lane.b32.xlu1 %v9508_v9, %s6968_s12 }
 0x58e   : > { %4897 = vrot.lane.b32.xlu0 %v9449_v49, %s6968_s12  ;;  %6307 = vmatpush2.bf16.xpose.msra.mxu1 %v6218_v52  ;;  %v5007_v49 = vld [vmem:[#allocation2 + $0xda] sm:$0xff] }
 0x58f   : > { %v5752_v28 = vpop.permute.xlu1 %5751 }
 0x590   : > { %5818 = vst.msk [vmem:[#allocation3 + $0x2c0] sm:$0xff] %vm872_vm4, %v5752_v28  ;;  %v5110_v32 = vpop.permute.xlu0 %5109 }
 0x591   : > { %5177 = vst.msk [vmem:[#allocation3 + $0x2a0] sm:$0xff] %vm872_vm4, %v5110_v32  ;;  %4899 = vrot.lane.b32.xlu1 %v9462_v61, %s6968_s12  ;;  %v5008_v61 = vld [vmem:[#allocation2 + $0xe2] sm:$0xff] }
 0x592   : > { %5729 = vrot.lane.b32.xlu0 %v9547_v37, %s6969_s13 }
 0x593   : > { %v5112_v1 = vpop.permute.xlu1 %5111 }
 0x594   : > { %5178 = vst.msk [vmem:[#allocation3 + $0x2b8] sm:$0xff] %vm872_vm4, %v5112_v1  ;;  %v5942_v9 = vpop.permute.xlu0 %5941 }
 0x595   : > { %6009 = vst.msk [vmem:[#allocation3 + $0x2a8] sm:$0xff] %vm1065_vm5, %v5942_v9  ;;  %5731 = vrot.lane.b32.xlu1 %v9569_v4, %s6969_s13 }
 0x596   : > { %5089 = vrot.lane.b32.xlu0 %v5007_v49, %s6969_s13 }
 0x597   : > { %v5944_v38 = vpop.permute.xlu1 %5943 }
 0x598   : > { %6010 = vst.msk [vmem:[#allocation3 + $0x2c0] sm:$0xff] %vm1065_vm5, %v5944_v38  ;;  %v5302_v20 = vpop.permute.xlu0 %5301 }
 0x599   : > { %5369 = vst.msk [vmem:[#allocation3 + $0x2a0] sm:$0xff] %vm1065_vm5, %v5302_v20  ;;  %5091 = vrot.lane.b32.xlu1 %v5008_v61, %s6969_s13 }
 0x59a   : > { %5921 = vrot.lane.b32.xlu0 %v9545_v50, %s6970_s14 }
 0x59b   : > { %v5304_v37 = vpop.permute.xlu1 %5303 }
 0x59c   : > { %5370 = vst.msk [vmem:[#allocation3 + $0x2b8] sm:$0xff] %vm1065_vm5, %v5304_v37  ;;  %v5554_v26 = vpop.permute.xlu0 %5553  ;;  %v6162_v2 = vld [vmem:[#allocation3 + $0x2a8] sm:$0xff] }
 0x59d   : > { %5623 = vst.msk [vmem:[#allocation3 + $0x278] sm:$0xff] %vm679_vm3, %v5554_v26  ;;  %5923 = vrot.lane.b32.xlu1 %v9561_v27, %s6970_s14 }
 0x59e   : > { %5281 = vrot.lane.b32.xlu0 %v9495_v60, %s6970_s14 }
 0x59f   : > { %v5556_v4 = vpop.permute.xlu1 %5555  ;;  %v6165_v24 = vld [vmem:[#allocation3 + $0x2c0] sm:$0xff] }
 0x5a0   : > { %5624 = vst.msk [vmem:[#allocation3 + $0x290] sm:$0xff] %vm679_vm3, %v5556_v4  ;;  %v4914_v29 = vpop.permute.xlu0 %4913  ;;  %v6216_v44 = vpack.c.bf16 %v6165_v24, %v6162_v2  ;;  %v6161_v27 = vld [vmem:[#allocation3 + $0x2a0] sm:$0xff] }
 0x5a1   : > { %4983 = vst.msk [vmem:[#allocation3 + $0x270] sm:$0xff] %vm679_vm3, %v4914_v29  ;;  %5283 = vrot.lane.b32.xlu1 %v9517_v57, %s6970_s14 }
 0x5a2   : > { %5533 = vrot.lane.b32.xlu0 %v5007_v49, %s6968_s12  ;;  %6308 = vmatprep.subr.bf16.mxu1 %v6216_v44 }
 0x5a3   : > { %v4916_v50 = vpop.permute.xlu1 %4915  ;;  %v6164_v55 = vld [vmem:[#allocation3 + $0x2b8] sm:$0xff] }
 0x5a4   : > { %4984 = vst.msk [vmem:[#allocation3 + $0x288] sm:$0xff] %vm679_vm3, %v4916_v50  ;;  %v5746_v62 = vpop.permute.xlu0 %5745  ;;  %v6215_v10 = vpack.c.bf16 %v6164_v55, %v6161_v27 }
 0x5a5   : > { %5815 = vst.msk [vmem:[#allocation3 + $0x278] sm:$0xff] %vm872_vm4, %v5746_v62  ;;  %5535 = vrot.lane.b32.xlu1 %v5008_v61, %s6968_s12 }
 0x5a6   : > { %4893 = vrot.lane.b32.xlu0 %v4813_v43, %s6968_s12  ;;  %6309 = vmatpush2.bf16.xpose.msra.mxu1 %v6215_v10 }
 0x5a7   : > { %v5748_v36 = vpop.permute.xlu1 %5747 }
 0x5a8   : > { %5816 = vst.msk [vmem:[#allocation3 + $0x290] sm:$0xff] %vm872_vm4, %v5748_v36  ;;  %v5106_v59 = vpop.permute.xlu0 %5105 }
 0x5a9   : > { %5175 = vst.msk [vmem:[#allocation3 + $0x270] sm:$0xff] %vm872_vm4, %v5106_v59  ;;  %4895 = vrot.lane.b32.xlu1 %v4814_v51, %s6968_s12 }
 0x5aa   : > { %5725 = vrot.lane.b32.xlu0 %v9495_v60, %s6969_s13 }
 0x5ab   : > { %v5108_v33 = vpop.permute.xlu1 %5107 }
 0x5ac   : > { %5176 = vst.msk [vmem:[#allocation3 + $0x288] sm:$0xff] %vm872_vm4, %v5108_v33  ;;  %v5938_v25 = vpop.permute.xlu0 %5937 }
 0x5ad   : > { %6007 = vst.msk [vmem:[#allocation3 + $0x278] sm:$0xff] %vm1065_vm5, %v5938_v25  ;;  %5727 = vrot.lane.b32.xlu1 %v9517_v57, %s6969_s13  ;;  %v6953_v57 = vld [vmem:[%s10257_s6 + $0x8] ss:$0 sps:$4 sm:$0xff]  }
 0x5ae   : > { %5085 = vrot.lane.b32.xlu0 %v5005_v12, %s6969_s13  ;;  %6821 = vmatprep.mubr.msk.bf16.mxu0 %vm333_vm0, %v6953_v57 }
 0x5af   : > { %v5940_v56 = vpop.permute.xlu1 %5939  ;;  %6822 = vmatmul.mubr.msk.bf16.vlgmr.msra.gmra.mxu0 %vm333_vm0, %v6953_v57 }
 0x5b0   : > { %6008 = vst.msk [vmem:[#allocation3 + $0x290] sm:$0xff] %vm1065_vm5, %v5940_v56  ;;  %v5298_v42 = vpop.permute.xlu0 %5297 }
 0x5b1   : > { %5367 = vst.msk [vmem:[#allocation3 + $0x270] sm:$0xff] %vm1065_vm5, %v5298_v42  ;;  %5087 = vrot.lane.b32.xlu1 %v5006_v30, %s6969_s13 }
 0x5b2   : > { %5917 = vrot.lane.b32.xlu0 %v9493_v46, %s6970_s14  ;;  %v10162_v46 = vld [vmem:[%s10257_s6] sm:$0xff] }
 0x5b3   : > { %v5300_v60 = vpop.permute.xlu1 %5299  ;;  %v6537_v21 = vcombine.high %v10162_v46, %v10162_v46 }
 0x5b4   : > { %5368 = vst.msk [vmem:[#allocation3 + $0x288] sm:$0xff] %vm1065_vm5, %v5300_v60  ;;  %v5550_v39 = vpop.permute.xlu0 %5549  ;;  %v6156_v14 = vld [vmem:[#allocation3 + $0x278] sm:$0xff] }
 0x5b5   : > { %5621 = vst.msk [vmem:[#allocation3 + $0x248] sm:$0xff] %vm679_vm3, %v5550_v39  ;;  %5919 = vrot.lane.b32.xlu1 %v9510_v31, %s6970_s14  ;;  %6322 = vmatprep.mubr.bf16.mxu1 %v6537_v21 }
 0x5b6   : > { %5277 = vrot.lane.b32.xlu0 %v9452_v54, %s6970_s14  ;;  %v10299_v54 = vld [vmem:[#allocation4_spill] sm:$0xff] }
 0x5b7   : > { %v5552_v3 = vpop.permute.xlu1 %5551  ;;  %v6159_v0 = vld [vmem:[#allocation3 + $0x290] sm:$0xff] }
 0x5b8   : > { %5622 = vst.msk [vmem:[#allocation3 + $0x260] sm:$0xff] %vm679_vm3, %v5552_v3  ;;  %v4910_v31 = vpop.permute.xlu0 %4909  ;;  %v6213_v11 = vpack.c.bf16 %v6159_v0, %v6156_v14  ;;  %v6155_v53 = vld [vmem:[#allocation3 + $0x270] sm:$0xff] }
 0x5b9   : > { %4981 = vst.msk [vmem:[#allocation3 + $0x240] sm:$0xff] %vm679_vm3, %v4910_v31  ;;  %5279 = vrot.lane.b32.xlu1 %v10299_v54, %s6970_s14  ;;  %s6542_s14 = sshll.u32 %s10301_s28, 3 }
 0x5ba   : > { %6310 = vmatprep.subr.bf16.mxu1 %v6213_v11  ;;  %6226 = vperm.xlu0 %6916, %v6223_v58   ;;  %s315_s11 = scalar_lea.vmem %s10251_s0, %s6542_s14 }
 0x5bb   : > { %v4912_v15 = vpop.permute.xlu1 %4911  ;;  %v6158_v7 = vld [vmem:[#allocation3 + $0x288] sm:$0xff]  ;;  %v327_v42 = vld [vmem:[%s315_s11] sm:$0xff] }
 0x5bc   : > { %4982 = vst.msk [vmem:[#allocation3 + $0x258] sm:$0xff] %vm679_vm3, %v4912_v15  ;;  %v5742_v47 = vpop.permute.xlu0 %5741  ;;  %v6212_v40 = vpack.c.bf16 %v6158_v7, %v6155_v53  ;;  %v329_v30 = vcombine.high %v327_v42, %v327_v42  ;;  %331 = vst [vmem:[%s10217_s19] sm:$0xf] %v327_v42 }
 0x5bd   : > { %5813 = vst.msk [vmem:[#allocation3 + $0x248] sm:$0xff] %vm872_vm4, %v5742_v47 }
 0x5be   : > { %6311 = vmatpush2.bf16.xpose.msra.mxu1 %v6212_v40  ;;  %332 = vst [vmem:[%s10217_s19 + $0x8] sm:$0xf] %v329_v30 }
 0x5bf   : > { %v5744_v63 = vpop.permute.xlu1 %5743 }
 0x5c0   : > { %5814 = vst.msk [vmem:[#allocation3 + $0x260] sm:$0xff] %vm872_vm4, %v5744_v63  ;;  %v5102_v18 = vpop.permute.xlu0 %5101 }
 0x5c1   : > { %5173 = vst.msk [vmem:[#allocation3 + $0x240] sm:$0xff] %vm872_vm4, %v5102_v18 }
 0x5c3   : > { %v5104_v48 = vpop.permute.xlu1 %5103 }
 0x5c4   : > { %5174 = vst.msk [vmem:[#allocation3 + $0x258] sm:$0xff] %vm872_vm4, %v5104_v48  ;;  %v5934_v5 = vpop.permute.xlu0 %5933 }
 0x5c5   : > { %6005 = vst.msk [vmem:[#allocation3 + $0x248] sm:$0xff] %vm1065_vm5, %v5934_v5 }
 0x5c7   : > { %v5936_v13 = vpop.permute.xlu1 %5935 }
 0x5c8   : > { %6006 = vst.msk [vmem:[#allocation3 + $0x260] sm:$0xff] %vm1065_vm5, %v5936_v13  ;;  %v5294_v34 = vpop.permute.xlu0 %5293 }
 0x5c9   : > { %5365 = vst.msk [vmem:[#allocation3 + $0x240] sm:$0xff] %vm1065_vm5, %v5294_v34 }
 0x5cb   : > { %v5296_v35 = vpop.permute.xlu1 %5295 }
 0x5cc   : > { %5366 = vst.msk [vmem:[#allocation3 + $0x258] sm:$0xff] %vm1065_vm5, %v5296_v35  ;;  %v5546_v8 = vpop.permute.xlu0 %5545  ;;  %v6150_v19 = vld [vmem:[#allocation3 + $0x248] sm:$0xff] }
 0x5cd   : > { %5619 = vst.msk [vmem:[#allocation3 + $0x218] sm:$0xff] %vm679_vm3, %v5546_v8 }
 0x5cf   : > { %v5548_v17 = vpop.permute.xlu1 %5547  ;;  %v6153_v23 = vld [vmem:[#allocation3 + $0x260] sm:$0xff] }
 0x5d0   : > { %5620 = vst.msk [vmem:[#allocation3 + $0x230] sm:$0xff] %vm679_vm3, %v5548_v17  ;;  %v4906_v41 = vpop.permute.xlu0 %4905  ;;  %v6210_v6 = vpack.c.bf16 %v6153_v23, %v6150_v19  ;;  %v6149_v16 = vld [vmem:[#allocation3 + $0x240] sm:$0xff] }
 0x5d1   : > { %4979 = vst.msk [vmem:[#allocation3 + $0x210] sm:$0xff] %vm679_vm3, %v4906_v41 }
 0x5d2   : > { %6312 = vmatprep.subr.bf16.mxu1 %v6210_v6 }
 0x5d3   : > { %v4908_v22 = vpop.permute.xlu1 %4907  ;;  %v6152_v52 = vld [vmem:[#allocation3 + $0x258] sm:$0xff] }
 0x5d4   : > { %4980 = vst.msk [vmem:[#allocation3 + $0x228] sm:$0xff] %vm679_vm3, %v4908_v22  ;;  %v5738_v28 = vpop.permute.xlu0 %5737  ;;  %v6209_v32 = vpack.c.bf16 %v6152_v52, %v6149_v16 }
 0x5d5   : > { %5811 = vst.msk [vmem:[#allocation3 + $0x218] sm:$0xff] %vm872_vm4, %v5738_v28 }
 0x5d6   : > { %6313 = vmatpush2.bf16.xpose.msra.mxu1 %v6209_v32 }
 0x5d7   : > { %v5740_v1 = vpop.permute.xlu1 %5739 }
 0x5d8   : > { %5812 = vst.msk [vmem:[#allocation3 + $0x230] sm:$0xff] %vm872_vm4, %v5740_v1  ;;  %v5098_v9 = vpop.permute.xlu0 %5097 }
 0x5d9   : > { %5171 = vst.msk [vmem:[#allocation3 + $0x210] sm:$0xff] %vm872_vm4, %v5098_v9 }
 0x5db   : > { %v5100_v49 = vpop.permute.xlu1 %5099 }
 0x5dc   : > { %5172 = vst.msk [vmem:[#allocation3 + $0x228] sm:$0xff] %vm872_vm4, %v5100_v49  ;;  %v5930_v38 = vpop.permute.xlu0 %5929 }
 0x5dd   : > { %6003 = vst.msk [vmem:[#allocation3 + $0x218] sm:$0xff] %vm1065_vm5, %v5930_v38 }
 0x5df   : > { %v5932_v20 = vpop.permute.xlu1 %5931 }
 0x5e0   : > { %6004 = vst.msk [vmem:[#allocation3 + $0x230] sm:$0xff] %vm1065_vm5, %v5932_v20  ;;  %v5290_v61 = vpop.permute.xlu0 %5289 }
 0x5e1   : > { %5363 = vst.msk [vmem:[#allocation3 + $0x210] sm:$0xff] %vm1065_vm5, %v5290_v61 }
 0x5e3   : > { %v5292_v37 = vpop.permute.xlu1 %5291 }
 0x5e4   : > { %5364 = vst.msk [vmem:[#allocation3 + $0x228] sm:$0xff] %vm1065_vm5, %v5292_v37  ;;  %v5542_v26 = vpop.permute.xlu0 %5541  ;;  %v6144_v2 = vld [vmem:[#allocation3 + $0x218] sm:$0xff]  ;;  %v6536_v37 = vcombine.low %v10162_v46, %v10162_v46 }
 0x5e5   : > { %5617 = vst.msk [vmem:[#allocation3 + $0x1e8] sm:$0xff] %vm679_vm3, %v5542_v26 }
 0x5e7   : > { %v5544_v4 = vpop.permute.xlu1 %5543  ;;  %v6147_v24 = vld [vmem:[#allocation3 + $0x230] sm:$0xff] }
 0x5e8   : > { %5618 = vst.msk [vmem:[#allocation3 + $0x200] sm:$0xff] %vm679_vm3, %v5544_v4  ;;  %v4902_v29 = vpop.permute.xlu0 %4901  ;;  %v6207_v44 = vpack.c.bf16 %v6147_v24, %v6144_v2  ;;  %v6143_v27 = vld [vmem:[#allocation3 + $0x210] sm:$0xff] }
 0x5e9   : > { %4977 = vst.msk [vmem:[#allocation3 + $0x1e0] sm:$0xff] %vm679_vm3, %v4902_v29 }
 0x5ea   : > { %6314 = vmatprep.subr.bf16.mxu1 %v6207_v44 }
 0x5eb   : > { %v4904_v50 = vpop.permute.xlu1 %4903  ;;  %v6146_v55 = vld [vmem:[#allocation3 + $0x228] sm:$0xff] }
 0x5ec   : > { %4978 = vst.msk [vmem:[#allocation3 + $0x1f8] sm:$0xff] %vm679_vm3, %v4904_v50  ;;  %v5734_v62 = vpop.permute.xlu0 %5733  ;;  %v6206_v10 = vpack.c.bf16 %v6146_v55, %v6143_v27 }
 0x5ed   : > { %5809 = vst.msk [vmem:[#allocation3 + $0x1e8] sm:$0xff] %vm872_vm4, %v5734_v62 }
 0x5ee   : > { %6315 = vmatpush2.bf16.xpose.msra.mxu1 %v6206_v10 }
 0x5ef   : > { %v5736_v43 = vpop.permute.xlu1 %5735 }
 0x5f0   : > { %5810 = vst.msk [vmem:[#allocation3 + $0x200] sm:$0xff] %vm872_vm4, %v5736_v43  ;;  %v5094_v36 = vpop.permute.xlu0 %5093 }
 0x5f1   : > { %5169 = vst.msk [vmem:[#allocation3 + $0x1e0] sm:$0xff] %vm872_vm4, %v5094_v36 }
 0x5f3   : > { %v5096_v59 = vpop.permute.xlu1 %5095 }
 0x5f4   : > { %5170 = vst.msk [vmem:[#allocation3 + $0x1f8] sm:$0xff] %vm872_vm4, %v5096_v59  ;;  %v5926_v51 = vpop.permute.xlu0 %5925 }
 0x5f5   : > { %6001 = vst.msk [vmem:[#allocation3 + $0x1e8] sm:$0xff] %vm1065_vm5, %v5926_v51 }
 0x5f7   : > { %v5928_v33 = vpop.permute.xlu1 %5927 }
 0x5f8   : > { %6002 = vst.msk [vmem:[#allocation3 + $0x200] sm:$0xff] %vm1065_vm5, %v5928_v33  ;;  %v5286_v25 = vpop.permute.xlu0 %5285 }
 0x5f9   : > { %5361 = vst.msk [vmem:[#allocation3 + $0x1e0] sm:$0xff] %vm1065_vm5, %v5286_v25 }
 0x5fb   : > { %v5288_v12 = vpop.permute.xlu1 %5287 }
 0x5fc   : > { %5362 = vst.msk [vmem:[#allocation3 + $0x1f8] sm:$0xff] %vm1065_vm5, %v5288_v12  ;;  %v5538_v56 = vpop.permute.xlu0 %5537  ;;  %v6138_v39 = vld [vmem:[#allocation3 + $0x1e8] sm:$0xff] }
 0x5fd   : > { %5615 = vst.msk [vmem:[#allocation3 + $0x1b8] sm:$0xff] %vm679_vm3, %v5538_v56 }
 0x5ff   : > { %v5540_v60 = vpop.permute.xlu1 %5539  ;;  %v6141_v57 = vld [vmem:[#allocation3 + $0x200] sm:$0xff] }
 0x600   : > { %5616 = vst.msk [vmem:[#allocation3 + $0x1d0] sm:$0xff] %vm679_vm3, %v5540_v60  ;;  %v4898_v3 = vpop.permute.xlu0 %4897  ;;  %v6204_v14 = vpack.c.bf16 %v6141_v57, %v6138_v39  ;;  %v6137_v21 = vld [vmem:[#allocation3 + $0x1e0] sm:$0xff] }
 0x601   : > { %4975 = vst.msk [vmem:[#allocation3 + $0x1b0] sm:$0xff] %vm679_vm3, %v4898_v3 }
 0x602   : > { %6316 = vmatprep.subr.bf16.mxu1 %v6204_v14 }
 0x603   : > { %v4900_v0 = vpop.permute.xlu1 %4899  ;;  %v6140_v31 = vld [vmem:[#allocation3 + $0x1f8] sm:$0xff] }
 0x604   : > { %4976 = vst.msk [vmem:[#allocation3 + $0x1c8] sm:$0xff] %vm679_vm3, %v4900_v0  ;;  %v5730_v11 = vpop.permute.xlu0 %5729  ;;  %v6203_v54 = vpack.c.bf16 %v6140_v31, %v6137_v21 }
 0x605   : > { %5807 = vst.msk [vmem:[#allocation3 + $0x1b8] sm:$0xff] %vm872_vm4, %v5730_v11 }
 0x606   : > { %6317 = vmatpush2.bf16.xpose.msra.mxu1 %v6203_v54 }
 0x607   : > { %v5732_v15 = vpop.permute.xlu1 %5731 }
 0x608   : > { %5808 = vst.msk [vmem:[#allocation3 + $0x1d0] sm:$0xff] %vm872_vm4, %v5732_v15  ;;  %v5090_v53 = vpop.permute.xlu0 %5089 }
 0x609   : > { %5167 = vst.msk [vmem:[#allocation3 + $0x1b0] sm:$0xff] %vm872_vm4, %v5090_v53 }
 0x60b   : > { %v5092_v7 = vpop.permute.xlu1 %5091 }
 0x60c   : > { %5168 = vst.msk [vmem:[#allocation3 + $0x1c8] sm:$0xff] %vm872_vm4, %v5092_v7  ;;  %v5922_v47 = vpop.permute.xlu0 %5921 }
 0x60d   : > { %5999 = vst.msk [vmem:[#allocation3 + $0x1b8] sm:$0xff] %vm1065_vm5, %v5922_v47 }
 0x60f   : > { %v5924_v40 = vpop.permute.xlu1 %5923 }
 0x610   : > { %6000 = vst.msk [vmem:[#allocation3 + $0x1d0] sm:$0xff] %vm1065_vm5, %v5924_v40  ;;  %v5282_v58 = vpop.permute.xlu0 %5281 }
 0x611   : > { %5359 = vst.msk [vmem:[#allocation3 + $0x1b0] sm:$0xff] %vm1065_vm5, %v5282_v58 }
 0x613   : > { %v5284_v45 = vpop.permute.xlu1 %5283 }
 0x614   : > { %5360 = vst.msk [vmem:[#allocation3 + $0x1c8] sm:$0xff] %vm1065_vm5, %v5284_v45  ;;  %v5534_v63 = vpop.permute.xlu0 %5533  ;;  %v6132_v48 = vld [vmem:[#allocation3 + $0x1b8] sm:$0xff] }
 0x615   : > { %5613 = vst.msk [vmem:[#allocation3 + $0x188] sm:$0xff] %vm679_vm3, %v5534_v63 }
 0x617   : > { %v5536_v18 = vpop.permute.xlu1 %5535  ;;  %v6135_v5 = vld [vmem:[#allocation3 + $0x1d0] sm:$0xff] }
 0x618   : > { %5614 = vst.msk [vmem:[#allocation3 + $0x1a0] sm:$0xff] %vm679_vm3, %v5536_v18  ;;  %v4894_v13 = vpop.permute.xlu0 %4893  ;;  %v6201_v34 = vpack.c.bf16 %v6135_v5, %v6132_v48  ;;  %v6131_v8 = vld [vmem:[#allocation3 + $0x1b0] sm:$0xff] }
 0x619   : > { %4973 = vst.msk [vmem:[#allocation3 + $0x180] sm:$0xff] %vm679_vm3, %v4894_v13 }
 0x61a   : > { %6318 = vmatprep.subr.bf16.mxu1 %v6201_v34 }
 0x61b   : > { %v4896_v35 = vpop.permute.xlu1 %4895  ;;  %v6134_v17 = vld [vmem:[#allocation3 + $0x1c8] sm:$0xff] }
 0x61c   : > { %4974 = vst.msk [vmem:[#allocation3 + $0x198] sm:$0xff] %vm679_vm3, %v4896_v35  ;;  %v5726_v19 = vpop.permute.xlu0 %5725  ;;  %v6200_v23 = vpack.c.bf16 %v6134_v17, %v6131_v8 }
 0x61d   : > { %5805 = vst.msk [vmem:[#allocation3 + $0x188] sm:$0xff] %vm872_vm4, %v5726_v19 }
 0x61e   : > { %6319 = vmatpush2.bf16.xpose.msra.mxu1 %v6200_v23 }
 0x61f   : > { %v5728_v41 = vpop.permute.xlu1 %5727 }
 0x620   : > { %5806 = vst.msk [vmem:[#allocation3 + $0x1a0] sm:$0xff] %vm872_vm4, %v5728_v41  ;;  %v5086_v6 = vpop.permute.xlu0 %5085 }
 0x621   : > { %5165 = vst.msk [vmem:[#allocation3 + $0x180] sm:$0xff] %vm872_vm4, %v5086_v6 }
 0x623   : > { %v5088_v22 = vpop.permute.xlu1 %5087 }
 0x624   : > { %5166 = vst.msk [vmem:[#allocation3 + $0x198] sm:$0xff] %vm872_vm4, %v5088_v22  ;;  %v5918_v16 = vpop.permute.xlu0 %5917 }
 0x625   : > { %5997 = vst.msk [vmem:[#allocation3 + $0x188] sm:$0xff] %vm1065_vm5, %v5918_v16 }
 0x627   : > { %v5920_v52 = vpop.permute.xlu1 %5919 }
 0x628   : > { %5998 = vst.msk [vmem:[#allocation3 + $0x1a0] sm:$0xff] %vm1065_vm5, %v5920_v52  ;;  %v5278_v28 = vpop.permute.xlu0 %5277 }
 0x629   : > { %5357 = vst.msk [vmem:[#allocation3 + $0x180] sm:$0xff] %vm1065_vm5, %v5278_v28 }
 0x62b   : > { %v5280_v32 = vpop.permute.xlu1 %5279 }
 0x62c   : > { %5358 = vst.msk [vmem:[#allocation3 + $0x198] sm:$0xff] %vm1065_vm5, %v5280_v32  ;;  %v6126_v1 = vld [vmem:[#allocation3 + $0x188] sm:$0xff] }
 0x62f   : > { %v6129_v9 = vld [vmem:[#allocation3 + $0x1a0] sm:$0xff] }
 0x630   : > { %v6198_v49 = vpack.c.bf16 %v6129_v9, %v6126_v1  ;;  %v6125_v38 = vld [vmem:[#allocation3 + $0x180] sm:$0xff] }
 0x632   : > { %6320 = vmatprep.subr.bf16.mxu1 %v6198_v49 }
 0x633   : > { %v6128_v20 = vld [vmem:[#allocation3 + $0x198] sm:$0xff] }
 0x634   : > { %v6197_v61 = vpack.c.bf16 %v6128_v20, %v6125_v38 }
 0x635   : > { %v6227_v29 = vpop.permute.xlu0 %6226 }
 0x636   : > { %6321 = vmatpush2.bf16.xpose.msra.mxu1 %v6197_v61 }
 0x63d   : > { %6323 = vmatmul.mubr.bf16.vlgmr.msra.gmra.mxu1 %v6536_v37 }
 0x66f   : > { %v6365_v26 = vpop.f32.mrf.mxu0 }
 0x671   : > { %v6367_v4 = vpop.f32.mrf.mxu0 }
 0x673   : > { %v6369_v2 = vpop.f32.mrf.mxu0 }
 0x675   : > { %v6370_v24 = vpop.f32.mrf.mxu0 }
 0x6fd   : > { %v6324_v44 = vpop.f32.mrf.mxu1 }
 0x6fe   : > { %v6325_v50 = vadd.f32 %v6324_v44, %v6227_v29 }
 0x6ff   : > { %v6326_v27 = vpop.f32.mrf.mxu1 }
 0x700   : > { %v6366_v55 = vadd.f32 %v6365_v26, %v6325_v50  ;;  %v6327_v62 = vadd.f32 %v6326_v27, %v6227_v29 }
 0x701   : > { %v6328_v10 = vpop.f32.mrf.mxu1 }
 0x702   : > { %vm6372_vm0 = vcmp.gt.f32.partialorder %v6366_v55, 0.0  ;;  %v6374_v43 = vmul.f32 0.01, %v6366_v55  ;;  %v6368_v36 = vadd.f32 %v6367_v4, %v6327_v62 }
 0x703   : > { %v6329_v59 = vpop.f32.mrf.mxu1 }
 0x704   : > { %v6376_v51 = vsel %vm6372_vm0, %v6366_v55, %v6374_v43  ;;  %vm6373_vm3 = vcmp.gt.f32.partialorder %v6368_v36, 0.0  ;;  %v6375_v46 = vmul.f32 0.01, %v6368_v36 }
 0x705   : > { %v6380_v33 = vrot.slane %v6376_v51, 4 }
 0x706   : > { %v6377_v25 = vsel %vm6373_vm3, %v6368_v36, %v6375_v46 }
 0x707   : > { %6384 = vst [vmem:[%s10217_s19 + $0x10] ss:$-12 sps:$4 sm:$0xff] %v6380_v33   ;;  %v6381_v12 = vrot.slane %v6377_v25, 4 }
 0x709   : > { %6385 = vst [vmem:[%s10217_s19 + $0x18] ss:$-12 sps:$4 sm:$0xff] %v6381_v12  }
 0x70a PF: > { %s18_s27 = sadd.s32 1, %s6965_s27  }
 0x70b   : > { %p15_p4 = scmp.ge.s32.totalorder %s18_s27, 4  }
 0x70d   :  { %17 = sbr.rel (!%p15_p4) target bundleno = 1 (0x1), region = 87 }

</bundles_post_ra>
